<compile_context>
chip_gen: v5e
topology: v5e:2x2
jax: 0.10.0
libtpu: 0.0.40
codegen_flags: <defaults>
</compile_context>

<pallas_src>
import jax
import jax.numpy as jnp
from jax import lax
from jax.experimental import pallas as pl
from jax.experimental.pallas import tpu as pltpu

N_EMBD = 64
BLOCK_SIZE = 32
NUM_HEADS = 4
HEAD_SIZE = N_EMBD // NUM_HEADS
LN_EPS = 1e-5
NEG_BIG = -1e9


def _layernorm(x, w, b):
    mean = jnp.mean(x, axis=-1, keepdims=True)
    var = jnp.mean(jnp.square(x - mean), axis=-1, keepdims=True)
    return (x - mean) * lax.rsqrt(var + LN_EPS) * w + b


def block_kernel(x_ref, ln1w_ref, ln1b_ref, wqkv_ref,
                 ln2w_ref, ln2b_ref, w1_ref, b1_ref, w2_ref, b2_ref, o_ref):
    bt, n, d = x_ref.shape
    hn = NUM_HEADS * n                        # packed score lanes (4*32 = 128)
    # power-of-two sizes -> head/group indices via shifts & masks (always lowers)
    log2_n = n.bit_length() - 1
    log2_hs = HEAD_SIZE.bit_length() - 1
    assert (1 << log2_n) == n and (1 << log2_hs) == HEAD_SIZE

    x3 = x_ref[...]                           # (BT, N, D) f32
    xf = x3.reshape(bt * n, d)                # fold batch+seq -> tall MXU slab

    # ---------------- LN1 + fused QKV projection ----------------
    # wqkv already carries the n_embd**-0.5 scale folded into its Q columns.
    h1 = _layernorm(xf, ln1w_ref[0], ln1b_ref[0])
    qkv = jnp.dot(h1.astype(jnp.bfloat16), wqkv_ref[...],
                  preferred_element_type=jnp.float32)           # (R, 3D) f32
    q3 = qkv[:, 0 * d:1 * d].reshape(bt, n, d)
    k3 = qkv[:, 1 * d:2 * d].reshape(bt, n, d)
    v3 = qkv[:, 2 * d:3 * d].reshape(bt, n, d)

    # ---------------- head packing masks ----------------
    # head_mask[j, f] = 1 iff packed row j (head j // N) and feature f
    # (head f // HEAD_SIZE) belong to the same head.
    jgrp = jnp.right_shift(lax.broadcasted_iota(jnp.int32, (hn, d), 0), log2_n)
    fgrp = jnp.right_shift(lax.broadcasted_iota(jnp.int32, (hn, d), 1), log2_hs)
    head_mask = (jgrp == fgrp).astype(jnp.float32)              # (hn, d)
    head_mask_b = head_mask.astype(jnp.bfloat16)

    # causal bias over packed columns: key position = j mod N
    qpos = lax.broadcasted_iota(jnp.int32, (n, hn), 0)
    kpos = jnp.bitwise_and(lax.broadcasted_iota(jnp.int32, (n, hn), 1), n - 1)
    causal_bias = jnp.where(qpos >= kpos, 0.0, NEG_BIG).astype(jnp.float32)

    # Head-block-masked K / V:
    #   Q (R,64) . Kx (hn,64)^T -> (R,128) = per-head scores packed along lanes
    #   P (R,128) . Vx (hn,64)  -> (R,64)  = concatenated head outputs directly
    k_rep = jnp.concatenate([k3] * NUM_HEADS, axis=1)           # (BT, hn, D)
    v_rep = jnp.concatenate([v3] * NUM_HEADS, axis=1)
    kx = (k_rep * head_mask[None]).astype(jnp.bfloat16)
    vx = (v_rep * head_mask[None]).astype(jnp.bfloat16)
    qb = q3.astype(jnp.bfloat16)

    wei = jnp.einsum("bnf,bjf->bnj", qb, kx,
                     preferred_element_type=jnp.float32)        # (BT, N, hn)
    wei = wei + causal_bias[None]
    # Global row max: per-head softmax is shift-invariant under a shared shift,
    # and the score magnitudes here make underflow a non-issue.
    wei = wei - jnp.max(wei, axis=-1, keepdims=True)
    p = jnp.exp(wei)
    pb = p.astype(jnp.bfloat16)
    pflat = pb.reshape(bt * n, hn)

    # per-head softmax denominators, broadcast onto each head's 16 feature
    # columns via a tiny matmul against head_mask
    denom = jnp.dot(pflat, head_mask_b,
                    preferred_element_type=jnp.float32)         # (R, D)
    outs = jnp.einsum("bnj,bjf->bnf", pb, vx,
                      preferred_element_type=jnp.float32)       # (BT, N, D)
    attn = outs.reshape(bt * n, d) * pl.reciprocal(denom, approx=True)
    # TODO(synk): dropout (p=0.2) on attention weights / FFN output omitted —
    # nn.Dropout is identity in eval mode.

    x1 = xf + attn

    # ------------------------- LN2 + FFN -----------------------------
    h2 = _layernorm(x1, ln2w_ref[0], ln2b_ref[0])
    ff = jnp.dot(h2.astype(jnp.bfloat16), w1_ref[...],
                 preferred_element_type=jnp.float32) + b1_ref[0]
    ff = jnp.maximum(ff, 0.0)
    ff = jnp.dot(ff.astype(jnp.bfloat16), w2_ref[...],
                 preferred_element_type=jnp.float32) + b2_ref[0]

    o_ref[...] = (x1 + ff).reshape(bt, n, d)


def prepare_params(params):
    """One-time parameter prep (hoisted out of the per-call path): fuse
    Wq/Wk/Wv into one (D, 3D) weight with the n_embd**-0.5 attention scale
    folded into the Q columns, and cast big matmul weights to bfloat16."""
    ln1w, ln1b, wq, wk, wv, ln2w, ln2b, w1, b1, w2, b2 = params
    D = wq.shape[0]
    wqkv = jnp.concatenate([wq * (jnp.float32(D) ** -0.5), wk, wv], axis=1)
    return (ln1w, ln1b, wqkv.astype(jnp.bfloat16), ln2w, ln2b,
            w1.astype(jnp.bfloat16), b1, w2.astype(jnp.bfloat16), b2)


def block_forward(x, prepared_params, batch_tile=None):
    ln1w, ln1b, wqkv, ln2w, ln2b, w1, b1, w2, b2 = prepared_params
    B, N, D = x.shape
    H4 = w1.shape[1]

    # Default: whole batch in ONE grid step — this kernel is overhead-bound
    # (~24 MFLOP, <1 MiB working set), so extra grid steps only add per-step
    # pipeline overhead.  batch_tile can be set (e.g. B//2) to split work on
    # dual-TensorCore parts; benchmark before doing so on single-TC v5e/v6e.
    BT = B if batch_tile is None else batch_tile
    assert B % BT == 0, "batch must be divisible by batch_tile"

    def full(shape):
        return pl.BlockSpec(shape, lambda b, _s=shape: (0,) * len(_s))

    in_specs = [
        pl.BlockSpec((BT, N, D), lambda b: (b, 0, 0)),    # x
        full((1, D)), full((1, D)),                       # ln1 w, b
        full((D, 3 * D)),                                 # fused Wqkv (bf16)
        full((1, D)), full((1, D)),                       # ln2 w, b
        full((D, H4)), full((1, H4)),                     # W1 (bf16), b1
        full((H4, D)), full((1, D)),                      # W2 (bf16), b2
    ]

    return pl.pallas_call(
        block_kernel,
        out_shape=jax.ShapeDtypeStruct((B, N, D), jnp.float32),
        grid_spec=pltpu.PrefetchScalarGridSpec(
            num_scalar_prefetch=0,
            grid=(B // BT,),
            in_specs=in_specs,
            out_specs=pl.BlockSpec((BT, N, D), lambda b: (b, 0, 0)),
        ),
        compiler_params=pltpu.CompilerParams(dimension_semantics=("parallel",)),
    )(x, ln1w, ln1b, wqkv, ln2w, ln2b, w1, b1, w2, b2)


def init_params(key, n_embd=N_EMBD):
    """Deterministic synthetic parameters (shapes match the torch module)."""
    ks = jax.random.split(key, 6)
    std = 0.02
    ln1w = jnp.ones((1, n_embd), jnp.float32)
    ln1b = jnp.zeros((1, n_embd), jnp.float32)
    wq = (jax.random.normal(ks[0], (n_embd, n_embd)) * std).astype(jnp.float32)
    wk = (jax.random.normal(ks[1], (n_embd, n_embd)) * std).astype(jnp.float32)
    wv = (jax.random.normal(ks[2], (n_embd, n_embd)) * std).astype(jnp.float32)
    ln2w = jnp.ones((1, n_embd), jnp.float32)
    ln2b = jnp.zeros((1, n_embd), jnp.float32)
    w1 = (jax.random.normal(ks[3], (n_embd, 4 * n_embd)) * std).astype(jnp.float32)
    b1 = (jax.random.normal(ks[4], (1, 4 * n_embd)) * std).astype(jnp.float32)
    w2 = (jax.random.normal(ks[5], (4 * n_embd, n_embd)) * std).astype(jnp.float32)
    b2 = jnp.zeros((1, n_embd), jnp.float32)
    return (ln1w, ln1b, wq, wk, wv, ln2w, ln2b, w1, b1, w2, b2)


def block_reference(x, params):
    """Pure-JAX f32 reference mirroring the PyTorch forward (eval mode)."""
    ln1w, ln1b, wq, wk, wv, ln2w, ln2b, w1, b1, w2, b2 = params
    B, N, D = x.shape
    h = _layernorm(x, ln1w[0], ln1b[0])
    q = h @ wq
    k = h @ wk
    v = h @ wv
    causal = jnp.tril(jnp.ones((N, N), bool))
    outs = []
    for head in range(NUM_HEADS):
        s = slice(head * HEAD_SIZE, (head + 1) * HEAD_SIZE)
        wei = jnp.einsum("bnd,bmd->bnm", q[..., s], k[..., s]) * (D ** -0.5)
        wei = jnp.where(causal, wei, -jnp.inf)
        wei = jax.nn.softmax(wei, axis=-1)
        outs.append(jnp.einsum("bnm,bmd->bnd", wei, v[..., s]))
    x1 = x + jnp.concatenate(outs, axis=-1)
    h2 = _layernorm(x1, ln2w[0], ln2b[0])
    ff = jnp.maximum(h2 @ w1 + b1[0], 0.0) @ w2 + b2[0]
    return x1 + ff


if __name__ == "__main__":
    key = jax.random.PRNGKey(0)
    kx, kp = jax.random.split(key)
    B, N, D = 8, BLOCK_SIZE, N_EMBD          # (8, 32, 64) -> grid=(1,), R=256
    x = jax.random.normal(kx, (B, N, D), jnp.float32)
    params = init_params(kp)
    prepared = prepare_params(params)        # one-time fused/bf16 weights

    out = jax.block_until_ready(block_forward(x, prepared))

    ref = block_reference(x, params)
    assert out.shape == (B, N, D) and out.dtype == jnp.float32
    # bf16 MXU operands + approx reciprocal -> looser tolerance vs f32 reference
    assert jnp.allclose(out, ref, rtol=1e-2, atol=1e-2), "mismatch vs reference"
    print("KERNEL_OK")
</pallas_src>

<mosaic_0001>
module attributes {stable_mosaic.version = 11 : i64} {
  func.func @block_kernel(%arg0: i32, %arg1: memref<8x32x64xf32, #tpu.memory_space<vmem>>, %arg2: memref<1x64xf32, #tpu.memory_space<vmem>>, %arg3: memref<1x64xf32, #tpu.memory_space<vmem>>, %arg4: memref<64x192xbf16, #tpu.memory_space<vmem>>, %arg5: memref<1x64xf32, #tpu.memory_space<vmem>>, %arg6: memref<1x64xf32, #tpu.memory_space<vmem>>, %arg7: memref<64x256xbf16, #tpu.memory_space<vmem>>, %arg8: memref<1x256xf32, #tpu.memory_space<vmem>>, %arg9: memref<256x64xbf16, #tpu.memory_space<vmem>>, %arg10: memref<1x64xf32, #tpu.memory_space<vmem>>, %arg11: memref<8x32x64xf32, #tpu.memory_space<vmem>>) attributes {dimension_semantics = [#tpu.dimension_semantics<parallel>], iteration_bounds = array<i64: 1>, scalar_prefetch = 0 : i64, scratch_operands = 0 : i64, tpu.core_type = #tpu.core_type<tc>, window_params = [{transform_indices = @transform_0, window_bounds = array<i64: 8, 32, 64>}, {pipeline_mode = #tpu.pipeline_mode<synchronous>, transform_indices = @transform_1, window_bounds = array<i64: 1, 64>}, {pipeline_mode = #tpu.pipeline_mode<synchronous>, transform_indices = @transform_2, window_bounds = array<i64: 1, 64>}, {pipeline_mode = #tpu.pipeline_mode<synchronous>, transform_indices = @transform_3, window_bounds = array<i64: 64, 192>}, {pipeline_mode = #tpu.pipeline_mode<synchronous>, transform_indices = @transform_4, window_bounds = array<i64: 1, 64>}, {pipeline_mode = #tpu.pipeline_mode<synchronous>, transform_indices = @transform_5, window_bounds = array<i64: 1, 64>}, {pipeline_mode = #tpu.pipeline_mode<synchronous>, transform_indices = @transform_6, window_bounds = array<i64: 64, 256>}, {pipeline_mode = #tpu.pipeline_mode<synchronous>, transform_indices = @transform_7, window_bounds = array<i64: 1, 256>}, {pipeline_mode = #tpu.pipeline_mode<synchronous>, transform_indices = @transform_8, window_bounds = array<i64: 256, 64>}, {pipeline_mode = #tpu.pipeline_mode<synchronous>, transform_indices = @transform_9, window_bounds = array<i64: 1, 64>}, {transform_indices = @transform_10, window_bounds = array<i64: 8, 32, 64>}]} {
    %c0 = arith.constant 0 : index
    %c0_0 = arith.constant 0 : index
    %c0_1 = arith.constant 0 : index
    %0 = vector.load %arg1[%c0, %c0_0, %c0_1] : memref<8x32x64xf32, #tpu.memory_space<vmem>>, vector<8x32x64xf32>
    %1 = vector.shape_cast %0 : vector<8x32x64xf32> to vector<256x64xf32>
    %c0_2 = arith.constant 0 : index
    %c0_3 = arith.constant 0 : index
    %2 = vector.load %arg2[%c0_2, %c0_3] : memref<1x64xf32, #tpu.memory_space<vmem>>, vector<1x64xf32>
    %3 = vector.shape_cast %2 : vector<1x64xf32> to vector<64xf32>
    %c0_4 = arith.constant 0 : index
    %c0_5 = arith.constant 0 : index
    %4 = vector.load %arg3[%c0_4, %c0_5] : memref<1x64xf32, #tpu.memory_space<vmem>>, vector<1x64xf32>
    %5 = vector.shape_cast %4 : vector<1x64xf32> to vector<64xf32>
    %cst = arith.constant dense<0.000000e+00> : vector<256xf32>
    %6 = vector.multi_reduction <add>, %1, %cst [1] : vector<256x64xf32> to vector<256xf32>
    %7 = vector.shape_cast %6 : vector<256xf32> to vector<256x1xf32>
    %cst_6 = arith.constant 6.400000e+01 : f32
    %8 = vector.broadcast %cst_6 : f32 to vector<256x1xf32>
    %9 = arith.divf %7, %8 : vector<256x1xf32>
    %10 = vector.broadcast %9 : vector<256x1xf32> to vector<256x64xf32>
    %11 = arith.subf %1, %10 : vector<256x64xf32>
    %12 = arith.mulf %11, %11 : vector<256x64xf32>
    %cst_7 = arith.constant dense<0.000000e+00> : vector<256xf32>
    %13 = vector.multi_reduction <add>, %12, %cst_7 [1] : vector<256x64xf32> to vector<256xf32>
    %14 = vector.shape_cast %13 : vector<256xf32> to vector<256x1xf32>
    %cst_8 = arith.constant 6.400000e+01 : f32
    %15 = vector.broadcast %cst_8 : f32 to vector<256x1xf32>
    %16 = arith.divf %14, %15 : vector<256x1xf32>
    %17 = vector.broadcast %9 : vector<256x1xf32> to vector<256x64xf32>
    %18 = arith.subf %1, %17 : vector<256x64xf32>
    %cst_9 = arith.constant 9.99999974E-6 : f32
    %19 = vector.broadcast %cst_9 : f32 to vector<256x1xf32>
    %20 = arith.addf %16, %19 : vector<256x1xf32>
    %21 = math.rsqrt %20 : vector<256x1xf32>
    %22 = vector.broadcast %21 : vector<256x1xf32> to vector<256x64xf32>
    %23 = arith.mulf %18, %22 : vector<256x64xf32>
    %24 = vector.shape_cast %3 : vector<64xf32> to vector<1x64xf32>
    %25 = vector.broadcast %24 : vector<1x64xf32> to vector<256x64xf32>
    %26 = arith.mulf %23, %25 : vector<256x64xf32>
    %27 = vector.shape_cast %5 : vector<64xf32> to vector<1x64xf32>
    %28 = vector.broadcast %27 : vector<1x64xf32> to vector<256x64xf32>
    %29 = arith.addf %26, %28 : vector<256x64xf32>
    %30 = arith.truncf %29 : vector<256x64xf32> to vector<256x64xbf16>
    %c0_10 = arith.constant 0 : index
    %c0_11 = arith.constant 0 : index
    %31 = vector.load %arg4[%c0_10, %c0_11] : memref<64x192xbf16, #tpu.memory_space<vmem>>, vector<64x192xbf16>
    %cst_12 = arith.constant dense<0.000000e+00> : vector<256x192xf32>
    %32 = tpu.matmul %30, %31, %cst_12 {dimension_numbers = #tpu.dot_dimension_numbers<[1], [0], [0], [1], [0, 0, 1, 1], [], []>} : vector<256x64xbf16>, vector<64x192xbf16>, vector<256x192xf32> -> vector<256x192xf32>
    %33 = vector.extract_strided_slice %32 {offsets = [0, 0], sizes = [256, 64], strides = [1, 1]} : vector<256x192xf32> to vector<256x64xf32>
    %34 = vector.shape_cast %33 : vector<256x64xf32> to vector<8x32x64xf32>
    %35 = vector.extract_strided_slice %32 {offsets = [0, 64], sizes = [256, 64], strides = [1, 1]} : vector<256x192xf32> to vector<256x64xf32>
    %36 = vector.shape_cast %35 : vector<256x64xf32> to vector<8x32x64xf32>
    %37 = vector.extract_strided_slice %32 {offsets = [0, 128], sizes = [256, 64], strides = [1, 1]} : vector<256x192xf32> to vector<256x64xf32>
    %38 = vector.shape_cast %37 : vector<256x64xf32> to vector<8x32x64xf32>
    %39 = tpu.iota {dimensions = array<i32: 0>} : vector<128x64xi32>
    %c5_i32 = arith.constant 5 : i32
    %40 = vector.broadcast %c5_i32 : i32 to vector<128x64xi32>
    %41 = arith.shrsi %39, %40 : vector<128x64xi32>
    %42 = tpu.iota {dimensions = array<i32: 1>} : vector<128x64xi32>
    %c4_i32 = arith.constant 4 : i32
    %43 = vector.broadcast %c4_i32 : i32 to vector<128x64xi32>
    %44 = arith.shrsi %42, %43 : vector<128x64xi32>
    %45 = arith.cmpi eq, %41, %44 : vector<128x64xi32>
    %46 = arith.extui %45 : vector<128x64xi1> to vector<128x64xi32>
    %47 = arith.sitofp %46 : vector<128x64xi32> to vector<128x64xf32>
    %48 = arith.truncf %47 : vector<128x64xf32> to vector<128x64xbf16>
    %49 = tpu.iota {dimensions = array<i32: 0>} : vector<32x128xi32>
    %50 = tpu.iota {dimensions = array<i32: 1>} : vector<32x128xi32>
    %c31_i32 = arith.constant 31 : i32
    %51 = vector.broadcast %c31_i32 : i32 to vector<32x128xi32>
    %52 = arith.andi %50, %51 : vector<32x128xi32>
    %53 = arith.cmpi sge, %49, %52 : vector<32x128xi32>
    %cst_13 = arith.constant 0.000000e+00 : f32
    %cst_14 = arith.constant -1.000000e+09 : f32
    %54 = vector.broadcast %cst_13 : f32 to vector<32x128xf32>
    %55 = vector.broadcast %cst_14 : f32 to vector<32x128xf32>
    %56 = arith.select %53, %54, %55 : vector<32x128xi1>, vector<32x128xf32>
    %57 = tpu.concatenate %36, %36, %36, %36 in 1 : vector<8x32x64xf32>, vector<8x32x64xf32>, vector<8x32x64xf32>, vector<8x32x64xf32> -> vector<8x128x64xf32>
    %58 = tpu.concatenate %38, %38, %38, %38 in 1 : vector<8x32x64xf32>, vector<8x32x64xf32>, vector<8x32x64xf32>, vector<8x32x64xf32> -> vector<8x128x64xf32>
    %59 = vector.shape_cast %47 : vector<128x64xf32> to vector<1x128x64xf32>
    %60 = vector.broadcast %59 : vector<1x128x64xf32> to vector<8x128x64xf32>
    %61 = arith.mulf %57, %60 : vector<8x128x64xf32>
    %62 = arith.truncf %61 : vector<8x128x64xf32> to vector<8x128x64xbf16>
    %63 = vector.shape_cast %47 : vector<128x64xf32> to vector<1x128x64xf32>
    %64 = vector.broadcast %63 : vector<1x128x64xf32> to vector<8x128x64xf32>
    %65 = arith.mulf %58, %64 : vector<8x128x64xf32>
    %66 = arith.truncf %65 : vector<8x128x64xf32> to vector<8x128x64xbf16>
    %67 = arith.truncf %34 : vector<8x32x64xf32> to vector<8x32x64xbf16>
    "tpu.trace_start"() <{level = 10 : i32, message = "bnf,bjf->bnj"}> : () -> ()
    %cst_15 = arith.constant dense<0.000000e+00> : vector<8x32x128xf32>
    %68 = tpu.matmul %67, %62, %cst_15 {dimension_numbers = #tpu.dot_dimension_numbers<[2], [2], [1], [1], [0, 0, 0, 1, 1, 1], [0], [0]>} : vector<8x32x64xbf16>, vector<8x128x64xbf16>, vector<8x32x128xf32> -> vector<8x32x128xf32>
    "tpu.trace_stop"() : () -> ()
    %69 = vector.shape_cast %56 : vector<32x128xf32> to vector<1x32x128xf32>
    %70 = vector.broadcast %69 : vector<1x32x128xf32> to vector<8x32x128xf32>
    %71 = arith.addf %68, %70 : vector<8x32x128xf32>
    %cst_16 = arith.constant dense<0xFF800000> : vector<8x32xf32>
    %72 = vector.multi_reduction <maximumf>, %71, %cst_16 [2] : vector<8x32x128xf32> to vector<8x32xf32>
    %73 = vector.shape_cast %72 : vector<8x32xf32> to vector<8x32x1xf32>
    %74 = vector.broadcast %73 : vector<8x32x1xf32> to vector<8x32x128xf32>
    %75 = arith.subf %71, %74 : vector<8x32x128xf32>
    %76 = math.exp %75 : vector<8x32x128xf32>
    %77 = arith.truncf %76 : vector<8x32x128xf32> to vector<8x32x128xbf16>
    %78 = vector.shape_cast %77 : vector<8x32x128xbf16> to vector<256x128xbf16>
    %cst_17 = arith.constant dense<0.000000e+00> : vector<256x64xf32>
    %79 = tpu.matmul %78, %48, %cst_17 {dimension_numbers = #tpu.dot_dimension_numbers<[1], [0], [0], [1], [0, 0, 1, 1], [], []>} : vector<256x128xbf16>, vector<128x64xbf16>, vector<256x64xf32> -> vector<256x64xf32>
    "tpu.trace_start"() <{level = 10 : i32, message = "bnj,bjf->bnf"}> : () -> ()
    %cst_18 = arith.constant dense<0.000000e+00> : vector<8x32x64xf32>
    %80 = tpu.matmul %77, %66, %cst_18 {dimension_numbers = #tpu.dot_dimension_numbers<[2], [1], [1], [2], [0, 0, 0, 1, 1, 2], [0], [0]>} : vector<8x32x128xbf16>, vector<8x128x64xbf16>, vector<8x32x64xf32> -> vector<8x32x64xf32>
    "tpu.trace_stop"() : () -> ()
    %81 = vector.shape_cast %80 : vector<8x32x64xf32> to vector<256x64xf32>
    %82 = tpu.reciprocal %79 {approx = true} : vector<256x64xf32> -> vector<256x64xf32>
    %83 = arith.mulf %81, %82 : vector<256x64xf32>
    %84 = arith.addf %1, %83 : vector<256x64xf32>
    %c0_19 = arith.constant 0 : index
    %c0_20 = arith.constant 0 : index
    %85 = vector.load %arg5[%c0_19, %c0_20] : memref<1x64xf32, #tpu.memory_space<vmem>>, vector<1x64xf32>
    %86 = vector.shape_cast %85 : vector<1x64xf32> to vector<64xf32>
    %c0_21 = arith.constant 0 : index
    %c0_22 = arith.constant 0 : index
    %87 = vector.load %arg6[%c0_21, %c0_22] : memref<1x64xf32, #tpu.memory_space<vmem>>, vector<1x64xf32>
    %88 = vector.shape_cast %87 : vector<1x64xf32> to vector<64xf32>
    %cst_23 = arith.constant dense<0.000000e+00> : vector<256xf32>
    %89 = vector.multi_reduction <add>, %84, %cst_23 [1] : vector<256x64xf32> to vector<256xf32>
    %90 = vector.shape_cast %89 : vector<256xf32> to vector<256x1xf32>
    %cst_24 = arith.constant 6.400000e+01 : f32
    %91 = vector.broadcast %cst_24 : f32 to vector<256x1xf32>
    %92 = arith.divf %90, %91 : vector<256x1xf32>
    %93 = vector.broadcast %92 : vector<256x1xf32> to vector<256x64xf32>
    %94 = arith.subf %84, %93 : vector<256x64xf32>
    %95 = arith.mulf %94, %94 : vector<256x64xf32>
    %cst_25 = arith.constant dense<0.000000e+00> : vector<256xf32>
    %96 = vector.multi_reduction <add>, %95, %cst_25 [1] : vector<256x64xf32> to vector<256xf32>
    %97 = vector.shape_cast %96 : vector<256xf32> to vector<256x1xf32>
    %cst_26 = arith.constant 6.400000e+01 : f32
    %98 = vector.broadcast %cst_26 : f32 to vector<256x1xf32>
    %99 = arith.divf %97, %98 : vector<256x1xf32>
    %100 = vector.broadcast %92 : vector<256x1xf32> to vector<256x64xf32>
    %101 = arith.subf %84, %100 : vector<256x64xf32>
    %cst_27 = arith.constant 9.99999974E-6 : f32
    %102 = vector.broadcast %cst_27 : f32 to vector<256x1xf32>
    %103 = arith.addf %99, %102 : vector<256x1xf32>
    %104 = math.rsqrt %103 : vector<256x1xf32>
    %105 = vector.broadcast %104 : vector<256x1xf32> to vector<256x64xf32>
    %106 = arith.mulf %101, %105 : vector<256x64xf32>
    %107 = vector.shape_cast %86 : vector<64xf32> to vector<1x64xf32>
    %108 = vector.broadcast %107 : vector<1x64xf32> to vector<256x64xf32>
    %109 = arith.mulf %106, %108 : vector<256x64xf32>
    %110 = vector.shape_cast %88 : vector<64xf32> to vector<1x64xf32>
    %111 = vector.broadcast %110 : vector<1x64xf32> to vector<256x64xf32>
    %112 = arith.addf %109, %111 : vector<256x64xf32>
    %113 = arith.truncf %112 : vector<256x64xf32> to vector<256x64xbf16>
    %c0_28 = arith.constant 0 : index
    %c0_29 = arith.constant 0 : index
    %114 = vector.load %arg7[%c0_28, %c0_29] : memref<64x256xbf16, #tpu.memory_space<vmem>>, vector<64x256xbf16>
    %cst_30 = arith.constant dense<0.000000e+00> : vector<256x256xf32>
    %115 = tpu.matmul %113, %114, %cst_30 {dimension_numbers = #tpu.dot_dimension_numbers<[1], [0], [0], [1], [0, 0, 1, 1], [], []>} : vector<256x64xbf16>, vector<64x256xbf16>, vector<256x256xf32> -> vector<256x256xf32>
    %c0_31 = arith.constant 0 : index
    %c0_32 = arith.constant 0 : index
    %116 = vector.load %arg8[%c0_31, %c0_32] : memref<1x256xf32, #tpu.memory_space<vmem>>, vector<1x256xf32>
    %117 = vector.shape_cast %116 : vector<1x256xf32> to vector<256xf32>
    %118 = vector.shape_cast %117 : vector<256xf32> to vector<1x256xf32>
    %119 = vector.broadcast %118 : vector<1x256xf32> to vector<256x256xf32>
    %120 = arith.addf %115, %119 : vector<256x256xf32>
    %cst_33 = arith.constant 0.000000e+00 : f32
    %121 = vector.broadcast %cst_33 : f32 to vector<256x256xf32>
    %122 = arith.maximumf %120, %121 : vector<256x256xf32>
    %123 = arith.truncf %122 : vector<256x256xf32> to vector<256x256xbf16>
    %c0_34 = arith.constant 0 : index
    %c0_35 = arith.constant 0 : index
    %124 = vector.load %arg9[%c0_34, %c0_35] : memref<256x64xbf16, #tpu.memory_space<vmem>>, vector<256x64xbf16>
    %cst_36 = arith.constant dense<0.000000e+00> : vector<256x64xf32>
    %125 = tpu.matmul %123, %124, %cst_36 {dimension_numbers = #tpu.dot_dimension_numbers<[1], [0], [0], [1], [0, 0, 1, 1], [], []>} : vector<256x256xbf16>, vector<256x64xbf16>, vector<256x64xf32> -> vector<256x64xf32>
    %c0_37 = arith.constant 0 : index
    %c0_38 = arith.constant 0 : index
    %126 = vector.load %arg10[%c0_37, %c0_38] : memref<1x64xf32, #tpu.memory_space<vmem>>, vector<1x64xf32>
    %127 = vector.shape_cast %126 : vector<1x64xf32> to vector<64xf32>
    %128 = vector.shape_cast %127 : vector<64xf32> to vector<1x64xf32>
    %129 = vector.broadcast %128 : vector<1x64xf32> to vector<256x64xf32>
    %130 = arith.addf %125, %129 : vector<256x64xf32>
    %131 = arith.addf %84, %130 : vector<256x64xf32>
    %132 = vector.shape_cast %131 : vector<256x64xf32> to vector<8x32x64xf32>
    %c0_39 = arith.constant 0 : index
    %c0_40 = arith.constant 0 : index
    %c0_41 = arith.constant 0 : index
    %133 = vector.load %arg11[%c0_39, %c0_40, %c0_41] : memref<8x32x64xf32, #tpu.memory_space<vmem>>, vector<8x32x64xf32>
    tpu.vector_store %arg11[%c0_39, %c0_40, %c0_41], %132 {strides = array<i32>} : memref<8x32x64xf32, #tpu.memory_space<vmem>>, vector<8x32x64xf32>,
    return
  }
  func.func @transform_0(%arg0: i32) -> (i32, i32, i32) {
    %c0_i32 = arith.constant 0 : i32
    %c0_i32_0 = arith.constant 0 : i32
    %c0_i32_1 = arith.constant 0 : i32
    return %arg0, %c0_i32, %c0_i32_0 : i32, i32, i32
  }
  func.func @transform_1(%arg0: i32) -> (i32, i32) {
    %c0_i32 = arith.constant 0 : i32
    %c0_i32_0 = arith.constant 0 : i32
    %c0_i32_1 = arith.constant 0 : i32
    return %c0_i32, %c0_i32_0 : i32, i32
  }
  func.func @transform_2(%arg0: i32) -> (i32, i32) {
    %c0_i32 = arith.constant 0 : i32
    %c0_i32_0 = arith.constant 0 : i32
    %c0_i32_1 = arith.constant 0 : i32
    return %c0_i32, %c0_i32_0 : i32, i32
  }
  func.func @transform_3(%arg0: i32) -> (i32, i32) {
    %c0_i32 = arith.constant 0 : i32
    %c0_i32_0 = arith.constant 0 : i32
    %c0_i32_1 = arith.constant 0 : i32
    return %c0_i32, %c0_i32_0 : i32, i32
  }
  func.func @transform_4(%arg0: i32) -> (i32, i32) {
    %c0_i32 = arith.constant 0 : i32
    %c0_i32_0 = arith.constant 0 : i32
    %c0_i32_1 = arith.constant 0 : i32
    return %c0_i32, %c0_i32_0 : i32, i32
  }
  func.func @transform_5(%arg0: i32) -> (i32, i32) {
    %c0_i32 = arith.constant 0 : i32
    %c0_i32_0 = arith.constant 0 : i32
    %c0_i32_1 = arith.constant 0 : i32
    return %c0_i32, %c0_i32_0 : i32, i32
  }
  func.func @transform_6(%arg0: i32) -> (i32, i32) {
    %c0_i32 = arith.constant 0 : i32
    %c0_i32_0 = arith.constant 0 : i32
    %c0_i32_1 = arith.constant 0 : i32
    return %c0_i32, %c0_i32_0 : i32, i32
  }
  func.func @transform_7(%arg0: i32) -> (i32, i32) {
    %c0_i32 = arith.constant 0 : i32
    %c0_i32_0 = arith.constant 0 : i32
    %c0_i32_1 = arith.constant 0 : i32
    return %c0_i32, %c0_i32_0 : i32, i32
  }
  func.func @transform_8(%arg0: i32) -> (i32, i32) {
    %c0_i32 = arith.constant 0 : i32
    %c0_i32_0 = arith.constant 0 : i32
    %c0_i32_1 = arith.constant 0 : i32
    return %c0_i32, %c0_i32_0 : i32, i32
  }
  func.func @transform_9(%arg0: i32) -> (i32, i32) {
    %c0_i32 = arith.constant 0 : i32
    %c0_i32_0 = arith.constant 0 : i32
    %c0_i32_1 = arith.constant 0 : i32
    return %c0_i32, %c0_i32_0 : i32, i32
  }
  func.func @transform_10(%arg0: i32) -> (i32, i32, i32) {
    %c0_i32 = arith.constant 0 : i32
    %c0_i32_0 = arith.constant 0 : i32
    %c0_i32_1 = arith.constant 0 : i32
    return %arg0, %c0_i32, %c0_i32_0 : i32, i32, i32
  }
}

</mosaic_0001>

<bundles_post_ra>
// kernel: tpu_custom_call.1
= control target key start
LH: loop header
LB: loop body
LE: loop exit
PB: predicated region body
PF: predicated region fallthrough
CT: control target
= control target key end

     0   :  { %15 = vsyncpa [#allocation3], 0  ;;  %s9498_s0 = inlined_call_operand.hbm [shape: f32[8,32,64], index: 0, kind: input, shape index: {}]   ;;  %s9499_s1 = inlined_call_operand.vmem [shape: f32[1,64], index: 1, kind: input, shape index: {}]   ;;  %s9500_s2 = inlined_call_operand.vmem [shape: f32[1,64], index: 2, kind: input, shape index: {}]   ;;  %s9501_s3 = inlined_call_operand.vmem [shape: bf16[64,192], index: 3, kind: input, shape index: {}]   ;;  %s9502_s4 = inlined_call_operand.vmem [shape: f32[1,64], index: 4, kind: input, shape index: {}]   ;;  %s9503_s5 = inlined_call_operand.vmem [shape: f32[1,64], index: 5, kind: input, shape index: {}]   ;;  %s9504_s6 = inlined_call_operand.vmem [shape: bf16[64,256], index: 6, kind: input, shape index: {}]   ;;  %s9505_s7 = inlined_call_operand.vmem [shape: f32[1,256], index: 7, kind: input, shape index: {}]   ;;  %s9506_s8 = inlined_call_operand.vmem [shape: bf16[256,64], index: 8, kind: input, shape index: {}]   ;;  %s9507_s9 = inlined_call_operand.vmem [shape: f32[1,64], index: 9, kind: input, shape index: {}]   ;;  %s9508_s10 = inlined_call_operand.hbm [shape: f32[8,32,64], index: 10, kind: output, shape index: {}]  }
   0x1   :  { %16 = vsyncpa [#allocation4], 0  ;;  %s21_s15 = sshll.u32 %s9498_s0, 4  ;;  %s6045_s16 = smov [#allocation2]   ;;  %s22_s15 = int_to_ptr.hbm [resolvable:$true] %s21_s15 }
   0x2   :  { %s23_s17 = sshll.u32 %s6045_s16, 4  ;;  %s6046_s18 = smov 128   ;;  %s24_s17 = int_to_ptr.vmem [resolvable:$true] %s23_s17 }
   0x3   :  { %s6047_s19 = smov 8  }
   0x4   :  { %29 = dma.hbm_to_vmem [thread:$0]  %s22_s15, 4096, %s24_s17, [#allocation3], %s6046_s18, %s6046_s18, %s6047_s19  }
   0x5   :  { %6041 = dma.done.wait [#allocation3], 4096  }
   0x6   :  { %6042 = vsyncadd [#allocation3], 4294963200  ;;  %vm9520_vm0 = vcmask 523264   ;;  %v6115_v0 = vld [vmem:[#allocation2 + $0x10] sm:$0xff]  ;;  %v53_v1 = vld [vmem:[#allocation2] sm:$0xff]  ;;  %v6048_v34 = vmov 64.0  }
   0x7   :  { %v94_v2 = vsel %vm9520_vm0, %v6115_v0, 0.0  ;;  %v88_v3 = vsel %vm9520_vm0, %v53_v1, 0.0  ;;  %v6120_v4 = vld [vmem:[#allocation2 + $0x20] sm:$0xff]  ;;  %v6124_v6 = vld [vmem:[#allocation2 + $0x18] sm:$0xff]  ;;  %v6126_v7 = vld [vmem:[#allocation2 + $0x8] sm:$0xff]  ;;  %5692 = vrcp.f32 %v6048_v34  ;;  %s6050_s20 = smov 64  }
   0x8   :  { %95 = vadd.xlane.f32.xlu1 %v94_v2  ;;  %89 = vadd.xlane.f32.xlu0 %v88_v3  ;;  %v100_v5 = vsel %vm9520_vm0, %v6120_v4, 0.0  ;;  %v6128_v8 = vld [vmem:[#allocation2 + $0x28] sm:$0xff]  ;;  %v97_v9 = vsel %vm9520_vm0, %v6124_v6, 0.0  ;;  %v91_v10 = vsel %vm9520_vm0, %v6126_v7, 0.0  ;;  %v6136_v12 = vld [vmem:[#allocation2 + $0x38] sm:$0xff]  ;;  %v6140_v14 = vld [vmem:[#allocation2 + $0x30] sm:$0xff] }
   0x9   :  { %101 = vadd.xlane.f32.xlu2 %v100_v5  ;;  %v103_v11 = vsel %vm9520_vm0, %v6128_v8, 0.0  ;;  %v6138_v13 = vld [vmem:[#allocation2 + $0x48] sm:$0xff]  ;;  %v109_v15 = vsel %vm9520_vm0, %v6136_v12, 0.0  ;;  %v106_v17 = vsel %vm9520_vm0, %v6140_v14, 0.0  ;;  %v6148_v18 = vld [vmem:[#allocation2 + $0x40] sm:$0xff]  ;;  %v6150_v19 = vld [vmem:[#allocation2 + $0x50] sm:$0xff] }
   0xa   :  { %v115_v16 = vsel %vm9520_vm0, %v6138_v13, 0.0  ;;  %v6152_v20 = vld [vmem:[#allocation2 + $0x58] sm:$0xff]  ;;  %v112_v21 = vsel %vm9520_vm0, %v6148_v18, 0.0  ;;  %v118_v22 = vsel %vm9520_vm0, %v6150_v19, 0.0  ;;  %v6160_v24 = vld [vmem:[#allocation2 + $0x68] sm:$0xff]  ;;  %v6164_v26 = vld [vmem:[#allocation2 + $0x60] sm:$0xff] }
   0xb   :  { %v121_v23 = vsel %vm9520_vm0, %v6152_v20, 0.0  ;;  %v6162_v25 = vld [vmem:[#allocation2 + $0x78] sm:$0xff]  ;;  %v127_v27 = vsel %vm9520_vm0, %v6160_v24, 0.0  ;;  %v124_v29 = vsel %vm9520_vm0, %v6164_v26, 0.0  ;;  %v6172_v30 = vld [vmem:[#allocation2 + $0x70] sm:$0xff]  ;;  %v6174_v31 = vld [vmem:[#allocation2 + $0x80] sm:$0xff] }
   0xc   :  { %v133_v28 = vsel %vm9520_vm0, %v6162_v25, 0.0  ;;  %v130_v32 = vsel %vm9520_vm0, %v6172_v30, 0.0  ;;  %v136_v33 = vsel %vm9520_vm0, %v6174_v31, 0.0  ;;  %v6190_v51 = vld [vmem:[#allocation2 + $0x98] sm:$0xff]  ;;  %v6211_v63 = vld [vmem:[#allocation2 + $0x88] sm:$0xff]  ;;  %s5345_s15 = sshll.u32 %s9508_s10, 4  ;;  %s5346_s15 = int_to_ptr.hbm [resolvable:$true] %s5345_s15 }
   0xd   :  { %v5693_v35 = vpop.eup %5692  ;;  %v145_v57 = vsel %vm9520_vm0, %v6190_v51, 0.0  ;;  %v139_v5 = vsel %vm9520_vm0, %v6211_v63, 0.0 }
   0xe   :  { %v185_v36 = vmul.f32 64.0, %v5693_v35  ;;  %vm189_vm1 = vweird.f32 %v5693_v35 }
  0x10   :  { %98 = vadd.xlane.f32.xlu1 %v97_v9  ;;  %92 = vadd.xlane.f32.xlu0 %v91_v10  ;;  %v186_v37 = vsub.f32 1.0, %v185_v36  ;;  %v6252_v36 = vld [vmem:[#allocation2 + $0xa8] sm:$0xff] }
  0x11   :  { %104 = vadd.xlane.f32.xlu2 %v103_v11  ;;  %v6228_v11 = vld [vmem:[#allocation2 + $0xc0] sm:$0xff] }
  0x12   :  { %v187_v38 = vmul.f32 %v5693_v35, %v186_v37  ;;  %v6254_v37 = vld [vmem:[#allocation2 + $0xd0] sm:$0xff] }
  0x14   :  { %v188_v39 = vadd.f32 %v5693_v35, %v187_v38 }
  0x16   :  { %v6180_v40 = vsel %vm189_vm1, %v5693_v35, %v188_v39 }
  0x17   :  { %9636 = vst [vmem:[#allocation8_spill] sm:$0xff] %v6180_v40 }
  0x18   :  { %110 = vadd.xlane.f32.xlu0 %v109_v15  ;;  %116 = vadd.xlane.f32.xlu1 %v115_v16 }
  0x19   :  { %107 = vadd.xlane.f32.xlu2 %v106_v17  ;;  %v160_v17 = vsel %vm9520_vm0, %v6228_v11, 0.0 }
  0x20   :  { %113 = vadd.xlane.f32.xlu0 %v112_v21  ;;  %119 = vadd.xlane.f32.xlu1 %v118_v22 }
  0x21   :  { %122 = vadd.xlane.f32.xlu2 %v121_v23 }
  0x28   :  { %128 = vadd.xlane.f32.xlu0 %v127_v27  ;;  %134 = vadd.xlane.f32.xlu1 %v133_v28  ;;  %v6242_v27 = vld [vmem:[#allocation2 + $0x90] sm:$0xff] }
  0x29   :  { %125 = vadd.xlane.f32.xlu2 %v124_v29  ;;  %v142_v29 = vsel %vm9520_vm0, %v6242_v27, 0.0 }
  0x30   :  { %131 = vadd.xlane.f32.xlu0 %v130_v32  ;;  %137 = vadd.xlane.f32.xlu1 %v136_v33 }
  0x7b   :  { %v96_v41 = vpop.xlane.xlu1 %95  ;;  %v90_v42 = vpop.xlane.xlu0 %89 }
  0x7c   :  { %v191_v43 = vmul.f32 %v6180_v40, %v90_v42  ;;  %v193_v54 = vmul.f32 %v6180_v40, %v96_v41  ;;  %v102_v55 = vpop.xlane.xlu2 %101  ;;  %v80_v41 = vld [vmem:[#allocation2 + $0xd8] sm:$0xff] }
  0x7d   :  { %v195_v62 = vmul.f32 %v6180_v40, %v102_v55 }
  0x7e   :  { %v6183_v44 = vsub.f32 %v53_v1, %v191_v43  ;;  %v6208_v61 = vsub.f32 %v6115_v0, %v193_v54  ;;  %v6213_v1 = vld [vmem:[#allocation2 + $0xb8] sm:$0xff]  ;;  %v6272_v54 = vld [vmem:[#allocation2 + $0xb0] sm:$0xff] }
  0x7f   :  { %v6218_v3 = vsub.f32 %v6120_v4, %v195_v62  ;;  %v157_v0 = vsel %vm9520_vm0, %v6213_v1, 0.0  ;;  %v6230_v4 = vld [vmem:[#allocation2 + $0xa0] sm:$0xff] }
  0x80   :  { %v255_v45 = vmul.f32 %v6183_v44, %v6183_v44  ;;  %v257_v2 = vmul.f32 %v6208_v61, %v6208_v61  ;;  %v148_v21 = vsel %vm9520_vm0, %v6230_v4, 0.0 }
  0x81   :  { %v259_v10 = vmul.f32 %v6218_v3, %v6218_v3 }
  0x82   :  { %v287_v46 = vsel %vm9520_vm0, %v255_v45, 0.0  ;;  %v151_v45 = vsel %vm9520_vm0, %v6252_v36, 0.0 }
  0x83   :  { %v99_v47 = vpop.xlane.xlu1 %98  ;;  %288 = vadd.xlane.f32.xlu0 %v287_v46  ;;  %v93_v48 = vpop.xlane.xlu0 %92  ;;  %v299_v16 = vsel %vm9520_vm0, %v259_v10, 0.0  ;;  %v166_v46 = vsel %vm9520_vm0, %v6254_v37, 0.0 }
  0x84   :  { %v194_v49 = vmul.f32 %v6180_v40, %v99_v47  ;;  %v192_v50 = vmul.f32 %v6180_v40, %v93_v48  ;;  %v169_v47 = vsel %vm9520_vm0, %v80_v41, 0.0 }
  0x86   :  { %v6193_v52 = vsub.f32 %v6124_v6, %v194_v49  ;;  %v6196_v53 = vsub.f32 %v6126_v7, %v192_v50  ;;  %v105_v6 = vpop.xlane.xlu2 %104  ;;  %v293_v7 = vsel %vm9520_vm0, %v257_v2, 0.0 }
  0x87   :  { %v196_v9 = vmul.f32 %v6180_v40, %v105_v6 }
  0x88   :  { %v258_v56 = vmul.f32 %v6193_v52, %v6193_v52  ;;  %v256_v58 = vmul.f32 %v6196_v53, %v6196_v53 }
  0x89   :  { %v6233_v15 = vsub.f32 %v6128_v8, %v196_v9  ;;  %v6244_v8 = vld [vmem:[#allocation2 + $0xc8] sm:$0xff] }
  0x8a   :  { %v296_v59 = vsel %vm9520_vm0, %v258_v56, 0.0  ;;  %v290_v60 = vsel %vm9520_vm0, %v256_v58, 0.0  ;;  %v163_v33 = vsel %vm9520_vm0, %v6244_v8, 0.0 }
  0x8b   :  { %297 = vadd.xlane.f32.xlu2 %v296_v59  ;;  %146 = vadd.xlane.f32.xlu0 %v145_v57  ;;  %v111_v22 = vpop.xlane.xlu0 %110  ;;  %v260_v23 = vmul.f32 %v6233_v15, %v6233_v15  ;;  %v117_v35 = vpop.xlane.xlu1 %116  ;;  %v154_v59 = vsel %vm9520_vm0, %v6272_v54, 0.0 }
  0x8c   :  { %291 = vadd.xlane.f32.xlu1 %v290_v60  ;;  %v198_v38 = vmul.f32 %v6180_v40, %v111_v22  ;;  %v200_v50 = vmul.f32 %v6180_v40, %v117_v35 }
  0x8d   :  { %v302_v32 = vsel %vm9520_vm0, %v260_v23, 0.0 }
  0x8e   :  { %v108_v28 = vpop.xlane.xlu2 %107  ;;  %v6266_v48 = vsub.f32 %v6136_v12, %v198_v38  ;;  %v6283_v60 = vsub.f32 %v6138_v13, %v200_v50 }
  0x8f   :  { %v197_v34 = vmul.f32 %v6180_v40, %v108_v28 }
  0x90   :  { %v262_v55 = vmul.f32 %v6266_v48, %v6266_v48  ;;  %v264_v6 = vmul.f32 %v6283_v60, %v6283_v60 }
  0x91   :  { %v6258_v43 = vsub.f32 %v6140_v14, %v197_v34 }
  0x92   :  { %v308_v2 = vsel %vm9520_vm0, %v262_v55, 0.0  ;;  %v5384_v55 = vld [vmem:[%s9501_s3 + $0x30] sm:$0xf] }
  0x93   :  { %140 = vadd.xlane.f32.xlu2 %v139_v5  ;;  %158 = vadd.xlane.f32.xlu0 %v157_v0  ;;  %v114_v39 = vpop.xlane.xlu0 %113  ;;  %v261_v14 = vmul.f32 %v6258_v43, %v6258_v43  ;;  %v120_v57 = vpop.xlane.xlu1 %119 }
  0x94   :  { %294 = vadd.xlane.f32.xlu1 %v293_v7  ;;  %v199_v56 = vmul.f32 %v6180_v40, %v114_v39  ;;  %v201_v7 = vmul.f32 %v6180_v40, %v120_v57  ;;  %v5376_v57 = vld [vmem:[%s9501_s3 + $0x20] sm:$0xf] }
  0x95   :  { %v305_v62 = vsel %vm9520_vm0, %v261_v14, 0.0 }
  0x96   :  { %v123_v42 = vpop.xlane.xlu2 %122  ;;  %v6288_v5 = vsub.f32 %v6148_v18, %v199_v56  ;;  %v5605_v56 = vld [vmem:[%s9501_s3 + $0x34] sm:$0xf0] }
  0x97   :  { %v202_v49 = vmul.f32 %v6180_v40, %v123_v42 }
  0x98   :  { %v263_v9 = vmul.f32 %v6288_v5, %v6288_v5 }
  0x99   :  { %v6278_v58 = vsub.f32 %v6152_v20, %v202_v49 }
  0x9a   :  { %v311_v23 = vsel %vm9520_vm0, %v263_v9, 0.0 }
  0x9b   :  { %300 = vadd.xlane.f32.xlu2 %v299_v16  ;;  %161 = vadd.xlane.f32.xlu0 %v160_v17  ;;  %v129_v12 = vpop.xlane.xlu0 %128  ;;  %v266_v13 = vmul.f32 %v6278_v58, %v6278_v58  ;;  %v314_v16 = vsel %vm9520_vm0, %v264_v6, 0.0  ;;  %v6304_v17 = vsub.f32 %v6150_v19, %v201_v7  ;;  %v135_v22 = vpop.xlane.xlu1 %134  ;;  %v5360_v7 = vld [vmem:[%s9501_s3] sm:$0xf] }
  0x9c   :  { %149 = vadd.xlane.f32.xlu1 %v148_v21  ;;  %v204_v18 = vmul.f32 %v6180_v40, %v129_v12  ;;  %v5603_v12 = vld [vmem:[%s9501_s3 + $0x24] sm:$0xf0] }
  0x9d   :  { %v320_v21 = vsel %vm9520_vm0, %v266_v13, 0.0  ;;  %v5599_v13 = vld [vmem:[%s9501_s3 + $0x4] sm:$0xf0] }
  0x9e   :  { %v126_v0 = vpop.xlane.xlu2 %125  ;;  %v6309_v28 = vsub.f32 %v6160_v24, %v204_v18  ;;  %v5361_v18 = vor.u32 %v5599_v13, %v5360_v7 }
  0x9f   :  { %v203_v20 = vmul.f32 %v6180_v40, %v126_v0 }
  0xa0   :  { %v268_v34 = vmul.f32 %v6309_v28, %v6309_v28 }
  0xa1   :  { %v6300_v10 = vsub.f32 %v6164_v26, %v203_v20  ;;  %v265_v26 = vmul.f32 %v6304_v17, %v6304_v17 }
  0xa2   :  { %v326_v41 = vsel %vm9520_vm0, %v268_v34, 0.0 }
  0xa3   :  { %143 = vadd.xlane.f32.xlu2 %v142_v29  ;;  %303 = vadd.xlane.f32.xlu0 %v302_v32  ;;  %v132_v29 = vpop.xlane.xlu0 %131  ;;  %v267_v32 = vmul.f32 %v6300_v10, %v6300_v10  ;;  %v317_v24 = vsel %vm9520_vm0, %v265_v26, 0.0  ;;  %v138_v42 = vpop.xlane.xlu1 %137 }
  0xa4   :  { %164 = vadd.xlane.f32.xlu1 %v163_v33  ;;  %v205_v19 = vmul.f32 %v6180_v40, %v132_v29  ;;  %v206_v33 = vmul.f32 %v6180_v40, %v135_v22 }
  0xa5   :  { %v323_v35 = vsel %vm9520_vm0, %v267_v32, 0.0 }
  0xa6   :  { %v6322_v38 = vsub.f32 %v6172_v30, %v205_v19  ;;  %v6325_v39 = vsub.f32 %v6162_v25, %v206_v33 }
  0xab   :  { %152 = vadd.xlane.f32.xlu2 %v151_v45  ;;  %167 = vadd.xlane.f32.xlu0 %v166_v46  ;;  %v269_v45 = vmul.f32 %v6322_v38, %v6322_v38  ;;  %v207_v46 = vmul.f32 %v6180_v40, %v138_v42  ;;  %v1159_v42 = vlaneseq }
  0xac   :  { %170 = vadd.xlane.f32.xlu1 %v169_v47  ;;  %v270_v47 = vmul.f32 %v6325_v39, %v6325_v39 }
  0xad   :  { %v329_v30 = vsel %vm9520_vm0, %v269_v45, 0.0  ;;  %v6335_v49 = vsub.f32 %v6174_v31, %v207_v46  ;;  %v5385_v31 = vor.u32 %v5605_v56, %v5384_v55  ;;  %v6385_v56 = vshrl.u32 %v1159_v42, 7 }
  0xae   :  { %v332_v25 = vsel %vm9520_vm0, %v270_v47, 0.0  ;;  %v6411_v13 = vand.u32 127, %v1159_v42 }
  0xaf   :  { %v271_v50 = vmul.f32 %v6335_v49, %v6335_v49  ;;  %985 = vmatpush.bf16.msra.mxu0 %v5385_v31  ;;  %5630 = vmatpush.bf16.msra.mxu1 %v5385_v31  ;;  %9637 = vst [vmem:[#allocation9_spill] sm:$0xff] %v6385_v56 }
  0xb0   :  { %5631 = vmatpush.bf16.msra.mxu3 %v5385_v31  ;;  %9640 = vst [vmem:[#allocation10_spill] sm:$0xff] %v6411_v13 }
  0xb1   :  { %v335_v14 = vsel %vm9520_vm0, %v271_v50, 0.0 }
  0xb3   :  { %155 = vadd.xlane.f32.xlu2 %v154_v59  ;;  %306 = vadd.xlane.f32.xlu0 %v305_v62  ;;  %v5377_v59 = vor.u32 %v5603_v12, %v5376_v57  ;;  %v5368_v62 = vld [vmem:[%s9501_s3 + $0x10] sm:$0xf] }
  0xb4   :  { %309 = vadd.xlane.f32.xlu1 %v308_v2  ;;  %v5601_v2 = vld [vmem:[%s9501_s3 + $0x14] sm:$0xf0] }
  0xb5   :  { %986 = vmatpush.bf16.msra.mxu0 %v5377_v59  ;;  %5632 = vmatpush.bf16.msra.mxu1 %v5377_v59  ;;  %v5369_v0 = vor.u32 %v5601_v2, %v5368_v62 }
  0xb6   :  { %5633 = vmatpush.bf16.msra.mxu3 %v5377_v59 }
  0xb9   :  { %987 = vmatpush.bf16.msra.mxu0 %v5369_v0  ;;  %5634 = vmatpush.bf16.msra.mxu1 %v5369_v0 }
  0xba   :  { %5635 = vmatpush.bf16.msra.mxu3 %v5369_v0 }
  0xbb   :  { %315 = vadd.xlane.f32.xlu2 %v314_v16  ;;  %321 = vadd.xlane.f32.xlu0 %v320_v21 }
  0xbc   :  { %312 = vadd.xlane.f32.xlu1 %v311_v23 }
  0xbd   :  { %988 = vmatpush.bf16.msra.mxu0 %v5361_v18  ;;  %5636 = vmatpush.bf16.msra.mxu1 %v5361_v18 }
  0xbe   :  { %5637 = vmatpush.bf16.msra.mxu3 %v5361_v18 }
  0xc3   :  { %318 = vadd.xlane.f32.xlu2 %v317_v24  ;;  %324 = vadd.xlane.f32.xlu0 %v323_v35 }
  0xc4   :  { %327 = vadd.xlane.f32.xlu1 %v326_v41 }
  0xcb   :  { %330 = vadd.xlane.f32.xlu0 %v329_v30 }
  0xcc   :  { %333 = vadd.xlane.f32.xlu1 %v332_v25 }
  0xd4   :  { %336 = vadd.xlane.f32.xlu1 %v335_v14 }
  0xf6   :  { %v289_v20 = vpop.xlane.xlu0 %288 }
  0xf7   :  { %v383_v6 = vmul.f32 %v289_v20, %v6180_v40 }
  0xf9   :  { %v415_v9 = vadd.f32 1e-05, %v383_v6 }
  0xfb   :  { %5694 = vrsqrt.f32 %v415_v9  ;;  %vm453_vm2 = vweird.f32 %v415_v9 }
  0xfe   :  { %v298_v16 = vpop.xlane.xlu2 %297  ;;  %v147_v21 = vpop.xlane.xlu0 %146 }
  0xff   :  { %v386_v22 = vmul.f32 %v298_v16, %v6180_v40  ;;  %v292_v23 = vpop.xlane.xlu1 %291  ;;  %v210_v29 = vmul.f32 %v6180_v40, %v147_v21  ;;  %v1175_v21 = vadd.s32 120, %v6385_v56 }
 0x100   :  { %v384_v26 = vmul.f32 %v292_v23, %v6180_v40 }
 0x101   :  { %v6369_v32 = vpop.eup %5694  ;;  %v6371_v19 = vadd.f32 1e-05, %v386_v22  ;;  %v6374_v33 = vsub.f32 %v6190_v51, %v210_v29 }
 0x102   :  { %v448_v34 = vmul.f32 %v6369_v32, %v415_v9  ;;  %v416_v24 = vadd.f32 1e-05, %v384_v26  ;;  %vm454_vm3 = vweird.f32 %v6369_v32 }
 0x103   :  { %5696 = vrsqrt.f32 %v6371_v19  ;;  %v274_v35 = vmul.f32 %v6374_v33, %v6374_v33  ;;  %vm6405_vm4 = vmor %vm453_vm2, %vm454_vm3  ;;  %vm483_vm13 = vweird.f32 %v6371_v19 }
 0x104   :  { %v449_v41 = vmul.f32 %v6369_v32, %v448_v34  ;;  %5698 = vrsqrt.f32 %v416_v24  ;;  %vm463_vm5 = vweird.f32 %v416_v24 }
 0x105   :  { %v344_v45 = vsel %vm9520_vm0, %v274_v35, 0.0 }
 0x106   :  { %v450_v46 = vmul.f32 0.5, %v449_v41  ;;  %v141_v47 = vpop.xlane.xlu2 %140  ;;  %345 = vadd.xlane.f32.xlu0 %v344_v45  ;;  %v159_v30 = vpop.xlane.xlu0 %158 }
 0x107   :  { %v208_v51 = vmul.f32 %v6180_v40, %v141_v47  ;;  %v295_v25 = vpop.xlane.xlu1 %294  ;;  %v214_v50 = vmul.f32 %v6180_v40, %v159_v30 }
 0x108   :  { %v451_v14 = vsub.f32 1.5, %v450_v46  ;;  %v385_v55 = vmul.f32 %v295_v25, %v6180_v40  ;;  %v6423_v46 = vshra.s32 %v6411_v13, 4 }
 0x109   :  { %v6387_v31 = vpop.eup %5696  ;;  %v6391_v57 = vsub.f32 %v6211_v63, %v208_v51  ;;  %v6394_v12 = vsub.f32 %v6213_v1, %v214_v50  ;;  %v1174_v1 = vadd.s32 112, %v6385_v56  ;;  %v1191_v51 = vshra.s32 %v1175_v21, 5 }
 0x10a   :  { %v5699_v59 = vpop.eup %5698  ;;  %v478_v62 = vmul.f32 %v6387_v31, %v6371_v19  ;;  %v6398_v2 = vadd.f32 1e-05, %v385_v55  ;;  %v452_v0 = vmul.f32 %v6369_v32, %v451_v14  ;;  %vm484_vm10 = vweird.f32 %v6387_v31 }
 0x10b   :  { %v458_v20 = vmul.f32 %v5699_v59, %v416_v24  ;;  %v272_v6 = vmul.f32 %v6391_v57, %v6391_v57  ;;  %v278_v7 = vmul.f32 %v6394_v12, %v6394_v12  ;;  %vm464_vm6 = vweird.f32 %v5699_v59  ;;  %vm6520_vm15 = vmor %vm483_vm13, %vm484_vm10 }
 0x10c   :  { %5700 = vrsqrt.f32 %v6398_v2  ;;  %v479_v22 = vmul.f32 %v6387_v31, %v478_v62  ;;  %v456_v26 = vsel %vm6405_vm4, %v6369_v32, %v452_v0  ;;  %v1190_v45 = vshra.s32 %v1174_v1, 5  ;;  %vm6430_vm7 = vmor %vm463_vm5, %vm464_vm6  ;;  %v6441_v62 = vld [vmem:[%s9499_s1] ss:$0 sm:$0xff] }
 0x10d   :  { %v459_v9 = vmul.f32 %v5699_v59, %v458_v20  ;;  %v338_v18 = vsel %vm9520_vm0, %v272_v6, 0.0  ;;  %v356_v16 = vsel %vm9520_vm0, %v278_v7, 0.0  ;;  %v767_v55 = vmul.f32 %v456_v26, %v6183_v44 }
 0x10e   :  { %v301_v23 = vpop.xlane.xlu2 %300  ;;  %339 = vadd.xlane.f32.xlu2 %v338_v18  ;;  %357 = vadd.xlane.f32.xlu0 %v356_v16  ;;  %v162_v29 = vpop.xlane.xlu0 %161  ;;  %v480_v50 = vmul.f32 0.5, %v479_v22  ;;  %vm6449_vm8 = vcmp.eq.s32.totalorder %v1190_v45, %v6423_v46  ;;  %vm6457_vm9 = vcmp.eq.s32.totalorder %v1191_v51, %v6423_v46  ;;  %v9646_v7 = vmov 0 }
 0x10f   :  { %v460_v34 = vmul.f32 0.5, %v459_v9  ;;  %v387_v35 = vmul.f32 %v301_v23, %v6180_v40  ;;  %v150_v41 = vpop.xlane.xlu1 %149  ;;  %v9647_v7 = vsel %vm6457_vm9, 4294967295, %v9646_v7  ;;  %v802_v21 = vmul.f32 %v6441_v62, %v767_v55  ;;  %v6494_v55 = vld [vmem:[#allocation2 + $0xe0] sm:$0xff] }
 0x110   :  { %v211_v42 = vmul.f32 %v6180_v40, %v150_v41  ;;  %9648 = vst [vmem:[#allocation12_spill] sm:$0xff] %v9647_v7  ;;  %v481_v63 = vsub.f32 1.5, %v480_v50  ;;  %v215_v41 = vmul.f32 %v6180_v40, %v162_v29  ;;  %vm473_vm12 = vweird.f32 %v6398_v2 }
 0x111   :  { %v461_v47 = vsub.f32 1.5, %v460_v34  ;;  %v6425_v30 = vadd.f32 1e-05, %v387_v35  ;;  %v9509_v35 = vmov 0.0  }
 0x112   :  { %v6427_v25 = vpop.eup %5700  ;;  %v6435_v14 = vsub.f32 %v6230_v4, %v211_v42  ;;  %v9643_v4 = vmov 0  ;;  %v6484_v45 = vsel %vm6457_vm9, 1.0, %v9509_v35  ;;  %v482_v29 = vmul.f32 %v6387_v31, %v481_v63 }
 0x113   :  { %v462_v0 = vmul.f32 %v5699_v59, %v461_v47  ;;  %v468_v20 = vmul.f32 %v6427_v25, %v6398_v2  ;;  %5702 = vrsqrt.f32 %v6425_v30  ;;  %v9644_v4 = vsel %vm6449_vm8, 4294967295, %v9643_v4  ;;  %9650 = vst [vmem:[#allocation14_spill] sm:$0xff] %v6484_v45 }
 0x114   :  { %v275_v24 = vmul.f32 %v6435_v14, %v6435_v14  ;;  %9645 = vst [vmem:[#allocation11_spill] sm:$0xff] %v9644_v4  ;;  %vm474_vm11 = vweird.f32 %v6427_v25  ;;  %v6512_v63 = vsub.f32 %v6228_v11, %v215_v41  ;;  %v486_v11 = vsel %vm6520_vm15, %v6387_v31, %v482_v29 }
 0x115   :  { %v466_v44 = vsel %vm6430_vm7, %v5699_v59, %v462_v0  ;;  %v469_v6 = vmul.f32 %v6427_v25, %v468_v20  ;;  %v6467_v59 = vld [vmem:[%s9500_s2] ss:$0 sm:$0xff]  ;;  %vm6507_vm14 = vmor %vm473_vm12, %vm474_vm11  ;;  %v770_v29 = vmul.f32 %v486_v11, %v6193_v52  ;;  %vm493_vm5 = vweird.f32 %v6425_v30 }
 0x116   :  { %v144_v1 = vpop.xlane.xlu2 %143  ;;  %v347_v9 = vsel %vm9520_vm0, %v275_v24, 0.0  ;;  %v304_v18 = vpop.xlane.xlu0 %303  ;;  %v768_v16 = vmul.f32 %v466_v44, %v6196_v53  ;;  %v6476_v53 = vsel %vm6449_vm8, 1.0, %v9509_v35  ;;  %v837_v20 = vadd.f32 %v6467_v59, %v802_v21 }
 0x117   :  { %v470_v22 = vmul.f32 0.5, %v469_v6  ;;  %v209_v23 = vmul.f32 %v6180_v40, %v144_v1  ;;  %v6470_v26 = vpop.xlane.xlu1 %164  ;;  %348 = vadd.xlane.f32.xlu1 %v347_v9  ;;  %v388_v34 = vmul.f32 %v304_v18, %v6180_v40  ;;  %9649 = vst [vmem:[#allocation13_spill] sm:$0xff] %v6476_v53  ;;  %v172_v9 = vsel %vm9520_vm0, %v6494_v55, 0.0 }
 0x118   :  { %v803_v42 = vmul.f32 %v6441_v62, %v768_v16  ;;  %v279_v31 = vmul.f32 %v6512_v63, %v6512_v63 }
 0x119   :  { %v6486_v47 = vpop.eup %5702  ;;  %v471_v51 = vsub.f32 1.5, %v470_v22  ;;  %v6490_v50 = vsub.f32 %v6242_v27, %v209_v23  ;;  %v6492_v32 = vadd.f32 1e-05, %v388_v34  ;;  %v5647_v23 = vpack.i.bf16 %v6484_v45, %v6476_v53 }
 0x11a   :  { %v488_v0 = vmul.f32 %v6486_v47, %v6425_v30  ;;  %v838_v24 = vadd.f32 %v6467_v59, %v803_v42  ;;  %vm494_vm3 = vweird.f32 %v6486_v47  ;;  %v216_v30 = vmul.f32 %v6180_v40, %v6470_v26 }
 0x11b   :  { %v472_v44 = vmul.f32 %v6427_v25, %v471_v51  ;;  %5704 = vrsqrt.f32 %v6492_v32  ;;  %v273_v27 = vmul.f32 %v6490_v50, %v6490_v50  ;;  %vm503_vm1 = vweird.f32 %v6492_v32  ;;  %vm6586_vm6 = vmor %vm493_vm5, %vm494_vm3 }
 0x11c   :  { %v6514_v1 = vpack.c.bf16 %v838_v24, %v837_v20  ;;  %v489_v16 = vmul.f32 %v6486_v47, %v488_v0 }
 0x11d   :  { %v476_v19 = vsel %vm6507_vm14, %v6427_v25, %v472_v44  ;;  %v341_v18 = vsel %vm9520_vm0, %v273_v27, 0.0  ;;  %v359_v27 = vsel %vm9520_vm0, %v279_v31, 0.0 }
 0x11e   :  { %5390 = vmatmul.msk.bf16.vlgmr.msra.gmra.mxu0 %vm9520_vm0, %v6514_v1  ;;  %v153_v21 = vpop.xlane.xlu2 %152  ;;  %342 = vadd.xlane.f32.xlu2 %v341_v18  ;;  %v6534_v22 = vpop.xlane.xlu0 %167  ;;  %v769_v41 = vmul.f32 %v476_v19, %v6208_v61  ;;  %v490_v0 = vmul.f32 0.5, %v489_v16 }
 0x11f   :  { %v212_v25 = vmul.f32 %v6180_v40, %v153_v21  ;;  %v6539_v34 = vpop.xlane.xlu1 %170  ;;  %173 = vadd.xlane.f32.xlu1 %v172_v9 }
 0x120   :  { %v804_v61 = vmul.f32 %v6441_v62, %v769_v41  ;;  %v491_v9 = vsub.f32 1.5, %v490_v0  ;;  %v83_v0 = vld [vmem:[#allocation2 + $0xf0] sm:$0xff] }
 0x121   :  { %v5705_v42 = vpop.eup %5704  ;;  %v6545_v51 = vsub.f32 %v6252_v36, %v212_v25  ;;  %v805_v36 = vmul.f32 %v6441_v62, %v770_v29 }
 0x122   :  { %v498_v20 = vmul.f32 %v5705_v42, %v6492_v32  ;;  %5648 = vrot.lane.b32.xlu0 %v5647_v23, %s6050_s20  ;;  %vm504_vm2 = vweird.f32 %v5705_v42  ;;  %v839_v25 = vadd.f32 %v6467_v59, %v804_v61 }
 0x123   :  { %v276_v24 = vmul.f32 %v6545_v51, %v6545_v51  ;;  %v840_v29 = vadd.f32 %v6467_v59, %v805_v36  ;;  %vm6572_vm4 = vmor %vm503_vm1, %vm504_vm2 }
 0x124   :  { %v499_v44 = vmul.f32 %v5705_v42, %v498_v20  ;;  %v492_v20 = vmul.f32 %v6486_v47, %v491_v9 }
 0x125   :  { %v350_v6 = vsel %vm9520_vm0, %v276_v24, 0.0  ;;  %v6583_v61 = vpack.c.bf16 %v840_v29, %v839_v25  ;;  %v6613_v25 = vsub.f32 %v6244_v8, %v216_v30 }
 0x126   :  { %v500_v52 = vmul.f32 0.5, %v499_v44  ;;  %v156_v2 = vpop.xlane.xlu2 %155  ;;  %351 = vadd.xlane.f32.xlu2 %v350_v6  ;;  %v307_v19 = vpop.xlane.xlu0 %306  ;;  %v178_v6 = vsel %vm9520_vm0, %v83_v0, 0.0 }
 0x127   :  { %v213_v18 = vmul.f32 %v6180_v40, %v156_v2  ;;  %v310_v11 = vpop.xlane.xlu1 %309  ;;  %360 = vadd.xlane.f32.xlu1 %v359_v27  ;;  %v389_v16 = vmul.f32 %v307_v19, %v6180_v40 }
 0x128   :  { %v501_v21 = vsub.f32 1.5, %v500_v52  ;;  %v390_v23 = vmul.f32 %v310_v11, %v6180_v40  ;;  %v496_v52 = vsel %vm6586_vm6, %v6486_v47, %v492_v20  ;;  %v6602_v11 = vld [vmem:[#allocation2 + $0xe8] sm:$0xff]  ;;  %v1172_v20 = vadd.s32 96, %v6385_v56 }
 0x129   :  { %v6562_v31 = vsub.f32 %v6272_v54, %v213_v18  ;;  %v6564_v41 = vadd.f32 1e-05, %v389_v16  ;;  %v771_v26 = vmul.f32 %v496_v52, %v6218_v3  ;;  %v175_v3 = vsel %vm9520_vm0, %v6602_v11, 0.0 }
 0x12a   :  { %v502_v24 = vmul.f32 %v5705_v42, %v501_v21  ;;  %v6576_v27 = vadd.f32 1e-05, %v390_v23  ;;  %v1188_v52 = vshra.s32 %v1172_v20, 5 }
 0x12b   :  { %5706 = vrsqrt.f32 %v6564_v41  ;;  %v277_v54 = vmul.f32 %v6562_v31, %v6562_v31  ;;  %vm513_vm7 = vweird.f32 %v6564_v41 }
 0x12c   :  { %5708 = vrsqrt.f32 %v6576_v27  ;;  %v506_v36 = vsel %vm6572_vm4, %v5705_v42, %v502_v24  ;;  %v1173_v24 = vadd.s32 104, %v6385_v56  ;;  %vm523_vm11 = vweird.f32 %v6576_v27 }
 0x12d   :  { %v353_v9 = vsel %vm9520_vm0, %v277_v54, 0.0  ;;  %v772_v16 = vmul.f32 %v506_v36, %v6233_v15  ;;  %vm6660_vm14 = vcmp.eq.s32.totalorder %v1188_v52, %v6423_v46 }
 0x12e   :  { %5391 = vmatmul.msk.bf16.gmra.mxu0 %vm9520_vm0, %v6583_v61  ;;  %v316_v2 = vpop.xlane.xlu2 %315  ;;  %354 = vadd.xlane.f32.xlu2 %v353_v9  ;;  %v280_v9 = vmul.f32 %v6613_v25, %v6613_v25 }
 0x12f   :  { %v392_v19 = vmul.f32 %v316_v2, %v6180_v40  ;;  %v313_v18 = vpop.xlane.xlu1 %312  ;;  %179 = vadd.xlane.f32.xlu1 %v178_v6  ;;  %v807_v44 = vmul.f32 %v6441_v62, %v772_v16  ;;  %v806_v6 = vmul.f32 %v6441_v62, %v771_v26  ;;  %v322_v2 = vpop.xlane.xlu0 %321 }
 0x130   :  { %v391_v42 = vmul.f32 %v313_v18, %v6180_v40 }
 0x131   :  { %v6605_v21 = vpop.eup %5706  ;;  %v6607_v47 = vadd.f32 1e-05, %v392_v19  ;;  %v1189_v19 = vshra.s32 %v1173_v24, 5  ;;  %v842_v16 = vadd.f32 %v6467_v59, %v807_v44  ;;  %v841_v20 = vadd.f32 %v6467_v59, %v806_v6 }
 0x132   :  { %v6610_v23 = vpop.eup %5708  ;;  %v508_v29 = vmul.f32 %v6605_v21, %v6564_v41  ;;  %v6617_v0 = vadd.f32 1e-05, %v391_v42  ;;  %vm514_vm10 = vweird.f32 %v6605_v21  ;;  %v394_v44 = vmul.f32 %v322_v2, %v6180_v40 }
 0x133   :  { %v518_v15 = vmul.f32 %v6610_v23, %v6576_v27  ;;  %5710 = vrsqrt.f32 %v6607_v47  ;;  %vm524_vm12 = vweird.f32 %v6610_v23  ;;  %vm6649_vm13 = vmor %vm513_vm7, %vm514_vm10  ;;  %v362_v6 = vsel %vm9520_vm0, %v280_v9, 0.0 }
 0x134   :  { %v509_v8 = vmul.f32 %v6605_v21, %v508_v29  ;;  %5712 = vrsqrt.f32 %v6617_v0  ;;  %v217_v29 = vmul.f32 %v6180_v40, %v6534_v22  ;;  %vm6665_vm15 = vcmp.eq.s32.totalorder %v1189_v19, %v6423_v46  ;;  %vm6677_vm1 = vmor %vm523_vm11, %vm524_vm12 }
 0x135   :  { %v519_v54 = vmul.f32 %v6610_v23, %v518_v15  ;;  %v9664_v41 = vmov 0  ;;  %v6672_v2 = vpack.c.bf16 %v842_v16, %v841_v20  ;;  %v6687_v16 = vadd.f32 1e-05, %v394_v44 }
 0x136   :  { %v510_v32 = vmul.f32 0.5, %v509_v8  ;;  %176 = vadd.xlane.f32.xlu2 %v175_v3  ;;  %v319_v36 = vpop.xlane.xlu2 %318  ;;  %v9665_v41 = vsel %vm6665_vm15, 4294967295, %v9664_v41  ;;  %v6692_v27 = vsub.f32 %v6254_v37, %v217_v29  ;;  %v6697_v20 = vsel %vm6660_vm14, 1.0, %v9509_v35 }
 0x137   :  { %v520_v30 = vmul.f32 0.5, %v519_v54  ;;  %v393_v42 = vmul.f32 %v319_v36, %v6180_v40  ;;  %9666 = vst [vmem:[#allocation16_spill] sm:$0xff] %v9665_v41  ;;  %v6708_v8 = vsel %vm6665_vm15, 1.0, %v9509_v35  ;;  %vm543_vm2 = vweird.f32 %v6607_v47  ;;  %v325_v9 = vpop.xlane.xlu0 %324 }
 0x138   :  { %v511_v18 = vsub.f32 1.5, %v510_v32  ;;  %v9661_v32 = vmov 0  ;;  %9669 = vst [vmem:[#allocation17_spill] sm:$0xff] %v6697_v20  ;;  %v5652_v35 = vpack.i.bf16 %v6708_v8, %v6697_v20  ;;  %vm533_vm6 = vweird.f32 %v6617_v0 }
 0x139   :  { %v6637_v26 = vpop.eup %5710  ;;  %v521_v15 = vsub.f32 1.5, %v520_v30  ;;  %v9662_v32 = vsel %vm6660_vm14, 4294967295, %v9661_v32  ;;  %v6670_v30 = vadd.f32 1e-05, %v393_v42  ;;  %v1169_v42 = vadd.s32 72, %v6385_v56  ;;  %9670 = vst [vmem:[#allocation18_spill] sm:$0xff] %v6708_v8 }
 0x13a   :  { %v6643_v3 = vpop.eup %5712  ;;  %v512_v24 = vmul.f32 %v6605_v21, %v511_v18  ;;  %v538_v22 = vmul.f32 %v6637_v26, %v6607_v47  ;;  %9663 = vst [vmem:[#allocation15_spill] sm:$0xff] %v9662_v32  ;;  %v1168_v18 = vadd.s32 64, %v6385_v56  ;;  %vm544_vm5 = vweird.f32 %v6637_v26 }
 0x13b   :  { %v528_v54 = vmul.f32 %v6643_v3, %v6617_v0  ;;  %v522_v36 = vmul.f32 %v6610_v23, %v521_v15  ;;  %5714 = vrsqrt.f32 %v6670_v30  ;;  %vm534_vm7 = vweird.f32 %v6643_v3  ;;  %vm6761_vm10 = vmor %vm543_vm2, %vm544_vm5 }
 0x13c   :  { %v516_v52 = vsel %vm6649_vm13, %v6605_v21, %v512_v24  ;;  %v539_v19 = vmul.f32 %v6637_v26, %v538_v22  ;;  %v6703_v24 = vld [vmem:[#allocation2 + $0xf8] sm:$0xff]  ;;  %v1184_v44 = vshra.s32 %v1168_v18, 5  ;;  %5716 = vrsqrt.f32 %v6687_v16  ;;  %vm6771_vm11 = vmor %vm533_vm6, %vm534_vm7 }
 0x13d   :  { %v529_v15 = vmul.f32 %v6643_v3, %v528_v54  ;;  %v526_v21 = vsel %vm6677_vm1, %v6610_v23, %v522_v36  ;;  %v773_v37 = vmul.f32 %v516_v52, %v6258_v43  ;;  %v1185_v54 = vshra.s32 %v1169_v42, 5 }
 0x13e   :  { %5392 = vmatmul.msk.bf16.gmra.mxu0 %vm9520_vm0, %v6672_v2  ;;  %363 = vadd.xlane.f32.xlu2 %v362_v6  ;;  %v540_v29 = vmul.f32 0.5, %v539_v19  ;;  %v328_v6 = vpop.xlane.xlu1 %327  ;;  %v181_v23 = vsel %vm9520_vm0, %v6703_v24, 0.0  ;;  %v774_v36 = vmul.f32 %v526_v21, %v6266_v48  ;;  %v281_v43 = vmul.f32 %v6692_v27, %v6692_v27 }
 0x13f   :  { %v530_v22 = vmul.f32 0.5, %v529_v15  ;;  %v808_v18 = vmul.f32 %v6441_v62, %v773_v37  ;;  %vm6722_vm3 = vcmp.eq.s32.totalorder %v1184_v44, %v6423_v46  ;;  %v9671_v15 = vmov 0 }
 0x140   :  { %v541_v52 = vsub.f32 1.5, %v540_v29  ;;  %v9672_v15 = vsel %vm6722_vm3, 4294967295, %v9671_v15  ;;  %vm6727_vm4 = vcmp.eq.s32.totalorder %v1185_v54, %v6423_v46  ;;  %v9674_v48 = vmov 0 }
 0x141   :  { %v531_v19 = vsub.f32 1.5, %v530_v22  ;;  %9673 = vst [vmem:[#allocation19_spill] sm:$0xff] %v9672_v15  ;;  %v9675_v48 = vsel %vm6727_vm4, 4294967295, %v9674_v48  ;;  %v6731_v42 = vpop.eup %5714  ;;  %v396_v21 = vmul.f32 %v328_v6, %v6180_v40  ;;  %v1166_v37 = vadd.s32 48, %v6385_v56 }
 0x142   :  { %9676 = vst [vmem:[#allocation20_spill] sm:$0xff] %v9675_v48  ;;  %v1167_v29 = vadd.s32 56, %v6385_v56  ;;  %v395_v22 = vmul.f32 %v325_v9, %v6180_v40  ;;  %v809_v44 = vmul.f32 %v6441_v62, %v774_v36  ;;  %v6741_v54 = vpop.eup %5716  ;;  %v365_v41 = vsel %vm9520_vm0, %v281_v43, 0.0 }
 0x143   :  { %v843_v6 = vadd.f32 %v6467_v59, %v808_v18  ;;  %v542_v36 = vmul.f32 %v6637_v26, %v541_v52  ;;  %v532_v9 = vmul.f32 %v6643_v3, %v531_v19  ;;  %v548_v43 = vmul.f32 %v6731_v42, %v6670_v30 }
 0x144   :  { %v844_v18 = vadd.f32 %v6467_v59, %v809_v44  ;;  %v6775_v52 = vadd.f32 1e-05, %v396_v21  ;;  %v1182_v47 = vshra.s32 %v1166_v37, 5  ;;  %v1183_v15 = vshra.s32 %v1167_v29, 5 }
 0x145   :  { %v558_v7 = vmul.f32 %v6741_v54, %v6687_v16  ;;  %v6779_v4 = vadd.f32 1e-05, %v395_v22  ;;  %v546_v0 = vsel %vm6761_vm10, %v6637_v26, %v542_v36  ;;  %v536_v21 = vsel %vm6771_vm11, %v6643_v3, %v532_v9 }
 0x146   :  { %182 = vadd.xlane.f32.xlu2 %v181_v23  ;;  %v9677_v23 = vmov 0.0   ;;  %v6781_v19 = vpack.c.bf16 %v844_v18, %v843_v6  ;;  %v549_v37 = vmul.f32 %v6731_v42, %v548_v43  ;;  %5718 = vrsqrt.f32 %v6775_v52  ;;  %v331_v43 = vpop.xlane.xlu0 %330 }
 0x147   :  { %v6749_v32 = vsel %vm6722_vm3, 1.0, %v9677_v23  ;;  %v6754_v13 = vsel %vm6727_vm4, 1.0, %v9677_v23  ;;  %vm6796_vm12 = vcmp.eq.s32.totalorder %v1182_v47, %v6423_v46  ;;  %vm6801_vm13 = vcmp.eq.s32.totalorder %v1183_v15, %v6423_v46 }
 0x148   :  { %5653 = vrot.lane.b32.xlu1 %v5652_v35, %s6050_s20  ;;  %9678 = vst [vmem:[#allocation21_spill] sm:$0xff] %v6749_v32  ;;  %v5662_v44 = vpack.i.bf16 %v6754_v13, %v6749_v32  ;;  %v9687_v29 = vmov 0  ;;  %v559_v26 = vmul.f32 %v6741_v54, %v558_v7  ;;  %5720 = vrsqrt.f32 %v6779_v4 }
 0x149   :  { %9679 = vst [vmem:[#allocation22_spill] sm:$0xff] %v6754_v13  ;;  %v9688_v29 = vsel %vm6801_vm13, 4294967295, %v9687_v29  ;;  %v775_v3 = vmul.f32 %v536_v21, %v6288_v5  ;;  %v776_v48 = vmul.f32 %v546_v0, %v6283_v60  ;;  %v1170_v22 = vadd.s32 80, %v6385_v56 }
 0x14a   :  { %9689 = vst [vmem:[#allocation24_spill] sm:$0xff] %v9688_v29  ;;  %v1171_v6 = vadd.s32 88, %v6385_v56  ;;  %v550_v36 = vmul.f32 0.5, %v549_v37  ;;  %v6815_v15 = vsel %vm6796_vm12, 1.0, %v9677_v23  ;;  %v6820_v7 = vsel %vm6801_vm13, 1.0, %v9677_v23 }
 0x14b   :  { %9690 = vst [vmem:[#allocation25_spill] sm:$0xff] %v6815_v15  ;;  %v1186_v35 = vshra.s32 %v1170_v22, 5  ;;  %v560_v5 = vmul.f32 0.5, %v559_v26  ;;  %v5667_v18 = vpack.i.bf16 %v6820_v7, %v6815_v15  ;;  %v810_v47 = vmul.f32 %v6441_v62, %v775_v3  ;;  %v334_v22 = vpop.xlane.xlu1 %333 }
 0x14c   :  { %366 = vadd.xlane.f32.xlu0 %v365_v41  ;;  %v9684_v41 = vmov 0  ;;  %9691 = vst [vmem:[#allocation26_spill] sm:$0xff] %v6820_v7  ;;  %v1187_v9 = vshra.s32 %v1171_v6, 5  ;;  %v6822_v60 = vpop.eup %5718  ;;  %v9692_v0 = vmov 0  ;;  %v551_v37 = vsub.f32 1.5, %v550_v36 }
 0x14d   :  { %v9685_v41 = vsel %vm6796_vm12, 4294967295, %v9684_v41  ;;  %vm6829_vm1 = vcmp.eq.s32.totalorder %v1186_v35, %v6423_v46  ;;  %v9695_v26 = vmov 0  ;;  %vm553_vm5 = vweird.f32 %v6670_v30 }
 0x14e   :  { %5393 = vmatmul.msk.bf16.gmra.mxu0 %vm9520_vm0, %v6781_v19  ;;  %9686 = vst [vmem:[#allocation23_spill] sm:$0xff] %v9685_v41  ;;  %v9693_v0 = vsel %vm6829_vm1, 4294967295, %v9692_v0  ;;  %v6833_v21 = vpop.eup %5720  ;;  %vm6836_vm2 = vcmp.eq.s32.totalorder %v1187_v9, %v6423_v46  ;;  %v397_v3 = vmul.f32 %v331_v43, %v6180_v40  ;;  %v561_v6 = vsub.f32 1.5, %v560_v5 }
 0x14f   :  { %9694 = vst [vmem:[#allocation27_spill] sm:$0xff] %v9693_v0  ;;  %v9696_v26 = vsel %vm6836_vm2, 4294967295, %v9695_v26  ;;  %vm554_vm6 = vweird.f32 %v6731_v42  ;;  %v6851_v36 = vsel %vm6836_vm2, 1.0, %v9677_v23  ;;  %vm563_vm7 = vweird.f32 %v6687_v16 }
 0x150   :  { %5663 = vrot.lane.b32.xlu1 %v5662_v44, %s6050_s20  ;;  %v811_v44 = vmul.f32 %v6441_v62, %v776_v48  ;;  %9697 = vst [vmem:[#allocation28_spill] sm:$0xff] %v9696_v26  ;;  %v6846_v48 = vsel %vm6829_vm1, 1.0, %v9677_v23  ;;  %v398_v35 = vmul.f32 %v334_v22, %v6180_v40  ;;  %v845_v9 = vadd.f32 %v6467_v59, %v810_v47  ;;  %vm555_vm11 = vmor %vm553_vm5, %vm554_vm6 }
 0x151   :  { %9698 = vst [vmem:[#allocation29_spill] sm:$0xff] %v6846_v48  ;;  %vm564_vm10 = vweird.f32 %v6741_v54  ;;  %v552_v43 = vmul.f32 %v6731_v42, %v551_v37  ;;  %v578_v29 = vmul.f32 %v6822_v60, %v6775_v52  ;;  %v568_v41 = vmul.f32 %v6833_v21, %v6779_v4 }
 0x152   :  { %9699 = vst [vmem:[#allocation30_spill] sm:$0xff] %v6851_v36  ;;  %v846_v5 = vadd.f32 %v6467_v59, %v811_v44  ;;  %v5657_v16 = vpack.i.bf16 %v6851_v36, %v6846_v48  ;;  %v429_v47 = vadd.f32 1e-05, %v397_v3  ;;  %vm565_vm0 = vmor %vm563_vm7, %vm564_vm10  ;;  %v430_v44 = vadd.f32 1e-05, %v398_v35 }
 0x153   :  { %v556_v37 = vsel %vm555_vm11, %v6731_v42, %v552_v43  ;;  %v579_v26 = vmul.f32 %v6822_v60, %v578_v29  ;;  %v569_v0 = vmul.f32 %v6833_v21, %v568_v41  ;;  %vm9700_vm13 = vcmask 523264  }
 0x154   :  { %v6869_v22 = vpack.c.bf16 %v846_v5, %v845_v9  ;;  %5722 = vrsqrt.f32 %v429_v47  ;;  %v777_v3 = vmul.f32 %v556_v37, %v6304_v17  ;;  %vm584_vm5 = vweird.f32 %v6822_v60 }
 0x155   :  { %5724 = vrsqrt.f32 %v430_v44  ;;  %v570_v35 = vmul.f32 0.5, %v569_v0  ;;  %vm574_vm6 = vweird.f32 %v6833_v21  ;;  %vm9703_vm11 = vcmask 523264  }
 0x156   :  { %v812_v42 = vmul.f32 %v6441_v62, %v777_v3 }
 0x157   :  { %v571_v41 = vsub.f32 1.5, %v570_v35 }
 0x158   :  { %5668 = vrot.lane.b32.xlu1 %v5667_v18, %s6050_s20  ;;  %v562_v18 = vmul.f32 %v6741_v54, %v561_v6  ;;  %v580_v6 = vmul.f32 0.5, %v579_v26  ;;  %v847_v17 = vadd.f32 %v6467_v59, %v812_v42 }
 0x159   :  { %v572_v26 = vmul.f32 %v6833_v21, %v571_v41 }
 0x15a   :  { %v566_v30 = vsel %vm565_vm0, %v6741_v54, %v562_v18  ;;  %v5723_v29 = vpop.eup %5722  ;;  %v581_v5 = vsub.f32 1.5, %v580_v6  ;;  %vm573_vm0 = vweird.f32 %v6779_v4  ;;  %v337_v18 = vpop.xlane.xlu1 %336 }
 0x15b   :  { %v778_v9 = vmul.f32 %v566_v30, %v6278_v58  ;;  %v5725_v43 = vpop.eup %5724  ;;  %vm575_vm10 = vmor %vm573_vm0, %vm574_vm6  ;;  %v399_v4 = vmul.f32 %v337_v18, %v6180_v40  ;;  %vm603_vm0 = vweird.f32 %v430_v44 }
 0x15c   :  { %v582_v58 = vmul.f32 %v6822_v60, %v581_v5  ;;  %v576_v6 = vsel %vm575_vm10, %v6833_v21, %v572_v26  ;;  %vm604_vm6 = vweird.f32 %v5725_v43 }
 0x15d   :  { %v813_v54 = vmul.f32 %v6441_v62, %v778_v9  ;;  %v431_v42 = vadd.f32 1e-05, %v399_v4  ;;  %v779_v5 = vmul.f32 %v576_v6, %v6300_v10  ;;  %vm605_vm10 = vmor %vm603_vm0, %vm604_vm6 }
 0x15e   :  { %5394 = vmatmul.msk.bf16.gmra.mxu0 %vm9700_vm13, %v6869_v22  ;;  %5658 = vrot.lane.b32.xlu2 %v5657_v16, %s6050_s20  ;;  %vm583_vm13 = vweird.f32 %v6775_v52  ;;  %v598_v16 = vmul.f32 %v5725_v43, %v430_v44  ;;  %v588_v52 = vmul.f32 %v5723_v29, %v429_v47 }
 0x15f   :  { %vm6888_vm7 = vmor %vm583_vm13, %vm584_vm5  ;;  %v848_v37 = vadd.f32 %v6467_v59, %v813_v54  ;;  %5726 = vrsqrt.f32 %v431_v42  ;;  %vm593_vm13 = vweird.f32 %v429_v47  ;;  %vm594_vm5 = vweird.f32 %v5723_v29 }
 0x160   :  { %v586_v3 = vsel %vm6888_vm7, %v6822_v60, %v582_v58  ;;  %v599_v35 = vmul.f32 %v5725_v43, %v598_v16  ;;  %v589_v9 = vmul.f32 %v5723_v29, %v588_v52  ;;  %vm595_vm7 = vmor %vm593_vm13, %vm594_vm5  ;;  %vm613_vm5 = vweird.f32 %v431_v42 }
 0x161   :  { %v6895_v30 = vpack.c.bf16 %v848_v37, %v847_v17  ;;  %v780_v41 = vmul.f32 %v586_v3, %v6309_v28  ;;  %v814_v17 = vmul.f32 %v6441_v62, %v779_v5  ;;  %v218_v37 = vmul.f32 %v6180_v40, %v6539_v34  ;;  %vm9704_vm13 = vmmov %vm9703_vm11 }
 0x162   :  { %v600_v54 = vmul.f32 0.5, %v599_v35  ;;  %v590_v18 = vmul.f32 0.5, %v589_v9  ;;  %v5950_v35 = vld [vmem:[#allocation2 + $0xd8] sm:$0xff] }
 0x163   :  { %v815_v0 = vmul.f32 %v6441_v62, %v780_v41  ;;  %v849_v21 = vadd.f32 %v6467_v59, %v814_v17  ;;  %v6914_v9 = vsub.f32 %v5950_v35, %v218_v37 }
 0x164   :  { %v601_v60 = vsub.f32 1.5, %v600_v54  ;;  %v591_v58 = vsub.f32 1.5, %v590_v18 }
 0x165   :  { %v850_v26 = vadd.f32 %v6467_v59, %v815_v0  ;;  %v5727_v52 = vpop.eup %5726 }
 0x166   :  { %v602_v10 = vmul.f32 %v5725_v43, %v601_v60  ;;  %v592_v16 = vmul.f32 %v5723_v29, %v591_v58  ;;  %v608_v6 = vmul.f32 %v5727_v52, %v431_v42  ;;  %vm614_vm0 = vweird.f32 %v5727_v52 }
 0x167   :  { %v6912_v3 = vpack.c.bf16 %v850_v26, %v849_v21  ;;  %vm6940_vm6 = vmor %vm613_vm5, %vm614_vm0 }
 0x168   :  { %v606_v47 = vsel %vm605_vm10, %v5725_v43, %v602_v10  ;;  %v596_v44 = vsel %vm595_vm7, %v5723_v29, %v592_v16  ;;  %v609_v54 = vmul.f32 %v5727_v52, %v608_v6  ;;  %v282_v29 = vmul.f32 %v6914_v9, %v6914_v9  ;;  %vm9707_vm7 = vmmov %vm9703_vm11 }
 0x169   :  { %v781_v41 = vmul.f32 %v596_v44, %v6322_v38  ;;  %v782_v34 = vmul.f32 %v606_v47, %v6325_v39  ;;  %vm9708_vm5 = vmmov %vm9707_vm7 }
 0x16a   :  { %v610_v58 = vmul.f32 0.5, %v609_v54  ;;  %v368_v38 = vsel %vm9704_vm13, %v282_v29, 0.0 }
 0x16b   :  { %v816_v0 = vmul.f32 %v6441_v62, %v781_v41  ;;  %v817_v60 = vmul.f32 %v6441_v62, %v782_v34 }
 0x16c   :  { %v611_v26 = vsub.f32 1.5, %v610_v58 }
 0x16d   :  { %v851_v39 = vadd.f32 %v6467_v59, %v816_v0  ;;  %v852_v21 = vadd.f32 %v6467_v59, %v817_v60 }
 0x16e   :  { %5395 = vmatmul.msk.bf16.gmra.mxu0 %vm9703_vm11, %v6895_v30  ;;  %v612_v47 = vmul.f32 %v5727_v52, %v611_v26 }
 0x179   :  { %v346_v28 = vpop.xlane.xlu0 %345 }
 0x17a   :  { %v402_v4 = vmul.f32 %v346_v28, %v6180_v40 }
 0x17c   :  { %v6918_v5 = vadd.f32 1e-05, %v402_v4  ;;  %v6934_v4 = vpack.c.bf16 %v852_v21, %v851_v39 }
 0x17e   :  { %5396 = vmatmul.msk.bf16.gmra.mxu0 %vm9703_vm11, %v6912_v3  ;;  %5728 = vrsqrt.f32 %v6918_v5  ;;  %vm643_vm0 = vweird.f32 %v6918_v5 }
 0x181   :  { %v340_v18 = vpop.xlane.xlu2 %339  ;;  %v358_v35 = vpop.xlane.xlu0 %357 }
 0x182   :  { %v400_v17 = vmul.f32 %v340_v18, %v6180_v40  ;;  %v406_v54 = vmul.f32 %v358_v35, %v6180_v40  ;;  %v616_v18 = vsel %vm6940_vm6, %v5727_v52, %v612_v47 }
 0x184   :  { %v432_v43 = vadd.f32 1e-05, %v400_v17  ;;  %v6931_v10 = vpop.eup %5728  ;;  %v6953_v21 = vadd.f32 1e-05, %v406_v54 }
 0x185   :  { %v638_v44 = vmul.f32 %v6931_v10, %v6918_v5  ;;  %vm644_vm6 = vweird.f32 %v6931_v10 }
 0x186   :  { %5730 = vrsqrt.f32 %v432_v43  ;;  %vm623_vm11 = vweird.f32 %v432_v43 }
 0x187   :  { %369 = vadd.xlane.f32.xlu2 %v368_v38  ;;  %v639_v17 = vmul.f32 %v6931_v10, %v638_v44 }
 0x189   :  { %v640_v52 = vmul.f32 0.5, %v639_v17 }
 0x18a   :  { %v349_v16 = vpop.xlane.xlu1 %348 }
 0x18b   :  { %v403_v28 = vmul.f32 %v349_v16, %v6180_v40  ;;  %v783_v16 = vmul.f32 %v616_v18, %v6335_v49  ;;  %v5604_v49 = vld [vmem:[%s9501_s3 + $0x34] sm:$0xf] }
 0x18c   :  { %v5731_v37 = vpop.eup %5730 }
 0x18d   :  { %v618_v6 = vmul.f32 %v5731_v37, %v432_v43  ;;  %v6938_v41 = vadd.f32 1e-05, %v403_v28  ;;  %vm624_vm10 = vweird.f32 %v5731_v37  ;;  %v5386_v43 = vld [vmem:[%s9501_s3 + $0x38] sm:$0xf0]  ;;  %v818_v54 = vmul.f32 %v6441_v62, %v783_v16 }
 0x18e   :  { %5397 = vmatmul.msk.bf16.gmra.mxu0 %vm9707_vm7, %v6934_v4  ;;  %vm625_vm13 = vmor %vm623_vm11, %vm624_vm10 }
 0x18f   :  { %v619_v42 = vmul.f32 %v5731_v37, %v618_v6  ;;  %5732 = vrsqrt.f32 %v6938_v41  ;;  %v853_v16 = vadd.f32 %v6467_v59, %v818_v54  ;;  %vm6993_vm7 = vmor %vm643_vm0, %vm644_vm6  ;;  %vm653_vm11 = vweird.f32 %v6938_v41 }
 0x190   :  { %vm9712_vm10 = vmmov %vm9708_vm5 }
 0x191   :  { %v620_v29 = vmul.f32 0.5, %v619_v42  ;;  %v343_v0 = vpop.xlane.xlu2 %342 }
 0x192   :  { %v401_v60 = vmul.f32 %v343_v0, %v6180_v40  ;;  %v174_v58 = vpop.xlane.xlu1 %173 }
 0x193   :  { %v621_v38 = vsub.f32 1.5, %v620_v29  ;;  %v219_v39 = vmul.f32 %v6180_v40, %v174_v58  ;;  %v5389_v29 = vor.u32 %v5604_v49, %v5386_v43 }
 0x194   :  { %v6955_v26 = vadd.f32 1e-05, %v401_v60 }
 0x195   :  { %v6958_v28 = vpop.eup %5732  ;;  %v622_v47 = vmul.f32 %v5731_v37, %v621_v38  ;;  %v6961_v44 = vsub.f32 %v6494_v55, %v219_v39  ;;  %1074 = vmatpush.bf16.msrb.mxu1 %v5389_v29 }
 0x196   :  { %v648_v6 = vmul.f32 %v6958_v28, %v6938_v41  ;;  %5734 = vrsqrt.f32 %v6955_v26  ;;  %vm633_vm6 = vweird.f32 %v6955_v26  ;;  %v5598_v41 = vld [vmem:[%s9501_s3 + $0x4] sm:$0xf] }
 0x197   :  { %v626_v35 = vsel %vm625_vm13, %v5731_v37, %v622_v47  ;;  %v283_v34 = vmul.f32 %v6961_v44, %v6961_v44  ;;  %5736 = vrsqrt.f32 %v6953_v21  ;;  %v641_v37 = vsub.f32 1.5, %v640_v52 }
 0x198   :  { %v649_v55 = vmul.f32 %v6958_v28, %v648_v6  ;;  %v784_v42 = vmul.f32 %v626_v35, %v6391_v57  ;;  %vm654_vm13 = vweird.f32 %v6958_v28 }
 0x199   :  { %v352_v18 = vpop.xlane.xlu2 %351  ;;  %v371_v17 = vsel %vm9708_vm5, %v283_v34, 0.0  ;;  %v642_v47 = vmul.f32 %v6931_v10, %v641_v37  ;;  %vm7031_vm0 = vmor %vm653_vm11, %vm654_vm13 }
 0x19a   :  { %v404_v0 = vmul.f32 %v352_v18, %v6180_v40  ;;  %372 = vadd.xlane.f32.xlu1 %v371_v17  ;;  %v819_v60 = vmul.f32 %v6441_v62, %v784_v42  ;;  %v650_v38 = vmul.f32 0.5, %v649_v55  ;;  %v361_v43 = vpop.xlane.xlu1 %360  ;;  %v5602_v55 = vld [vmem:[%s9501_s3 + $0x24] sm:$0xf]  ;;  %v5378_v42 = vld [vmem:[%s9501_s3 + $0x28] sm:$0xf0] }
 0x19b   :  { %v6983_v58 = vpop.f32.mrf.mxu0  ;;  %v5381_v37 = vor.u32 %v5602_v55, %v5378_v42  ;;  %v646_v18 = vsel %vm6993_vm7, %v6931_v10, %v642_v47  ;;  %v5600_v10 = vld [vmem:[%s9501_s3 + $0x14] sm:$0xf]  ;;  %v5370_v47 = vld [vmem:[%s9501_s3 + $0x18] sm:$0xf0] }
 0x19c   :  { %9709 = vst [vmem:[#allocation31_spill] sm:$0xff] %v6983_v58  ;;  %v5735_v57 = vpop.eup %5734  ;;  %v6985_v39 = vadd.f32 1e-05, %v404_v0  ;;  %v854_v52 = vadd.f32 %v6467_v59, %v819_v60  ;;  %v651_v54 = vsub.f32 1.5, %v650_v38  ;;  %v407_v60 = vmul.f32 %v361_v43, %v6180_v40 }
 0x19d   :  { %v628_v6 = vmul.f32 %v5735_v57, %v6955_v26  ;;  %v6991_v35 = vpop.eup %5736  ;;  %1075 = vmatpush.bf16.msrb.mxu1 %v5381_v37  ;;  %vm634_vm5 = vweird.f32 %v5735_v57  ;;  %v786_v43 = vmul.f32 %v646_v18, %v6374_v33  ;;  %v5373_v55 = vor.u32 %v5600_v10, %v5370_v47  ;;  %v5362_v26 = vld [vmem:[%s9501_s3 + $0x8] sm:$0xf0] }
 0x19e   :  { %5738 = vrsqrt.f32 %v6985_v39  ;;  %v6998_v34 = vpack.c.bf16 %v854_v52, %v853_v16  ;;  %v678_v17 = vmul.f32 %v6991_v35, %v6953_v21  ;;  %v652_v5 = vmul.f32 %v6958_v28, %v651_v54  ;;  %vm635_vm7 = vmor %vm633_vm6, %vm634_vm5 }
 0x19f   :  { %v629_v49 = vmul.f32 %v5735_v57, %v628_v6  ;;  %v7038_v54 = vadd.f32 1e-05, %v407_v60  ;;  %vm663_vm11 = vweird.f32 %v6985_v39  ;;  %vm683_vm5 = vweird.f32 %v6953_v21 }
 0x1a0   :  { %5398 = vmatmul.msk.bf16.vlgmr.msra.gmra.mxu1 %vm9712_vm10, %v6998_v34 }
 0x1a1   :  { %v630_v29 = vmul.f32 0.5, %v629_v49  ;;  %v355_v0 = vpop.xlane.xlu2 %354  ;;  %1076 = vmatpush.bf16.msrb.mxu1 %v5373_v55 }
 0x1a2   :  { %v405_v38 = vmul.f32 %v355_v0, %v6180_v40  ;;  %v679_v0 = vmul.f32 %v6991_v35, %v678_v17  ;;  %v656_v17 = vsel %vm7031_vm0, %v6958_v28, %v652_v5  ;;  %vm9719_vm0 = vcmask 523264  }
 0x1a3   :  { %v631_v16 = vsub.f32 1.5, %v630_v29  ;;  %v7017_v52 = vpop.f32.mrf.mxu0  ;;  %vm9720_vm6 = vmmov %vm9719_vm0 }
 0x1a4   :  { %9713 = vst [vmem:[#allocation32_spill] sm:$0xff] %v7017_v52  ;;  %v5739_v6 = vpop.eup %5738  ;;  %v7026_v49 = vadd.f32 1e-05, %v405_v38  ;;  %v821_v38 = vmul.f32 %v6441_v62, %v786_v43  ;;  %v680_v55 = vmul.f32 0.5, %v679_v0 }
 0x1a5   :  { %v632_v37 = vmul.f32 %v5735_v57, %v631_v16  ;;  %v658_v29 = vmul.f32 %v5739_v6, %v6985_v39  ;;  %v5365_v16 = vor.u32 %v5598_v41, %v5362_v26  ;;  %vm664_vm10 = vweird.f32 %v5739_v6 }
 0x1a6   :  { %5740 = vrsqrt.f32 %v7026_v49  ;;  %v681_v26 = vsub.f32 1.5, %v680_v55  ;;  %vm665_vm13 = vmor %vm663_vm11, %vm664_vm10 }
 0x1a7   :  { %v636_v33 = vsel %vm635_vm7, %v5735_v57, %v632_v37  ;;  %v659_v18 = vmul.f32 %v5739_v6, %v658_v29  ;;  %v5649_v57 = vpop.permute.xlu0 %5648  ;;  %5742 = vrsqrt.f32 %v7038_v54  ;;  %1077 = vmatpush.bf16.msrb.mxu1 %v5365_v16  ;;  %v7083_v16 = vpop.xlane.xlu1 %179  ;;  %vm684_vm7 = vweird.f32 %v6991_v35 }
 0x1a8   :  { %v785_v60 = vmul.f32 %v636_v33, %v6490_v50  ;;  %v787_v50 = vmul.f32 %v656_v17, %v6435_v14  ;;  %v7060_v5 = vunpack.i.l.bf16 %v5649_v57  ;;  %v856_v33 = vadd.f32 %v6467_v59, %v821_v38  ;;  %vm7110_vm11 = vmor %vm683_vm5, %vm684_vm7 }
 0x1a9   :  { %v660_v10 = vmul.f32 0.5, %v659_v18  ;;  %v177_v47 = vpop.xlane.xlu2 %176  ;;  %v7079_v39 = vunpack.i.h.bf16 %v5649_v57  ;;  %v1164_v57 = vadd.s32 32, %v6385_v56  ;;  %vm9727_vm5 = vmmov %vm9720_vm6 }
 0x1aa   :  { %v220_v37 = vmul.f32 %v6180_v40, %v177_v47  ;;  %v820_v29 = vmul.f32 %v6441_v62, %v785_v60  ;;  %9717 = vst [vmem:[#allocation34_spill] sm:$0xff] %v7060_v5  ;;  %v822_v38 = vmul.f32 %v6441_v62, %v787_v50 }
 0x1ab   :  { %v661_v15 = vsub.f32 1.5, %v660_v10  ;;  %v7055_v42 = vpop.f32.mrf.mxu0  ;;  %9718 = vst [vmem:[#allocation35_spill] sm:$0xff] %v7079_v39 }
 0x1ac   :  { %9716 = vst [vmem:[#allocation33_spill] sm:$0xff] %v7055_v42  ;;  %v7058_v28 = vpop.eup %5740  ;;  %v7063_v43 = vsub.f32 %v6602_v11, %v220_v37  ;;  %v855_v0 = vadd.f32 %v6467_v59, %v820_v29  ;;  %v1165_v37 = vadd.s32 40, %v6385_v56  ;;  %v682_v29 = vmul.f32 %v6991_v35, %v681_v26 }
 0x1ad   :  { %v662_v18 = vmul.f32 %v5739_v6, %v661_v15  ;;  %v668_v41 = vmul.f32 %v7058_v28, %v7026_v49  ;;  %v7077_v15 = vpop.eup %5742  ;;  %vm674_vm10 = vweird.f32 %v7058_v28 }
 0x1ae   :  { %v7070_v14 = vpack.c.bf16 %v856_v33, %v855_v0  ;;  %v284_v17 = vmul.f32 %v7063_v43, %v7063_v43  ;;  %v688_v33 = vmul.f32 %v7077_v15, %v7038_v54 }
 0x1af   :  { %v666_v11 = vsel %vm665_vm13, %v5739_v6, %v662_v18  ;;  %v669_v60 = vmul.f32 %v7058_v28, %v668_v41  ;;  %v1338_v6 = vmul.f32 %v7060_v5, %v7055_v42  ;;  %vm673_vm13 = vweird.f32 %v7026_v49 }
 0x1b0   :  { %5399 = vmatmul.msk.bf16.gmra.mxu1 %vm9719_vm0, %v7070_v14  ;;  %v374_v10 = vsel %vm9720_vm6, %v284_v17, 0.0  ;;  %v788_v47 = vmul.f32 %v666_v11, %v6545_v51  ;;  %v7097_v51 = vld [vmem:[%s9499_s1] ss:$0 sm:$0xff]  ;;  %v857_v17 = vadd.f32 %v6467_v59, %v822_v38  ;;  %v1180_v38 = vshra.s32 %v1164_v57, 5  ;;  %vm7121_vm0 = vmor %vm673_vm13, %vm674_vm10 }
 0x1b1   :  { %v670_v55 = vmul.f32 0.5, %v669_v60  ;;  %v364_v62 = vpop.xlane.xlu2 %363  ;;  %375 = vadd.xlane.f32.xlu0 %v374_v10  ;;  %vm9741_vm13 = vmmov %vm9727_vm5 }
 0x1b2   :  { %v408_v50 = vmul.f32 %v364_v62, %v6180_v40  ;;  %v823_v0 = vmul.f32 %v7097_v51, %v788_v47  ;;  %v1466_v47 = vpack.c.bf16 %v1338_v6, %v1338_v6  ;;  %v1181_v62 = vshra.s32 %v1165_v37, 5 }
 0x1b3   :  { %v671_v18 = vsub.f32 1.5, %v670_v55  ;;  %v7103_v41 = vpop.f32.mrf.mxu0  ;;  %v689_v6 = vmul.f32 %v7077_v15, %v688_v33  ;;  %vm7141_vm6 = vcmp.eq.s32.totalorder %v1180_v38, %v6423_v46 }
 0x1b4   :  { %9721 = vst [vmem:[#allocation36_spill] sm:$0xff] %v7103_v41  ;;  %v7114_v11 = vadd.f32 1e-05, %v408_v50  ;;  %v858_v60 = vadd.f32 %v6467_v59, %v823_v0  ;;  %v1339_v10 = vmul.f32 %v7079_v39, %v7103_v41  ;;  %v686_v59 = vsel %vm7110_vm11, %v6991_v35, %v682_v29 }
 0x1b5   :  { %v672_v55 = vmul.f32 %v7058_v28, %v671_v18  ;;  %v1908_v57 = vunpack.c.l.b16 %v1466_v47  ;;  %v7138_v0 = vadd.s32 16, %v6385_v56  ;;  %vm7146_vm7 = vcmp.eq.s32.totalorder %v1181_v62, %v6423_v46 }
 0x1b6   :  { %5744 = vrsqrt.f32 %v7114_v11  ;;  %v7126_v50 = vpack.c.bf16 %v858_v60, %v857_v17  ;;  %v1467_v7 = vpack.c.bf16 %v1339_v10, %v1339_v10  ;;  %v9729_v17 = vmov 0 }
 0x1b7   :  { %v676_v49 = vsel %vm7121_vm0, %v7058_v28, %v672_v55  ;;  %9728 = vst [vmem:[#allocation38_spill] sm:$0xff] %v7138_v0  ;;  %v9730_v17 = vsel %vm7141_vm6, 4294967295, %v9729_v17  ;;  %v9732_v35 = vmov 0  ;;  %v7151_v28 = vadd.s32 24, %v6385_v56  ;;  %vm9742_vm0 = vmmov %vm9727_vm5 }
 0x1b8   :  { %9726 = vst [vmem:[#allocation37_spill] sm:$0xff] %v7126_v50  ;;  %5400 = vmatmul.msk.bf16.vlgmr.msra.gmra.mxu3 %vm9727_vm5, %v7126_v50  ;;  %v1909_v37 = vunpack.c.l.b16 %v1467_v7  ;;  %v9733_v35 = vsel %vm7146_vm7, 4294967295, %v9732_v35  ;;  %v789_v26 = vmul.f32 %v676_v49, %v6562_v31  ;;  %v790_v60 = vmul.f32 %v686_v59, %v6394_v12 }
 0x1b9   :  { %v183_v18 = vpop.xlane.xlu2 %182  ;;  %9731 = vst [vmem:[#allocation39_spill] sm:$0xff] %v9730_v17  ;;  %v690_v10 = vmul.f32 0.5, %v689_v6  ;;  %v7171_v31 = vsel %vm7141_vm6, 1.0, %v9677_v23  ;;  %v7176_v12 = vsel %vm7146_vm7, 1.0, %v9677_v23  ;;  %v1178_v59 = vshra.s32 %v7138_v0, 5 }
 0x1ba   :  { %9734 = vst [vmem:[#allocation40_spill] sm:$0xff] %v9733_v35  ;;  %v222_v29 = vmul.f32 %v6180_v40, %v183_v18  ;;  %v5654_v7 = vpop.permute.xlu1 %5653  ;;  %v1917_v33 = vpack.c.b16 %v1909_v37, %v1908_v57  ;;  %v1179_v57 = vshra.s32 %v7151_v28, 5  ;;  %v824_v18 = vmul.f32 %v7097_v51, %v789_v26 }
 0x1bb   :  { %9735 = vst [vmem:[#allocation41_spill] sm:$0xff] %v7151_v28  ;;  %v7156_v47 = vunpack.i.h.bf16 %v5654_v7  ;;  %v7158_v55 = vunpack.i.l.bf16 %v5654_v7  ;;  %v7160_v38 = vpop.f32.mrf.mxu0  ;;  %vm694_vm11 = vweird.f32 %v7077_v15  ;;  %v691_v17 = vsub.f32 1.5, %v690_v10 }
 0x1bc   :  { %9737 = vst [vmem:[#allocation43_spill] sm:$0xff] %v7160_v38  ;;  %v7162_v62 = vpop.eup %5744  ;;  %v7165_v21 = vsub.f32 %v6703_v24, %v222_v29  ;;  %1932 = vrot.lane.b32.xlu2 %v1917_v33, %s6050_s20  ;;  %v825_v29 = vmul.f32 %v7097_v51, %v790_v60  ;;  %v5672_v0 = vpack.i.bf16 %v7176_v12, %v7171_v31  ;;  %v9743_v26 = vmov 0 }
 0x1bd   :  { %9736 = vst [vmem:[#allocation42_spill] sm:$0xff] %v7158_v55  ;;  %v698_v6 = vmul.f32 %v7162_v62, %v7114_v11  ;;  %v1336_v24 = vmul.f32 %v7158_v55, %v6983_v58  ;;  %v1337_v49 = vmul.f32 %v7156_v47, %v7017_v52  ;;  %vm7199_vm5 = vcmp.eq.s32.totalorder %v1178_v59, %v6423_v46 }
 0x1be   :  { %9738 = vst [vmem:[#allocation44_spill] sm:$0xff] %v7165_v21  ;;  %v286_v37 = vmul.f32 %v7165_v21, %v7165_v21  ;;  %v9744_v26 = vsel %vm7199_vm5, 4294967295, %v9743_v26  ;;  %vm7204_vm10 = vcmp.eq.s32.totalorder %v1179_v57, %v6423_v46  ;;  %v9746_v10 = vmov 0 }
 0x1bf   :  { %9739 = vst [vmem:[#allocation45_spill] sm:$0xff] %v7171_v31  ;;  %v699_v7 = vmul.f32 %v7162_v62, %v698_v6  ;;  %v1464_v33 = vpack.c.bf16 %v1336_v24, %v1336_v24  ;;  %v1465_v35 = vpack.c.bf16 %v1337_v49, %v1337_v49  ;;  %v9747_v10 = vsel %vm7204_vm10, 4294967295, %v9746_v10 }
 0x1c0   :  { %9740 = vst [vmem:[#allocation46_spill] sm:$0xff] %v7176_v12  ;;  %5406 = vmatmul.msk.bf16.vlgmr.msrb.gmra.mxu1 %vm9741_vm13, %v6514_v1  ;;  %v380_v28 = vsel %vm9742_vm0, %v286_v37, 0.0  ;;  %v7216_v37 = vld [vmem:[%s9500_s2] ss:$0 sm:$0xff]  ;;  %v692_v32 = vmul.f32 %v7077_v15, %v691_v17  ;;  %vm9752_vm0 = vweird.f32 %v7038_v54  ;;  %vm703_vm7 = vweird.f32 %v7114_v11 }
 0x1c1   :  { %9745 = vst [vmem:[#allocation47_spill] sm:$0xff] %v9744_v26  ;;  %v700_v60 = vmul.f32 0.5, %v699_v7  ;;  %v5659_v21 = vpop.permute.xlu2 %5658  ;;  %381 = vadd.xlane.f32.xlu1 %v380_v28  ;;  %v1906_v6 = vunpack.c.l.b16 %v1464_v33  ;;  %v1907_v24 = vunpack.c.l.b16 %v1465_v35  ;;  %v859_v28 = vadd.f32 %v7216_v37, %v824_v18  ;;  %vm7235_vm13 = vmor %vm9752_vm0, %vm694_vm11 }
 0x1c2   :  { %9748 = vst [vmem:[#allocation48_spill] sm:$0xff] %v9747_v10  ;;  %v7209_v1 = vunpack.i.h.bf16 %v5659_v21  ;;  %v7211_v49 = vunpack.i.l.bf16 %v5659_v21  ;;  %v5664_v59 = vpop.permute.xlu1 %5663  ;;  %v860_v12 = vadd.f32 %v7216_v37, %v825_v29  ;;  %v7246_v17 = vsel %vm7199_vm5, 1.0, %v9677_v23 }
 0x1c3   :  { %v701_v35 = vsub.f32 1.5, %v700_v60  ;;  %v7219_v7 = vunpack.i.h.bf16 %v5664_v59  ;;  %v7221_v57 = vunpack.i.l.bf16 %v5664_v59  ;;  %v7223_v33 = vpop.f32.mrf.mxu0  ;;  %v1916_v31 = vpack.c.b16 %v1907_v24, %v1906_v6  ;;  %9755 = vst [vmem:[#allocation52_spill] sm:$0xff] %v7246_v17 }
 0x1c4   :  { %9749 = vst [vmem:[#allocation49_spill] sm:$0xff] %v7209_v1  ;;  %v1334_v21 = vmul.f32 %v7211_v49, %v7055_v42  ;;  %v1335_v50 = vmul.f32 %v7209_v1, %v7103_v41  ;;  %vm9756_vm6 = vweird.f32 %v7162_v62  ;;  %v7254_v29 = vpack.c.bf16 %v860_v12, %v859_v28 }
 0x1c5   :  { %9750 = vst [vmem:[#allocation50_spill] sm:$0xff] %v7219_v7  ;;  %v702_v60 = vmul.f32 %v7162_v62, %v701_v35  ;;  %1930 = vrot.lane.b32.xlu2 %v1916_v31, %s6050_s20  ;;  %5673 = vrot.lane.b32.xlu0 %v5672_v0, %s6050_s20  ;;  %vm7250_vm12 = vmor %vm703_vm7, %vm9756_vm6  ;;  %v7259_v11 = vsel %vm7204_vm10, 1.0, %v9677_v23  ;;  %v1332_v31 = vmul.f32 %v7221_v57, %v6983_v58  ;;  %vm9760_vm6 = vcmask 523264  }
 0x1c6   :  { %9751 = vst [vmem:[#allocation51_spill] sm:$0xff] %v7223_v33  ;;  %v1462_v6 = vpack.c.bf16 %v1334_v21, %v1334_v21  ;;  %v1463_v24 = vpack.c.bf16 %v1335_v50, %v1335_v50  ;;  %v1333_v59 = vmul.f32 %v7219_v7, %v7017_v52  ;;  %v7271_v28 = vadd.s32 8, %v6385_v56  ;;  %vm9766_vm7 = vmmov %vm9760_vm6 }
 0x1c7   :  { %9759 = vst [vmem:[#allocation53_spill] sm:$0xff] %v7254_v29  ;;  %v706_v0 = vsel %vm7250_vm12, %v7162_v62, %v702_v60  ;;  %v696_v35 = vsel %vm7235_vm13, %v7077_v15, %v692_v32  ;;  %v5677_v62 = vpack.i.bf16 %v7259_v11, %v7246_v17  ;;  %v1176_v10 = vshra.s32 %v6385_v56, 5  ;;  %vm9773_vm13 = vmmov %vm9760_vm6 }
 0x1c8   :  { %5401 = vmatmul.msk.bf16.gmra.mxu3 %vm9760_vm6, %v7254_v29  ;;  %v1904_v12 = vunpack.c.l.b16 %v1462_v6  ;;  %v1905_v50 = vunpack.c.l.b16 %v1463_v24  ;;  %9761 = vst [vmem:[#allocation54_spill] sm:$0xff] %v7271_v28  ;;  %v792_v54 = vmul.f32 %v706_v0, %v6613_v25  ;;  %v1460_v29 = vpack.c.bf16 %v1332_v31, %v1332_v31  ;;  %vm9774_vm0 = vmmov %vm9760_vm6 }
 0x1c9   :  { %v1461_v13 = vpack.c.bf16 %v1333_v59, %v1333_v59  ;;  %v791_v18 = vmul.f32 %v696_v35, %v6512_v63  ;;  %v1177_v32 = vshra.s32 %v7271_v28, 5  ;;  %vm7292_vm12 = vcmp.eq.s32.totalorder %v1176_v10, %v6423_v46  ;;  %vm9777_vm6 = vmmov %vm9774_vm0 }
 0x1ca   :  { %v5669_v21 = vpop.permute.xlu1 %5668  ;;  %v1915_v60 = vpack.c.b16 %v1905_v50, %v1904_v12  ;;  %v827_v25 = vmul.f32 %v7097_v51, %v792_v54  ;;  %v9763_v15 = vmov 0  ;;  %v1902_v0 = vunpack.c.l.b16 %v1460_v29 }
 0x1cb   :  { %v7280_v26 = vunpack.i.h.bf16 %v5669_v21  ;;  %v7282_v6 = vunpack.i.l.bf16 %v5669_v21  ;;  %v7284_v24 = vpop.f32.mrf.mxu0  ;;  %v9764_v15 = vsel %vm7292_vm12, 4294967295, %v9763_v15  ;;  %v1903_v12 = vunpack.c.l.b16 %v1461_v13 }
 0x1cc   :  { %9762 = vst [vmem:[#allocation55_spill] sm:$0xff] %v7284_v24  ;;  %v826_v59 = vmul.f32 %v7097_v51, %v791_v18  ;;  %vm7304_vm11 = vcmp.eq.s32.totalorder %v1177_v32, %v6423_v46  ;;  %v9767_v50 = vmov 0  ;;  %v862_v10 = vadd.f32 %v7216_v37, %v827_v25 }
 0x1cd   :  { %1928 = vrot.lane.b32.xlu2 %v1915_v60, %s6050_s20  ;;  %5678 = vrot.lane.b32.xlu0 %v5677_v62, %s6050_s20  ;;  %9765 = vst [vmem:[#allocation56_spill] sm:$0xff] %v9764_v15  ;;  %v1330_v31 = vmul.f32 %v7282_v6, %v7055_v42  ;;  %v1331_v63 = vmul.f32 %v7280_v26, %v7103_v41  ;;  %v9768_v50 = vsel %vm7304_vm11, 4294967295, %v9767_v50  ;;  %v7312_v13 = vsel %vm7292_vm12, 1.0, %v9677_v23 }
 0x1ce   :  { %9769 = vst [vmem:[#allocation57_spill] sm:$0xff] %v9768_v50  ;;  %v1914_v35 = vpack.c.b16 %v1903_v12, %v1902_v0  ;;  %v861_v21 = vadd.f32 %v7216_v37, %v826_v59  ;;  %v1354_v32 = vmul.f32 %v7060_v5, %v7284_v24 }
 0x1cf   :  { %v1458_v62 = vpack.c.bf16 %v1330_v31, %v1330_v31  ;;  %v1459_v46 = vpack.c.bf16 %v1331_v63, %v1331_v63 }
 0x1d0   :  { %5407 = vmatmul.msk.bf16.gmra.mxu1 %vm9766_vm7, %v6583_v61  ;;  %v7319_v61 = vsel %vm7304_vm11, 1.0, %v9677_v23  ;;  %v7325_v54 = vpack.c.bf16 %v862_v10, %v861_v21  ;;  %v1482_v12 = vpack.c.bf16 %v1354_v32, %v1354_v32  ;;  %vm9778_vm7 = vmmov %vm9774_vm0  ;;  %vm9782_vm11 = vcmask 523264  }
 0x1d1   :  { %9771 = vst [vmem:[#allocation59_spill] sm:$0xff] %v7319_v61  ;;  %v5682_v18 = vpack.i.bf16 %v7319_v61, %v7312_v13  ;;  %v1900_v25 = vunpack.c.l.b16 %v1458_v62  ;;  %v1901_v23 = vunpack.c.l.b16 %v1459_v46 }
 0x1d2   :  { %9772 = vst [vmem:[#allocation60_spill] sm:$0xff] %v7325_v54  ;;  %v2023_v59 = vunpack.c.l.b16 %v1482_v12 }
 0x1d3   :  { %v7314_v29 = vpop.f32.mrf.mxu0  ;;  %v1913_v31 = vpack.c.b16 %v1901_v23, %v1900_v25 }
 0x1d4   :  { %9770 = vst [vmem:[#allocation58_spill] sm:$0xff] %v7314_v29  ;;  %v1355_v60 = vmul.f32 %v7079_v39, %v7314_v29 }
 0x1d5   :  { %1926 = vrot.lane.b32.xlu2 %v1914_v35, %s6050_s20  ;;  %v367_v35 = vpop.xlane.xlu0 %366 }
 0x1d6   :  { %v1483_v0 = vpack.c.bf16 %v1355_v60, %v1355_v60  ;;  %v409_v46 = vmul.f32 %v367_v35, %v6180_v40  ;;  %v221_v60 = vmul.f32 %v6180_v40, %v7083_v16  ;;  %v1353_v35 = vmul.f32 %v7156_v47, %v7223_v33 }
 0x1d8   :  { %5402 = vmatmul.msk.bf16.gmra.mxu3 %vm9773_vm13, %v7325_v54  ;;  %v2024_v63 = vunpack.c.l.b16 %v1483_v0  ;;  %v441_v21 = vadd.f32 1e-05, %v409_v46  ;;  %vm9780_vm13 = vmmov %vm9774_vm0 }
 0x1da   :  { %5683 = vrot.lane.b32.xlu1 %v5682_v18, %s6050_s20  ;;  %v2032_v10 = vpack.c.b16 %v2024_v63, %v2023_v59  ;;  %5746 = vrsqrt.f32 %v441_v21  ;;  %v5953_v18 = vld [vmem:[#allocation2 + $0xf0] sm:$0xff] }
 0x1db   :  { %v7338_v62 = vpop.f32.mrf.mxu0  ;;  %v7343_v32 = vsub.f32 %v5953_v18, %v221_v60  ;;  %v1481_v60 = vpack.c.bf16 %v1353_v35, %v1353_v35 }
 0x1dd   :  { %1924 = vrot.lane.b32.xlu2 %v1913_v31, %s6050_s20  ;;  %9775 = vst [vmem:[#allocation61_spill] sm:$0xff] %v7343_v32 }
 0x1e0   :  { %5408 = vmatmul.msk.bf16.gmra.mxu1 %vm9774_vm0, %v6672_v2  ;;  %v285_v2 = vmul.f32 %v7343_v32, %v7343_v32  ;;  %v5747_v23 = vpop.eup %5746  ;;  %vm713_vm0 = vweird.f32 %v441_v21 }
 0x1e1   :  { %v708_v0 = vmul.f32 %v5747_v23, %v441_v21 }
 0x1e2   :  { %2047 = vrot.lane.b32.xlu1 %v2032_v10, %s6050_s20  ;;  %v377_v12 = vsel %vm9778_vm7, %v285_v2, 0.0 }
 0x1e3   :  { %v7345_v25 = vpop.f32.mrf.mxu0  ;;  %v709_v16 = vmul.f32 %v5747_v23, %v708_v0 }
 0x1e4   :  { %9776 = vst [vmem:[#allocation62_spill] sm:$0xff] %v7345_v25 }
 0x1e5   :  { %v710_v46 = vmul.f32 0.5, %v709_v16 }
 0x1e7   :  { %v711_v18 = vsub.f32 1.5, %v710_v46 }
 0x1e9   :  { %v712_v16 = vmul.f32 %v5747_v23, %v711_v18 }
 0x1eb   :  { %v7352_v31 = vpop.f32.mrf.mxu0 }
 0x1ec   :  { %9779 = vst [vmem:[#allocation63_spill] sm:$0xff] %v7352_v31  ;;  %v1370_v28 = vmul.f32 %v7060_v5, %v7352_v31 }
 0x1ee   :  { %v1498_v21 = vpack.c.bf16 %v1370_v28, %v1370_v28 }
 0x1f0   :  { %5409 = vmatmul.msk.bf16.gmra.mxu1 %vm9777_vm6, %v6781_v19  ;;  %v1352_v19 = vmul.f32 %v7158_v55, %v7160_v38  ;;  %vm714_vm6 = vweird.f32 %v5747_v23  ;;  %v2138_v5 = vunpack.c.l.b16 %v1498_v21 }
 0x1f1   :  { %vm715_vm7 = vmor %vm713_vm0, %vm714_vm6 }
 0x1f2   :  { %v1480_v0 = vpack.c.bf16 %v1352_v19, %v1352_v19  ;;  %v716_v56 = vsel %vm715_vm7, %v5747_v23, %v712_v16  ;;  %vm9783_vm7 = vmmov %vm9782_vm11 }
 0x1f3   :  { %v7361_v2 = vpop.f32.mrf.mxu0  ;;  %v793_v18 = vmul.f32 %v716_v56, %v6692_v27 }
 0x1f4   :  { %9781 = vst [vmem:[#allocation64_spill] sm:$0xff] %v7361_v2  ;;  %v2021_v15 = vunpack.c.l.b16 %v1480_v0 }
 0x1f5   :  { %v828_v28 = vmul.f32 %v7097_v51, %v793_v18 }
 0x1f7   :  { %378 = vadd.xlane.f32.xlu0 %v377_v12  ;;  %v863_v27 = vadd.f32 %v7216_v37, %v828_v28 }
 0x1fa   :  { %v370_v63 = vpop.xlane.xlu2 %369 }
 0x1fb   :  { %v410_v59 = vmul.f32 %v370_v63, %v6180_v40  ;;  %v2022_v63 = vunpack.c.l.b16 %v1481_v60 }
 0x1fd   :  { %v442_v10 = vadd.f32 1e-05, %v410_v59  ;;  %v1371_v59 = vmul.f32 %v7079_v39, %v7361_v2  ;;  %v2031_v35 = vpack.c.b16 %v2022_v63, %v2021_v15 }
 0x1ff   :  { %5748 = vrsqrt.f32 %v442_v10  ;;  %v1499_v46 = vpack.c.bf16 %v1371_v59, %v1371_v59  ;;  %vm723_vm0 = vweird.f32 %v442_v10 }
 0x200   :  { %5410 = vmatmul.msk.bf16.gmra.mxu1 %vm9780_vm13, %v6869_v22 }
 0x201   :  { %v2139_v54 = vunpack.c.l.b16 %v1499_v46 }
 0x203   :  { %v2147_v15 = vpack.c.b16 %v2139_v54, %v2138_v5 }
 0x205   :  { %v5749_v12 = vpop.eup %5748 }
 0x206   :  { %v718_v50 = vmul.f32 %v5749_v12, %v442_v10  ;;  %vm724_vm13 = vweird.f32 %v5749_v12 }
 0x207   :  { %vm725_vm6 = vmor %vm723_vm0, %vm724_vm13 }
 0x208   :  { %v719_v22 = vmul.f32 %v5749_v12, %v718_v50  ;;  %vm9786_vm13 = vmmov %vm9783_vm7 }
 0x209   :  { %vm9787_vm0 = vmmov %vm9783_vm7 }
 0x20a   :  { %v720_v32 = vmul.f32 0.5, %v719_v22 }
 0x20b   :  { %2045 = vrot.lane.b32.xlu0 %v2031_v35, %s6050_s20 }
 0x20c   :  { %v721_v19 = vsub.f32 1.5, %v720_v32 }
 0x20d   :  { %v373_v60 = vpop.xlane.xlu1 %372 }
 0x20e   :  { %v722_v39 = vmul.f32 %v5749_v12, %v721_v19  ;;  %v411_v0 = vmul.f32 %v373_v60, %v6180_v40 }
 0x210   :  { %v726_v50 = vsel %vm725_vm6, %v5749_v12, %v722_v39  ;;  %5411 = vmatmul.msk.bf16.gmra.mxu1 %vm9782_vm11, %v6895_v30  ;;  %v443_v32 = vadd.f32 1e-05, %v411_v0  ;;  %vm9785_vm11 = vmmov %vm9783_vm7 }
 0x211   :  { %v794_v23 = vmul.f32 %v726_v50, %v6914_v9  ;;  %vm9788_vm6 = vmmov %vm9787_vm0 }
 0x212   :  { %5750 = vrsqrt.f32 %v443_v32 }
 0x213   :  { %2162 = vrot.lane.b32.xlu0 %v2147_v15, %s6050_s20  ;;  %v829_v56 = vmul.f32 %v7097_v51, %v794_v23 }
 0x215   :  { %v864_v10 = vadd.f32 %v7216_v37, %v829_v56 }
 0x216   :  { %v1933_v63 = vpop.permute.xlu2 %1932 }
 0x217   :  { %v1962_v39 = vsel %vm9783_vm7, %v1933_v63, 0  ;;  %v7379_v12 = vpack.c.bf16 %v864_v10, %v863_v27  ;;  %vm733_vm7 = vweird.f32 %v443_v32  ;;  %v7397_v10 = vpop.f32.mrf.mxu0 }
 0x218   :  { %1964 = vmatpush.bf16.xpose.msra.mxu2 %v1962_v39  ;;  %v5751_v30 = vpop.eup %5750 }
 0x219   :  { %9784 = vst [vmem:[#allocation65_spill] sm:$0xff] %v7379_v12  ;;  %5403 = vmatmul.msk.bf16.gmra.mxu3 %vm9785_vm11, %v7379_v12  ;;  %v728_v54 = vmul.f32 %v5751_v30, %v443_v32  ;;  %vm734_vm11 = vweird.f32 %v5751_v30 }
 0x21a   :  { %vm735_vm12 = vmor %vm733_vm7, %vm734_vm11 }
 0x21b   :  { %v729_v16 = vmul.f32 %v5751_v30, %v728_v54  ;;  %vm9794_vm7 = vmmov %vm9787_vm0 }
 0x21c   :  { %vm9797_vm11 = vmmov %vm9787_vm0 }
 0x21d   :  { %v7383_v9 = vpop.f32.mrf.mxu1  ;;  %v730_v60 = vmul.f32 0.5, %v729_v16 }
 0x21f   :  { %v1931_v5 = vpop.permute.xlu2 %1930  ;;  %v731_v0 = vsub.f32 1.5, %v730_v60 }
 0x220   :  { %5412 = vmatmul.msk.bf16.gmra.mxu1 %vm9786_vm13, %v6912_v3  ;;  %v1959_v59 = vsel %vm9787_vm0, %v1931_v5, 0  ;;  %vm9790_vm13 = vmmov %vm9787_vm0 }
 0x221   :  { %1965 = vmatpush.bf16.xpose.msra.mxu2 %v1959_v59  ;;  %v732_v23 = vmul.f32 %v5751_v30, %v731_v0  ;;  %v1349_v0 = vmul.f32 %v7219_v7, %v7223_v33 }
 0x223   :  { %v736_v63 = vsel %vm735_vm12, %v5751_v30, %v732_v23 }
 0x224   :  { %v376_v22 = vpop.xlane.xlu0 %375  ;;  %v795_v16 = vmul.f32 %v736_v63, %v6961_v44 }
 0x225   :  { %v412_v35 = vmul.f32 %v376_v22, %v6180_v40  ;;  %v7389_v46 = vpop.f32.mrf.mxu1 }
 0x227   :  { %v444_v21 = vadd.f32 1e-05, %v412_v35  ;;  %v1929_v19 = vpop.permute.xlu2 %1928 }
 0x228   :  { %v1956_v18 = vsel %vm9788_vm6, %v1929_v19, 0 }
 0x229   :  { %5752 = vrsqrt.f32 %v444_v21  ;;  %1966 = vmatpush.bf16.xpose.msra.mxu2 %v1956_v18  ;;  %vm743_vm10 = vweird.f32 %v444_v21 }
 0x22d   :  { %v7392_v50 = vpop.f32.mrf.mxu1 }
 0x22e   :  { %9789 = vst [vmem:[#allocation66_spill] sm:$0xff] %v7392_v50 }
 0x22f   :  { %v5753_v3 = vpop.eup %5752  ;;  %v1927_v15 = vpop.permute.xlu2 %1926 }
 0x230   :  { %v738_v28 = vmul.f32 %v5753_v3, %v444_v21  ;;  %5413 = vmatmul.msk.bf16.gmra.mxu1 %vm9790_vm13, %v6934_v4  ;;  %v1953_v56 = vsel %vm9787_vm0, %v1927_v15, 0  ;;  %vm744_vm6 = vweird.f32 %v5753_v3  ;;  %v1348_v4 = vmul.f32 %v7221_v57, %v7160_v38  ;;  %vm9798_vm13 = vmmov %vm9787_vm0 }
 0x231   :  { %1967 = vmatpush.bf16.xpose.msra.mxu2 %v1953_v56  ;;  %vm745_vm12 = vmor %vm743_vm10, %vm744_vm6 }
 0x232   :  { %v739_v27 = vmul.f32 %v5753_v3, %v738_v28  ;;  %v830_v28 = vmul.f32 %v7097_v51, %v795_v16  ;;  %v1476_v56 = vpack.c.bf16 %v1348_v4, %v1348_v4  ;;  %vm9795_vm10 = vmmov %vm9787_vm0 }
 0x233   :  { %vm9806_vm6 = vmmov %vm9787_vm0 }
 0x234   :  { %v740_v39 = vmul.f32 0.5, %v739_v27  ;;  %v7417_v27 = vpop.f32.mrf.mxu0  ;;  %v865_v4 = vadd.f32 %v7216_v37, %v830_v28 }
 0x235   :  { %v7399_v5 = vpop.f32.mrf.mxu1 }
 0x236   :  { %9791 = vst [vmem:[#allocation67_spill] sm:$0xff] %v7399_v5  ;;  %v741_v32 = vsub.f32 1.5, %v740_v39  ;;  %v1350_v39 = vmul.f32 %v7211_v49, %v7284_v24 }
 0x237   :  { %v1925_v54 = vpop.permute.xlu2 %1924  ;;  %v5674_v59 = vpop.permute.xlu0 %5673 }
 0x238   :  { %v742_v22 = vmul.f32 %v5753_v3, %v741_v32  ;;  %v7404_v35 = vunpack.i.h.bf16 %v5674_v59  ;;  %v7406_v19 = vunpack.i.l.bf16 %v5674_v59  ;;  %v1950_v30 = vsel %vm9794_vm7, %v1925_v54, 0  ;;  %vm9821_vm7 = vmmov %vm9787_vm0 }
 0x239   :  { %1968 = vmatpush.bf16.xpose.msra.mxu2 %v1950_v30  ;;  %v1347_v32 = vmul.f32 %v7280_v26, %v7314_v29  ;;  %v7432_v30 = vunpack.c.l.b16 %v1476_v56 }
 0x23a   :  { %9792 = vst [vmem:[#allocation68_spill] sm:$0xff] %v7404_v35  ;;  %v746_v60 = vsel %vm745_vm12, %v5753_v3, %v742_v22  ;;  %v1328_v21 = vmul.f32 %v7406_v19, %v6983_v58  ;;  %v1329_v18 = vmul.f32 %v7404_v35, %v7017_v52 }
 0x23b   :  { %9793 = vst [vmem:[#allocation69_spill] sm:$0xff] %v7406_v19  ;;  %v796_v44 = vmul.f32 %v746_v60, %v7063_v43  ;;  %v1351_v43 = vmul.f32 %v7209_v1, %v7314_v29  ;;  %v1346_v60 = vmul.f32 %v7282_v6, %v7284_v24 }
 0x23c   :  { %v1456_v15 = vpack.c.bf16 %v1328_v21, %v1328_v21  ;;  %v1457_v23 = vpack.c.bf16 %v1329_v18, %v1329_v18  ;;  %v7467_v50 = vpop.f32.mrf.mxu0 }
 0x23d   :  { %v7419_v63 = vpop.f32.mrf.mxu1  ;;  %v831_v3 = vmul.f32 %v7097_v51, %v796_v44  ;;  %v1477_v51 = vpack.c.bf16 %v1349_v0, %v1349_v0  ;;  %v1478_v44 = vpack.c.bf16 %v1350_v39, %v1350_v39  ;;  %v382_v39 = vpop.xlane.xlu1 %381 }
 0x23e   :  { %v1898_v59 = vunpack.c.l.b16 %v1456_v15  ;;  %v1899_v22 = vunpack.c.l.b16 %v1457_v23  ;;  %v1479_v15 = vpack.c.bf16 %v1351_v43, %v1351_v43  ;;  %v1364_v43 = vmul.f32 %v7221_v57, %v7338_v62 }
 0x23f   :  { %v5679_v54 = vpop.permute.xlu0 %5678  ;;  %v866_v16 = vadd.f32 %v7216_v37, %v831_v3  ;;  %v1475_v3 = vpack.c.bf16 %v1347_v32, %v1347_v32  ;;  %v7457_v32 = vunpack.c.l.b16 %v1477_v51  ;;  %v2019_v61 = vunpack.c.l.b16 %v1478_v44 }
 0x240   :  { %5414 = vmatmul.msk.bf16.gmra.mxu1 %vm9795_vm10, %v6998_v34  ;;  %v7436_v21 = vunpack.i.h.bf16 %v5679_v54  ;;  %v7438_v18 = vunpack.i.l.bf16 %v5679_v54  ;;  %v1912_v23 = vpack.c.b16 %v1899_v22, %v1898_v59  ;;  %v1365_v34 = vmul.f32 %v7219_v7, %v7345_v25 }
 0x241   :  { %v7440_v12 = vpack.c.bf16 %v866_v16, %v865_v4  ;;  %v1474_v54 = vpack.c.bf16 %v1346_v60, %v1346_v60  ;;  %v1369_v59 = vmul.f32 %v7156_v47, %v7345_v25  ;;  %v1492_v17 = vpack.c.bf16 %v1364_v43, %v1364_v43 }
 0x242   :  { %v1342_v37 = vmul.f32 %v7438_v18, %v7284_v24  ;;  %v1343_v0 = vmul.f32 %v7436_v21, %v7314_v29  ;;  %v1326_v28 = vmul.f32 %v7438_v18, %v7055_v42  ;;  %v1327_v56 = vmul.f32 %v7436_v21, %v7103_v41  ;;  %1922 = vrot.lane.b32.xlu2 %v1912_v23, %s6050_s20 }
 0x243   :  { %9796 = vst [vmem:[#allocation70_spill] sm:$0xff] %v7440_v12  ;;  %5404 = vmatmul.msk.bf16.gmra.mxu3 %vm9797_vm11, %v7440_v12  ;;  %v2020_v42 = vunpack.c.l.b16 %v1479_v15  ;;  %v1493_v23 = vpack.c.bf16 %v1365_v34, %v1365_v34  ;;  %v7463_v41 = vunpack.c.l.b16 %v1475_v3  ;;  %v1368_v12 = vmul.f32 %v7158_v55, %v7338_v62 }
 0x244   :  { %v1470_v16 = vpack.c.bf16 %v1342_v37, %v1342_v37  ;;  %v1471_v4 = vpack.c.bf16 %v1343_v0, %v1343_v0  ;;  %v1454_v24 = vpack.c.bf16 %v1326_v28, %v1326_v28  ;;  %v1455_v29 = vpack.c.bf16 %v1327_v56, %v1327_v56 }
 0x245   :  { %v7461_v22 = vpop.f32.mrf.mxu1  ;;  %v1366_v37 = vmul.f32 %v7211_v49, %v7352_v31  ;;  %v1497_v0 = vpack.c.bf16 %v1369_v59, %v1369_v59  ;;  %v7471_v34 = vunpack.c.l.b16 %v1474_v54  ;;  %v2030_v3 = vpack.c.b16 %v2020_v42, %v2019_v61 }
 0x246   :  { %v2011_v51 = vunpack.c.l.b16 %v1470_v16  ;;  %v2012_v60 = vunpack.c.l.b16 %v1471_v4  ;;  %v1896_v7 = vunpack.c.l.b16 %v1454_v24  ;;  %v1897_v5 = vunpack.c.l.b16 %v1455_v29 }
 0x247   :  { %v1496_v56 = vpack.c.bf16 %v1368_v12, %v1368_v12  ;;  %v2133_v16 = vunpack.c.l.b16 %v1493_v23  ;;  %v2029_v24 = vpack.c.b16 %v7457_v32, %v7432_v30  ;;  %v2132_v43 = vunpack.c.l.b16 %v1492_v17 }
 0x248   :  { %v2026_v28 = vpack.c.b16 %v2012_v60, %v2011_v51  ;;  %v1911_v15 = vpack.c.b16 %v1897_v5, %v1896_v7  ;;  %v1494_v7 = vpack.c.bf16 %v1366_v37, %v1366_v37  ;;  %v7480_v5 = vunpack.c.l.b16 %v1497_v0 }
 0x249   :  { %v1362_v42 = vmul.f32 %v7282_v6, %v7352_v31  ;;  %v1360_v30 = vmul.f32 %v7406_v19, %v7338_v62  ;;  %v1361_v32 = vmul.f32 %v7404_v35, %v7345_v25  ;;  %v1344_v17 = vmul.f32 %v7406_v19, %v7160_v38 }
 0x24a   :  { %2035 = vrot.lane.b32.xlu0 %v2026_v28, %s6050_s20  ;;  %1920 = vrot.lane.b32.xlu1 %v1911_v15, %s6050_s20  ;;  %v1345_v59 = vmul.f32 %v7404_v35, %v7223_v33  ;;  %v1367_v4 = vmul.f32 %v7209_v1, %v7361_v2  ;;  %v7500_v23 = vunpack.c.l.b16 %v1496_v56  ;;  %v2144_v51 = vpack.c.b16 %v2133_v16, %v2132_v43  ;;  %v7515_v16 = vpop.f32.mrf.mxu0 }
 0x24b   :  { %2043 = vrot.lane.b32.xlu2 %v2030_v3, %s6050_s20  ;;  %v1363_v0 = vmul.f32 %v7280_v26, %v7361_v2  ;;  %v414_v28 = vmul.f32 %v382_v39, %v6180_v40  ;;  %v7511_v15 = vunpack.c.l.b16 %v1494_v7  ;;  %v1490_v56 = vpack.c.bf16 %v1362_v42, %v1362_v42 }
 0x24c   :  { %v5684_v44 = vpop.permute.xlu1 %5683  ;;  %v1488_v29 = vpack.c.bf16 %v1360_v30, %v1360_v30  ;;  %v1472_v35 = vpack.c.bf16 %v1344_v17, %v1344_v17  ;;  %v1473_v39 = vpack.c.bf16 %v1345_v59, %v1345_v59  ;;  %v1495_v19 = vpack.c.bf16 %v1367_v4, %v1367_v4 }
 0x24d   :  { %v7484_v61 = vunpack.i.h.bf16 %v5684_v44  ;;  %v7486_v12 = vunpack.i.l.bf16 %v5684_v44  ;;  %v7488_v54 = vpop.f32.mrf.mxu1  ;;  %v1491_v25 = vpack.c.bf16 %v1363_v0, %v1363_v0  ;;  %v1384_v42 = vmul.f32 %v7158_v55, %v7397_v10 }
 0x24e   :  { %v7522_v3 = vadd.f32 1e-05, %v414_v28  ;;  %v1592_v30 = vmul.f32 %v6697_v20, %v7419_v63  ;;  %v1593_v17 = vmul.f32 %v6708_v8, %v7461_v22  ;;  %v1383_v59 = vmul.f32 %v7209_v1, %v7515_v16 }
 0x24f   :  { %v1324_v60 = vmul.f32 %v7486_v12, %v6983_v58  ;;  %v1325_v37 = vmul.f32 %v7484_v61, %v7017_v52  ;;  %v1489_v58 = vpack.c.bf16 %v1361_v32, %v1361_v32  ;;  %v1594_v52 = vmul.f32 %v6476_v53, %v7488_v54 }
 0x250   :  { %5415 = vmatmul.msk.bf16.gmra.mxu1 %vm9798_vm13, %v7070_v14  ;;  %v2128_v0 = vunpack.c.l.b16 %v1488_v29  ;;  %v2014_v20 = vunpack.c.l.b16 %v1473_v39  ;;  %v1382_v8 = vmul.f32 %v7211_v49, %v7467_v50  ;;  %v2135_v53 = vunpack.c.l.b16 %v1495_v19 }
 0x251   :  { %v1452_v44 = vpack.c.bf16 %v1324_v60, %v1324_v60  ;;  %v1453_v43 = vpack.c.bf16 %v1325_v37, %v1325_v37  ;;  %v7524_v60 = vpop.f32.mrf.mxu3  ;;  %v2129_v28 = vunpack.c.l.b16 %v1489_v58  ;;  %v7541_v1 = vunpack.c.l.b16 %v1490_v56 }
 0x252   :  { %2156 = vrot.lane.b32.xlu0 %v2144_v51, %s6050_s20  ;;  %9799 = vst [vmem:[#allocation71_spill] sm:$0xff] %v7524_v60  ;;  %v7543_v60 = vunpack.c.l.b16 %v1491_v25  ;;  %v1721_v29 = vpack.c.bf16 %v1593_v17, %v1593_v17  ;;  %5754 = vrsqrt.f32 %v7522_v3  ;;  %v1510_v25 = vpack.c.bf16 %v1382_v8, %v1382_v8 }
 0x253   :  { %v1894_v14 = vunpack.c.l.b16 %v1452_v44  ;;  %v1895_v7 = vunpack.c.l.b16 %v1453_v43  ;;  %2041 = vrot.lane.b32.xlu2 %v2029_v24, %s6050_s20  ;;  %v1722_v44 = vpack.c.bf16 %v1594_v52, %v1594_v52  ;;  %v2013_v24 = vunpack.c.l.b16 %v1472_v35 }
 0x254   :  { %v2048_v32 = vpop.permute.xlu1 %2047  ;;  %v1512_v52 = vpack.c.bf16 %v1384_v42, %v1384_v42  ;;  %v1720_v35 = vpack.c.bf16 %v1592_v30, %v1592_v30  ;;  %v2142_v39 = vpack.c.b16 %v2129_v28, %v2128_v0  ;;  %v2145_v17 = vpack.c.b16 %v2135_v53, %v7511_v15  ;;  %v9800_v28 = vld [vmem:[#allocation22_spill] sm:$0xff] }
 0x255   :  { %v7533_v4 = vpop.f32.mrf.mxu1  ;;  %v2077_v51 = vsel %vm9787_vm0, %v2048_v32, 0  ;;  %v1910_v37 = vpack.c.b16 %v1895_v7, %v1894_v14  ;;  %v1511_v7 = vpack.c.bf16 %v1383_v59, %v1383_v59  ;;  %v1590_v32 = vmul.f32 %v6846_v48, %v7488_v54 }
 0x256   :  { %v1595_v43 = vmul.f32 %v6484_v45, %v7533_v4  ;;  %2079 = vmatpush.bf16.xpose.msrb.mxu3 %v2077_v51  ;;  %v1591_v58 = vmul.f32 %v6851_v36, %v7533_v4  ;;  %v3195_v51 = vunpack.c.l.b16 %v1722_v44  ;;  %v2027_v19 = vpack.c.b16 %v2014_v20, %v2013_v24  ;;  %v9802_v24 = vld [vmem:[#allocation21_spill] sm:$0xff] }
 0x257   :  { %1918 = vrot.lane.b32.xlu1 %v1910_v37, %s6050_s20  ;;  %v1385_v42 = vmul.f32 %v7156_v47, %v7417_v27  ;;  %v3194_v59 = vunpack.c.l.b16 %v1721_v29  ;;  %v1589_v20 = vmul.f32 %v9800_v28, %v7461_v22  ;;  %v1401_v53 = vmul.f32 %v7156_v47, %v7389_v46  ;;  %v9807_v28 = vld [vmem:[#allocation26_spill] sm:$0xff] }
 0x258   :  { %v1723_v14 = vpack.c.bf16 %v1595_v43, %v1595_v43  ;;  %v1719_v0 = vpack.c.bf16 %v1591_v58, %v1591_v58  ;;  %v2250_v43 = vunpack.c.l.b16 %v1511_v7  ;;  %v7563_v8 = vunpack.c.l.b16 %v1512_v52 }
 0x259   :  { %v7567_v15 = vmul.f32 %v7221_v57, %v7397_v10  ;;  %v7571_v29 = vpop.f32.mrf.mxu3  ;;  %v1718_v58 = vpack.c.bf16 %v1590_v32, %v1590_v32  ;;  %v1378_v7 = vmul.f32 %v7282_v6, %v7467_v50  ;;  %v9804_v52 = vpack.c.b16 %v7463_v41, %v7471_v34 }
 0x25a   :  { %v3196_v56 = vunpack.c.l.b16 %v1723_v14  ;;  %2152 = vrot.lane.b32.xlu0 %v2142_v39, %s6050_s20  ;;  %v1588_v14 = vmul.f32 %v9802_v24, %v7419_v63  ;;  %9803 = vst [vmem:[#allocation73_spill] sm:$0xff] %v7571_v29  ;;  %v3193_v39 = vunpack.c.l.b16 %v1720_v35  ;;  %v1379_v37 = vmul.f32 %v7280_v26, %v7515_v16 }
 0x25b   :  { %2037 = vrot.lane.b32.xlu2 %v2027_v19, %s6050_s20  ;;  %v2249_v19 = vunpack.c.l.b16 %v1510_v25  ;;  %v1513_v32 = vpack.c.bf16 %v1385_v42, %v1385_v42  ;;  %v1717_v24 = vpack.c.bf16 %v1589_v20, %v1589_v20  ;;  %v1587_v48 = vmul.f32 %v9807_v28, %v7533_v4  ;;  %v9808_v42 = vld [vmem:[#allocation25_spill] sm:$0xff] }
 0x25c   :  { %v3204_v30 = vpack.c.b16 %v3196_v56, %v3195_v51  ;;  %v7575_v51 = vpop.eup %5754  ;;  %v1400_v56 = vmul.f32 %v7158_v55, %v7383_v9  ;;  %v3203_v35 = vpack.c.b16 %v3194_v59, %v3193_v39  ;;  %v1529_v41 = vpack.c.bf16 %v1401_v53, %v1401_v53 }
 0x25d   :  { %v7559_v44 = vpop.f32.mrf.mxu1  ;;  %v2260_v36 = vpack.c.b16 %v2250_v43, %v2249_v19  ;;  %v1340_v34 = vmul.f32 %v7486_v12, %v7160_v38  ;;  %v1341_v25 = vmul.f32 %v7484_v61, %v7223_v33  ;;  %v1586_v45 = vmul.f32 %v9808_v42, %v7488_v54 }
 0x25e   :  { %9801 = vst [vmem:[#allocation72_spill] sm:$0xff] %v7559_v44  ;;  %3213 = vmatpush.bf16.msra.mxu1 %v3204_v30  ;;  %v9805_v30 = vld [vmem:[#allocation37_spill] sm:$0xff]  ;;  %v3192_v44 = vunpack.c.l.b16 %v1719_v0  ;;  %v1506_v59 = vpack.c.bf16 %v1378_v7, %v1378_v7  ;;  %v758_v0 = vmul.f32 %v7575_v51, %v7522_v3  ;;  %v1528_v20 = vpack.c.bf16 %v1400_v56, %v1400_v56 }
 0x25f   :  { %2039 = vrot.lane.b32.xlu1 %v9804_v52, %s6050_s20  ;;  %v1716_v52 = vpack.c.bf16 %v1588_v14, %v1588_v14  ;;  %v7598_v43 = vunpack.c.l.b16 %v1513_v32  ;;  %v3190_v39 = vunpack.c.l.b16 %v1717_v24  ;;  %v1715_v19 = vpack.c.bf16 %v1587_v48, %v1587_v48  ;;  %v9811_v56 = vld [vmem:[#allocation45_spill] sm:$0xff] }
 0x260   :  { %5416 = vmatmul.msk.bf16.gmra.mxu1 %vm9806_vm6, %v9805_v30  ;;  %v3191_v30 = vunpack.c.l.b16 %v1718_v58  ;;  %v2367_v38 = vunpack.c.l.b16 %v1529_v41  ;;  %v1468_v33 = vpack.c.bf16 %v1340_v34, %v1340_v34  ;;  %v1469_v42 = vpack.c.bf16 %v1341_v25, %v1341_v25 }
 0x261   :  { %v1584_v32 = vmul.f32 %v9811_v56, %v7419_v63  ;;  %v1714_v28 = vpack.c.bf16 %v1586_v45, %v1586_v45  ;;  %v3189_v53 = vunpack.c.l.b16 %v1716_v52  ;;  %v2245_v55 = vunpack.c.l.b16 %v1506_v59  ;;  %v7618_v41 = vpop.f32.mrf.mxu3 }
 0x262   :  { %3214 = vmatpush.bf16.msra.mxu1 %v3203_v35  ;;  %2273 = vrot.lane.b32.xlu0 %v2260_v36, %s6050_s20  ;;  %v3202_v14 = vpack.c.b16 %v3192_v44, %v3191_v30  ;;  %v9809_v35 = vld [vmem:[#allocation46_spill] sm:$0xff]  ;;  %v1507_v36 = vpack.c.bf16 %v1379_v37, %v1379_v37  ;;  %v9812_v48 = vpack.c.b16 %v7480_v5, %v7500_v23  ;;  %v2366_v44 = vunpack.c.l.b16 %v1528_v20 }
 0x263   :  { %2158 = vrot.lane.b32.xlu2 %v2145_v17, %s6050_s20  ;;  %v1585_v58 = vmul.f32 %v9809_v35, %v7461_v22  ;;  %v759_v17 = vmul.f32 %v7575_v51, %v758_v0  ;;  %v1358_v24 = vmul.f32 %v7438_v18, %v7352_v31  ;;  %v1359_v37 = vmul.f32 %v7436_v21, %v7361_v2 }
 0x264   :  { %9813 = vst [vmem:[#allocation45_spill] sm:$0xff] %v7618_v41  ;;  %v3201_v45 = vpack.c.b16 %v3190_v39, %v3189_v53  ;;  %v3188_v34 = vunpack.c.l.b16 %v1715_v19  ;;  %v1583_v52 = vmul.f32 %v7259_v11, %v7533_v4  ;;  %v2376_v30 = vpack.c.b16 %v2367_v38, %v2366_v44 }
 0x265   :  { %v7605_v7 = vpop.f32.mrf.mxu1  ;;  %v1713_v25 = vpack.c.bf16 %v1585_v58, %v1585_v58  ;;  %v2009_v59 = vunpack.c.l.b16 %v1468_v33  ;;  %v2010_v0 = vunpack.c.l.b16 %v1469_v42  ;;  %v2246_v5 = vunpack.c.l.b16 %v1507_v36  ;;  %v9815_v33 = vld [vmem:[#allocation59_spill] sm:$0xff] }
 0x266   :  { %9810 = vst [vmem:[#allocation37_spill] sm:$0xff] %v7605_v7  ;;  %3215 = vmatpush.bf16.msra.mxu1 %v3202_v14  ;;  %v7624_v23 = vmul.f32 %v7312_v13, %v7419_v63  ;;  %v1712_v20 = vpack.c.bf16 %v1584_v32, %v1584_v32  ;;  %v9814_v14 = vld [vmem:[#allocation52_spill] sm:$0xff]  ;;  %v3187_v53 = vunpack.c.l.b16 %v1714_v28  ;;  %v760_v39 = vmul.f32 0.5, %v759_v17 }
 0x267   :  { %2160 = vrot.lane.b32.xlu1 %v9812_v48, %s6050_s20  ;;  %v1582_v48 = vmul.f32 %v9814_v14, %v7488_v54  ;;  %v1486_v38 = vpack.c.bf16 %v1358_v24, %v1358_v24  ;;  %v1581_v4 = vmul.f32 %v9815_v33, %v7461_v22  ;;  %v9816_v63 = vpack.c.b16 %v7543_v60, %v7541_v1  ;;  %v9818_v60 = vld [vmem:[#allocation62_spill] sm:$0xff] }
 0x268   :  { %v3200_v42 = vpack.c.b16 %v3188_v34, %v3187_v53  ;;  %v3186_v58 = vunpack.c.l.b16 %v1713_v25  ;;  %v1711_v54 = vpack.c.bf16 %v1583_v52, %v1583_v52  ;;  %v1487_v36 = vpack.c.bf16 %v1359_v37, %v1359_v37  ;;  %v9819_v25 = vld [vmem:[#allocation35_spill] sm:$0xff] }
 0x269   :  { %v1372_v17 = vmul.f32 %v7486_v12, %v7397_v10  ;;  %v1373_v22 = vmul.f32 %v7484_v61, %v7417_v27  ;;  %v1710_v44 = vpack.c.bf16 %v1582_v48, %v1582_v48  ;;  %v3185_v24 = vunpack.c.l.b16 %v1712_v20 }
 0x26a   :  { %3216 = vmatpush.bf16.msra.mxu1 %v3201_v45  ;;  %v379_v7 = vpop.xlane.xlu0 %378  ;;  %2390 = vrot.lane.b32.xlu0 %v2376_v30, %s6050_s20  ;;  %v1356_v1 = vmul.f32 %v7486_v12, %v7338_v62  ;;  %v1357_v37 = vmul.f32 %v7484_v61, %v9818_v60  ;;  %v2258_v45 = vpack.c.b16 %v2246_v5, %v2245_v55  ;;  %v761_v30 = vsub.f32 1.5, %v760_v39  ;;  %v7658_v5 = vpop.f32.mrf.mxu3  ;;  %v9823_v39 = vld [vmem:[#allocation34_spill] sm:$0xff] }
 0x26b   :  { %v413_v19 = vmul.f32 %v379_v7, %v6180_v40  ;;  %2154 = vrot.lane.b32.xlu2 %v9816_v63, %s6050_s20  ;;  %v2025_v7 = vpack.c.b16 %v2010_v0, %v2009_v59  ;;  %v2261_v34 = vpack.c.b16 %v7598_v43, %v7563_v8  ;;  %v1387_v52 = vmul.f32 %v9819_v25, %v7515_v16  ;;  %v9820_v59 = vld [vmem:[#allocation53_spill] sm:$0xff] }
 0x26c   :  { %v3199_v0 = vpack.c.b16 %v3186_v58, %v3185_v24  ;;  %v3184_v20 = vunpack.c.l.b16 %v1711_v54  ;;  %v1709_v48 = vpack.c.bf16 %v1581_v4, %v1581_v4  ;;  %v2126_v53 = vunpack.c.l.b16 %v1486_v38  ;;  %9822 = vst [vmem:[#allocation59_spill] sm:$0xff] %v7658_v5  ;;  %v9824_v4 = vld [vmem:[#allocation67_spill] sm:$0xff] }
 0x26d   :  { %v7636_v32 = vadd.f32 1e-05, %v413_v19  ;;  %v7638_v28 = vpop.f32.mrf.mxu1  ;;  %v2127_v19 = vunpack.c.l.b16 %v1487_v36  ;;  %v1500_v63 = vpack.c.bf16 %v1372_v17, %v1372_v17  ;;  %v1708_v55 = vpack.c.bf16 %v7624_v23, %v7624_v23  ;;  %v9825_v36 = vld [vmem:[#allocation50_spill] sm:$0xff] }
 0x26e   :  { %9817 = vst [vmem:[#allocation52_spill] sm:$0xff] %v7638_v28  ;;  %3217 = vmatpush.bf16.msra.mxu1 %v3200_v42  ;;  %v1501_v42 = vpack.c.bf16 %v1373_v22, %v1373_v22  ;;  %v3183_v8 = vunpack.c.l.b16 %v1710_v44  ;;  %v1484_v43 = vpack.c.bf16 %v1356_v1, %v1356_v1  ;;  %v1386_v58 = vmul.f32 %v9823_v39, %v7467_v50 }
 0x26f   :  { %5756 = vrsqrt.f32 %v7636_v32  ;;  %2033 = vrot.lane.b32.xlu1 %v2025_v7, %s6050_s20  ;;  %v1485_v7 = vpack.c.bf16 %v1357_v37, %v1357_v37  ;;  %v1515_v54 = vpack.c.bf16 %v1387_v52, %v1387_v52  ;;  %v1403_v38 = vmul.f32 %v9819_v25, %v9824_v4 }
 0x270   :  { %5417 = vmatmul.msk.bf16.gmra.mxu1 %vm9821_vm7, %v9820_v59  ;;  %v1381_v17 = vmul.f32 %v9825_v36, %v7417_v27  ;;  %v762_v23 = vmul.f32 %v7575_v51, %v761_v30  ;;  %vm764_vm12 = vweird.f32 %v7575_v51  ;;  %v3198_v22 = vpack.c.b16 %v3184_v20, %v3183_v8 }
 0x271   :  { %v3182_v44 = vunpack.c.l.b16 %v1709_v48  ;;  %v2141_v37 = vpack.c.b16 %v2127_v19, %v2126_v53  ;;  %v2240_v52 = vunpack.c.l.b16 %v1501_v42  ;;  %v1419_v59 = vmul.f32 %v9819_v25, %v7658_v5  ;;  %v9827_v48 = vld [vmem:[#allocation66_spill] sm:$0xff] }
 0x272   :  { %3218 = vmatpush.bf16.msra.mxu1 %v3199_v0  ;;  %2269 = vrot.lane.b32.xlu0 %v2258_v45, %s6050_s20  ;;  %v2239_v45 = vunpack.c.l.b16 %v1500_v63  ;;  %v3181_v30 = vunpack.c.l.b16 %v1708_v55  ;;  %v2124_v40 = vunpack.c.l.b16 %v1484_v43  ;;  %v2125_v28 = vunpack.c.l.b16 %v1485_v7 }
 0x273   :  { %2275 = vrot.lane.b32.xlu2 %v2261_v34, %s6050_s20  ;;  %vm763_vm10 = vweird.f32 %v7522_v3  ;;  %v1514_v34 = vpack.c.bf16 %v1386_v58, %v1386_v58  ;;  %v1418_v20 = vmul.f32 %v9823_v39, %v7618_v41  ;;  %v1402_v53 = vmul.f32 %v9823_v39, %v9827_v48 }
 0x274   :  { %vm7686_vm11 = vmor %vm763_vm10, %vm764_vm12  ;;  %v3197_v42 = vpack.c.b16 %v3182_v44, %v3181_v30  ;;  %v1509_v55 = vpack.c.bf16 %v1381_v17, %v1381_v17  ;;  %v2255_v8 = vpack.c.b16 %v2240_v52, %v2239_v45  ;;  %v2254_v43 = vunpack.c.l.b16 %v1515_v54 }
 0x275   :  { %v7670_v24 = vpop.eup %5756  ;;  %v7672_v1 = vpop.f32.mrf.mxu1  ;;  %v766_v3 = vsel %vm7686_vm11, %v7575_v51, %v762_v23  ;;  %v1547_v7 = vpack.c.bf16 %v1419_v59, %v1419_v59  ;;  %v1546_v31 = vpack.c.bf16 %v1418_v20, %v1418_v20  ;;  %v1530_v2 = vpack.c.bf16 %v1402_v53, %v1402_v53  ;;  %v9831_v51 = vld [vmem:[#allocation44_spill] sm:$0xff]  ;;  %vm9835_vm12 = vmmov %vm9821_vm7 }
 0x276   :  { %9826 = vst [vmem:[#allocation62_spill] sm:$0xff] %v7672_v1  ;;  %v748_v0 = vmul.f32 %v7670_v24, %v7636_v32  ;;  %3219 = vmatpush.bf16.msra.mxu1 %v3198_v22  ;;  %v2140_v22 = vpack.c.b16 %v2125_v28, %v2124_v40  ;;  %v2253_v1 = vunpack.c.l.b16 %v1514_v34  ;;  %v9830_v44 = vpack.c.bf16 %v7567_v15, %v7567_v15  ;;  %vm9840_vm10 = vmmov %vm9821_vm7 }
 0x277   :  { %2150 = vrot.lane.b32.xlu1 %v2141_v37, %s6050_s20  ;;  %v1531_v37 = vpack.c.bf16 %v1403_v38, %v1403_v38  ;;  %vm754_vm13 = vweird.f32 %v7670_v24  ;;  %v798_v54 = vmul.f32 %v766_v3, %v9831_v51  ;;  %v1390_v40 = vmul.f32 %v7438_v18, %v9827_v48  ;;  %v9833_v3 = vld [vmem:[#allocation69_spill] sm:$0xff]  ;;  %vm9844_vm11 = vmmov %vm9821_vm7 }
 0x278   :  { %v749_v63 = vmul.f32 %v7670_v24, %v748_v0  ;;  %v2247_v17 = vunpack.c.l.b16 %v9830_v44  ;;  %v2262_v23 = vpack.c.b16 %v2254_v43, %v2253_v1  ;;  %v2484_v45 = vunpack.c.l.b16 %v1547_v7  ;;  %v9834_v43 = vld [vmem:[#allocation60_spill] sm:$0xff] }
 0x279   :  { %v2248_v52 = vunpack.c.l.b16 %v1509_v55  ;;  %v1391_v15 = vmul.f32 %v7436_v21, %v9824_v4  ;;  %vm753_vm0 = vweird.f32 %v7636_v32  ;;  %v2369_v30 = vunpack.c.l.b16 %v1531_v37  ;;  %v5954_v32 = vld [vmem:[%s9499_s1] ss:$0 sm:$0xff] }
 0x27a   :  { %v750_v58 = vmul.f32 0.5, %v749_v63  ;;  %3220 = vmatpush.bf16.msra.mxu1 %v3197_v42  ;;  %2263 = vrot.lane.b32.xlu0 %v2255_v8, %s6050_s20  ;;  %v1397_v34 = vmul.f32 %v9825_v36, %v7389_v46  ;;  %vm755_vm6 = vmor %vm753_vm0, %vm754_vm13  ;;  %v2483_v53 = vunpack.c.l.b16 %v1546_v31  ;;  %v2368_v1 = vunpack.c.l.b16 %v1530_v2  ;;  %v9836_v2 = vld [vmem:[#allocation61_spill] sm:$0xff] }
 0x27b   :  { %2148 = vrot.lane.b32.xlu2 %v2140_v22, %s6050_s20  ;;  %v1396_v19 = vmul.f32 %v7221_v57, %v7383_v9  ;;  %v833_v42 = vmul.f32 %v5954_v32, %v798_v54  ;;  %v1518_v55 = vpack.c.bf16 %v1390_v40, %v1390_v40  ;;  %v1376_v8 = vmul.f32 %v9833_v3, %v7397_v10  ;;  %v9837_v22 = vld [vmem:[#allocation68_spill] sm:$0xff]  ;;  %vm9847_vm13 = vmmov %vm9821_vm7 }
 0x27c   :  { %v751_v0 = vsub.f32 1.5, %v750_v58  ;;  %v2492_v31 = vpack.c.b16 %v2484_v45, %v2483_v53  ;;  %v1519_v58 = vpack.c.bf16 %v1391_v15, %v1391_v15  ;;  %v2377_v37 = vpack.c.b16 %v2369_v30, %v2368_v1  ;;  %v5955_v54 = vld [vmem:[%s9500_s2] ss:$0 sm:$0xff]  ;;  %vm9849_vm0 = vmmov %vm9821_vm7 }
 0x27d   :  { %v7703_v28 = vpop.f32.mrf.mxu1  ;;  %v2046_v38 = vpop.permute.xlu0 %2045  ;;  %v1525_v44 = vpack.c.bf16 %v1397_v34, %v1397_v34  ;;  %v868_v40 = vadd.f32 %v5955_v54, %v833_v42  ;;  %v1504_v45 = vpack.c.bf16 %v1376_v8, %v1376_v8  ;;  %v1413_v34 = vmul.f32 %v9825_v36, %v7571_v29 }
 0x27e   :  { %9832 = vst [vmem:[#allocation35_spill] sm:$0xff] %v7703_v28  ;;  %v752_v59 = vmul.f32 %v7670_v24, %v751_v0  ;;  %v2074_v20 = vsel %vm9821_vm7, %v2046_v38, 0  ;;  %v2259_v0 = vpack.c.b16 %v2248_v52, %v2247_v17  ;;  %v2356_v38 = vunpack.c.l.b16 %v1518_v55  ;;  %vm9851_vm7 = vmmov %vm9849_vm0 }
 0x27f   :  { %2277 = vrot.lane.b32.xlu1 %v2262_v23, %s6050_s20  ;;  %2080 = vmatpush.bf16.xpose.msrb.mxu3 %v2074_v20  ;;  %v1524_v23 = vpack.c.bf16 %v1396_v19, %v1396_v19  ;;  %v2357_v20 = vunpack.c.l.b16 %v1519_v58  ;;  %v2363_v17 = vunpack.c.l.b16 %v1525_v44  ;;  %v1392_v52 = vmul.f32 %v9833_v3, %v7383_v9  ;;  %v9839_v19 = vld [vmem:[#allocation71_spill] sm:$0xff] }
 0x280   :  { %v756_v63 = vsel %vm755_vm6, %v7670_v24, %v752_v59  ;;  %5418 = vmatmul.msk.bf16.gmra.mxu1 %vm9835_vm12, %v9834_v43  ;;  %v1377_v24 = vmul.f32 %v9837_v22, %v7417_v27  ;;  %v1393_v53 = vmul.f32 %v9837_v22, %v7389_v46  ;;  %v2243_v42 = vunpack.c.l.b16 %v1504_v45  ;;  %vm9850_vm6 = vmmov %vm9849_vm0 }
 0x281   :  { %v797_v7 = vmul.f32 %v756_v63, %v9836_v2  ;;  %v1412_v63 = vmul.f32 %v7221_v57, %v9839_v19  ;;  %v2371_v55 = vpack.c.b16 %v2357_v20, %v2356_v38  ;;  %v1541_v43 = vpack.c.bf16 %v1413_v34, %v1413_v34  ;;  %vm9852_vm12 = vmmov %vm9849_vm0 }
 0x282   :  { %2507 = vrot.lane.b32.xlu0 %v2492_v31, %s6050_s20  ;;  %v1505_v30 = vpack.c.bf16 %v1377_v24, %v1377_v24  ;;  %v9841_v31 = vld [vmem:[#allocation49_spill] sm:$0xff]  ;;  %v1520_v24 = vpack.c.bf16 %v1392_v52, %v1392_v52  ;;  %v1374_v20 = vmul.f32 %v7438_v18, %v7467_v50  ;;  %v1408_v52 = vmul.f32 %v9833_v3, %v9839_v19 }
 0x283   :  { %v832_v51 = vmul.f32 %v5954_v32, %v797_v7  ;;  %2392 = vrot.lane.b32.xlu2 %v2377_v37, %s6050_s20  ;;  %v2362_v32 = vunpack.c.l.b16 %v1524_v23  ;;  %v1399_v2 = vmul.f32 %v9841_v31, %v9824_v4  ;;  %v7748_v7 = vpop.f32.mrf.mxu3  ;;  %v1521_v37 = vpack.c.bf16 %v1393_v53, %v1393_v53  ;;  %v9843_v53 = vld [vmem:[#allocation65_spill] sm:$0xff] }
 0x284   :  { %v2244_v8 = vunpack.c.l.b16 %v1505_v30  ;;  %v1540_v44 = vpack.c.bf16 %v1412_v63, %v1412_v63  ;;  %v1409_v23 = vmul.f32 %v9837_v22, %v7571_v29  ;;  %v2358_v45 = vunpack.c.l.b16 %v1520_v24 }
 0x285   :  { %v7731_v15 = vpop.f32.mrf.mxu1  ;;  %v867_v59 = vadd.f32 %v5955_v54, %v832_v51  ;;  %v2374_v58 = vpack.c.b16 %v2363_v17, %v2362_v32  ;;  %v1527_v38 = vpack.c.bf16 %v1399_v2, %v1399_v2  ;;  %v1375_v30 = vmul.f32 %v7436_v21, %v7515_v16 }
 0x286   :  { %9838 = vst [vmem:[#allocation53_spill] sm:$0xff] %v7731_v15  ;;  %v2257_v54 = vpack.c.b16 %v2244_v8, %v2243_v42  ;;  %v2477_v34 = vunpack.c.l.b16 %v1540_v44  ;;  %v1537_v42 = vpack.c.bf16 %v1409_v23, %v1409_v23  ;;  %v1536_v24 = vpack.c.bf16 %v1408_v52, %v1408_v52 }
 0x287   :  { %2271 = vrot.lane.b32.xlu1 %v2259_v0, %s6050_s20  ;;  %v7740_v1 = vpack.c.bf16 %v868_v40, %v867_v59  ;;  %v1398_v0 = vmul.f32 %v7211_v49, %v9827_v48  ;;  %v2478_v40 = vunpack.c.l.b16 %v1541_v43  ;;  %v2359_v59 = vunpack.c.l.b16 %v1521_v37 }
 0x288   :  { %v2365_v32 = vunpack.c.l.b16 %v1527_v38  ;;  %v1502_v43 = vpack.c.bf16 %v1374_v20, %v1374_v20  ;;  %v1503_v2 = vpack.c.bf16 %v1375_v30, %v1375_v30  ;;  %v1394_v37 = vmul.f32 %v7282_v6, %v9827_v48 }
 0x289   :  { %5405 = vmatmul.msk.bf16.gmra.mxu3 %vm9840_vm10, %v7740_v1  ;;  %v1526_v17 = vpack.c.bf16 %v1398_v0, %v1398_v0  ;;  %v2489_v63 = vpack.c.b16 %v2478_v40, %v2477_v34  ;;  %v2372_v8 = vpack.c.b16 %v2359_v59, %v2358_v45  ;;  %v2474_v40 = vunpack.c.l.b16 %v1537_v42  ;;  %vm9861_vm10 = vmmov %vm9849_vm0 }
 0x28a   :  { %2380 = vrot.lane.b32.xlu0 %v2371_v55, %s6050_s20  ;;  %v1395_v55 = vmul.f32 %v7280_v26, %v9824_v4  ;;  %v2241_v23 = vunpack.c.l.b16 %v1502_v43  ;;  %v2242_v45 = vunpack.c.l.b16 %v1503_v2  ;;  %v1415_v59 = vmul.f32 %v9841_v31, %v7658_v5 }
 0x28b   :  { %2386 = vrot.lane.b32.xlu2 %v2374_v58, %s6050_s20  ;;  %v2364_v58 = vunpack.c.l.b16 %v1526_v17  ;;  %v7772_v44 = vpop.f32.mrf.mxu3  ;;  %v2473_v20 = vunpack.c.l.b16 %v1536_v24  ;;  %v1522_v30 = vpack.c.bf16 %v1394_v37, %v1394_v37  ;;  %v1414_v34 = vmul.f32 %v7211_v49, %v7618_v41 }
 0x28c   :  { %v1523_v38 = vpack.c.bf16 %v1395_v55, %v1395_v55  ;;  %v9846_v55 = vld [vmem:[#allocation42_spill] sm:$0xff] }
 0x28d   :  { %v7754_v51 = vpop.f32.mrf.mxu1  ;;  %v2487_v17 = vpack.c.b16 %v2474_v40, %v2473_v20  ;;  %v2360_v42 = vunpack.c.l.b16 %v1522_v30  ;;  %v1542_v2 = vpack.c.bf16 %v1414_v34, %v1414_v34  ;;  %v1410_v20 = vmul.f32 %v7282_v6, %v7618_v41 }
 0x28e   :  { %9842 = vst [vmem:[#allocation34_spill] sm:$0xff] %v7754_v51  ;;  %v2361_v52 = vunpack.c.l.b16 %v1523_v38  ;;  %v1411_v38 = vmul.f32 %v7280_v26, %v7658_v5  ;;  %v1388_v30 = vmul.f32 %v7486_v12, %v7383_v9  ;;  %v1389_v34 = vmul.f32 %v7484_v61, %v7389_v46 }
 0x28f   :  { %2267 = vrot.lane.b32.xlu1 %v2257_v54, %s6050_s20  ;;  %v2375_v54 = vpack.c.b16 %v2365_v32, %v2364_v58  ;;  %v1543_v32 = vpack.c.bf16 %v1415_v59, %v1415_v59  ;;  %v2479_v59 = vunpack.c.l.b16 %v1542_v2  ;;  %v1538_v2 = vpack.c.bf16 %v1410_v20, %v1410_v20 }
 0x290   :  { %5419 = vmatmul.msk.bf16.gmra.mxu1 %vm9844_vm11, %v9843_v53  ;;  %v1417_v53 = vmul.f32 %v7156_v47, %v7571_v29  ;;  %v2373_v24 = vpack.c.b16 %v2361_v52, %v2360_v42  ;;  %vm9866_vm11 = vmmov %vm9849_vm0 }
 0x291   :  { %v2480_v40 = vunpack.c.l.b16 %v1543_v32  ;;  %v1539_v32 = vpack.c.bf16 %v1411_v38, %v1411_v38  ;;  %v2475_v20 = vunpack.c.l.b16 %v1538_v2 }
 0x292   :  { %2501 = vrot.lane.b32.xlu0 %v2489_v63, %s6050_s20  ;;  %v2256_v63 = vpack.c.b16 %v2242_v45, %v2241_v23  ;;  %v1545_v37 = vpack.c.bf16 %v1417_v53, %v1417_v53 }
 0x293   :  { %2382 = vrot.lane.b32.xlu2 %v2372_v8, %s6050_s20  ;;  %v1416_v8 = vmul.f32 %v9846_v55, %v9839_v19  ;;  %v2476_v51 = vunpack.c.l.b16 %v1539_v32 }
 0x294   :  { %v2482_v52 = vunpack.c.l.b16 %v1545_v37 }
 0x295   :  { %v7775_v0 = vpop.f32.mrf.mxu1  ;;  %v1544_v45 = vpack.c.bf16 %v1416_v8, %v1416_v8 }
 0x296   :  { %9845 = vst [vmem:[#allocation67_spill] sm:$0xff] %v7775_v0 }
 0x297   :  { %2388 = vrot.lane.b32.xlu1 %v2375_v54, %s6050_s20  ;;  %v2481_v42 = vunpack.c.l.b16 %v1544_v45 }
 0x299   :  { %v2491_v28 = vpack.c.b16 %v2482_v52, %v2481_v42  ;;  %v1432_v52 = vmul.f32 %v9846_v55, %v7748_v7 }
 0x29a   :  { %2497 = vrot.lane.b32.xlu0 %v2487_v17, %s6050_s20  ;;  %v9848_v17 = vld [vmem:[#allocation70_spill] sm:$0xff] }
 0x29b   :  { %2265 = vrot.lane.b32.xlu2 %v2256_v63, %s6050_s20  ;;  %v2490_v63 = vpack.c.b16 %v2480_v40, %v2479_v59  ;;  %v1433_v40 = vmul.f32 %v7156_v47, %v7772_v44 }
 0x29c   :  { %v7788_v43 = vpop.f32.mrf.mxu3  ;;  %v1923_v54 = vpop.permute.xlu2 %1922 }
 0x29d   :  { %v7790_v58 = vpop.f32.mrf.mxu1  ;;  %v1947_v23 = vsel %vm9847_vm13, %v1923_v54, 0  ;;  %v1430_v53 = vmul.f32 %v7211_v49, %v7788_v43  ;;  %v1517_v54 = vpack.c.bf16 %v1389_v34, %v1389_v34  ;;  %v1426_v32 = vmul.f32 %v7282_v6, %v7788_v43  ;;  %vm9867_vm13 = vmmov %vm9849_vm0 }
 0x29e   :  { %1969 = vmatpush.bf16.xpose.msra.mxu2 %v1947_v23  ;;  %v1561_v42 = vpack.c.bf16 %v1433_v40, %v1433_v40  ;;  %v1434_v2 = vmul.f32 %v9823_v39, %v7788_v43 }
 0x29f   :  { %2384 = vrot.lane.b32.xlu1 %v2373_v24, %s6050_s20  ;;  %v1516_v24 = vpack.c.bf16 %v1388_v30, %v1388_v30  ;;  %v1558_v37 = vpack.c.bf16 %v1430_v53, %v1430_v53  ;;  %v2355_v34 = vunpack.c.l.b16 %v1517_v54  ;;  %v1404_v54 = vmul.f32 %v7486_v12, %v9839_v19 }
 0x2a0   :  { %5420 = vmatmul.msk.bf16.gmra.mxu1 %vm9849_vm0, %v9848_v17 }
 0x2a1   :  { %v2354_v30 = vunpack.c.l.b16 %v1516_v24  ;;  %v2594_v53 = vunpack.c.l.b16 %v1558_v37  ;;  %v1560_v24 = vpack.c.bf16 %v1432_v52, %v1432_v52 }
 0x2a3   :  { %2503 = vrot.lane.b32.xlu2 %v2490_v63, %s6050_s20 }
 0x2a4   :  { %v7807_v8 = vpop.f32.mrf.mxu3 }
 0x2a5   :  { %v7809_v23 = vpop.f32.mrf.mxu1  ;;  %v1431_v17 = vmul.f32 %v9841_v31, %v7807_v8  ;;  %v2044_v15 = vpop.permute.xlu2 %2043  ;;  %v1427_v59 = vmul.f32 %v7280_v26, %v7807_v8 }
 0x2a6   :  { %v2071_v38 = vsel %vm9850_vm6, %v2044_v15, 0  ;;  %v1435_v15 = vmul.f32 %v9819_v25, %v7807_v8  ;;  %vm9868_vm6 = vmmov %vm9849_vm0 }
 0x2a7   :  { %2505 = vrot.lane.b32.xlu1 %v2491_v28, %s6050_s20  ;;  %v1559_v45 = vpack.c.bf16 %v1431_v17, %v1431_v17  ;;  %2081 = vmatpush.bf16.xpose.msrb.mxu3 %v2071_v38  ;;  %v2488_v28 = vpack.c.b16 %v2476_v51, %v2475_v20  ;;  %v1555_v0 = vpack.c.bf16 %v1427_v59, %v1427_v59  ;;  %v2597_v59 = vunpack.c.l.b16 %v1561_v42  ;;  %v9853_v42 = vld [vmem:[#allocation13_spill] sm:$0xff] }
 0x2a8   :  { %v2370_v38 = vpack.c.b16 %v2355_v34, %v2354_v30  ;;  %v1563_v48 = vpack.c.bf16 %v1435_v15, %v1435_v15  ;;  %v1405_v51 = vmul.f32 %v7484_v61, %v7571_v29  ;;  %v1407_v15 = vmul.f32 %v7436_v21, %v7658_v5  ;;  %v9860_v5 = vld [vmem:[#allocation21_spill] sm:$0xff] }
 0x2a9   :  { %v2595_v63 = vunpack.c.l.b16 %v1559_v45  ;;  %v1554_v45 = vpack.c.bf16 %v1426_v32, %v1426_v32  ;;  %v2591_v52 = vunpack.c.l.b16 %v1555_v0  ;;  %v1406_v0 = vmul.f32 %v7438_v18, %v7618_v41 }
 0x2aa   :  { %v2599_v34 = vunpack.c.l.b16 %v1563_v48  ;;  %v1533_v32 = vpack.c.bf16 %v1405_v51, %v1405_v51  ;;  %v1535_v51 = vpack.c.bf16 %v1407_v15, %v1407_v15  ;;  %v9858_v15 = vld [vmem:[#allocation29_spill] sm:$0xff] }
 0x2ab   :  { %v2605_v17 = vpack.c.b16 %v2595_v63, %v2594_v53  ;;  %2499 = vrot.lane.b32.xlu2 %v2488_v28, %s6050_s20  ;;  %v1562_v53 = vpack.c.bf16 %v1434_v2, %v1434_v2  ;;  %v2596_v63 = vunpack.c.l.b16 %v1560_v24  ;;  %v1532_v28 = vpack.c.bf16 %v1404_v54, %v1404_v54  ;;  %v9854_v2 = vld [vmem:[#allocation18_spill] sm:$0xff] }
 0x2ac   :  { %v2590_v30 = vunpack.c.l.b16 %v1554_v45  ;;  %v2470_v45 = vunpack.c.l.b16 %v1533_v32 }
 0x2ad   :  { %v7830_v37 = vpop.f32.mrf.mxu1  ;;  %2618 = vrot.lane.b32.xlu0 %v2605_v17, %s6050_s20  ;;  %v2042_v40 = vpop.permute.xlu2 %2041  ;;  %v2469_v54 = vunpack.c.l.b16 %v1532_v28  ;;  %v1429_v28 = vmul.f32 %v9825_v36, %v7772_v44 }
 0x2ae   :  { %v2068_v20 = vsel %vm9851_vm7, %v2042_v40, 0  ;;  %v1642_v17 = vmul.f32 %v9853_v42, %v7830_v37  ;;  %v2606_v40 = vpack.c.b16 %v2597_v59, %v2596_v63  ;;  %v2603_v19 = vpack.c.b16 %v2591_v52, %v2590_v30  ;;  %v9855_v59 = vld [vmem:[#allocation17_spill] sm:$0xff]  ;;  %v9857_v42 = vld [vmem:[#allocation30_spill] sm:$0xff]  ;;  %vm9870_vm7 = vmmov %vm9849_vm0 }
 0x2af   :  { %2378 = vrot.lane.b32.xlu1 %v2370_v38, %s6050_s20  ;;  %2082 = vmatpush.bf16.xpose.msrb.mxu3 %v2068_v20  ;;  %v2598_v38 = vunpack.c.l.b16 %v1562_v53  ;;  %v1640_v20 = vmul.f32 %v9855_v59, %v7790_v58  ;;  %v9856_v53 = vld [vmem:[#allocation14_spill] sm:$0xff]  ;;  %v1534_v30 = vpack.c.bf16 %v1406_v0, %v1406_v0  ;;  %v1428_v0 = vmul.f32 %v7221_v57, %v7748_v7 }
 0x2b0   :  { %5421 = vmatmul.msk.bf16.gmra.mxu1 %vm9852_vm12, %v7740_v1  ;;  %v1641_v1 = vmul.f32 %v9854_v2, %v7809_v23  ;;  %v1770_v52 = vpack.c.bf16 %v1642_v17, %v1642_v17  ;;  %v1638_v17 = vmul.f32 %v9858_v15, %v7830_v37  ;;  %v1636_v15 = vmul.f32 %v9860_v5, %v7790_v58  ;;  %vm9871_vm12 = vmmov %vm9849_vm0 }
 0x2b1   :  { %v2607_v48 = vpack.c.b16 %v2599_v34, %v2598_v38  ;;  %v2472_v34 = vunpack.c.l.b16 %v1535_v51  ;;  %v1768_v32 = vpack.c.bf16 %v1640_v20, %v1640_v20  ;;  %v1557_v20 = vpack.c.bf16 %v1429_v28, %v1429_v28  ;;  %v9863_v28 = vld [vmem:[#allocation25_spill] sm:$0xff] }
 0x2b2   :  { %v1769_v2 = vpack.c.bf16 %v1641_v1, %v1641_v1  ;;  %v3396_v38 = vunpack.c.l.b16 %v1770_v52  ;;  %v1766_v52 = vpack.c.bf16 %v1638_v17, %v1638_v17  ;;  %v1556_v29 = vpack.c.bf16 %v1428_v0, %v1428_v0 }
 0x2b3   :  { %2620 = vrot.lane.b32.xlu2 %v2606_v40, %s6050_s20  ;;  %v1634_v17 = vmul.f32 %v9863_v28, %v7830_v37  ;;  %v1424_v0 = vmul.f32 %v9833_v3, %v7748_v7 }
 0x2b5   :  { %v7848_v24 = vpop.f32.mrf.mxu1  ;;  %2614 = vrot.lane.b32.xlu0 %v2603_v19, %s6050_s20  ;;  %v2485_v19 = vpack.c.b16 %v2470_v45, %v2469_v54  ;;  %v9859_v54 = vld [vmem:[#allocation22_spill] sm:$0xff] }
 0x2b6   :  { %v1643_v63 = vmul.f32 %v9856_v53, %v7848_v24  ;;  %v1639_v41 = vmul.f32 %v9857_v42, %v7848_v24  ;;  %v2471_v53 = vunpack.c.l.b16 %v1534_v30  ;;  %v1637_v45 = vmul.f32 %v9859_v54, %v7809_v23 }
 0x2b7   :  { %2622 = vrot.lane.b32.xlu1 %v2607_v48, %s6050_s20  ;;  %v3395_v48 = vunpack.c.l.b16 %v1769_v2 }
 0x2b8   :  { %v1771_v40 = vpack.c.bf16 %v1643_v63, %v1643_v63  ;;  %v1767_v63 = vpack.c.bf16 %v1639_v41, %v1639_v41  ;;  %v2486_v42 = vpack.c.b16 %v2472_v34, %v2471_v53  ;;  %v1425_v53 = vmul.f32 %v9837_v22, %v7772_v44 }
 0x2b9   :  { %v1764_v34 = vpack.c.bf16 %v1636_v15, %v1636_v15  ;;  %v1762_v15 = vpack.c.bf16 %v1634_v17, %v1634_v17 }
 0x2ba   :  { %v3397_v59 = vunpack.c.l.b16 %v1771_v40  ;;  %v3394_v40 = vunpack.c.l.b16 %v1768_v32  ;;  %v3393_v41 = vunpack.c.l.b16 %v1767_v63  ;;  %v2593_v32 = vunpack.c.l.b16 %v1557_v20 }
 0x2bb   :  { %2493 = vrot.lane.b32.xlu2 %v2485_v19, %s6050_s20  ;;  %v9862_v19 = vld [vmem:[#allocation26_spill] sm:$0xff]  ;;  %v2592_v63 = vunpack.c.l.b16 %v1556_v29  ;;  %v3390_v28 = vunpack.c.l.b16 %v1764_v34  ;;  %v1552_v20 = vpack.c.bf16 %v1424_v0, %v1424_v0  ;;  %v1630_v34 = vmul.f32 %v9814_v14, %v7830_v37 }
 0x2bc   :  { %v3405_v1 = vpack.c.b16 %v3397_v59, %v3396_v38  ;;  %v1921_v51 = vpop.permute.xlu1 %1920  ;;  %v3404_v2 = vpack.c.b16 %v3395_v48, %v3394_v40  ;;  %v1765_v59 = vpack.c.bf16 %v1637_v45, %v1637_v45  ;;  %v1635_v38 = vmul.f32 %v9862_v19, %v7848_v24  ;;  %v9864_v19 = vld [vmem:[#allocation32_spill] sm:$0xff] }
 0x2bd   :  { %v1944_v30 = vsel %vm9861_vm10, %v1921_v51, 0  ;;  %v2604_v40 = vpack.c.b16 %v2593_v32, %v2592_v63  ;;  %v1837_v5 = vpack.c.bf16 %v9864_v19, %v9864_v19  ;;  %v3388_v32 = vunpack.c.l.b16 %v1762_v15  ;;  %vm9873_vm10 = vmmov %vm9849_vm0 }
 0x2be   :  { %3414 = vmatpush.bf16.msrb.mxu1 %v3405_v1  ;;  %1970 = vmatpush.bf16.xpose.msra.mxu2 %v1944_v30  ;;  %v3392_v1 = vunpack.c.l.b16 %v1766_v52  ;;  %v3391_v45 = vunpack.c.l.b16 %v1765_v59  ;;  %v1763_v51 = vpack.c.bf16 %v1635_v38, %v1635_v38  ;;  %v1632_v30 = vmul.f32 %v9811_v56, %v7790_v58 }
 0x2bf   :  { %2495 = vrot.lane.b32.xlu1 %v2486_v42, %s6050_s20  ;;  %v1633_v42 = vmul.f32 %v9809_v35, %v7809_v23  ;;  %v2163_v35 = vpop.permute.xlu0 %2162  ;;  %v1631_v59 = vmul.f32 %v7259_v11, %v7848_v24  ;;  %v1629_v37 = vmul.f32 %v9815_v33, %v7809_v23  ;;  %v1628_v15 = vmul.f32 %v7312_v13, %v7790_v58 }
 0x2c0   :  { %v3403_v48 = vpack.c.b16 %v3393_v41, %v3392_v1  ;;  %v3402_v29 = vpack.c.b16 %v3391_v45, %v3390_v28  ;;  %v3389_v41 = vunpack.c.l.b16 %v1763_v51  ;;  %v1760_v38 = vpack.c.bf16 %v1632_v30, %v1632_v30  ;;  %v9865_v1 = vld [vmem:[#allocation31_spill] sm:$0xff] }
 0x2c1   :  { %v1761_v54 = vpack.c.bf16 %v1633_v42, %v1633_v42  ;;  %v2192_v28 = vsel %vm9867_vm13, %v2163_v35, 0  ;;  %v2588_v42 = vunpack.c.l.b16 %v1552_v20  ;;  %v1759_v45 = vpack.c.bf16 %v1631_v59, %v1631_v59  ;;  %v2038_v20 = vpop.permute.xlu2 %2037  ;;  %vm9875_vm13 = vmmov %vm9849_vm0 }
 0x2c2   :  { %3415 = vmatpush.bf16.msrb.mxu1 %v3404_v2  ;;  %v1553_v2 = vpack.c.bf16 %v1425_v53, %v1425_v53  ;;  %v1836_v53 = vpack.c.bf16 %v9865_v1, %v9865_v1  ;;  %v3401_v24 = vpack.c.b16 %v3389_v41, %v3388_v32  ;;  %v1757_v59 = vpack.c.bf16 %v1629_v37, %v1629_v37 }
 0x2c3   :  { %v3387_v63 = vunpack.c.l.b16 %v1761_v54  ;;  %v3385_v41 = vunpack.c.l.b16 %v1759_v45 }
 0x2c4   :  { %v2589_v0 = vunpack.c.l.b16 %v1553_v2  ;;  %v1872_v30 = vunpack.c.l.b16 %v1836_v53  ;;  %v1758_v2 = vpack.c.bf16 %v1630_v34, %v1630_v34 }
 0x2c6   :  { %3416 = vmatpush.bf16.msrb.mxu1 %v3403_v48  ;;  %v7883_v52 = vpop.f32.mrf.mxu3  ;;  %v1873_v48 = vunpack.c.l.b16 %v1837_v5  ;;  %v2602_v35 = vpack.c.b16 %v2589_v0, %v2588_v42  ;;  %v3384_v1 = vunpack.c.l.b16 %v1758_v2  ;;  %v3383_v0 = vunpack.c.l.b16 %v1757_v59  ;;  %v9876_v59 = vld [vmem:[#allocation51_spill] sm:$0xff] }
 0x2c7   :  { %2616 = vrot.lane.b32.xlu1 %v2604_v40, %s6050_s20  ;;  %v1448_v51 = vmul.f32 %v9846_v55, %v7883_v52  ;;  %v3386_v40 = vunpack.c.l.b16 %v1760_v38  ;;  %v2036_v2 = vpop.permute.xlu0 %2035 }
 0x2c8   :  { %v1876_v54 = vpack.c.b16 %v1873_v48, %v1872_v30  ;;  %v3399_v34 = vpack.c.b16 %v3385_v41, %v3384_v1  ;;  %v9869_v48 = vld [vmem:[#allocation36_spill] sm:$0xff]  ;;  %v9872_v30 = vld [vmem:[#allocation33_spill] sm:$0xff] }
 0x2c9   :  { %v1919_v17 = vpop.permute.xlu1 %1918  ;;  %v1576_v23 = vpack.c.bf16 %v1448_v51, %v1448_v51  ;;  %v2062_v51 = vsel %vm9870_vm7, %v2038_v20, 0  ;;  %vm9879_vm7 = vmmov %vm9849_vm0 }
 0x2ca   :  { %3417 = vmatpush.bf16.msrb.mxu1 %v3402_v29  ;;  %v1941_v19 = vsel %vm9866_vm11, %v1919_v17, 0  ;;  %v3400_v29 = vpack.c.b16 %v3387_v63, %v3386_v40  ;;  %v1756_v17 = vpack.c.bf16 %v1628_v15, %v1628_v15  ;;  %v1839_v63 = vpack.c.bf16 %v9869_v48, %v9869_v48  ;;  %vm9874_vm11 = vmmov %vm9849_vm0 }
 0x2cb   :  { %1971 = vmatpush.bf16.xpose.msra.mxu2 %v1941_v19  ;;  %v2711_v19 = vunpack.c.l.b16 %v1576_v23  ;;  %v1838_v40 = vpack.c.bf16 %v9872_v30, %v9872_v30  ;;  %v2059_v41 = vsel %vm9874_vm11, %v2036_v2, 0  ;;  %vm9883_vm11 = vmmov %vm9849_vm0 }
 0x2cc   :  { %v3382_v42 = vunpack.c.l.b16 %v1756_v17  ;;  %v1875_v15 = vunpack.c.l.b16 %v1839_v63 }
 0x2ce   :  { %3418 = vmatpush.bf16.msrb.mxu1 %v3401_v24  ;;  %v7902_v5 = vpop.f32.mrf.mxu3  ;;  %v2159_v24 = vpop.permute.xlu2 %2158 }
 0x2cf   :  { %2612 = vrot.lane.b32.xlu1 %v2602_v35, %s6050_s20  ;;  %v1449_v55 = vmul.f32 %v7156_v47, %v7902_v5  ;;  %v3398_v47 = vpack.c.b16 %v3383_v0, %v3382_v42  ;;  %v1874_v35 = vunpack.c.l.b16 %v1838_v40  ;;  %v2157_v20 = vpop.permute.xlu0 %2156  ;;  %v9885_v40 = vld [vmem:[#allocation55_spill] sm:$0xff] }
 0x2d1   :  { %v2040_v38 = vpop.permute.xlu1 %2039  ;;  %v1577_v53 = vpack.c.bf16 %v1449_v55, %v1449_v55  ;;  %v2186_v55 = vsel %vm9875_vm13, %v2159_v24, 0  ;;  %vm9884_vm13 = vmmov %vm9849_vm0 }
 0x2d2   :  { %5438 = vmatmul.msk.bf16.vlgmr.msra.gmra.mxu2 %vm9849_vm0, %v1876_v54  ;;  %3419 = vmatpush.bf16.msrb.mxu1 %v3400_v29  ;;  %v2065_v58 = vsel %vm9868_vm6, %v2040_v38, 0  ;;  %v1877_v54 = vpack.c.b16 %v1875_v15, %v1874_v35  ;;  %v1841_v38 = vpack.c.bf16 %v9876_v59, %v9876_v59  ;;  %vm9878_vm6 = vmmov %vm9849_vm0  ;;  %v1842_v15 = vpack.c.bf16 %v9885_v40, %v9885_v40 }
 0x2d3   :  { %2194 = vmatpush.bf16.xpose.msrb.mxu2 %v2192_v28  ;;  %2083 = vmatpush.bf16.xpose.msrb.mxu3 %v2065_v58  ;;  %v2712_v32 = vunpack.c.l.b16 %v1577_v53  ;;  %v9877_v58 = vld [vmem:[#allocation43_spill] sm:$0xff] }
 0x2d4   :  { %v1840_v1 = vpack.c.bf16 %v9877_v58, %v9877_v58  ;;  %v1844_v58 = vpack.c.bf16 %v7338_v62, %v7338_v62 }
 0x2d5   :  { %v2721_v28 = vpack.c.b16 %v2712_v32, %v2711_v19  ;;  %v1988_v19 = vunpack.c.l.b16 %v1841_v38  ;;  %v1845_v38 = vpack.c.bf16 %v9818_v60, %v9818_v60 }
 0x2d6   :  { %3420 = vmatpush.bf16.msrb.mxu1 %v3399_v34  ;;  %v2155_v23 = vpop.permute.xlu2 %2154  ;;  %v2183_v34 = vsel %vm9878_vm6, %v2157_v20, 0  ;;  %v1987_v0 = vunpack.c.l.b16 %v1840_v1  ;;  %vm9886_vm6 = vmmov %vm9849_vm0 }
 0x2d7   :  { %2735 = vrot.lane.b32.xlu0 %v2721_v28, %s6050_s20  ;;  %v2153_v42 = vpop.permute.xlu0 %2152 }
 0x2d8   :  { %v1991_v28 = vpack.c.b16 %v1988_v19, %v1987_v0  ;;  %v2177_v30 = vsel %vm9884_vm13, %v2153_v42, 0  ;;  %v2102_v0 = vunpack.c.l.b16 %v1844_v58  ;;  %vm9891_vm13 = vmmov %vm9849_vm0 }
 0x2d9   :  { %v2161_v45 = vpop.permute.xlu1 %2160 }
 0x2da   :  { %3421 = vmatpush.bf16.msrb.mxu1 %v3398_v47  ;;  %v2189_v37 = vsel %vm9871_vm12, %v2161_v45, 0  ;;  %vm9880_vm12 = vmmov %vm9849_vm0  ;;  %v9882_v45 = vld [vmem:[#allocation58_spill] sm:$0xff] }
 0x2db   :  { %2084 = vmatpush.bf16.xpose.msrb.mxu3 %v2062_v51  ;;  %2195 = vmatpush.bf16.xpose.msrb.mxu2 %v2189_v37  ;;  %v1843_v51 = vpack.c.bf16 %v9882_v45, %v9882_v45 }
 0x2dd   :  { %v1990_v35 = vunpack.c.l.b16 %v1843_v51 }
 0x2de   :  { %v2276_v32 = vpop.permute.xlu2 %2275 }
 0x2df   :  { %v2304_v37 = vsel %vm9883_vm11, %v2276_v32, 0  ;;  %v2274_v2 = vpop.permute.xlu0 %2273  ;;  %vm9890_vm11 = vmmov %vm9849_vm0  ;;  %v2103_v32 = vunpack.c.l.b16 %v1845_v38  ;;  %v9895_v38 = vld [vmem:[#allocation63_spill] sm:$0xff] }
 0x2e0   :  { %v1846_v58 = vpack.c.bf16 %v9895_v38, %v9895_v38 }
 0x2e1   :  { %v2034_v29 = vpop.permute.xlu1 %2033  ;;  %v2106_v60 = vpack.c.b16 %v2103_v32, %v2102_v0 }
 0x2e2   :  { %5439 = vmatmul.msk.bf16.gmra.mxu2 %vm9873_vm10, %v1877_v54  ;;  %v2056_v53 = vsel %vm9849_vm0, %v2034_v29, 0  ;;  %vm9881_vm10 = vmmov %vm9849_vm0  ;;  %v1989_v54 = vunpack.c.l.b16 %v1842_v15 }
 0x2e3   :  { %2085 = vmatpush.bf16.xpose.msrb.mxu3 %v2059_v41  ;;  %2196 = vmatpush.bf16.xpose.msrb.mxu2 %v2186_v55  ;;  %v2180_v63 = vsel %vm9881_vm10, %v2155_v23, 0  ;;  %v2301_v55 = vsel %vm9849_vm0, %v2274_v2, 0  ;;  %vm9889_vm10 = vmmov %vm9849_vm0  ;;  %v1423_v2 = vmul.f32 %v7436_v21, %v7807_v8 }
 0x2e4   :  { %v1992_v29 = vpack.c.b16 %v1990_v35, %v1989_v54  ;;  %v9893_v54 = vld [vmem:[#allocation64_spill] sm:$0xff] }
 0x2e5   :  { %v1551_v0 = vpack.c.bf16 %v1423_v2, %v1423_v2 }
 0x2e6   :  { %v2149_v24 = vpop.permute.xlu2 %2148 }
 0x2e7   :  { %v2391_v59 = vpop.permute.xlu0 %2390 }
 0x2e9   :  { %v2151_v17 = vpop.permute.xlu1 %2150 }
 0x2eb   :  { %2086 = vmatpush.bf16.xpose.msrb.mxu3 %v2056_v53  ;;  %2197 = vmatpush.bf16.xpose.msrb.mxu2 %v2183_v34  ;;  %v2171_v53 = vsel %vm9889_vm10, %v2149_v24, 0  ;;  %vm9897_vm10 = vmmov %vm9849_vm0 }
 0x2ee   :  { %v2393_v41 = vpop.permute.xlu2 %2392 }
 0x2ef   :  { %v2422_v34 = vsel %vm9890_vm11, %v2393_v41, 0  ;;  %v2270_v42 = vpop.permute.xlu0 %2269  ;;  %v1422_v41 = vmul.f32 %v7438_v18, %v7788_v43  ;;  %vm9898_vm11 = vmmov %vm9849_vm0 }
 0x2f1   :  { %v2278_v47 = vpop.permute.xlu1 %2277 }
 0x2f2   :  { %v2307_v48 = vsel %vm9879_vm7, %v2278_v47, 0  ;;  %5440 = vmatmul.msk.bf16.vlgmr.msrb.gmra.mxu3 %vm9880_vm12, %v1991_v28  ;;  %vm9887_vm7 = vmmov %vm9849_vm0 }
 0x2f3   :  { %2198 = vmatpush.bf16.xpose.msrb.mxu2 %v2180_v63  ;;  %2309 = vmatpush.bf16.xpose.msra.mxu3 %v2307_v48  ;;  %v2174_v23 = vsel %vm9887_vm7, %v2151_v17, 0  ;;  %vm9888_vm12 = vmmov %vm9849_vm0  ;;  %v2295_v48 = vsel %vm9891_vm13, %v2270_v42, 0 }
 0x2f4   :  { %vm9894_vm7 = vmmov %vm9849_vm0 }
 0x2f5   :  { %vm9899_vm13 = vmmov %vm9849_vm0 }
 0x2f6   :  { %v2387_v19 = vpop.permute.xlu2 %2386 }
 0x2f7   :  { %v2413_v2 = vsel %vm9899_vm13, %v2387_v19, 0  ;;  %vm9905_vm13 = vmmov %vm9849_vm0 }
 0x2f9   :  { %v2272_v20 = vpop.permute.xlu1 %2271 }
 0x2fa   :  { %v2298_v1 = vsel %vm9888_vm12, %v2272_v20, 0  ;;  %vm9896_vm12 = vmmov %vm9849_vm0 }
 0x2fb   :  { %2199 = vmatpush.bf16.xpose.msrb.mxu2 %v2177_v30  ;;  %2310 = vmatpush.bf16.xpose.msra.mxu3 %v2304_v37  ;;  %v1421_v30 = vmul.f32 %v7484_v61, %v7772_v44 }
 0x2fe   :  { %v7955_v45 = vpop.permute.xlu2 %2382 }
 0x301   :  { %v2268_v28 = vpop.permute.xlu1 %2267 }
 0x302   :  { %5441 = vmatmul.msk.bf16.gmra.mxu3 %vm9886_vm6, %v1992_v29  ;;  %vm9892_vm6 = vmmov %vm9849_vm0  ;;  %v1847_v29 = vpack.c.bf16 %v9893_v54, %v9893_v54 }
 0x303   :  { %2200 = vmatpush.bf16.xpose.msrb.mxu2 %v2174_v23  ;;  %2311 = vmatpush.bf16.xpose.msra.mxu3 %v2301_v55  ;;  %v2419_v63 = vsel %vm9892_vm6, %v2391_v59, 0  ;;  %v2292_v59 = vsel %vm9894_vm7, %v2268_v28, 0  ;;  %v2104_v28 = vunpack.c.l.b16 %v1846_v58  ;;  %vm9900_vm6 = vmmov %vm9849_vm0 }
 0x304   :  { %v2105_v42 = vunpack.c.l.b16 %v1847_v29  ;;  %vm9901_vm7 = vmmov %vm9849_vm0 }
 0x309   :  { %v2389_v35 = vpop.permute.xlu1 %2388 }
 0x30b   :  { %2201 = vmatpush.bf16.xpose.msrb.mxu2 %v2171_v53  ;;  %2312 = vmatpush.bf16.xpose.msra.mxu3 %v2298_v1  ;;  %v1549_v1 = vpack.c.bf16 %v1421_v30, %v1421_v30  ;;  %v2416_v53 = vsel %vm9896_vm12, %v2389_v35, 0  ;;  %vm9902_vm12 = vmmov %vm9849_vm0 }
 0x30c   :  { %v7944_v17 = vpop.f32.mrf.mxu3 }
 0x30d   :  { %v1446_v62 = vmul.f32 %v7211_v49, %v7944_v17  ;;  %v1450_v47 = vmul.f32 %v9823_v39, %v7944_v17 }
 0x30f   :  { %v1574_v37 = vpack.c.bf16 %v1446_v62, %v1446_v62  ;;  %v1578_v39 = vpack.c.bf16 %v1450_v47, %v1450_v47  ;;  %v1550_v62 = vpack.c.bf16 %v1422_v41, %v1422_v41  ;;  %v2264_v47 = vpop.permute.xlu0 %2263 }
 0x311   :  { %v2713_v23 = vunpack.c.l.b16 %v1578_v39  ;;  %v2586_v30 = vunpack.c.l.b16 %v1550_v62  ;;  %v2385_v35 = vpop.permute.xlu1 %2384 }
 0x312   :  { %5442 = vmatmul.msk.bf16.vlgmr.msrb.gmra.mxu2 %vm9849_vm0, %v2106_v60  ;;  %v2410_v58 = vsel %vm9901_vm7, %v2385_v35, 0  ;;  %vm9907_vm7 = vmmov %vm9849_vm0 }
 0x313   :  { %2424 = vmatpush.bf16.xpose.msra.mxu2 %v2422_v34  ;;  %2313 = vmatpush.bf16.xpose.msra.mxu3 %v2295_v48  ;;  %v2266_v48 = vpop.permute.xlu2 %2265 }
 0x314   :  { %v7953_v24 = vpop.f32.mrf.mxu3 }
 0x315   :  { %v1447_v51 = vmul.f32 %v9841_v31, %v7953_v24  ;;  %v1451_v49 = vmul.f32 %v9819_v25, %v7953_v24  ;;  %v1420_v31 = vmul.f32 %v7486_v12, %v7748_v7  ;;  %v2709_v25 = vunpack.c.l.b16 %v1574_v37 }
 0x316   :  { %v1445_v37 = vmul.f32 %v9825_v36, %v7902_v5 }
 0x317   :  { %v1575_v40 = vpack.c.bf16 %v1447_v51, %v1447_v51  ;;  %v1579_v15 = vpack.c.bf16 %v1451_v49, %v1451_v49  ;;  %v1548_v60 = vpack.c.bf16 %v1420_v31, %v1420_v31  ;;  %v2587_v51 = vunpack.c.l.b16 %v1551_v0 }
 0x318   :  { %v2107_v49 = vpack.c.b16 %v2105_v42, %v2104_v28  ;;  %v1573_v31 = vpack.c.bf16 %v1445_v37, %v1445_v37 }
 0x319   :  { %v2710_v55 = vunpack.c.l.b16 %v1575_v40  ;;  %v2714_v20 = vunpack.c.l.b16 %v1579_v15  ;;  %v2584_v39 = vunpack.c.l.b16 %v1548_v60  ;;  %v1444_v40 = vmul.f32 %v7221_v57, %v7883_v52 }
 0x31a   :  { %v2289_v15 = vsel %vm9897_vm10, %v2266_v48, 0  ;;  %v2601_v29 = vpack.c.b16 %v2587_v51, %v2586_v30  ;;  %v2708_v41 = vunpack.c.l.b16 %v1573_v31  ;;  %v1443_v57 = vmul.f32 %v7280_v26, %v7953_v24  ;;  %vm9903_vm10 = vmmov %vm9849_vm0 }
 0x31b   :  { %2425 = vmatpush.bf16.xpose.msra.mxu2 %v2419_v63  ;;  %2314 = vmatpush.bf16.xpose.msra.mxu3 %v2292_v59  ;;  %v2720_v34 = vpack.c.b16 %v2710_v55, %v2709_v25  ;;  %v2722_v32 = vpack.c.b16 %v2714_v20, %v2713_v23  ;;  %v2585_v63 = vunpack.c.l.b16 %v1549_v1  ;;  %v1572_v36 = vpack.c.bf16 %v1444_v40, %v1444_v40  ;;  %v2508_v55 = vpop.permute.xlu0 %2507  ;;  %v2504_v28 = vpop.permute.xlu2 %2503 }
 0x31c   :  { %v1849_v25 = vpack.c.bf16 %v7417_v27, %v7417_v27  ;;  %v1442_v23 = vmul.f32 %v7282_v6, %v7944_v17  ;;  %v1848_v20 = vpack.c.bf16 %v7397_v10, %v7397_v10  ;;  %v2286_v59 = vsel %vm9849_vm0, %v2264_v47, 0  ;;  %v2506_v27 = vpop.permute.xlu1 %2505 }
 0x31d   :  { %2733 = vrot.lane.b32.xlu1 %v2720_v34, %s6050_s20  ;;  %2737 = vrot.lane.b32.xlu2 %v2722_v32, %s6050_s20  ;;  %v2600_v54 = vpack.c.b16 %v2585_v63, %v2584_v39  ;;  %v2707_v19 = vunpack.c.l.b16 %v1572_v36  ;;  %v2537_v38 = vsel %vm9900_vm6, %v2508_v55, 0  ;;  %v1571_v26 = vpack.c.bf16 %v1443_v57, %v1443_v57  ;;  %vm9906_vm6 = vmmov %vm9849_vm0 }
 0x31e   :  { %v1570_v34 = vpack.c.bf16 %v1442_v23, %v1442_v23  ;;  %v2217_v6 = vunpack.c.l.b16 %v1848_v20  ;;  %v2407_v42 = vsel %vm9903_vm10, %v7955_v45, 0  ;;  %v1851_v63 = vpack.c.bf16 %v7515_v16, %v7515_v16  ;;  %vm9909_vm10 = vmmov %vm9849_vm0  ;;  %v9914_v20 = vld [vmem:[#allocation10_spill] sm:$0xff] }
 0x31f   :  { %v2719_v1 = vpack.c.b16 %v2708_v41, %v2707_v19  ;;  %v2706_v32 = vunpack.c.l.b16 %v1571_v26  ;;  %v1850_v51 = vpack.c.bf16 %v7467_v50, %v7467_v50  ;;  %v2531_v45 = vsel %vm9849_vm0, %v2504_v28, 0  ;;  %v9921_v28 = vld [vmem:[#allocation54_spill] sm:$0xff] }
 0x320   :  { %v2705_v10 = vunpack.c.l.b16 %v1570_v34  ;;  %v1852_v50 = vpack.c.bf16 %v7383_v9, %v7383_v9  ;;  %v9620_v57 = vmov 1.0|1.0   ;;  %v1855_v26 = vpack.c.bf16 %v9824_v4, %v9824_v4 }
 0x321   :  { %v2219_v39 = vunpack.c.l.b16 %v1850_v51 }
 0x322   :  { %5443 = vmatmul.msk.bf16.gmra.mxu2 %vm9898_vm11, %v2107_v49  ;;  %vm9904_vm11 = vmmov %vm9849_vm0  ;;  %v2718_v62 = vpack.c.b16 %v2706_v32, %v2705_v10  ;;  %v2220_v49 = vunpack.c.l.b16 %v1851_v63 }
 0x323   :  { %2426 = vmatpush.bf16.xpose.msra.mxu2 %v2416_v53  ;;  %2315 = vmatpush.bf16.xpose.msra.mxu3 %v2289_v15  ;;  %v2218_v53 = vunpack.c.l.b16 %v1849_v25  ;;  %v2534_v60 = vsel %vm9904_vm11, %v2506_v27, 0  ;;  %v2381_v47 = vpop.permute.xlu0 %2380  ;;  %v2500_v40 = vpop.permute.xlu2 %2499  ;;  %vm5454_vm11 = vmpackc.low %vm6457_vm9, %vm6449_vm8  ;;  %v6052_v27 = vmov -1e+09  }
 0x324   :  { %v2379_v48 = vpop.permute.xlu1 %2378  ;;  %v2404_v37 = vsel %vm9905_vm13, %v2381_v47, 0  ;;  %v2222_v15 = vpack.c.b16 %v2220_v49, %v2219_v39  ;;  %5455 = vmatpush.bf16.msk.msrb.mxu0 %vm5454_vm11, %v9620_v57  ;;  %vm9912_vm13 = vmmov %vm9849_vm0 }
 0x325   :  { %2608 = vrot.lane.b32.xlu1 %v2600_v54, %s6050_s20  ;;  %2610 = vrot.lane.b32.xlu2 %v2601_v29, %s6050_s20  ;;  %v2221_v0 = vpack.c.b16 %v2218_v53, %v2217_v6  ;;  %v2525_v19 = vsel %vm9912_vm13, %v2500_v40, 0  ;;  %vm9916_vm9 = vmmov %vm9849_vm0  ;;  %v9917_v6 = vld [vmem:[#allocation66_spill] sm:$0xff] }
 0x326   :  { %v1854_v32 = vpack.c.bf16 %v9917_v6, %v9917_v6  ;;  %vm9922_vm11 = vmmov %vm9849_vm0  ;;  %v9924_v40 = vld [vmem:[#allocation38_spill] sm:$0xff] }
 0x327   :  { %vm9923_vm13 = vmmov %vm9849_vm0 }
 0x328   :  { %v2334_v47 = vunpack.c.l.b16 %v1854_v32 }
 0x32b   :  { %2427 = vmatpush.bf16.xpose.msra.mxu2 %v2413_v2  ;;  %2316 = vmatpush.bf16.xpose.msra.mxu3 %v2286_v59  ;;  %v2502_v30 = vpop.permute.xlu0 %2501  ;;  %v1853_v2 = vpack.c.bf16 %v7389_v46, %v7389_v46  ;;  %v2332_v46 = vunpack.c.l.b16 %v1852_v50  ;;  %v2621_v25 = vpop.permute.xlu2 %2620  ;;  %v1251_v59 = vand.u32 31, %v9914_v20  ;;  %v9926_v50 = vld [vmem:[#allocation71_spill] sm:$0xff] }
 0x32c   :  { %v2623_v35 = vpop.permute.xlu1 %2622  ;;  %v2528_v16 = vsel %vm9907_vm7, %v2502_v30, 0  ;;  %vm9918_vm7 = vmmov %vm9849_vm0 }
 0x32d   :  { %2731 = vrot.lane.b32.xlu1 %v2719_v1, %s6050_s20  ;;  %v2652_v29 = vsel %vm9909_vm10, %v2623_v35, 0  ;;  %v2333_v31 = vunpack.c.l.b16 %v1853_v2  ;;  %vm1253_vm10 = vcmp.ge.s32.totalorder %v9921_v28, %v1251_v59  ;;  %v1436_v28 = vmul.f32 %v7486_v12, %v7883_v52 }
 0x32e   :  { %v1438_v12 = vmul.f32 %v7438_v18, %v7944_v17 }
 0x32f   :  { %v2336_v55 = vpack.c.b16 %v2333_v31, %v2332_v46 }
 0x332   :  { %5444 = vmatmul.msk.bf16.vlgmr.msra.gmra.mxu3 %vm9902_vm12, %v2221_v0  ;;  %vm9908_vm12 = vmmov %vm9849_vm0 }
 0x333   :  { %2428 = vmatpush.bf16.xpose.msra.mxu2 %v2410_v58  ;;  %2539 = vmatpush.bf16.xpose.msrb.mxu3 %v2537_v38  ;;  %v2401_v54 = vsel %vm9908_vm12, %v2379_v48, 0  ;;  %v2498_v9 = vpop.permute.xlu0 %2497  ;;  %v9915_v58 = vld [vmem:[#allocation9_spill] sm:$0xff]  ;;  %vm5456_vm12 = vmpackc.low %vm6665_vm15, %vm6660_vm14  ;;  %v2494_v30 = vpop.permute.xlu2 %2493  ;;  %vm1254_vm14 = vcmp.ge.s32.totalorder %v9924_v40, %v1251_v59 }
 0x334   :  { %v2496_v38 = vpop.permute.xlu1 %2495  ;;  %vm1252_vm8 = vcmp.ge.s32.totalorder %v9915_v58, %v1251_v59  ;;  %v2522_v53 = vsel %vm9916_vm9, %v2498_v9, 0  ;;  %5457 = vmatpush.bf16.msk.msrb.mxu0 %vm5456_vm12, %v9620_v57  ;;  %vm9927_vm15 = vmmov %vm9849_vm0  ;;  %v1441_v58 = vmul.f32 %v9837_v22, %v7902_v5  ;;  %v9934_v22 = vld [vmem:[#allocation59_spill] sm:$0xff] }
 0x335   :  { %2729 = vrot.lane.b32.xlu1 %v2718_v62, %s6050_s20  ;;  %v8030_v34 = vsel %vm1252_vm8, 0.0, %v6052_v27  ;;  %v2519_v51 = vsel %vm9922_vm11, %v2496_v38, 0  ;;  %vm5458_vm8 = vmpackc.low %vm6836_vm2, %vm6829_vm1  ;;  %v9935_v62 = vld [vmem:[#allocation45_spill] sm:$0xff] }
 0x336   :  { %vm9933_vm12 = vmmov %vm9849_vm0  ;;  %v1858_v4 = vpack.c.bf16 %v9935_v62, %v9935_v62 }
 0x337   :  { %vm5460_vm1 = vmpackc.low %vm6727_vm4, %vm6722_vm3 }
 0x338   :  { %5459 = vmatpush.bf16.msk.msrb.mxu0 %vm5458_vm8, %v9620_v57  ;;  %v2449_v40 = vunpack.c.l.b16 %v1858_v4  ;;  %vm9938_vm2 = vmmov %vm9849_vm0 }
 0x339   :  { %vm9940_vm3 = vmmov %vm9849_vm0 }
 0x33a   :  { %vm9941_vm4 = vmmov %vm9849_vm0 }
 0x33b   :  { %2429 = vmatpush.bf16.xpose.msra.mxu2 %v2407_v42  ;;  %2540 = vmatpush.bf16.xpose.msrb.mxu3 %v2534_v60  ;;  %v2619_v1 = vpop.permute.xlu0 %2618  ;;  %v2335_v42 = vunpack.c.l.b16 %v1855_v26 }
 0x33c   :  { %v2646_v0 = vsel %vm9918_vm7, %v2619_v1, 0  ;;  %v2617_v48 = vpop.permute.xlu1 %2616  ;;  %vm9932_vm7 = vmmov %vm9849_vm0  ;;  %5461 = vmatpush.bf16.msk.msrb.mxu0 %vm5460_vm1, %v9620_v57 }
 0x33d   :  { %v2337_v63 = vpack.c.b16 %v2335_v42, %v2334_v47 }
 0x342   :  { %5445 = vmatmul.msk.bf16.gmra.mxu3 %vm9906_vm6, %v2222_v15  ;;  %vm9913_vm6 = vmmov %vm9849_vm0  ;;  %v9925_v15 = vld [vmem:[#allocation73_spill] sm:$0xff] }
 0x343   :  { %2430 = vmatpush.bf16.xpose.msra.mxu2 %v2404_v37  ;;  %2541 = vmatpush.bf16.xpose.msrb.mxu3 %v2531_v45  ;;  %v2649_v23 = vsel %vm9913_vm6, %v2621_v25, 0  ;;  %v8047_v37 = vsel %vm1253_vm10, 0.0, %v6052_v27  ;;  %v2643_v45 = vsel %vm9849_vm0, %v2617_v48, 0  ;;  %v1857_v2 = vpack.c.bf16 %v9925_v15, %v9925_v15  ;;  %v2615_v35 = vpop.permute.xlu0 %2614  ;;  %vm9928_vm6 = vmmov %vm9849_vm0 }
 0x344   :  { %v2640_v31 = vsel %vm9928_vm6, %v2615_v35, 0  ;;  %v2613_v20 = vpop.permute.xlu1 %2612  ;;  %vm9939_vm10 = vmmov %vm9849_vm0 }
 0x345   :  { %v2448_v36 = vunpack.c.l.b16 %v1857_v2  ;;  %v2637_v26 = vsel %vm9933_vm12, %v2613_v20, 0  ;;  %v1564_v2 = vpack.c.bf16 %v1436_v28, %v1436_v28  ;;  %vm9969_vm12 = vmmov %vm9938_vm2 }
 0x34b   :  { %2431 = vmatpush.bf16.xpose.msra.mxu2 %v2401_v54  ;;  %2542 = vmatpush.bf16.xpose.msrb.mxu3 %v2528_v16  ;;  %v1856_v16 = vpack.c.bf16 %v9926_v50, %v9926_v50  ;;  %v2516_v54 = vsel %vm9927_vm15, %v2494_v30, 0 }
 0x352   :  { %5446 = vmatmul.msk.bf16.vlgmr.msra.gmra.mxu2 %vm9849_vm0, %v2336_v55  ;;  %v2447_v55 = vunpack.c.l.b16 %v1856_v16 }
 0x353   :  { %2654 = vmatpush.bf16.xpose.msrb.mxu2 %v2652_v29  ;;  %2543 = vmatpush.bf16.xpose.msrb.mxu3 %v2525_v19  ;;  %v8060_v29 = vsel %vm1254_vm14, 0.0, %v6052_v27  ;;  %v8070_v19 = vpop.f32.mrf.mxu1  ;;  %vm9951_vm14 = vmmov %vm9938_vm2 }
 0x354   :  { %v2451_v38 = vpack.c.b16 %v2448_v36, %v2447_v55  ;;  %v2736_v36 = vpop.permute.xlu0 %2735 }
 0x355   :  { %v1973_v10 = vpop.f32.mrf.mxu2  ;;  %v2764_v18 = vsel %vm9941_vm4, %v2736_v36, 0 }
 0x356   :  { %v8036_v60 = vadd.f32 %v1973_v10, %v8030_v34 }
 0x358   :  { %2788 = vmax.xlane.f32.xlu0 %v8036_v60 }
 0x35b   :  { %2655 = vmatpush.bf16.xpose.msrb.mxu2 %v2649_v23  ;;  %2544 = vmatpush.bf16.xpose.msrb.mxu3 %v2522_v53  ;;  %v9931_v23 = vld [vmem:[#allocation41_spill] sm:$0xff]  ;;  %v1440_v53 = vmul.f32 %v9833_v3, %v7883_v52  ;;  %v8087_v10 = vpop.f32.mrf.mxu1  ;;  %v1437_v3 = vmul.f32 %v7484_v61, %v7902_v5 }
 0x35c   :  { %vm1255_vm9 = vcmp.ge.s32.totalorder %v9931_v23, %v1251_v59  ;;  %v1569_v59 = vpack.c.bf16 %v1441_v58, %v1441_v58 }
 0x35d   :  { %v1975_v49 = vpop.f32.mrf.mxu2  ;;  %v8078_v1 = vsel %vm1255_vm9, 0.0, %v6052_v27  ;;  %v1859_v27 = vpack.c.bf16 %v9934_v22, %v9934_v22  ;;  %v1565_v15 = vpack.c.bf16 %v1437_v3, %v1437_v3  ;;  %v9948_v22 = vld [vmem:[#allocation52_spill] sm:$0xff]  ;;  %vm9963_vm9 = vmmov %vm9938_vm2 }
 0x35e   :  { %v8051_v39 = vadd.f32 %v1975_v49, %v8047_v37  ;;  %v2704_v42 = vunpack.c.l.b16 %v1569_v59  ;;  %v9947_v59 = vld [vmem:[#allocation14_spill] sm:$0xff]  ;;  %v9955_v49 = vld [vmem:[#allocation17_spill] sm:$0xff] }
 0x35f   :  { %v2450_v48 = vunpack.c.l.b16 %v1859_v27  ;;  %v2700_v16 = vunpack.c.l.b16 %v1565_v15  ;;  %v9949_v27 = vld [vmem:[#allocation13_spill] sm:$0xff] }
 0x360   :  { %2790 = vmax.xlane.f32.xlu2 %v8051_v39 }
 0x362   :  { %5447 = vmatmul.msk.bf16.gmra.mxu2 %vm9923_vm13, %v2337_v63 }
 0x363   :  { %2656 = vmatpush.bf16.xpose.msrb.mxu2 %v2646_v0  ;;  %2545 = vmatpush.bf16.xpose.msrb.mxu3 %v2519_v51  ;;  %v1568_v0 = vpack.c.bf16 %v1440_v53, %v1440_v53  ;;  %v1439_v51 = vmul.f32 %v7436_v21, %v7953_v24  ;;  %v2452_v21 = vpack.c.b16 %v2450_v48, %v2449_v40  ;;  %v8108_v50 = vpop.f32.mrf.mxu1  ;;  %v9944_v53 = vld [vmem:[#allocation24_spill] sm:$0xff]  ;;  %v9952_v48 = vld [vmem:[#allocation37_spill] sm:$0xff] }
 0x364   :  { %vm9945_vm13 = vnez %v9944_v53 }
 0x365   :  { %v1978_v41 = vpop.f32.mrf.mxu2  ;;  %v2703_v47 = vunpack.c.l.b16 %v1568_v0  ;;  %v1567_v35 = vpack.c.bf16 %v1439_v51, %v1439_v51 }
 0x366   :  { %v8064_v46 = vadd.f32 %v1978_v41, %v8060_v29 }
 0x367   :  { %v2717_v63 = vpack.c.b16 %v2704_v42, %v2703_v47  ;;  %v2702_v41 = vunpack.c.l.b16 %v1567_v35  ;;  %v1610_v42 = vmul.f32 %v9949_v27, %v9948_v22  ;;  %v1861_v35 = vpack.c.bf16 %v7772_v44, %v7772_v44 }
 0x368   :  { %2792 = vmax.xlane.f32.xlu1 %v8064_v46 }
 0x369   :  { %v1738_v40 = vpack.c.bf16 %v1610_v42, %v1610_v42  ;;  %v9964_v42 = vld [vmem:[#allocation21_spill] sm:$0xff] }
 0x36b   :  { %2657 = vmatpush.bf16.xpose.msrb.mxu2 %v2643_v45  ;;  %2546 = vmatpush.bf16.xpose.msrb.mxu3 %v2516_v54  ;;  %v1566_v54 = vpack.c.bf16 %v1438_v12, %v1438_v12  ;;  %v9954_v45 = vld [vmem:[#allocation72_spill] sm:$0xff]  ;;  %v9956_v12 = vld [vmem:[#allocation30_spill] sm:$0xff] }
 0x36d   :  { %v1980_v6 = vpop.f32.mrf.mxu2  ;;  %v2701_v23 = vunpack.c.l.b16 %v1566_v54 }
 0x36e   :  { %v8084_v32 = vadd.f32 %v1980_v6, %v8078_v1  ;;  %v9946_v6 = vld [vmem:[#allocation62_spill] sm:$0xff] }
 0x36f   :  { %v2716_v20 = vpack.c.b16 %v2702_v41, %v2701_v23  ;;  %v1611_v0 = vmul.f32 %v9947_v59, %v9946_v6  ;;  %v9958_v41 = vld [vmem:[#allocation39_spill] sm:$0xff]  ;;  %v9962_v23 = vld [vmem:[#allocation22_spill] sm:$0xff] }
 0x370   :  { %2794 = vmax.xlane.f32.xlu0 %v8084_v32  ;;  %vm9959_vm15 = vnez %v9958_v41 }
 0x371   :  { %v1739_v3 = vpack.c.bf16 %v1611_v0, %v1611_v0 }
 0x372   :  { %5448 = vmatmul.msk.bf16.vlgmr.msrb.gmra.mxu3 %vm9932_vm7, %v2451_v38  ;;  %v8115_v38 = vpop.f32.mrf.mxu1  ;;  %vm9968_vm7 = vmmov %vm9938_vm2 }
 0x373   :  { %2658 = vmatpush.bf16.xpose.msrb.mxu2 %v2640_v31  ;;  %v2699_v31 = vunpack.c.l.b16 %v1564_v2  ;;  %v3263_v15 = vunpack.c.l.b16 %v1739_v3  ;;  %v1607_v2 = vmul.f32 %v9956_v12, %v9946_v6  ;;  %v2563_v3 = vunpack.c.l.b16 %v1861_v35 }
 0x375   :  { %v2715_v25 = vpack.c.b16 %v2700_v16, %v2699_v31  ;;  %v2088_v58 = vpop.f32.mrf.mxu3  ;;  %v9957_v16 = vld [vmem:[#allocation29_spill] sm:$0xff]  ;;  %v3262_v31 = vunpack.c.l.b16 %v1738_v40  ;;  %v1735_v53 = vpack.c.bf16 %v1607_v2, %v1607_v2 }
 0x376   :  { %v1606_v54 = vmul.f32 %v9957_v16, %v9948_v22  ;;  %v9966_v2 = vld [vmem:[#allocation25_spill] sm:$0xff]  ;;  %v8162_v35 = vadd.f32 %v2088_v58, %v8030_v34 }
 0x377   :  { %v2738_v30 = vpop.permute.xlu2 %2737  ;;  %v3259_v41 = vunpack.c.l.b16 %v1735_v53 }
 0x378   :  { %v2767_v61 = vsel %vm9938_vm2, %v2738_v30, 0  ;;  %2727 = vrot.lane.b32.xlu2 %v2717_v63, %s6050_s20  ;;  %v9953_v63 = vld [vmem:[#allocation18_spill] sm:$0xff]  ;;  %v1608_v30 = vmul.f32 %v9955_v49, %v9954_v45 }
 0x379   :  { %2769 = vmatpush.bf16.xpose.msra.mxu3 %v2767_v61  ;;  %v1609_v51 = vmul.f32 %v9953_v63, %v9952_v48 }
 0x37a   :  { %v8126_v62 = vpop.f32.mrf.mxu1 }
 0x37b   :  { %2659 = vmatpush.bf16.xpose.msrb.mxu2 %v2637_v26  ;;  %v9942_v26 = vld [vmem:[#allocation23_spill] sm:$0xff]  ;;  %9950 = vst [vmem:[#allocation50_spill] sm:$0xff] %v8126_v62  ;;  %v1737_v61 = vpack.c.bf16 %v1609_v51, %v1609_v51 }
 0x37c   :  { %vm9943_vm11 = vnez %v9942_v26 }
 0x37d   :  { %vm5462_vm0 = vmpackc.low %vm9945_vm13, %vm9943_vm11  ;;  %v8128_v47 = vpop.f32.mrf.mxu3  ;;  %v3261_v26 = vunpack.c.l.b16 %v1737_v61 }
 0x37e   :  { %5463 = vmatpush.bf16.msk.msrb.mxu0 %vm5462_vm0, %v9620_v57 }
 0x37f   :  { %v2611_v9 = vpop.permute.xlu2 %2610 }
 0x380   :  { %v2634_v55 = vsel %vm9940_vm3, %v2611_v9, 0  ;;  %v9960_v9 = vld [vmem:[#allocation40_spill] sm:$0xff] }
 0x381   :  { %2723 = vrot.lane.b32.xlu1 %v2715_v25, %s6050_s20  ;;  %2770 = vmatpush.bf16.xpose.msra.mxu3 %v2764_v18  ;;  %vm9961_vm6 = vnez %v9960_v9  ;;  %v1860_v25 = vpack.c.bf16 %v7748_v7, %v7748_v7  ;;  %v1605_v18 = vmul.f32 %v9962_v23, %v9952_v48 }
 0x382   :  { %5449 = vmatmul.msk.bf16.gmra.mxu3 %vm9939_vm10, %v2452_v21  ;;  %v1736_v21 = vpack.c.bf16 %v1608_v30, %v1608_v30  ;;  %vm5464_vm8 = vmpackc.low %vm9961_vm6, %vm9959_vm15  ;;  %v8153_v0 = vpop.f32.mrf.mxu1 }
 0x383   :  { %2660 = vmatpush.bf16.xpose.msrb.mxu2 %v2634_v55  ;;  %5465 = vmatpush.bf16.msk.msrb.mxu0 %vm5464_vm8, %v9620_v57  ;;  %v2562_v30 = vunpack.c.l.b16 %v1860_v25  ;;  %v1733_v9 = vpack.c.bf16 %v1605_v18, %v1605_v18  ;;  %vm9974_vm10 = vmmov %vm9940_vm3 }
 0x384   :  { %2725 = vrot.lane.b32.xlu0 %v2716_v20, %s6050_s20  ;;  %v3271_v20 = vpack.c.b16 %v3263_v15, %v3262_v31  ;;  %v3260_v51 = vunpack.c.l.b16 %v1736_v21  ;;  %v1602_v31 = vmul.f32 %v9966_v2, %v9948_v22  ;;  %v9967_v21 = vld [vmem:[#allocation46_spill] sm:$0xff] }
 0x385   :  { %v2093_v7 = vpop.f32.mrf.mxu3  ;;  %v1601_v25 = vmul.f32 %v9967_v21, %v9952_v48  ;;  %v3257_v53 = vunpack.c.l.b16 %v1733_v9  ;;  %v1598_v9 = vmul.f32 %v9814_v14, %v9948_v22 }
 0x386   :  { %v3270_v40 = vpack.c.b16 %v3261_v26, %v3260_v51  ;;  %v1730_v58 = vpack.c.bf16 %v1602_v31, %v1602_v31  ;;  %v1863_v31 = vpack.c.bf16 %v7807_v8, %v7807_v8  ;;  %v1862_v8 = vpack.c.bf16 %v7788_v43, %v7788_v43 }
 0x387   :  { %v1658_v43 = vmul.f32 %v9949_v27, %v8108_v50 }
 0x38a   :  { %v8171_v51 = vpop.f32.mrf.mxu1 }
 0x38f   :  { %v2734_v4 = vpop.permute.xlu1 %2733 }
 0x390   :  { %v2761_v28 = vsel %vm9951_vm14, %v2734_v4, 0  ;;  %v1604_v4 = vmul.f32 %v9964_v42, %v9954_v45 }
 0x391   :  { %2771 = vmatpush.bf16.xpose.msra.mxu3 %v2761_v28  ;;  %v1734_v28 = vpack.c.bf16 %v1606_v54, %v1606_v54 }
 0x392   :  { %v1732_v61 = vpack.c.bf16 %v1604_v4, %v1604_v4 }
 0x393   :  { %v3258_v57 = vunpack.c.l.b16 %v1734_v28 }
 0x394   :  { %v3256_v28 = vunpack.c.l.b16 %v1732_v61  ;;  %v9971_v61 = vld [vmem:[#allocation48_spill] sm:$0xff] }
 0x395   :  { %v8141_v36 = vpop.f32.mrf.mxu2  ;;  %v3269_v26 = vpack.c.b16 %v3259_v41, %v3258_v57  ;;  %v1599_v57 = vmul.f32 %v7259_v11, %v9946_v6  ;;  %vm9972_vm1 = vnez %v9971_v61 }
 0x396   :  { %v3268_v62 = vpack.c.b16 %v3257_v53, %v3256_v28  ;;  %vm5466_vm2 = vmpackc.low %vm9972_vm1, %vm7199_vm5  ;;  %v9973_v53 = vmov 1.0|1.0   ;;  %v1726_v28 = vpack.c.bf16 %v1598_v9, %v1598_v9 }
 0x397   :  { %v2609_v55 = vpop.permute.xlu1 %2608  ;;  %5467 = vmatpush.bf16.msk.msrb.mxu0 %vm5466_vm2, %v9973_v53  ;;  %vm9975_vm5 = vmmov %vm9940_vm3 }
 0x398   :  { %v2631_v44 = vsel %vm9963_vm9, %v2609_v55, 0  ;;  %v9965_v55 = vld [vmem:[#allocation26_spill] sm:$0xff]  ;;  %vm9984_vm13 = vmmov %vm9975_vm5 }
 0x399   :  { %2661 = vmatpush.bf16.xpose.msrb.mxu2 %v2631_v44  ;;  %v1603_v15 = vmul.f32 %v9965_v55, %v9946_v6  ;;  %v2566_v44 = vpack.c.b16 %v2563_v3, %v2562_v30  ;;  %v1600_v3 = vmul.f32 %v9811_v56, %v9954_v45  ;;  %v1729_v30 = vpack.c.bf16 %v1601_v25, %v1601_v25  ;;  %vm9991_vm0 = vmmov %vm9975_vm5 }
 0x39a   :  { %v1597_v6 = vmul.f32 %v9815_v33, %v9952_v48  ;;  %v1596_v48 = vmul.f32 %v7312_v13, %v9954_v45  ;;  %v8207_v45 = vpop.f32.mrf.mxu1  ;;  %vm9994_vm14 = vmmov %vm9991_vm0 }
 0x39b   :  { %v1731_v4 = vpack.c.bf16 %v1603_v15, %v1603_v15  ;;  %v1728_v41 = vpack.c.bf16 %v1600_v3, %v1600_v3  ;;  %v3254_v15 = vunpack.c.l.b16 %v1730_v58  ;;  %v1659_v3 = vmul.f32 %v9947_v59, %v8115_v38  ;;  %vm9995_vm15 = vmmov %vm9991_vm0 }
 0x39c   :  { %v8195_v58 = vadd.f32 %v2093_v7, %v8060_v29  ;;  %v8205_v7 = vadd.f32 %v8128_v47, %v8047_v37  ;;  %v1724_v9 = vpack.c.bf16 %v1596_v48, %v1596_v48  ;;  %v1786_v47 = vpack.c.bf16 %v1658_v43, %v1658_v43  ;;  %vm9997_vm6 = vmmov %vm9991_vm0 }
 0x39d   :  { %v1655_v48 = vmul.f32 %v9956_v12, %v8115_v38  ;;  %vm10006_vm8 = vmmov %vm9991_vm0 }
 0x39e   :  { %v3463_v43 = vunpack.c.l.b16 %v1786_v47  ;;  %vm10007_vm9 = vmmov %vm9991_vm0 }
 0x39f   :  { %v2732_v54 = vpop.permute.xlu1 %2731  ;;  %vm10010_vm1 = vmmov %vm9991_vm0 }
 0x3a0   :  { %v2758_v18 = vsel %vm9968_vm7, %v2732_v54, 0  ;;  %5450 = vmatmul.msk.bf16.vlgmr.msrb.gmra.mxu2 %vm9969_vm12, %v2566_v44  ;;  %v3255_v54 = vunpack.c.l.b16 %v1731_v4  ;;  %v1727_v4 = vpack.c.bf16 %v1599_v57, %v1599_v57  ;;  %v1725_v57 = vpack.c.bf16 %v1597_v6, %v1597_v6  ;;  %vm10008_vm7 = vmmov %vm9991_vm0 }
 0x3a1   :  { %3280 = vmatpush.bf16.msra.mxu2 %v3271_v20  ;;  %v2205_v20 = vpop.f32.mrf.mxu2  ;;  %2796 = vmax.xlane.f32.xlu2 %v8162_v35  ;;  %v2564_v44 = vunpack.c.l.b16 %v1862_v8  ;;  %v1656_v6 = vmul.f32 %v9955_v49, %v8070_v19  ;;  %vm10009_vm12 = vmmov %vm9991_vm0 }
 0x3a2   :  { %2772 = vmatpush.bf16.xpose.msra.mxu3 %v2758_v18  ;;  %v3251_v61 = vunpack.c.l.b16 %v1727_v4  ;;  %v3249_v8 = vunpack.c.l.b16 %v1725_v57  ;;  %vm10011_vm2 = vmmov %vm9991_vm0 }
 0x3a5   :  { %3281 = vmatpush.bf16.msra.mxu2 %v3270_v40  ;;  %v2095_v40 = vpop.f32.mrf.mxu3 }
 0x3a6   :  { %v8184_v18 = vadd.f32 %v2095_v40, %v8078_v1  ;;  %v3252_v40 = vunpack.c.l.b16 %v1728_v41  ;;  %v1657_v41 = vmul.f32 %v9953_v63, %v8087_v10 }
 0x3a7   :  { %v2730_v25 = vpop.permute.xlu1 %2729 }
 0x3a8   :  { %v2755_v22 = vsel %vm9974_vm10, %v2730_v25, 0  ;;  %v1787_v25 = vpack.c.bf16 %v1659_v3, %v1659_v3  ;;  %v1785_v3 = vpack.c.bf16 %v1657_v41, %v1657_v41  ;;  %v1783_v41 = vpack.c.bf16 %v1655_v48, %v1655_v48  ;;  %vm10012_vm10 = vmmov %vm9991_vm0 }
 0x3a9   :  { %3282 = vmatpush.bf16.msra.mxu2 %v3269_v26  ;;  %v3253_v26 = vunpack.c.l.b16 %v1729_v30  ;;  %2802 = vmax.xlane.f32.xlu2 %v8184_v18  ;;  %v2208_v30 = vpop.f32.mrf.mxu2 }
 0x3aa   :  { %2773 = vmatpush.bf16.xpose.msra.mxu3 %v2755_v22  ;;  %v3250_v22 = vunpack.c.l.b16 %v1726_v28  ;;  %v3464_v4 = vunpack.c.l.b16 %v1787_v25  ;;  %v3248_v28 = vunpack.c.l.b16 %v1724_v9  ;;  %v3462_v25 = vunpack.c.l.b16 %v1785_v3 }
 0x3ab   :  { %2800 = vmax.xlane.f32.xlu1 %v8195_v58  ;;  %v1652_v9 = vmul.f32 %v9964_v42, %v8070_v19  ;;  %v1651_v3 = vmul.f32 %v9965_v55, %v8115_v38 }
 0x3ac   :  { %v3264_v57 = vpack.c.b16 %v3249_v8, %v3248_v28  ;;  %v3460_v8 = vunpack.c.l.b16 %v1783_v41  ;;  %v1650_v28 = vmul.f32 %v9966_v2, %v8108_v50 }
 0x3ad   :  { %3283 = vmatpush.bf16.msra.mxu2 %v3268_v62  ;;  %v3267_v62 = vpack.c.b16 %v3255_v54, %v3254_v15  ;;  %v2565_v54 = vunpack.c.l.b16 %v1863_v31  ;;  %v3266_v15 = vpack.c.b16 %v3253_v26, %v3252_v40  ;;  %v8215_v26 = vadd.f32 %v2205_v20, %v8047_v37 }
 0x3ae   :  { %2798 = vmax.xlane.f32.xlu0 %v8205_v7  ;;  %v1784_v40 = vpack.c.bf16 %v1656_v6, %v1656_v6  ;;  %v8225_v20 = vadd.f32 %v8141_v36, %v8030_v34  ;;  %v8232_v6 = vpop.f32.mrf.mxu1  ;;  %v1780_v48 = vpack.c.bf16 %v1652_v9, %v1652_v9  ;;  %v1778_v9 = vpack.c.bf16 %v1650_v28, %v1650_v28 }
 0x3af   :  { %v2567_v31 = vpack.c.b16 %v2565_v54, %v2564_v44  ;;  %v1654_v54 = vmul.f32 %v9957_v16, %v8108_v50 }
 0x3b0   :  { %v3461_v47 = vunpack.c.l.b16 %v1784_v40 }
 0x3b1   :  { %3284 = vmatpush.bf16.msra.mxu2 %v3267_v62  ;;  %v3265_v62 = vpack.c.b16 %v3251_v61, %v3250_v22  ;;  %2806 = vmax.xlane.f32.xlu2 %v8215_v26  ;;  %v3472_v61 = vpack.c.b16 %v3464_v4, %v3463_v43  ;;  %v1782_v22 = vpack.c.bf16 %v1654_v54, %v1654_v54 }
 0x3b2   :  { %5451 = vmatmul.msk.bf16.gmra.mxu2 %vm9975_vm5, %v2567_v31  ;;  %v1653_v31 = vmul.f32 %v9962_v23, %v8087_v10  ;;  %v8243_v43 = vadd.f32 %v2208_v30, %v8060_v29  ;;  %vm10014_vm5 = vmmov %vm9991_vm0 }
 0x3b3   :  { %v3459_v54 = vunpack.c.l.b16 %v1782_v22  ;;  %v3457_v22 = vunpack.c.l.b16 %v1780_v48  ;;  %v1646_v48 = vmul.f32 %v9814_v14, %v8108_v50 }
 0x3b4   :  { %v1781_v4 = vpack.c.bf16 %v1653_v31, %v1653_v31  ;;  %v1648_v31 = vmul.f32 %v9811_v56, %v8070_v19 }
 0x3b5   :  { %3285 = vmatpush.bf16.msra.mxu2 %v3266_v15  ;;  %v2210_v15 = vpop.f32.mrf.mxu2  ;;  %v2318_v44 = vpop.f32.mrf.mxu3 }
 0x3b6   :  { %2804 = vmax.xlane.f32.xlu0 %v8225_v20  ;;  %v8235_v36 = vadd.f32 %v2210_v15, %v8078_v1  ;;  %v3458_v40 = vunpack.c.l.b16 %v1781_v4  ;;  %v8253_v30 = vpop.f32.mrf.mxu1  ;;  %v1647_v4 = vmul.f32 %v7259_v11, %v8115_v38  ;;  %v1776_v28 = vpack.c.bf16 %v1648_v31, %v1648_v31 }
 0x3b7   :  { %v1774_v31 = vpack.c.bf16 %v1646_v48, %v1646_v48 }
 0x3b8   :  { %v1775_v38 = vpack.c.bf16 %v1647_v4, %v1647_v4  ;;  %v3453_v50 = vunpack.c.l.b16 %v1776_v28 }
 0x3b9   :  { %3286 = vmatpush.bf16.msra.mxu2 %v3265_v62  ;;  %2810 = vmax.xlane.f32.xlu2 %v8235_v36  ;;  %v3471_v62 = vpack.c.b16 %v3462_v25, %v3461_v47  ;;  %v1649_v25 = vmul.f32 %v9967_v21, %v8087_v10  ;;  %v3469_v47 = vpack.c.b16 %v3458_v40, %v3457_v22 }
 0x3ba   :  { %v1645_v22 = vmul.f32 %v9815_v33, %v8087_v10 }
 0x3bd   :  { %3287 = vmatpush.bf16.msra.mxu2 %v3264_v57  ;;  %v2320_v15 = vpop.f32.mrf.mxu3  ;;  %v3470_v57 = vpack.c.b16 %v3460_v8, %v3459_v54  ;;  %v1777_v8 = vpack.c.bf16 %v1649_v25, %v1649_v25  ;;  %v9978_v54 = vld [vmem:[#allocation57_spill] sm:$0xff] }
 0x3be   :  { %v8248_v41 = vadd.f32 %v2320_v15, %v8047_v37  ;;  %2808 = vmax.xlane.f32.xlu0 %v8243_v43  ;;  %vm9979_vm4 = vnez %v9978_v54  ;;  %v3455_v15 = vunpack.c.l.b16 %v1778_v9  ;;  %v3452_v9 = vunpack.c.l.b16 %v1775_v38  ;;  %v8273_v54 = vpop.f32.mrf.mxu1 }
 0x3bf   :  { %v3454_v25 = vunpack.c.l.b16 %v1777_v8  ;;  %v3451_v8 = vunpack.c.l.b16 %v1774_v31 }
 0x3c1   :  { %3481 = vmatpush.bf16.msrb.mxu2 %v3472_v61  ;;  %v1779_v61 = vpack.c.bf16 %v1651_v3, %v1651_v3  ;;  %2814 = vmax.xlane.f32.xlu2 %v8248_v41  ;;  %v9976_v3 = vld [vmem:[#allocation56_spill] sm:$0xff] }
 0x3c2   :  { %vm9977_vm3 = vnez %v9976_v3  ;;  %v1773_v3 = vpack.c.bf16 %v1645_v22, %v1645_v22 }
 0x3c3   :  { %vm5468_vm11 = vmpackc.low %vm9979_vm4, %vm9977_vm3 }
 0x3c4   :  { %5469 = vmatpush.bf16.msk.msrb.mxu0 %vm5468_vm11, %v9973_v53  ;;  %v1644_v53 = vmul.f32 %v7312_v13, %v8070_v19  ;;  %v3450_v19 = vunpack.c.l.b16 %v1773_v3  ;;  %v1690_v3 = vmul.f32 %v9949_v27, %v8273_v54  ;;  %vm10015_vm3 = vmmov %vm9991_vm0 }
 0x3c5   :  { %3482 = vmatpush.bf16.msrb.mxu2 %v3471_v62  ;;  %v3456_v62 = vunpack.c.l.b16 %v1779_v61  ;;  %v2323_v40 = vpop.f32.mrf.mxu3  ;;  %vm10016_vm4 = vmmov %vm9991_vm0 }
 0x3c6   :  { %v8276_v4 = vadd.f32 %v2323_v40, %v8060_v29  ;;  %vm10017_vm11 = vmmov %vm9991_vm0 }
 0x3c7   :  { %v3468_v61 = vpack.c.b16 %v3456_v62, %v3455_v15 }
 0x3c9   :  { %3483 = vmatpush.bf16.msrb.mxu2 %v3470_v57  ;;  %v8266_v57 = vadd.f32 %v2318_v44, %v8030_v34  ;;  %v1772_v44 = vpack.c.bf16 %v1644_v53, %v1644_v53  ;;  %v8289_v53 = vpop.f32.mrf.mxu1 }
 0x3cb   :  { %9980 = vst [vmem:[#allocation44_spill] sm:$0xff] %v8266_v57  ;;  %2812 = vmax.xlane.f32.xlu0 %v8266_v57  ;;  %v2789_v62 = vpop.xlane.xlu0 %2788  ;;  %v3466_v57 = vpack.c.b16 %v3452_v9, %v3451_v8 }
 0x3cc   :  { %v2852_v10 = vsub.f32 %v8036_v60, %v2789_v62 }
 0x3cd   :  { %3484 = vmatpush.bf16.msrb.mxu2 %v3469_v47  ;;  %v3467_v47 = vpack.c.b16 %v3454_v25, %v3453_v50  ;;  %v2325_v15 = vpop.f32.mrf.mxu3  ;;  %v3449_v25 = vunpack.c.l.b16 %v1772_v44 }
 0x3ce   :  { %v8280_v48 = vadd.f32 %v2325_v15, %v8078_v1  ;;  %v2884_v38 = vmul.f32 1.442695, %v2852_v10 }
 0x3cf   :  { %v3465_v60 = vpack.c.b16 %v3450_v19, %v3449_v25  ;;  %v1688_v25 = vmul.f32 %v9955_v49, %v8232_v6 }
 0x3d0   :  { %9981 = vst [vmem:[#allocation69_spill] sm:$0xff] %v8280_v48  ;;  %2818 = vmax.xlane.f32.xlu1 %v8280_v48  ;;  %5758 = vpow2.f32 %v2884_v38  ;;  %v1818_v38 = vpack.c.bf16 %v1690_v3, %v1690_v3 }
 0x3d1   :  { %3485 = vmatpush.bf16.msrb.mxu2 %v3468_v61 }
 0x3d2   :  { %v3597_v3 = vunpack.c.l.b16 %v1818_v38 }
 0x3d3   :  { %2816 = vmax.xlane.f32.xlu0 %v8276_v4  ;;  %v2791_v40 = vpop.xlane.xlu2 %2790 }
 0x3d4   :  { %v2853_v22 = vsub.f32 %v8051_v39, %v2791_v40  ;;  %v1689_v39 = vmul.f32 %v9953_v63, %v8253_v30 }
 0x3d5   :  { %3486 = vmatpush.bf16.msrb.mxu2 %v3467_v47  ;;  %v2433_v28 = vpop.f32.mrf.mxu2 }
 0x3d6   :  { %v8284_v61 = vadd.f32 %v2433_v28, %v8030_v34  ;;  %v2886_v31 = vmul.f32 1.442695, %v2853_v22  ;;  %v5759_v9 = vpop.eup %5758 }
 0x3d7   :  { %v2948_v19 = vpack.c.bf16 %v5759_v9, %v5759_v9  ;;  %v1816_v9 = vpack.c.bf16 %v1688_v25, %v1688_v25 }
 0x3d8   :  { %9982 = vst [vmem:[#allocation60_spill] sm:$0xff] %v8284_v61  ;;  %2820 = vmax.xlane.f32.xlu2 %v8284_v61  ;;  %5760 = vpow2.f32 %v2886_v31  ;;  %v1817_v31 = vpack.c.bf16 %v1689_v39, %v1689_v39  ;;  %v1685_v39 = vmul.f32 %v9962_v23, %v8253_v30 }
 0x3d9   :  { %3487 = vmatpush.bf16.msrb.mxu2 %v3466_v57  ;;  %v1691_v57 = vmul.f32 %v9947_v59, %v8289_v53 }
 0x3da   :  { %v3596_v61 = vunpack.c.l.b16 %v1817_v31 }
 0x3db   :  { %v2793_v44 = vpop.xlane.xlu1 %2792  ;;  %v2728_v62 = vpop.permute.xlu2 %2727  ;;  %v1819_v8 = vpack.c.bf16 %v1691_v57, %v1691_v57  ;;  %v3012_v57 = vunpack.c.l.b16 %v2948_v19  ;;  %v1684_v19 = vmul.f32 %v9964_v42, %v8232_v6 }
 0x3dc   :  { %v2854_v10 = vsub.f32 %v8064_v46, %v2793_v44  ;;  %v2752_v15 = vsel %vm9984_vm13, %v2728_v62, 0  ;;  %v1687_v46 = vmul.f32 %v9956_v12, %v8289_v53  ;;  %v1686_v62 = vmul.f32 %v9957_v16, %v8273_v54  ;;  %vm10018_vm13 = vmmov %vm9991_vm0 }
 0x3dd   :  { %3488 = vmatpush.bf16.msrb.mxu2 %v3465_v60  ;;  %v2435_v50 = vpop.f32.mrf.mxu2  ;;  %2774 = vmatpush.bf16.xpose.msra.mxu3 %v2752_v15 }
 0x3de   :  { %v8292_v47 = vadd.f32 %v2435_v50, %v8047_v37  ;;  %v5761_v28 = vpop.eup %5760  ;;  %v2888_v50 = vmul.f32 1.442695, %v2854_v10  ;;  %v1814_v25 = vpack.c.bf16 %v1686_v62, %v1686_v62  ;;  %v1682_v62 = vmul.f32 %v9966_v2, %v8273_v54 }
 0x3df   :  { %v2949_v40 = vpack.c.bf16 %v5761_v28, %v5761_v28 }
 0x3e0   :  { %9983 = vst [vmem:[#allocation61_spill] sm:$0xff] %v8292_v47  ;;  %2822 = vmax.xlane.f32.xlu0 %v8292_v47  ;;  %v3598_v47 = vunpack.c.l.b16 %v1819_v8  ;;  %5762 = vpow2.f32 %v2888_v50 }
 0x3e1   :  { %v3013_v44 = vunpack.c.l.b16 %v2949_v40 }
 0x3e2   :  { %v3606_v10 = vpack.c.b16 %v3598_v47, %v3597_v3  ;;  %v3593_v3 = vunpack.c.l.b16 %v1814_v25 }
 0x3e3   :  { %v2795_v15 = vpop.xlane.xlu0 %2794  ;;  %v3044_v28 = vpack.c.b16 %v3013_v44, %v3012_v57  ;;  %v1813_v57 = vpack.c.bf16 %v1685_v39, %v1685_v39  ;;  %v1681_v39 = vmul.f32 %v9967_v21, %v8253_v30 }
 0x3e4   :  { %v2855_v8 = vsub.f32 %v8084_v32, %v2795_v15  ;;  %v1683_v32 = vmul.f32 %v9965_v55, %v8289_v53 }
 0x3e5   :  { %v2438_v60 = vpop.f32.mrf.mxu2  ;;  %3084 = vmatmul.bf16.vlgmr.msrb.gmra.mxu0 %v3044_v28  ;;  %3221 = vmatmul.bf16.vlgmr.msra.gmra.mxu1 %v3044_v28  ;;  %v3592_v15 = vunpack.c.l.b16 %v1813_v57  ;;  %v1809_v57 = vpack.c.bf16 %v1681_v39, %v1681_v39 }
 0x3e6   :  { %v8306_v22 = vadd.f32 %v2438_v60, %v8060_v29  ;;  %v1815_v60 = vpack.c.bf16 %v1687_v46, %v1687_v46  ;;  %v2890_v40 = vmul.f32 1.442695, %v2855_v8  ;;  %3615 = vmatpush.bf16.msra.mxu1 %v3606_v10  ;;  %v5763_v47 = vpop.eup %5762  ;;  %v1812_v46 = vpack.c.bf16 %v1684_v19, %v1684_v19 }
 0x3e7   :  { %v1811_v28 = vpack.c.bf16 %v1683_v32, %v1683_v32  ;;  %v1680_v8 = vmul.f32 %v9811_v56, %v8232_v6  ;;  %v1810_v10 = vpack.c.bf16 %v1682_v62, %v1682_v62  ;;  %v1678_v62 = vmul.f32 %v9814_v14, %v8273_v54 }
 0x3e8   :  { %9985 = vst [vmem:[#allocation68_spill] sm:$0xff] %v8306_v22  ;;  %2824 = vmax.xlane.f32.xlu1 %v8306_v22  ;;  %v3595_v22 = vunpack.c.l.b16 %v1816_v9  ;;  %5764 = vpow2.f32 %v2890_v40  ;;  %v3594_v44 = vunpack.c.l.b16 %v1815_v60  ;;  %v3591_v19 = vunpack.c.l.b16 %v1812_v46 }
 0x3e9   :  { %v3589_v46 = vunpack.c.l.b16 %v1810_v10  ;;  %v1676_v54 = vmul.f32 %v7312_v13, %v8232_v6 }
 0x3ea   :  { %v3605_v50 = vpack.c.b16 %v3596_v61, %v3595_v22  ;;  %v3604_v9 = vpack.c.b16 %v3594_v44, %v3593_v3  ;;  %v2950_v61 = vpack.c.bf16 %v5763_v47, %v5763_v47  ;;  %v3603_v25 = vpack.c.b16 %v3592_v15, %v3591_v19  ;;  %v9989_v19 = vld [vmem:[#allocation34_spill] sm:$0xff] }
 0x3eb   :  { %v1679_v44 = vmul.f32 %v7259_v11, %v8289_v53  ;;  %v1808_v3 = vpack.c.bf16 %v1680_v8, %v1680_v8  ;;  %v1677_v53 = vmul.f32 %v9815_v33, %v8253_v30  ;;  %v1806_v8 = vpack.c.bf16 %v1678_v62, %v1678_v62 }
 0x3ec   :  { %3616 = vmatpush.bf16.msra.mxu1 %v3605_v50  ;;  %v3590_v50 = vunpack.c.l.b16 %v1811_v28  ;;  %v3014_v32 = vunpack.c.l.b16 %v2950_v61  ;;  %v3588_v28 = vunpack.c.l.b16 %v1809_v57  ;;  %v1626_v61 = vmul.f32 %v9949_v27, %v9989_v19 }
 0x3ed   :  { %v2440_v38 = vpop.f32.mrf.mxu2  ;;  %v1807_v39 = vpack.c.bf16 %v1679_v44, %v1679_v44 }
 0x3ee   :  { %v8319_v31 = vadd.f32 %v2440_v38, %v8078_v1  ;;  %v5765_v22 = vpop.eup %5764  ;;  %v3602_v15 = vpack.c.b16 %v3590_v50, %v3589_v46  ;;  %v1754_v62 = vpack.c.bf16 %v1626_v61, %v1626_v61  ;;  %v1865_v61 = vpack.c.bf16 %v7902_v5, %v7902_v5 }
 0x3ef   :  { %v2951_v40 = vpack.c.bf16 %v5765_v22, %v5765_v22  ;;  %v3586_v46 = vunpack.c.l.b16 %v1807_v39  ;;  %v1622_v39 = vmul.f32 %v9957_v16, %v9989_v19 }
 0x3f0   :  { %9986 = vst [vmem:[#allocation49_spill] sm:$0xff] %v8319_v31  ;;  %2826 = vmax.xlane.f32.xlu2 %v8319_v31  ;;  %3617 = vmatpush.bf16.msra.mxu1 %v3604_v9  ;;  %v9988_v9 = vld [vmem:[#allocation67_spill] sm:$0xff] }
 0x3f1   :  { %v3015_v47 = vunpack.c.l.b16 %v2951_v40  ;;  %v1627_v22 = vmul.f32 %v9947_v59, %v9988_v9 }
 0x3f3   :  { %v1755_v57 = vpack.c.bf16 %v1627_v22, %v1627_v22 }
 0x3f4   :  { %3618 = vmatpush.bf16.msra.mxu1 %v3603_v25  ;;  %v3587_v25 = vunpack.c.l.b16 %v1808_v3  ;;  %v1804_v3 = vpack.c.bf16 %v1676_v54, %v1676_v54  ;;  %v1864_v54 = vpack.c.bf16 %v7883_v52, %v7883_v52  ;;  %v1750_v52 = vpack.c.bf16 %v1622_v39, %v1622_v39 }
 0x3f5   :  { %v2548_v60 = vpop.f32.mrf.mxu3  ;;  %v3330_v22 = vunpack.c.l.b16 %v1755_v57 }
 0x3f6   :  { %v8331_v38 = vadd.f32 %v2548_v60, %v8030_v34  ;;  %v3045_v60 = vpack.c.b16 %v3015_v47, %v3014_v32  ;;  %v2726_v10 = vpop.permute.xlu0 %2725  ;;  %v9990_v32 = vld [vmem:[#allocation53_spill] sm:$0xff]  ;;  %v3601_v47 = vpack.c.b16 %v3588_v28, %v3587_v25  ;;  %v3583_v25 = vunpack.c.l.b16 %v1804_v3 }
 0x3f7   :  { %v1625_v50 = vmul.f32 %v9953_v63, %v9990_v32  ;;  %v2749_v44 = vsel %vm9991_vm0, %v2726_v10, 0  ;;  %v1623_v10 = vmul.f32 %v9956_v12, %v9988_v9  ;;  %v1621_v57 = vmul.f32 %v9962_v23, %v9990_v32 }
 0x3f8   :  { %9987 = vst [vmem:[#allocation65_spill] sm:$0xff] %v8331_v38  ;;  %2828 = vmax.xlane.f32.xlu0 %v8331_v38  ;;  %3089 = vmatmul.bf16.gmra.mxu0 %v3045_v60  ;;  %v9993_v38 = vld [vmem:[#allocation35_spill] sm:$0xff]  ;;  %v2677_v3 = vunpack.c.l.b16 %v1864_v54 }
 0x3f9   :  { %3226 = vmatmul.bf16.gmra.mxu1 %v3045_v60  ;;  %2775 = vmatpush.bf16.xpose.msra.mxu3 %v2749_v44  ;;  %v1805_v60 = vpack.c.bf16 %v1677_v53, %v1677_v53  ;;  %v1624_v6 = vmul.f32 %v9955_v49, %v9993_v38  ;;  %v1753_v31 = vpack.c.bf16 %v1625_v50, %v1625_v50  ;;  %v3329_v53 = vunpack.c.l.b16 %v1754_v62 }
 0x3fa   :  { %3619 = vmatpush.bf16.msra.mxu1 %v3602_v15  ;;  %v3585_v15 = vunpack.c.l.b16 %v1806_v8  ;;  %v1620_v5 = vmul.f32 %v9964_v42, %v9993_v38 }
 0x3fb   :  { %v3584_v44 = vunpack.c.l.b16 %v1805_v60  ;;  %v1752_v28 = vpack.c.bf16 %v1624_v6, %v1624_v6  ;;  %v3328_v50 = vunpack.c.l.b16 %v1753_v31  ;;  %v3338_v60 = vpack.c.b16 %v3330_v22, %v3329_v53 }
 0x3fc   :  { %v3600_v48 = vpack.c.b16 %v3586_v46, %v3585_v15  ;;  %v1751_v6 = vpack.c.bf16 %v1623_v10, %v1623_v10  ;;  %v1619_v22 = vmul.f32 %v9965_v55, %v9988_v9  ;;  %v8374_v10 = vpop.f32.mrf.mxu1  ;;  %v1618_v53 = vmul.f32 %v9966_v2, %v9989_v19 }
 0x3fd   :  { %v2550_v40 = vpop.f32.mrf.mxu3  ;;  %v3599_v62 = vpack.c.b16 %v3584_v44, %v3583_v25  ;;  %v3327_v31 = vunpack.c.l.b16 %v1752_v28  ;;  %v1748_v44 = vpack.c.bf16 %v1620_v5, %v1620_v5  ;;  %v1617_v28 = vmul.f32 %v9967_v21, %v9990_v32 }
 0x3fe   :  { %v8350_v30 = vadd.f32 %v2550_v40, %v8047_v37  ;;  %3620 = vmatpush.bf16.msra.mxu1 %v3601_v47  ;;  %v2724_v40 = vpop.permute.xlu1 %2723 }
 0x3ff   :  { %v2746_v47 = vsel %vm9994_vm14, %v2724_v40, 0  ;;  %v3337_v15 = vpack.c.b16 %v3328_v50, %v3327_v31  ;;  %v3326_v40 = vunpack.c.l.b16 %v1751_v6  ;;  %v3323_v6 = vunpack.c.l.b16 %v1748_v44  ;;  %vm10019_vm14 = vmmov %vm9991_vm0 }
 0x400   :  { %9992 = vst [vmem:[#allocation42_spill] sm:$0xff] %v8350_v30  ;;  %2830 = vmax.xlane.f32.xlu1 %v8350_v30  ;;  %v1749_v30 = vpack.c.bf16 %v1621_v57, %v1621_v57  ;;  %v1747_v57 = vpack.c.bf16 %v1619_v22, %v1619_v22  ;;  %v1613_v22 = vmul.f32 %v9815_v33, %v9990_v32 }
 0x401   :  { %2776 = vmatpush.bf16.xpose.msra.mxu3 %v2746_v47  ;;  %v1616_v47 = vmul.f32 %v9811_v56, %v9993_v38  ;;  %v1866_v44 = vpack.c.bf16 %v7944_v17, %v7944_v17 }
 0x402   :  { %3621 = vmatpush.bf16.msra.mxu1 %v3600_v48  ;;  %v2678_v48 = vunpack.c.l.b16 %v1865_v61  ;;  %v3325_v61 = vunpack.c.l.b16 %v1750_v52  ;;  %v3324_v50 = vunpack.c.l.b16 %v1749_v30  ;;  %v3322_v5 = vunpack.c.l.b16 %v1747_v57 }
 0x403   :  { %v1745_v52 = vpack.c.bf16 %v1617_v28, %v1617_v28  ;;  %v1744_v31 = vpack.c.bf16 %v1616_v47, %v1616_v47  ;;  %v2679_v32 = vunpack.c.l.b16 %v1866_v44  ;;  %v1741_v17 = vpack.c.bf16 %v1613_v22, %v1613_v22 }
 0x404   :  { %v2681_v39 = vpack.c.b16 %v2678_v48, %v2677_v3  ;;  %v3336_v25 = vpack.c.b16 %v3326_v40, %v3325_v61  ;;  %v1615_v48 = vmul.f32 %v7259_v11, %v9988_v9  ;;  %v1614_v3 = vmul.f32 %v9814_v14, %v9989_v19  ;;  %v8393_v40 = vpop.f32.mrf.mxu1 }
 0x405   :  { %v2553_v8 = vpop.f32.mrf.mxu3  ;;  %v1675_v61 = vmul.f32 %v9947_v59, %v8207_v45  ;;  %v1612_v19 = vmul.f32 %v7312_v13, %v9993_v38 }
 0x406   :  { %v8367_v46 = vadd.f32 %v2553_v8, %v8060_v29  ;;  %3622 = vmatpush.bf16.msra.mxu1 %v3599_v62  ;;  %v3335_v62 = vpack.c.b16 %v3324_v50, %v3323_v6  ;;  %v1743_v9 = vpack.c.bf16 %v1615_v48, %v1615_v48  ;;  %v1673_v6 = vmul.f32 %v9953_v63, %v8153_v0 }
 0x407   :  { %v1803_v47 = vpack.c.bf16 %v1675_v61, %v1675_v61  ;;  %v1670_v61 = vmul.f32 %v9957_v16, %v8171_v51 }
 0x408   :  { %2832 = vmax.xlane.f32.xlu2 %v8367_v46  ;;  %5452 = vmatmul.msk.bf16.vlgmr.msra.gmra.mxu3 %vm9995_vm15, %v2681_v39  ;;  %v3320_v39 = vunpack.c.l.b16 %v1745_v52  ;;  %v3318_v57 = vunpack.c.l.b16 %v1743_v9  ;;  %v9996_v52 = vld [vmem:[#allocation50_spill] sm:$0xff]  ;;  %v1801_v44 = vpack.c.bf16 %v1673_v6, %v1673_v6  ;;  %vm10020_vm15 = vmmov %vm9991_vm0 }
 0x409   :  { %3347 = vmatpush.bf16.msrb.mxu3 %v3338_v60  ;;  %v1746_v60 = vpack.c.bf16 %v1618_v53, %v1618_v53  ;;  %v1672_v48 = vmul.f32 %v9955_v49, %v9996_v52  ;;  %v3531_v22 = vunpack.c.l.b16 %v1803_v47  ;;  %v1798_v47 = vpack.c.bf16 %v1670_v61, %v1670_v61 }
 0x40a   :  { %v8440_v61 = vmul.f32 %v9814_v14, %v8171_v51 }
 0x40b   :  { %v3321_v30 = vunpack.c.l.b16 %v1746_v60  ;;  %v1800_v9 = vpack.c.bf16 %v1672_v48, %v1672_v48  ;;  %v1667_v48 = vmul.f32 %v9965_v55, %v8207_v45 }
 0x40d   :  { %3348 = vmatpush.bf16.msrb.mxu3 %v3337_v15  ;;  %v2555_v8 = vpop.f32.mrf.mxu3  ;;  %v1867_v15 = vpack.c.bf16 %v7953_v24, %v7953_v24  ;;  %v3334_v53 = vpack.c.b16 %v3322_v5, %v3321_v30  ;;  %v3319_v24 = vunpack.c.l.b16 %v1744_v31  ;;  %v3316_v30 = vunpack.c.l.b16 %v1741_v17 }
 0x40e   :  { %v8381_v54 = vadd.f32 %v2555_v8, %v8078_v1  ;;  %v1742_v8 = vpack.c.bf16 %v1614_v3, %v1614_v3  ;;  %v1668_v17 = vmul.f32 %v9964_v42, %v9996_v52 }
 0x40f   :  { %v2680_v28 = vunpack.c.l.b16 %v1867_v15  ;;  %v3333_v50 = vpack.c.b16 %v3320_v39, %v3319_v24  ;;  %v8410_v15 = vpop.f32.mrf.mxu1 }
 0x410   :  { %2834 = vmax.xlane.f32.xlu0 %v8381_v54  ;;  %v3317_v38 = vunpack.c.l.b16 %v1742_v8 }
 0x411   :  { %3349 = vmatpush.bf16.msrb.mxu3 %v3336_v25  ;;  %v1674_v25 = vmul.f32 %v9949_v27, %v8171_v51  ;;  %v2682_v5 = vpack.c.b16 %v2680_v28, %v2679_v32  ;;  %v1669_v28 = vmul.f32 %v9962_v23, %v8153_v0 }
 0x412   :  { %v3332_v3 = vpack.c.b16 %v3318_v57, %v3317_v38 }
 0x413   :  { %v1802_v31 = vpack.c.bf16 %v1674_v25, %v1674_v25 }
 0x414   :  { %v2797_v60 = vpop.xlane.xlu2 %2796 }
 0x415   :  { %3350 = vmatpush.bf16.msrb.mxu3 %v3335_v62  ;;  %v1740_v62 = vpack.c.bf16 %v1612_v19, %v1612_v19  ;;  %v3530_v19 = vunpack.c.l.b16 %v1802_v31  ;;  %v2856_v8 = vsub.f32 %v8162_v35, %v2797_v60  ;;  %v8425_v35 = vmul.f32 %v7312_v13, %v9996_v52 }
 0x416   :  { %v1797_v60 = vpack.c.bf16 %v1669_v28, %v1669_v28  ;;  %v1664_v31 = vmul.f32 %v9811_v56, %v9996_v52 }
 0x417   :  { %v3315_v39 = vunpack.c.l.b16 %v1740_v62  ;;  %v3539_v32 = vpack.c.b16 %v3531_v22, %v3530_v19  ;;  %v2892_v6 = vmul.f32 1.442695, %v2856_v8  ;;  %v3528_v62 = vunpack.c.l.b16 %v1800_v9 }
 0x418   :  { %5453 = vmatmul.msk.bf16.gmra.mxu3 %vm9997_vm6, %v2682_v5  ;;  %v1666_v22 = vmul.f32 %v9966_v2, %v8171_v51  ;;  %v1788_v9 = vpack.c.bf16 %v8425_v35, %v8425_v35  ;;  %v3525_v19 = vunpack.c.l.b16 %v1797_v60  ;;  %v1665_v8 = vmul.f32 %v9967_v21, %v8153_v0  ;;  %vm10021_vm6 = vmmov %vm9991_vm0 }
 0x419   :  { %3351 = vmatpush.bf16.msrb.mxu3 %v3334_v53  ;;  %v1671_v53 = vmul.f32 %v9956_v12, %v8207_v45  ;;  %v3331_v24 = vpack.c.b16 %v3316_v30, %v3315_v39  ;;  %5766 = vpow2.f32 %v2892_v6  ;;  %v3526_v39 = vunpack.c.l.b16 %v1798_v47 }
 0x41a   :  { %v1706_v51 = vmul.f32 %v9949_v27, %v8410_v15  ;;  %v1794_v60 = vpack.c.bf16 %v1666_v22, %v1666_v22  ;;  %v1663_v27 = vmul.f32 %v7259_v11, %v8207_v45 }
 0x41b   :  { %v1799_v57 = vpack.c.bf16 %v1671_v53, %v1671_v53 }
 0x41c   :  { %v8419_v25 = vpop.xlane.xlu2 %2802 }
 0x41d   :  { %3352 = vmatpush.bf16.msrb.mxu3 %v3333_v50  ;;  %v3529_v50 = vunpack.c.l.b16 %v1801_v44  ;;  %v3527_v38 = vunpack.c.l.b16 %v1799_v57  ;;  %v8433_v44 = vpop.f32.mrf.mxu1  ;;  %v8449_v57 = vmul.f32 %v9955_v49, %v8374_v10  ;;  %v1790_v49 = vpack.c.bf16 %v8440_v61, %v8440_v61 }
 0x41e   :  { %v2801_v47 = vpop.xlane.xlu1 %2800  ;;  %v2859_v45 = vsub.f32 %v8184_v18, %v8419_v25 }
 0x41f   :  { %v3538_v5 = vpack.c.b16 %v3529_v50, %v3528_v62  ;;  %v1795_v50 = vpack.c.bf16 %v1667_v48, %v1667_v48  ;;  %v1792_v62 = vpack.c.bf16 %v1664_v31, %v1664_v31  ;;  %v1793_v48 = vpack.c.bf16 %v1665_v8, %v1665_v8 }
 0x420   :  { %v3522_v8 = vunpack.c.l.b16 %v1794_v60 }
 0x421   :  { %3353 = vmatpush.bf16.msrb.mxu3 %v3332_v3  ;;  %v1796_v3 = vpack.c.bf16 %v1668_v17, %v1668_v17  ;;  %v2799_v30 = vpop.xlane.xlu0 %2798  ;;  %v1707_v17 = vmul.f32 %v9947_v59, %v8433_v44  ;;  %v8463_v59 = vmul.f32 %v9964_v42, %v8374_v10  ;;  %v3523_v22 = vunpack.c.l.b16 %v1795_v50 }
 0x422   :  { %v2857_v53 = vsub.f32 %v8205_v7, %v2799_v30  ;;  %v3537_v7 = vpack.c.b16 %v3527_v38, %v3526_v39  ;;  %v5767_v30 = vpop.eup %5766 }
 0x423   :  { %v2663_v52 = vpop.f32.mrf.mxu2  ;;  %v1835_v39 = vpack.c.bf16 %v1707_v17, %v1707_v17  ;;  %v3535_v18 = vpack.c.b16 %v3523_v22, %v3522_v8 }
 0x424   :  { %v8445_v28 = vadd.f32 %v2663_v52, %v8030_v34  ;;  %v1705_v52 = vmul.f32 %v9953_v63, %v8393_v40 }
 0x425   :  { %3354 = vmatpush.bf16.msrb.mxu3 %v3331_v24  ;;  %v2894_v24 = vmul.f32 1.442695, %v2857_v53  ;;  %v1834_v53 = vpack.c.bf16 %v1706_v51, %v1706_v51 }
 0x426   :  { %2836 = vmax.xlane.f32.xlu1 %v8445_v28  ;;  %v1833_v60 = vpack.c.bf16 %v1705_v52, %v1705_v52 }
 0x427   :  { %5768 = vpow2.f32 %v2894_v24  ;;  %v3521_v24 = vunpack.c.l.b16 %v1793_v48  ;;  %v3664_v48 = vunpack.c.l.b16 %v1834_v53 }
 0x429   :  { %3548 = vmatpush.bf16.msra.mxu3 %v3539_v32  ;;  %v2807_v32 = vpop.xlane.xlu2 %2806  ;;  %v2805_v61 = vpop.xlane.xlu0 %2804 }
 0x42a   :  { %v2861_v6 = vsub.f32 %v8215_v26, %v2807_v32  ;;  %v2858_v26 = vsub.f32 %v8195_v58, %v2801_v47  ;;  %v2860_v42 = vsub.f32 %v8225_v20, %v2805_v61  ;;  %v2952_v58 = vpack.c.bf16 %v5767_v30, %v5767_v30 }
 0x42b   :  { %v1791_v32 = vpack.c.bf16 %v1663_v27, %v1663_v27  ;;  %v1702_v20 = vmul.f32 %v9957_v16, %v8410_v15  ;;  %v3518_v16 = vunpack.c.l.b16 %v1790_v49 }
 0x42c   :  { %v2902_v38 = vmul.f32 1.442695, %v2861_v6  ;;  %v2896_v51 = vmul.f32 1.442695, %v2858_v26  ;;  %v2900_v17 = vmul.f32 1.442695, %v2860_v42  ;;  %v3520_v6 = vunpack.c.l.b16 %v1792_v62 }
 0x42d   :  { %3549 = vmatpush.bf16.msra.mxu3 %v3538_v5  ;;  %v3524_v5 = vunpack.c.l.b16 %v1796_v3  ;;  %v1832_v3 = vpack.c.bf16 %v8449_v57, %v8449_v57  ;;  %v5769_v50 = vpop.eup %5768  ;;  %v3016_v27 = vunpack.c.l.b16 %v2952_v58  ;;  %v3519_v61 = vunpack.c.l.b16 %v1791_v32 }
 0x42e   :  { %5770 = vpow2.f32 %v2902_v38  ;;  %v2953_v25 = vpack.c.bf16 %v5769_v50, %v5769_v50  ;;  %v1703_v38 = vmul.f32 %v9956_v12, %v8433_v44  ;;  %v3534_v22 = vpack.c.b16 %v3521_v24, %v3520_v6 }
 0x42f   :  { %v3536_v31 = vpack.c.b16 %v3525_v19, %v3524_v5  ;;  %v2665_v19 = vpop.f32.mrf.mxu2  ;;  %v2898_v5 = vmul.f32 1.442695, %v2859_v45  ;;  %5772 = vpow2.f32 %v2900_v17  ;;  %v3663_v42 = vunpack.c.l.b16 %v1833_v60 }
 0x430   :  { %v8476_v63 = vadd.f32 %v2665_v19, %v8047_v37  ;;  %v3017_v30 = vunpack.c.l.b16 %v2953_v25  ;;  %5774 = vpow2.f32 %v2896_v51  ;;  %v1831_v8 = vpack.c.bf16 %v1703_v38, %v1703_v38 }
 0x431   :  { %3550 = vmatpush.bf16.msra.mxu3 %v3537_v7  ;;  %v1661_v7 = vmul.f32 %v9815_v33, %v8153_v0  ;;  %v2811_v47 = vpop.xlane.xlu2 %2810  ;;  %v3665_v0 = vunpack.c.l.b16 %v1835_v39  ;;  %v2809_v52 = vpop.xlane.xlu0 %2808  ;;  %v1701_v39 = vmul.f32 %v9962_v23, %v8393_v40  ;;  %5776 = vpow2.f32 %v2898_v5 }
 0x432   :  { %2838 = vmax.xlane.f32.xlu2 %v8476_v63  ;;  %v2863_v62 = vsub.f32 %v8235_v36, %v2811_v47  ;;  %v3046_v45 = vpack.c.b16 %v3017_v30, %v3016_v27  ;;  %v2862_v12 = vsub.f32 %v8243_v43, %v2809_v52  ;;  %v1828_v58 = vpack.c.bf16 %v8463_v59, %v8463_v59 }
 0x433   :  { %v1789_v26 = vpack.c.bf16 %v1661_v7, %v1661_v7  ;;  %v3673_v53 = vpack.c.b16 %v3665_v0, %v3664_v48  ;;  %v1830_v19 = vpack.c.bf16 %v1702_v20, %v1702_v20  ;;  %v3533_v43 = vpack.c.b16 %v3519_v61, %v3518_v16 }
 0x434   :  { %3094 = vmatmul.bf16.gmra.mxu0 %v3046_v45  ;;  %3288 = vmatmul.bf16.vlgmr.msra.gmra.mxu2 %v3046_v45  ;;  %v2904_v7 = vmul.f32 1.442695, %v2862_v12  ;;  %v3662_v51 = vunpack.c.l.b16 %v1832_v3  ;;  %v2906_v59 = vmul.f32 1.442695, %v2863_v62  ;;  %v3516_v6 = vunpack.c.l.b16 %v1788_v9 }
 0x435   :  { %3551 = vmatpush.bf16.msra.mxu3 %v3536_v31  ;;  %v5771_v31 = vpop.eup %5770  ;;  %v3517_v36 = vunpack.c.l.b16 %v1789_v26  ;;  %3682 = vmatpush.bf16.msra.mxu2 %v3673_v53  ;;  %v3661_v60 = vunpack.c.l.b16 %v1831_v8  ;;  %v1699_v5 = vmul.f32 %v9965_v55, %v8433_v44  ;;  %v1698_v57 = vmul.f32 %v9966_v2, %v8410_v15 }
 0x436   :  { %v2957_v49 = vpack.c.bf16 %v5771_v31, %v5771_v31  ;;  %v5773_v32 = vpop.eup %5772  ;;  %v3672_v25 = vpack.c.b16 %v3663_v42, %v3662_v51  ;;  %5778 = vpow2.f32 %v2904_v7  ;;  %v3660_v27 = vunpack.c.l.b16 %v1830_v19  ;;  %v9998_v31 = vld [vmem:[#allocation44_spill] sm:$0xff] }
 0x437   :  { %v2668_v24 = vpop.f32.mrf.mxu2  ;;  %v2956_v17 = vpack.c.bf16 %v5773_v32, %v5773_v32  ;;  %v5775_v20 = vpop.eup %5774  ;;  %v3532_v48 = vpack.c.b16 %v3517_v36, %v3516_v6  ;;  %v1697_v30 = vmul.f32 %v9967_v21, %v8393_v40  ;;  %5780 = vpow2.f32 %v2906_v59  ;;  %v9999_v6 = vld [vmem:[#allocation69_spill] sm:$0xff] }
 0x438   :  { %v8490_v50 = vadd.f32 %v2668_v24, %v8060_v29  ;;  %v3021_v3 = vunpack.c.l.b16 %v2957_v49  ;;  %v5777_v38 = vpop.eup %5776  ;;  %v2954_v35 = vpack.c.bf16 %v5775_v20, %v5775_v20  ;;  %v1827_v16 = vpack.c.bf16 %v1699_v5, %v1699_v5 }
 0x439   :  { %3552 = vmatpush.bf16.msra.mxu3 %v3535_v18  ;;  %v2815_v23 = vpop.xlane.xlu2 %2814  ;;  %v1829_v18 = vpack.c.bf16 %v1701_v39, %v1701_v39  ;;  %v3020_v0 = vunpack.c.l.b16 %v2956_v17  ;;  %3683 = vmatpush.bf16.msra.mxu2 %v3672_v25  ;;  %v2955_v61 = vpack.c.bf16 %v5777_v38, %v5777_v38  ;;  %v1696_v62 = vmul.f32 %v9811_v56, %v8374_v10 }
 0x43a   :  { %v2865_v47 = vsub.f32 %v8248_v41, %v2815_v23  ;;  %2840 = vmax.xlane.f32.xlu2 %v8490_v50  ;;  %v1826_v52 = vpack.c.bf16 %v1698_v57, %v1698_v57  ;;  %v3658_v45 = vunpack.c.l.b16 %v1828_v58  ;;  %v3018_v42 = vunpack.c.l.b16 %v2954_v35  ;;  %v10000_v57 = vld [vmem:[#allocation60_spill] sm:$0xff] }
 0x43b   :  { %v8506_v9 = vpack.c.b16 %v3021_v3, %v3020_v0  ;;  %v3659_v55 = vunpack.c.l.b16 %v1829_v18  ;;  %v1825_v39 = vpack.c.bf16 %v1697_v30, %v1697_v30  ;;  %v3657_v8 = vunpack.c.l.b16 %v1827_v16 }
 0x43c   :  { %v2910_v41 = vmul.f32 1.442695, %v2865_v47  ;;  %v5779_v12 = vpop.eup %5778  ;;  %v1695_v19 = vmul.f32 %v7259_v11, %v8433_v44  ;;  %v3019_v24 = vunpack.c.l.b16 %v2955_v61  ;;  %v1824_v32 = vpack.c.bf16 %v1696_v62, %v1696_v62 }
 0x43d   :  { %3553 = vmatpush.bf16.msra.mxu3 %v3534_v22  ;;  %v3671_v22 = vpack.c.b16 %v3661_v60, %v3660_v27  ;;  %v3670_v53 = vpack.c.b16 %v3659_v55, %v3658_v45  ;;  %v5781_v49 = vpop.eup %5780  ;;  %v1694_v56 = vmul.f32 %v9814_v14, %v8410_v15  ;;  %v3656_v7 = vunpack.c.l.b16 %v1826_v52  ;;  %v10001_v52 = vld [vmem:[#allocation61_spill] sm:$0xff] }
 0x43e   :  { %v2813_v26 = vpop.xlane.xlu0 %2812  ;;  %5782 = vpow2.f32 %v2910_v41  ;;  %3355 = vmatmul.bf16.vlgmr.msrb.gmra.mxu3 %v8506_v9  ;;  %v2958_v23 = vpack.c.bf16 %v5779_v12, %v5779_v12  ;;  %v1693_v51 = vmul.f32 %v9815_v33, %v8393_v40  ;;  %v3655_v47 = vunpack.c.l.b16 %v1825_v39 }
 0x43f   :  { %v2864_v2 = vsub.f32 %v9998_v31, %v2813_v26  ;;  %3684 = vmatpush.bf16.msra.mxu2 %v3671_v22  ;;  %v3669_v59 = vpack.c.b16 %v3657_v8, %v3656_v7  ;;  %v1823_v11 = vpack.c.bf16 %v1695_v19, %v1695_v19  ;;  %v2959_v44 = vpack.c.bf16 %v5781_v49, %v5781_v49 }
 0x440   :  { %v1692_v14 = vmul.f32 %v7312_v13, %v8374_v10  ;;  %v1822_v15 = vpack.c.bf16 %v1694_v56, %v1694_v56  ;;  %v3654_v33 = vunpack.c.l.b16 %v1824_v32  ;;  %v3022_v40 = vunpack.c.l.b16 %v2958_v23 }
 0x441   :  { %3554 = vmatpush.bf16.msra.mxu3 %v3533_v43  ;;  %v2908_v21 = vmul.f32 1.442695, %v2864_v2  ;;  %v3047_v43 = vpack.c.b16 %v3019_v24, %v3018_v42  ;;  %v1821_v0 = vpack.c.bf16 %v1693_v51, %v1693_v51  ;;  %v3653_v27 = vunpack.c.l.b16 %v1823_v11 }
 0x442   :  { %v3023_v30 = vunpack.c.l.b16 %v2959_v44  ;;  %v1820_v55 = vpack.c.bf16 %v1692_v14, %v1692_v14  ;;  %v3652_v13 = vunpack.c.l.b16 %v1822_v15 }
 0x443   :  { %5784 = vpow2.f32 %v2908_v21  ;;  %3685 = vmatpush.bf16.msra.mxu2 %v3670_v53  ;;  %v2819_v20 = vpop.xlane.xlu1 %2818  ;;  %v3651_v16 = vunpack.c.l.b16 %v1821_v0 }
 0x444   :  { %v5783_v36 = vpop.eup %5782  ;;  %3099 = vmatmul.bf16.gmra.mxu0 %v3047_v43  ;;  %3293 = vmatmul.bf16.gmra.mxu2 %v3047_v43  ;;  %v2867_v60 = vsub.f32 %v9999_v6, %v2819_v20  ;;  %v3049_v2 = vpack.c.b16 %v3023_v30, %v3022_v40  ;;  %v3667_v22 = vpack.c.b16 %v3653_v27, %v3652_v13  ;;  %v3650_v62 = vunpack.c.l.b16 %v1820_v55  ;;  %v10004_v6 = vld [vmem:[#allocation65_spill] sm:$0xff]  ;;  %v10005_v55 = vld [vmem:[#allocation42_spill] sm:$0xff] }
 0x445   :  { %3555 = vmatpush.bf16.msra.mxu3 %v3532_v48  ;;  %v2961_v18 = vpack.c.bf16 %v5783_v36, %v5783_v36  ;;  %v3668_v48 = vpack.c.b16 %v3655_v47, %v3654_v33  ;;  %v10002_v36 = vld [vmem:[#allocation68_spill] sm:$0xff] }
 0x446   :  { %v2817_v58 = vpop.xlane.xlu0 %2816  ;;  %v2914_v38 = vmul.f32 1.442695, %v2867_v60  ;;  %v3666_v42 = vpack.c.b16 %v3651_v16, %v3650_v62  ;;  %v2670_v16 = vpop.f32.mrf.mxu2 }
 0x447   :  { %v2866_v17 = vsub.f32 %v8276_v4, %v2817_v58  ;;  %3686 = vmatpush.bf16.msra.mxu2 %v3669_v59  ;;  %v3025_v35 = vunpack.c.l.b16 %v2961_v18 }
 0x448   :  { %5786 = vpow2.f32 %v2914_v38 }
 0x449   :  { %v5785_v25 = vpop.eup %5784  ;;  %v2912_v41 = vmul.f32 1.442695, %v2866_v17 }
 0x44a   :  { %v2960_v4 = vpack.c.bf16 %v5785_v25, %v5785_v25 }
 0x44b   :  { %v2821_v5 = vpop.xlane.xlu2 %2820  ;;  %3687 = vmatpush.bf16.msra.mxu2 %v3668_v48  ;;  %5788 = vpow2.f32 %v2912_v41  ;;  %v5956_v48 = vld [vmem:[#allocation2] sm:$0xff] }
 0x44c   :  { %v2868_v3 = vsub.f32 %v10000_v57, %v2821_v5  ;;  %v3024_v26 = vunpack.c.l.b16 %v2960_v4 }
 0x44e   :  { %v8523_v10 = vpack.c.b16 %v3025_v35, %v3024_v26  ;;  %v2916_v31 = vmul.f32 1.442695, %v2868_v3  ;;  %3360 = vmatmul.bf16.gmra.mxu3 %v3049_v2  ;;  %v5787_v45 = vpop.eup %5786 }
 0x44f   :  { %3688 = vmatpush.bf16.msra.mxu2 %v3667_v22  ;;  %v2963_v53 = vpack.c.bf16 %v5787_v45, %v5787_v45 }
 0x450   :  { %3422 = vmatmul.bf16.vlgmr.msrb.gmra.mxu1 %v8523_v10  ;;  %5790 = vpow2.f32 %v2916_v31 }
 0x451   :  { %v5789_v12 = vpop.eup %5788  ;;  %v3027_v24 = vunpack.c.l.b16 %v2963_v53 }
 0x452   :  { %v2962_v19 = vpack.c.bf16 %v5789_v12, %v5789_v12 }
 0x453   :  { %v2823_v61 = vpop.xlane.xlu0 %2822  ;;  %3689 = vmatpush.bf16.msra.mxu2 %v3666_v42 }
 0x454   :  { %v2869_v21 = vsub.f32 %v10001_v52, %v2823_v61  ;;  %3104 = vmatmul.bf16.gmra.mxu0 %v8506_v9  ;;  %v3026_v23 = vunpack.c.l.b16 %v2962_v19  ;;  %v10003_v9 = vld [vmem:[#allocation49_spill] sm:$0xff] }
 0x456   :  { %v2918_v39 = vmul.f32 1.442695, %v2869_v21  ;;  %v5791_v8 = vpop.eup %5790  ;;  %v8529_v51 = vpack.c.b16 %v3027_v24, %v3026_v23  ;;  %v5957_v21 = vld [vmem:[#allocation2 + $0x8] sm:$0xff] }
 0x457   :  { %v2964_v56 = vpack.c.bf16 %v5791_v8, %v5791_v8 }
 0x458   :  { %5792 = vpow2.f32 %v2918_v39  ;;  %v8549_v39 = vadd.f32 %v2670_v16, %v8078_v1 }
 0x459   :  { %v3028_v17 = vunpack.c.l.b16 %v2964_v56 }
 0x45b   :  { %v2825_v49 = vpop.xlane.xlu1 %2824 }
 0x45c   :  { %v2870_v32 = vsub.f32 %v10002_v36, %v2825_v49 }
 0x45e   :  { %v5793_v7 = vpop.eup %5792  ;;  %v2920_v43 = vmul.f32 1.442695, %v2870_v32 }
 0x45f   :  { %v2965_v58 = vpack.c.bf16 %v5793_v7, %v5793_v7 }
 0x460   :  { %3427 = vmatmul.bf16.gmra.mxu1 %v8529_v51  ;;  %5794 = vpow2.f32 %v2920_v43  ;;  %v5958_v43 = vld [vmem:[#allocation2 + $0x10] sm:$0xff] }
 0x461   :  { %v3029_v59 = vunpack.c.l.b16 %v2965_v58 }
 0x462   :  { %v3085_v20 = vpop.f32.mrf.mxu0  ;;  %v3222_v14 = vpop.f32.mrf.mxu1 }
 0x463   :  { %v8532_v47 = vpack.c.b16 %v3029_v59, %v3028_v17  ;;  %v2827_v11 = vpop.xlane.xlu2 %2826 }
 0x464   :  { %v2871_v44 = vsub.f32 %v10003_v9, %v2827_v11  ;;  %3109 = vmatmul.bf16.gmra.mxu0 %v3049_v2 }
 0x465   :  { %3489 = vmatmul.bf16.vlgmr.msrb.gmra.mxu2 %v8532_v47 }
 0x466   :  { %v2922_v18 = vmul.f32 1.442695, %v2871_v44  ;;  %v5795_v25 = vpop.eup %5794 }
 0x467   :  { %v2966_v5 = vpack.c.bf16 %v5795_v25, %v5795_v25 }
 0x468   :  { %5796 = vpow2.f32 %v2922_v18 }
 0x469   :  { %5798 = vrcp.f32 %v3085_v20  ;;  %v3030_v41 = vunpack.c.l.b16 %v2966_v5 }
 0x46a   :  { %v3087_v0 = vpop.f32.mrf.mxu0  ;;  %v3224_v26 = vpop.f32.mrf.mxu1 }
 0x46b   :  { %v2829_v15 = vpop.xlane.xlu0 %2828  ;;  %5800 = vrcp.f32 %v3087_v0 }
 0x46c   :  { %v2872_v60 = vsub.f32 %v10004_v6, %v2829_v15 }
 0x46e   :  { %v5797_v33 = vpop.eup %5796  ;;  %v2924_v57 = vmul.f32 1.442695, %v2872_v60 }
 0x46f   :  { %v2967_v40 = vpack.c.bf16 %v5797_v33, %v5797_v33  ;;  %v5799_v4 = vpop.eup %5798 }
 0x470   :  { %v3733_v3 = vmul.f32 %v5799_v4, %v3222_v14  ;;  %5802 = vpow2.f32 %v2924_v57  ;;  %v5959_v14 = vld [vmem:[#allocation2 + $0x18] sm:$0xff] }
 0x471   :  { %v3031_v38 = vunpack.c.l.b16 %v2967_v40  ;;  %v5801_v22 = vpop.eup %5800 }
 0x472   :  { %v8537_v27 = vadd.f32 %v5956_v48, %v3733_v3  ;;  %v3734_v61 = vmul.f32 %v5801_v22, %v3224_v26 }
 0x473   :  { %v2831_v30 = vpop.xlane.xlu1 %2830  ;;  %v8539_v35 = vpack.c.b16 %v3031_v38, %v3030_v41 }
 0x474   :  { %v2873_v13 = vsub.f32 %v10005_v55, %v2831_v30  ;;  %v3799_v31 = vsel %vm10006_vm8, %v8537_v27, 0.0  ;;  %3114 = vmatmul.bf16.gmra.mxu0 %v8523_v10  ;;  %v8546_v45 = vadd.f32 %v5957_v21, %v3734_v61  ;;  %vm10022_vm8 = vmmov %vm9991_vm0 }
 0x475   :  { %3494 = vmatmul.bf16.gmra.mxu2 %v8539_v35  ;;  %3800 = vadd.xlane.f32.xlu0 %v3799_v31  ;;  %v3090_v62 = vpop.f32.mrf.mxu0 }
 0x476   :  { %v2926_v2 = vmul.f32 1.442695, %v2873_v13  ;;  %v5803_v52 = vpop.eup %5802  ;;  %v3802_v8 = vsel %vm10007_vm9, %v8546_v45, 0.0  ;;  %v3227_v49 = vpop.f32.mrf.mxu1  ;;  %vm10023_vm9 = vmmov %vm9991_vm0 }
 0x477   :  { %v2968_v53 = vpack.c.bf16 %v5803_v52, %v5803_v52  ;;  %3803 = vadd.xlane.f32.xlu1 %v3802_v8 }
 0x478   :  { %5804 = vpow2.f32 %v2926_v2 }
 0x479   :  { %5806 = vrcp.f32 %v3090_v62  ;;  %v3032_v32 = vunpack.c.l.b16 %v2968_v53 }
 0x47b   :  { %v2833_v42 = vpop.xlane.xlu2 %2832 }
 0x47c   :  { %v2874_v12 = vsub.f32 %v8367_v46, %v2833_v42 }
 0x47d   :  { %2842 = vmax.xlane.f32.xlu0 %v8549_v39  ;;  %v3092_v23 = vpop.f32.mrf.mxu0 }
 0x47e   :  { %v5805_v19 = vpop.eup %5804  ;;  %v2928_v36 = vmul.f32 1.442695, %v2874_v12  ;;  %5808 = vrcp.f32 %v3092_v23  ;;  %v3229_v18 = vpop.f32.mrf.mxu1 }
 0x47f   :  { %v2969_v24 = vpack.c.bf16 %v5805_v19, %v5805_v19  ;;  %v5807_v10 = vpop.eup %5806 }
 0x480   :  { %v3735_v7 = vmul.f32 %v5807_v10, %v3227_v49  ;;  %5810 = vpow2.f32 %v2928_v36 }
 0x481   :  { %v3033_v56 = vunpack.c.l.b16 %v2969_v24  ;;  %v5961_v24 = vld [vmem:[#allocation2 + $0x28] sm:$0xff] }
 0x482   :  { %v8555_v46 = vadd.f32 %v5958_v43, %v3735_v7 }
 0x483   :  { %v3054_v58 = vpack.c.b16 %v3033_v56, %v3032_v32  ;;  %v2835_v17 = vpop.xlane.xlu0 %2834 }
 0x484   :  { %v2875_v59 = vsub.f32 %v8381_v54, %v2835_v17  ;;  %v3805_v11 = vsel %vm10008_vm7, %v8555_v46, 0.0  ;;  %v5809_v44 = vpop.eup %5808  ;;  %3119 = vmatmul.bf16.gmra.mxu0 %v8529_v51  ;;  %vm10024_vm7 = vmmov %vm9991_vm0 }
 0x485   :  { %3556 = vmatmul.bf16.vlgmr.msra.gmra.mxu3 %v3054_v58  ;;  %3806 = vadd.xlane.f32.xlu1 %v3805_v11  ;;  %v3736_v20 = vmul.f32 %v5809_v44, %v3229_v18  ;;  %v10013_v18 = vld [vmem:[#allocation8_spill] sm:$0xff] }
 0x486   :  { %v2930_v9 = vmul.f32 1.442695, %v2875_v59  ;;  %v5811_v25 = vpop.eup %5810 }
 0x487   :  { %v8561_v15 = vadd.f32 %v5959_v14, %v3736_v20  ;;  %v2970_v6 = vpack.c.bf16 %v5811_v25, %v5811_v25 }
 0x488   :  { %5812 = vpow2.f32 %v2930_v9 }
 0x489   :  { %v3808_v54 = vsel %vm10009_vm12, %v8561_v15, 0.0  ;;  %v3034_v33 = vunpack.c.l.b16 %v2970_v6  ;;  %vm10025_vm12 = vmmov %vm9991_vm0 }
 0x48a   :  { %3809 = vadd.xlane.f32.xlu2 %v3808_v54 }
 0x48b   :  { %v2778_v4 = vpop.f32.mrf.mxu3 }
 0x48c   :  { %v8566_v57 = vadd.f32 %v2778_v4, %v8030_v34 }
 0x48e   :  { %v5813_v60 = vpop.eup %5812  ;;  %2844 = vmax.xlane.f32.xlu0 %v8566_v57 }
 0x48f   :  { %v2971_v5 = vpack.c.bf16 %v5813_v60, %v5813_v60 }
 0x491   :  { %v3035_v40 = vunpack.c.l.b16 %v2971_v5 }
 0x493   :  { %v3055_v3 = vpack.c.b16 %v3035_v40, %v3034_v33  ;;  %v2780_v51 = vpop.f32.mrf.mxu3 }
 0x494   :  { %v8570_v0 = vadd.f32 %v2780_v51, %v8047_v37  ;;  %3124 = vmatmul.bf16.gmra.mxu0 %v8532_v47 }
 0x495   :  { %3561 = vmatmul.bf16.gmra.mxu3 %v3055_v3 }
 0x496   :  { %2846 = vmax.xlane.f32.xlu1 %v8570_v0 }
 0x499   :  { %v2837_v41 = vpop.xlane.xlu1 %2836 }
 0x49a   :  { %v2876_v38 = vsub.f32 %v8445_v28, %v2837_v41 }
 0x49b   :  { %v2783_v48 = vpop.f32.mrf.mxu3 }
 0x49c   :  { %v8576_v30 = vadd.f32 %v2783_v48, %v8060_v29  ;;  %v2932_v34 = vmul.f32 1.442695, %v2876_v38  ;;  %v5963_v38 = vld [vmem:[#allocation2 + $0x38] sm:$0xff] }
 0x49e   :  { %2848 = vmax.xlane.f32.xlu1 %v8576_v30  ;;  %5814 = vpow2.f32 %v2932_v34 }
 0x4a3   :  { %v2785_v8 = vpop.f32.mrf.mxu3 }
 0x4a4   :  { %3129 = vmatmul.bf16.gmra.mxu0 %v8539_v35  ;;  %v5815_v47 = vpop.eup %5814  ;;  %v8588_v36 = vadd.f32 %v2785_v8, %v8078_v1 }
 0x4a5   :  { %v2839_v26 = vpop.xlane.xlu2 %2838  ;;  %v2972_v13 = vpack.c.bf16 %v5815_v47, %v5815_v47 }
 0x4a6   :  { %v2877_v55 = vsub.f32 %v8476_v63, %v2839_v26  ;;  %v5960_v63 = vld [vmem:[#allocation2 + $0x20] sm:$0xff] }
 0x4a7   :  { %v3036_v28 = vunpack.c.l.b16 %v2972_v13 }
 0x4a8   :  { %v2934_v37 = vmul.f32 1.442695, %v2877_v55 }
 0x4aa   :  { %5816 = vpow2.f32 %v2934_v37 }
 0x4ad   :  { %v2841_v59 = vpop.xlane.xlu2 %2840 }
 0x4ae   :  { %v2878_v44 = vsub.f32 %v8490_v50, %v2841_v59 }
 0x4b0   :  { %v5817_v31 = vpop.eup %5816  ;;  %v2936_v54 = vmul.f32 1.442695, %v2878_v44 }
 0x4b1   :  { %v2973_v2 = vpack.c.bf16 %v5817_v31, %v5817_v31  ;;  %v3095_v16 = vpop.f32.mrf.mxu0 }
 0x4b2   :  { %5818 = vrcp.f32 %v3095_v16 }
 0x4b3   :  { %v3037_v22 = vunpack.c.l.b16 %v2973_v2 }
 0x4b4   :  { %3134 = vmatmul.bf16.gmra.mxu0 %v3054_v58  ;;  %v5962_v58 = vld [vmem:[#allocation2 + $0x30] sm:$0xff] }
 0x4b5   :  { %v3056_v29 = vpack.c.b16 %v3037_v22, %v3036_v28 }
 0x4b7   :  { %3623 = vmatmul.bf16.vlgmr.msra.gmra.mxu1 %v3056_v29  ;;  %v3289_v61 = vpop.f32.mrf.mxu2 }
 0x4b8   :  { %v5819_v62 = vpop.eup %5818 }
 0x4b9   :  { %v3737_v52 = vmul.f32 %v5819_v62, %v3289_v61  ;;  %v3097_v21 = vpop.f32.mrf.mxu0  ;;  %v5964_v62 = vld [vmem:[#allocation2 + $0x40] sm:$0xff] }
 0x4ba   :  { %5820 = vrcp.f32 %v3097_v21 }
 0x4bb   :  { %v8581_v35 = vadd.f32 %v5960_v63, %v3737_v52 }
 0x4bd   :  { %v3811_v42 = vsel %vm10010_vm1, %v8581_v35, 0.0  ;;  %vm10026_vm1 = vmmov %vm9991_vm0 }
 0x4be   :  { %3812 = vadd.xlane.f32.xlu2 %v3811_v42 }
 0x4bf   :  { %v3291_v12 = vpop.f32.mrf.mxu2 }
 0x4c0   :  { %v5821_v53 = vpop.eup %5820 }
 0x4c1   :  { %v3738_v19 = vmul.f32 %v5821_v53, %v3291_v12  ;;  %v3100_v49 = vpop.f32.mrf.mxu0  ;;  %v3356_v41 = vpop.f32.mrf.mxu3 }
 0x4c2   :  { %5822 = vrcp.f32 %v3100_v49 }
 0x4c3   :  { %v8585_v10 = vadd.f32 %v5961_v24, %v3738_v19 }
 0x4c4   :  { %3139 = vmatmul.bf16.gmra.mxu0 %v3055_v3 }
 0x4c5   :  { %v3814_v32 = vsel %vm10011_vm2, %v8585_v10, 0.0  ;;  %vm10027_vm2 = vmmov %vm9991_vm0 }
 0x4c6   :  { %2850 = vmax.xlane.f32.xlu2 %v8588_v36  ;;  %3815 = vadd.xlane.f32.xlu0 %v3814_v32 }
 0x4c7   :  { %v3294_v56 = vpop.f32.mrf.mxu2 }
 0x4c8   :  { %v5823_v7 = vpop.eup %5822 }
 0x4c9   :  { %v3739_v23 = vmul.f32 %v5823_v7, %v3294_v56  ;;  %v3102_v1 = vpop.f32.mrf.mxu0  ;;  %v3358_v63 = vpop.f32.mrf.mxu3 }
 0x4ca   :  { %5824 = vrcp.f32 %v3102_v1 }
 0x4cb   :  { %v8593_v43 = vadd.f32 %v5962_v58, %v3739_v23  ;;  %v5965_v58 = vld [vmem:[#allocation2 + $0x48] sm:$0xff] }
 0x4cd   :  { %v3817_v17 = vsel %vm10012_vm10, %v8593_v43, 0.0  ;;  %vm10028_vm10 = vmmov %vm9991_vm0 }
 0x4ce   :  { %3818 = vadd.xlane.f32.xlu2 %v3817_v17 }
 0x4cf   :  { %v3296_v6 = vpop.f32.mrf.mxu2 }
 0x4d0   :  { %v5825_v14 = vpop.eup %5824 }
 0x4d1   :  { %v3105_v11 = vpop.f32.mrf.mxu0  ;;  %v3740_v5 = vmul.f32 %v5825_v14, %v3296_v6 }
 0x4d2   :  { %5826 = vrcp.f32 %v3105_v11  ;;  %v3361_v11 = vpop.f32.mrf.mxu3 }
 0x4d3   :  { %5828 = vpow2.f32 %v2936_v54  ;;  %v8607_v48 = vadd.f32 %v5963_v38, %v3740_v5 }
 0x4d4   :  { %3144 = vmatmul.bf16.gmra.mxu0 %v3056_v29 }
 0x4d5   :  { %v3820_v31 = vsel %vm10016_vm4, %v8607_v48, 0.0 }
 0x4d8   :  { %v5827_v55 = vpop.eup %5826 }
 0x4d9   :  { %v3107_v50 = vpop.f32.mrf.mxu0  ;;  %v5829_v47 = vpop.eup %5828  ;;  %v3741_v13 = vmul.f32 %v5827_v55, %v3356_v41 }
 0x4da   :  { %v2974_v22 = vpack.c.bf16 %v5829_v47, %v5829_v47 }
 0x4db   :  { %v8621_v52 = vadd.f32 %v5964_v62, %v3741_v13 }
 0x4dc   :  { %v3038_v53 = vunpack.c.l.b16 %v2974_v22 }
 0x4dd   :  { %v3823_v49 = vsel %vm10018_vm13, %v8621_v52, 0.0 }
 0x4e1   :  { %v3110_v29 = vpop.f32.mrf.mxu0 }
 0x4e8   :  { %v3801_v9 = vpop.xlane.xlu0 %3800 }
 0x4e9   :  { %v3895_v20 = vmul.f32 %v3801_v9, %v10013_v18 }
 0x4ea   :  { %v3804_v4 = vpop.xlane.xlu1 %3803 }
 0x4eb   :  { %v8600_v25 = vsub.f32 %v8537_v27, %v3895_v20  ;;  %v3896_v51 = vmul.f32 %v3804_v4, %v10013_v18 }
 0x4ed   :  { %v3959_v60 = vmul.f32 %v8600_v25, %v8600_v25  ;;  %v8610_v26 = vsub.f32 %v8546_v45, %v3896_v51 }
 0x4ef   :  { %v3991_v33 = vsel %vm10014_vm5, %v3959_v60, 0.0  ;;  %v3960_v37 = vmul.f32 %v8610_v26, %v8610_v26  ;;  %v5966_v60 = vld [vmem:[#allocation2 + $0x50] sm:$0xff] }
 0x4f0   :  { %v2843_v40 = vpop.xlane.xlu0 %2842  ;;  %3992 = vadd.xlane.f32.xlu0 %v3991_v33 }
 0x4f1   :  { %v2879_v3 = vsub.f32 %v8549_v39, %v2843_v40  ;;  %v3994_v39 = vsel %vm10015_vm3, %v3960_v37, 0.0  ;;  %v3112_v37 = vpop.f32.mrf.mxu0 }
 0x4f2   :  { %3995 = vadd.xlane.f32.xlu1 %v3994_v39 }
 0x4f3   :  { %v2938_v34 = vmul.f32 1.442695, %v2879_v3 }
 0x4f5   :  { %5830 = vpow2.f32 %v2938_v34 }
 0x4f6   :  { %5832 = vrcp.f32 %v3107_v50 }
 0x4f7   :  { %5834 = vrcp.f32 %v3110_v29  ;;  %v3363_v29 = vpop.f32.mrf.mxu3 }
 0x4f8   :  { %v3807_v2 = vpop.xlane.xlu1 %3806  ;;  %3821 = vadd.xlane.f32.xlu0 %v3820_v31 }
 0x4f9   :  { %v3897_v28 = vmul.f32 %v3807_v2, %v10013_v18  ;;  %v3115_v13 = vpop.f32.mrf.mxu0 }
 0x4fb   :  { %v5831_v16 = vpop.eup %5830  ;;  %v8619_v61 = vsub.f32 %v8555_v46, %v3897_v28 }
 0x4fc   :  { %v5833_v21 = vpop.eup %5832  ;;  %v2975_v42 = vpack.c.bf16 %v5831_v16, %v5831_v16 }
 0x4fd   :  { %v3961_v12 = vmul.f32 %v8619_v61, %v8619_v61  ;;  %v3742_v24 = vmul.f32 %v5833_v21, %v3358_v63  ;;  %v3810_v32 = vpop.xlane.xlu2 %3809  ;;  %v5835_v1 = vpop.eup %5834 }
 0x4fe   :  { %v3039_v8 = vunpack.c.l.b16 %v2975_v42  ;;  %v3898_v7 = vmul.f32 %v3810_v32, %v10013_v18  ;;  %v3743_v44 = vmul.f32 %v5835_v1, %v3361_v11 }
 0x4ff   :  { %v3997_v19 = vsel %vm10017_vm11, %v3961_v12, 0.0  ;;  %v8632_v17 = vadd.f32 %v5965_v58, %v3742_v24  ;;  %v5967_v24 = vld [vmem:[#allocation2 + $0x58] sm:$0xff]  ;;  %vm10031_vm11 = vmmov %vm9991_vm0 }
 0x500   :  { %3998 = vadd.xlane.f32.xlu1 %v3997_v19  ;;  %3824 = vadd.xlane.f32.xlu0 %v3823_v49  ;;  %v3057_v56 = vpack.c.b16 %v3039_v8, %v3038_v53  ;;  %v8630_v23 = vsub.f32 %v8561_v15, %v3898_v7  ;;  %v8640_v5 = vadd.f32 %v5966_v60, %v3743_v44  ;;  %v3423_v8 = vpop.f32.mrf.mxu1 }
 0x501   :  { %v2845_v9 = vpop.xlane.xlu0 %2844  ;;  %v3826_v14 = vsel %vm9991_vm0, %v8632_v17, 0.0  ;;  %v3117_v12 = vpop.f32.mrf.mxu0 }
 0x502   :  { %3149 = vmatmul.bf16.gmra.mxu0 %v3057_v56  ;;  %3628 = vmatmul.bf16.gmra.mxu1 %v3057_v56  ;;  %v3962_v59 = vmul.f32 %v8630_v23, %v8630_v23  ;;  %v2880_v20 = vsub.f32 %v8566_v57, %v2845_v9  ;;  %v3829_v4 = vsel %vm10020_vm15, %v8640_v5, 0.0  ;;  %vm10032_vm15 = vmmov %vm10026_vm1 }
 0x504   :  { %v4000_v6 = vsel %vm10019_vm14, %v3962_v59, 0.0  ;;  %v2940_v54 = vmul.f32 1.442695, %v2880_v20 }
 0x505   :  { %4001 = vadd.xlane.f32.xlu2 %v4000_v6 }
 0x506   :  { %5836 = vpow2.f32 %v2940_v54  ;;  %v5968_v54 = vld [vmem:[#allocation2 + $0x60] sm:$0xff] }
 0x508   :  { %3827 = vadd.xlane.f32.xlu1 %v3826_v14 }
 0x509   :  { %v2847_v33 = vpop.xlane.xlu1 %2846  ;;  %v3120_v14 = vpop.f32.mrf.mxu0 }
 0x50a   :  { %v2881_v40 = vsub.f32 %v8570_v0, %v2847_v33 }
 0x50c   :  { %v2942_v57 = vmul.f32 1.442695, %v2881_v40  ;;  %v5837_v50 = vpop.eup %5836  ;;  %v3425_v40 = vpop.f32.mrf.mxu1 }
 0x50d   :  { %v2976_v3 = vpack.c.bf16 %v5837_v50, %v5837_v50 }
 0x50e   :  { %5838 = vpow2.f32 %v2942_v57 }
 0x50f   :  { %v3040_v38 = vunpack.c.l.b16 %v2976_v3  ;;  %5840 = vrcp.f32 %v3112_v37 }
 0x510   :  { %3830 = vadd.xlane.f32.xlu1 %v3829_v4  ;;  %5842 = vrcp.f32 %v3115_v13 }
 0x511   :  { %v2849_v47 = vpop.xlane.xlu1 %2848 }
 0x512   :  { %v2882_v39 = vsub.f32 %v8576_v30, %v2849_v47 }
 0x514   :  { %v5839_v51 = vpop.eup %5838  ;;  %v2944_v22 = vmul.f32 1.442695, %v2882_v39  ;;  %v3428_v13 = vpop.f32.mrf.mxu1 }
 0x515   :  { %v2977_v41 = vpack.c.bf16 %v5839_v51, %v5839_v51  ;;  %v5841_v28 = vpop.eup %5840 }
 0x516   :  { %v3744_v63 = vmul.f32 %v5841_v28, %v3363_v29  ;;  %5844 = vpow2.f32 %v2944_v22  ;;  %v5843_v56 = vpop.eup %5842 }
 0x517   :  { %v3041_v34 = vunpack.c.l.b16 %v2977_v41  ;;  %v3745_v59 = vmul.f32 %v5843_v56, %v3423_v8 }
 0x518   :  { %v8658_v32 = vadd.f32 %v5967_v24, %v3744_v63  ;;  %v5496_v63 = vld [vmem:[%s9504_s6 + $0x30] sm:$0xf] }
 0x519   :  { %v3058_v55 = vpack.c.b16 %v3041_v34, %v3040_v38  ;;  %v8669_v60 = vadd.f32 %v5968_v54, %v3745_v59  ;;  %v5611_v54 = vld [vmem:[%s9504_s6 + $0x24] sm:$0xf0] }
 0x51b   :  { %3154 = vmatmul.bf16.gmra.mxu0 %v3058_v55  ;;  %3690 = vmatmul.bf16.vlgmr.msra.gmra.mxu2 %v3058_v55  ;;  %v3835_v51 = vsel %vm10024_vm7, %v8669_v60, 0.0  ;;  %v5969_v55 = vld [vmem:[#allocation2 + $0x68] sm:$0xff] }
 0x51c   :  { %v5845_v1 = vpop.eup %5844 }
 0x51d   :  { %v2978_v44 = vpack.c.bf16 %v5845_v1, %v5845_v1 }
 0x51f   :  { %v3042_v50 = vunpack.c.l.b16 %v2978_v44 }
 0x531   :  { %v3813_v0 = vpop.xlane.xlu2 %3812 }
 0x532   :  { %v3899_v31 = vmul.f32 %v3813_v0, %v10013_v18 }
 0x534   :  { %v8648_v2 = vsub.f32 %v8581_v35, %v3899_v31  ;;  %v5970_v31 = vld [vmem:[#allocation2 + $0x70] sm:$0xff] }
 0x536   :  { %v3963_v16 = vmul.f32 %v8648_v2, %v8648_v2 }
 0x538   :  { %v4003_v21 = vsel %vm10021_vm6, %v3963_v16, 0.0  ;;  %vm10033_vm6 = vmmov %vm10026_vm1 }
 0x539   :  { %v3816_v62 = vpop.xlane.xlu0 %3815  ;;  %4004 = vadd.xlane.f32.xlu2 %v4003_v21  ;;  %v2851_v30 = vpop.xlane.xlu2 %2850 }
 0x53a   :  { %v3900_v42 = vmul.f32 %v3816_v62, %v10013_v18  ;;  %v2883_v53 = vsub.f32 %v8588_v36, %v2851_v30  ;;  %v3832_v36 = vsel %vm10023_vm9, %v8658_v32, 0.0  ;;  %v3122_v21 = vpop.f32.mrf.mxu0  ;;  %v5612_v30 = vld [vmem:[%s9504_s6 + $0x34] sm:$0xf] }
 0x53c   :  { %v8656_v19 = vsub.f32 %v8585_v10, %v3900_v42  ;;  %v2946_v49 = vmul.f32 1.442695, %v2883_v53  ;;  %v5613_v42 = vld [vmem:[%s9504_s6 + $0x34] sm:$0xf0] }
 0x53d   :  { %v5497_v8 = vor.u32 %v5613_v42, %v5496_v63  ;;  %v5607_v63 = vld [vmem:[%s9504_s6 + $0x4] sm:$0xf0] }
 0x53e   :  { %v3964_v7 = vmul.f32 %v8656_v19, %v8656_v19  ;;  %5846 = vpow2.f32 %v2946_v49  ;;  %v5498_v49 = vld [vmem:[%s9504_s6 + $0x38] sm:$0xf0] }
 0x53f   :  { %5848 = vrcp.f32 %v3117_v12  ;;  %4695 = vmatpush.bf16.msrb.mxu3 %v5497_v8  ;;  %v5474_v8 = vld [vmem:[%s9504_s6 + $0x8] sm:$0xf0] }
 0x540   :  { %v4006_v58 = vsel %vm10022_vm8, %v3964_v7, 0.0  ;;  %5850 = vrcp.f32 %v3120_v14  ;;  %v5501_v7 = vor.u32 %v5612_v30, %v5498_v49  ;;  %v5488_v14 = vld [vmem:[%s9504_s6 + $0x20] sm:$0xf] }
 0x541   :  { %4007 = vadd.xlane.f32.xlu0 %v4006_v58  ;;  %3833 = vadd.xlane.f32.xlu2 %v3832_v36  ;;  %v3819_v11 = vpop.xlane.xlu2 %3818 }
 0x542   :  { %v3901_v9 = vmul.f32 %v3819_v11, %v10013_v18  ;;  %4784 = vmatpush.bf16.msrb.mxu1 %v5501_v7  ;;  %v3125_v44 = vpop.f32.mrf.mxu0 }
 0x544   :  { %v5847_v20 = vpop.eup %5846  ;;  %v8667_v6 = vsub.f32 %v8593_v43, %v3901_v9 }
 0x545   :  { %v5849_v33 = vpop.eup %5848  ;;  %v2979_v4 = vpack.c.bf16 %v5847_v20, %v5847_v20 }
 0x546   :  { %v3965_v57 = vmul.f32 %v8667_v6, %v8667_v6  ;;  %v3746_v38 = vmul.f32 %v5849_v33, %v3425_v40  ;;  %v5851_v47 = vpop.eup %5850 }
 0x547   :  { %v3043_v3 = vunpack.c.l.b16 %v2979_v4  ;;  %v3747_v0 = vmul.f32 %v5851_v47, %v3428_v13  ;;  %v5608_v47 = vld [vmem:[%s9504_s6 + $0x14] sm:$0xf] }
 0x548   :  { %v4009_v41 = vsel %vm10025_vm12, %v3965_v57, 0.0  ;;  %v8676_v37 = vadd.f32 %v5969_v55, %v3746_v38  ;;  %v5489_v57 = vor.u32 %v5611_v54, %v5488_v14  ;;  %v5609_v55 = vld [vmem:[%s9504_s6 + $0x14] sm:$0xf0]  ;;  %vm10034_vm12 = vmmov %vm10026_vm1 }
 0x549   :  { %3836 = vadd.xlane.f32.xlu2 %v3835_v51  ;;  %4010 = vadd.xlane.f32.xlu0 %v4009_v41  ;;  %v3059_v34 = vpack.c.b16 %v3043_v3, %v3042_v50  ;;  %v8680_v28 = vadd.f32 %v5970_v31, %v3747_v0  ;;  %v5610_v50 = vld [vmem:[%s9504_s6 + $0x24] sm:$0xf]  ;;  %v5490_v3 = vld [vmem:[%s9504_s6 + $0x28] sm:$0xf0] }
 0x54a   :  { %v3838_v39 = vsel %vm10026_vm1, %v8676_v37, 0.0  ;;  %v5493_v38 = vor.u32 %v5610_v50, %v5490_v3  ;;  %4696 = vmatpush.bf16.msrb.mxu3 %v5489_v57  ;;  %v3490_v50 = vpop.f32.mrf.mxu2 }
 0x54b   :  { %3159 = vmatmul.bf16.gmra.mxu0 %v3059_v34  ;;  %3695 = vmatmul.bf16.gmra.mxu2 %v3059_v34  ;;  %v3841_v22 = vsel %vm10027_vm2, %v8680_v28, 0.0  ;;  %v5480_v34 = vld [vmem:[%s9504_s6 + $0x10] sm:$0xf]  ;;  %vm10035_vm2 = vmmov %vm10026_vm1 }
 0x54c   :  { %v5481_v0 = vor.u32 %v5609_v55, %v5480_v34  ;;  %4785 = vmatpush.bf16.msrb.mxu1 %v5493_v38  ;;  %v5971_v55 = vld [vmem:[#allocation2 + $0x78] sm:$0xff] }
 0x54e   :  { %4697 = vmatpush.bf16.msrb.mxu3 %v5481_v0 }
 0x551   :  { %3839 = vadd.xlane.f32.xlu0 %v3838_v39  ;;  %v5482_v39 = vld [vmem:[%s9504_s6 + $0x18] sm:$0xf0] }
 0x559   :  { %3842 = vadd.xlane.f32.xlu0 %v3841_v22 }
 0x563   :  { %v3993_v16 = vpop.xlane.xlu0 %3992 }
 0x564   :  { %v4087_v29 = vmul.f32 %v3993_v16, %v10013_v18 }
 0x565   :  { %v3996_v12 = vpop.xlane.xlu1 %3995 }
 0x566   :  { %v8685_v62 = vadd.f32 1e-05, %v4087_v29  ;;  %v4088_v24 = vmul.f32 %v3996_v12, %v10013_v18  ;;  %v5485_v29 = vor.u32 %v5608_v47, %v5482_v39 }
 0x568   :  { %5852 = vrsqrt.f32 %v8685_v62  ;;  %v8704_v1 = vadd.f32 1e-05, %v4088_v24  ;;  %v3430_v24 = vpop.f32.mrf.mxu1  ;;  %vm4157_vm3 = vweird.f32 %v8685_v62  ;;  %4786 = vmatpush.bf16.msrb.mxu1 %v5485_v29 }
 0x56a   :  { %5854 = vrsqrt.f32 %v8704_v1  ;;  %vm4167_vm0 = vweird.f32 %v8704_v1 }
 0x56b   :  { %v3822_v53 = vpop.xlane.xlu0 %3821  ;;  %5856 = vrcp.f32 %v3122_v21  ;;  %v5472_v21 = vld [vmem:[%s9504_s6] sm:$0xf] }
 0x56c   :  { %v3902_v56 = vmul.f32 %v3822_v53, %v10013_v18  ;;  %5858 = vrcp.f32 %v3125_v44  ;;  %v5606_v53 = vld [vmem:[%s9504_s6 + $0x4] sm:$0xf]  ;;  %v5473_v7 = vor.u32 %v5607_v63, %v5472_v21  ;;  %v8794_v63 = vld [vmem:[%s9503_s5] ss:$0 sm:$0xff] }
 0x56d   :  { %v5477_v44 = vor.u32 %v5606_v53, %v5474_v8 }
 0x56e   :  { %v8702_v58 = vpop.eup %5852  ;;  %v8707_v59 = vsub.f32 %v8607_v48, %v3902_v56  ;;  %4698 = vmatpush.bf16.msrb.mxu3 %v5473_v7 }
 0x56f   :  { %v4152_v36 = vmul.f32 %v8702_v58, %v8685_v62  ;;  %vm4158_vm5 = vweird.f32 %v8702_v58  ;;  %4787 = vmatpush.bf16.msrb.mxu1 %v5477_v44 }
 0x570   :  { %v3966_v11 = vmul.f32 %v8707_v59, %v8707_v59  ;;  %v5855_v31 = vpop.eup %5854  ;;  %vm8766_vm4 = vmor %vm4157_vm3, %vm4158_vm5 }
 0x571   :  { %v4153_v9 = vmul.f32 %v8702_v58, %v4152_v36  ;;  %v5857_v42 = vpop.eup %5856  ;;  %v4162_v12 = vmul.f32 %v5855_v31, %v8704_v1  ;;  %vm4168_vm13 = vweird.f32 %v5855_v31 }
 0x572   :  { %v4012_v20 = vsel %vm10028_vm10, %v3966_v11, 0.0  ;;  %v5859_v57 = vpop.eup %5858  ;;  %vm4169_vm14 = vmor %vm4167_vm0, %vm4168_vm13 }
 0x573   :  { %v4154_v33 = vmul.f32 0.5, %v4153_v9  ;;  %v3999_v40 = vpop.xlane.xlu1 %3998  ;;  %v3825_v4 = vpop.xlane.xlu0 %3824  ;;  %4013 = vadd.xlane.f32.xlu1 %v4012_v20  ;;  %v4163_v56 = vmul.f32 %v5855_v31, %v4162_v12  ;;  %v3748_v9 = vmul.f32 %v5857_v42, %v3430_v24  ;;  %v3749_v29 = vmul.f32 %v5859_v57, %v3490_v50  ;;  %vm10036_vm10 = vmmov %vm10026_vm1 }
 0x574   :  { %v4089_v51 = vmul.f32 %v3999_v40, %v10013_v18  ;;  %v3903_v41 = vmul.f32 %v3825_v4, %v10013_v18  ;;  %vm10038_vm13 = vmmov %vm10026_vm1 }
 0x575   :  { %v4155_v13 = vsub.f32 1.5, %v4154_v33  ;;  %v4164_v14 = vmul.f32 0.5, %v4163_v56  ;;  %v3127_v33 = vpop.f32.mrf.mxu0  ;;  %v8785_v47 = vadd.f32 %v5971_v55, %v3748_v9  ;;  %v5972_v9 = vld [vmem:[#allocation2 + $0x80] sm:$0xff]  ;;  %vm10039_vm0 = vmmov %vm10026_vm1 }
 0x576   :  { %v8742_v22 = vadd.f32 1e-05, %v4089_v51  ;;  %v8745_v16 = vsub.f32 %v8621_v52, %v3903_v41  ;;  %v8779_v41 = vld [vmem:[%s9502_s4] ss:$0 sm:$0xff]  ;;  %v8808_v44 = vadd.f32 %v5972_v9, %v3749_v29 }
 0x577   :  { %v4156_v30 = vmul.f32 %v8702_v58, %v4155_v13  ;;  %v4165_v3 = vsub.f32 1.5, %v4164_v14  ;;  %v3492_v14 = vpop.f32.mrf.mxu2 }
 0x578   :  { %5860 = vrsqrt.f32 %v8742_v22  ;;  %v3967_v49 = vmul.f32 %v8745_v16, %v8745_v16  ;;  %v4002_v62 = vpop.xlane.xlu2 %4001  ;;  %vm4177_vm9 = vweird.f32 %v8742_v22  ;;  %v3847_v57 = vsel %vm10035_vm2, %v8808_v44, 0.0 }
 0x579   :  { %v4160_v20 = vsel %vm8766_vm4, %v8702_v58, %v4156_v30  ;;  %v4090_v4 = vmul.f32 %v4002_v62, %v10013_v18  ;;  %v4166_v13 = vmul.f32 %v5855_v31, %v4165_v3  ;;  %v3844_v30 = vsel %vm10032_vm15, %v8785_v47, 0.0  ;;  %vm10041_vm15 = vmmov %vm10039_vm0 }
 0x57a   :  { %v4015_v11 = vsel %vm10031_vm11, %v3967_v49, 0.0  ;;  %v4471_v58 = vmul.f32 %v4160_v20, %v8600_v25  ;;  %vm10037_vm11 = vmmov %vm10026_vm1 }
 0x57b   :  { %v3828_v54 = vpop.xlane.xlu1 %3827  ;;  %4016 = vadd.xlane.f32.xlu1 %v4015_v11  ;;  %v4122_v34 = vadd.f32 1e-05, %v4090_v4  ;;  %v4170_v25 = vsel %vm4169_vm14, %v5855_v31, %v4166_v13  ;;  %vm10040_vm14 = vmmov %vm10039_vm0 }
 0x57c   :  { %v3904_v40 = vmul.f32 %v3828_v54, %v10013_v18  ;;  %v4506_v42 = vmul.f32 %v8779_v41, %v4471_v58  ;;  %v4472_v1 = vmul.f32 %v4170_v25, %v8610_v26 }
 0x57d   :  { %5862 = vrsqrt.f32 %v4122_v34  ;;  %v3130_v7 = vpop.f32.mrf.mxu0  ;;  %vm4187_vm3 = vweird.f32 %v4122_v34 }
 0x57e   :  { %v5861_v51 = vpop.eup %5860  ;;  %v8783_v38 = vsub.f32 %v8632_v17, %v3904_v40  ;;  %5864 = vrcp.f32 %v3127_v33  ;;  %v4507_v31 = vmul.f32 %v8779_v41, %v4472_v1  ;;  %v4541_v36 = vadd.f32 %v8794_v63, %v4506_v42 }
 0x57f   :  { %v4172_v0 = vmul.f32 %v5861_v51, %v8742_v22  ;;  %vm4178_vm8 = vweird.f32 %v5861_v51  ;;  %5866 = vrcp.f32 %v3130_v7 }
 0x580   :  { %v3968_v39 = vmul.f32 %v8783_v38, %v8783_v38  ;;  %v4542_v26 = vadd.f32 %v8794_v63, %v4507_v31  ;;  %vm4179_vm7 = vmor %vm4177_vm9, %vm4178_vm8  ;;  %v5974_v31 = vld [vmem:[#allocation2 + $0x90] sm:$0xff] }
 0x581   :  { %v4173_v21 = vmul.f32 %v5861_v51, %v4172_v0  ;;  %v5973_v0 = vld [vmem:[#allocation2 + $0x88] sm:$0xff] }
 0x582   :  { %v4018_v12 = vsel %vm10033_vm6, %v3968_v39, 0.0  ;;  %v4573_v33 = vpack.c.bf16 %v4542_v26, %v4541_v36 }
 0x583   :  { %v4174_v53 = vmul.f32 0.5, %v4173_v21  ;;  %v3831_v8 = vpop.xlane.xlu1 %3830  ;;  %3845 = vadd.xlane.f32.xlu1 %v3844_v30  ;;  %4019 = vadd.xlane.f32.xlu2 %v4018_v12  ;;  %v5863_v56 = vpop.eup %5862 }
 0x584   :  { %v3905_v49 = vmul.f32 %v3831_v8, %v10013_v18  ;;  %v5865_v20 = vpop.eup %5864  ;;  %v4182_v62 = vmul.f32 %v5863_v56, %v4122_v34  ;;  %5502 = vmatmul.msk.bf16.vlgmr.msrb.gmra.mxu3 %vm10034_vm12, %v4573_v33  ;;  %5518 = vmatmul.msk.bf16.vlgmr.msrb.gmra.mxu1 %vm10026_vm1, %v4573_v33  ;;  %vm4188_vm5 = vweird.f32 %v5863_v56  ;;  %v3495_v21 = vpop.f32.mrf.mxu2 }
 0x585   :  { %v4175_v24 = vsub.f32 1.5, %v4174_v53  ;;  %v3750_v3 = vmul.f32 %v5865_v20, %v3492_v14  ;;  %v5867_v29 = vpop.eup %5866  ;;  %vm4189_vm4 = vmor %vm4187_vm3, %vm4188_vm5  ;;  %v3132_v36 = vpop.f32.mrf.mxu0 }
 0x586   :  { %v8806_v11 = vsub.f32 %v8640_v5, %v3905_v49  ;;  %v4183_v4 = vmul.f32 %v5863_v56, %v4182_v62  ;;  %v3751_v1 = vmul.f32 %v5867_v29, %v3495_v21  ;;  %vm10044_vm5 = vmmov %vm10039_vm0 }
 0x587   :  { %v4176_v54 = vmul.f32 %v5861_v51, %v4175_v24  ;;  %v8819_v39 = vadd.f32 %v5973_v0, %v3750_v3  ;;  %vm10046_vm3 = vmmov %vm10039_vm0 }
 0x588   :  { %v3969_v40 = vmul.f32 %v8806_v11, %v8806_v11  ;;  %v4184_v55 = vmul.f32 0.5, %v4183_v4  ;;  %v8828_v34 = vadd.f32 %v5974_v31, %v3751_v1 }
 0x589   :  { %v4180_v58 = vsel %vm4179_vm7, %v5861_v51, %v4176_v54  ;;  %v3850_v51 = vsel %vm10037_vm11, %v8819_v39, 0.0  ;;  %vm10042_vm7 = vmmov %vm10039_vm0 }
 0x58a   :  { %v4021_v50 = vsel %vm10036_vm10, %v3969_v40, 0.0  ;;  %v4185_v13 = vsub.f32 1.5, %v4184_v55  ;;  %v4473_v22 = vmul.f32 %v4180_v58, %v8619_v61  ;;  %vm10043_vm10 = vmmov %vm10039_vm0 }
 0x58b   :  { %3848 = vadd.xlane.f32.xlu1 %v3847_v57  ;;  %4022 = vadd.xlane.f32.xlu2 %v4021_v50  ;;  %vm10048_vm11 = vmmov %vm10039_vm0 }
 0x58c   :  { %v4186_v25 = vmul.f32 %v5863_v56, %v4185_v13  ;;  %v4508_v12 = vmul.f32 %v8779_v41, %v4473_v22 }
 0x58d   :  { %v3135_v50 = vpop.f32.mrf.mxu0 }
 0x58e   :  { %v4190_v42 = vsel %vm4189_vm4, %v5863_v56, %v4186_v25  ;;  %v4543_v53 = vadd.f32 %v8794_v63, %v4508_v12  ;;  %v3497_v12 = vpop.f32.mrf.mxu2  ;;  %vm10047_vm4 = vmmov %vm10039_vm0 }
 0x58f   :  { %v4474_v30 = vmul.f32 %v4190_v42, %v8630_v23  ;;  %v3853_v23 = vsel %vm10040_vm14, %v8828_v34, 0.0  ;;  %vm10052_vm14 = vmmov %vm10039_vm0 }
 0x591   :  { %v4509_v61 = vmul.f32 %v8779_v41, %v4474_v30 }
 0x593   :  { %3851 = vadd.xlane.f32.xlu2 %v3850_v51  ;;  %v4544_v8 = vadd.f32 %v8794_v63, %v4509_v61 }
 0x595   :  { %v4574_v49 = vpack.c.bf16 %v4544_v8, %v4543_v53 }
 0x597   :  { %5503 = vmatmul.msk.bf16.gmra.mxu3 %vm10038_vm13, %v4574_v49  ;;  %5519 = vmatmul.msk.bf16.gmra.mxu1 %vm10039_vm0, %v4574_v49  ;;  %vm10049_vm13 = vmmov %vm10039_vm0 }
 0x59b   :  { %3854 = vadd.xlane.f32.xlu2 %v3853_v23  ;;  %v3137_v23 = vpop.f32.mrf.mxu0 }
 0x5ac   :  { %v4005_v24 = vpop.xlane.xlu2 %4004 }
 0x5ad   :  { %v4091_v56 = vmul.f32 %v4005_v24, %v10013_v18 }
 0x5af   :  { %v4123_v7 = vadd.f32 1e-05, %v4091_v56 }
 0x5b1   :  { %5868 = vrsqrt.f32 %v4123_v7  ;;  %vm4197_vm8 = vweird.f32 %v4123_v7 }
 0x5b4   :  { %v4008_v26 = vpop.xlane.xlu0 %4007  ;;  %v3834_v20 = vpop.xlane.xlu2 %3833 }
 0x5b5   :  { %v4092_v9 = vmul.f32 %v4008_v26, %v10013_v18  ;;  %v3906_v14 = vmul.f32 %v3834_v20, %v10013_v18  ;;  %v5975_v20 = vld [vmem:[#allocation2 + $0x98] sm:$0xff] }
 0x5b7   :  { %v4124_v54 = vadd.f32 1e-05, %v4092_v9  ;;  %v5869_v62 = vpop.eup %5868  ;;  %v8838_v33 = vsub.f32 %v8658_v32, %v3906_v14 }
 0x5b8   :  { %v4192_v40 = vmul.f32 %v5869_v62, %v4123_v7  ;;  %vm4198_vm6 = vweird.f32 %v5869_v62  ;;  %v3557_v7 = vpop.f32.mrf.mxu3 }
 0x5b9   :  { %5870 = vrsqrt.f32 %v4124_v54  ;;  %v3970_v4 = vmul.f32 %v8838_v33, %v8838_v33  ;;  %vm4199_vm9 = vmor %vm4197_vm8, %vm4198_vm6  ;;  %vm4207_vm1 = vweird.f32 %v4124_v54 }
 0x5ba   :  { %5872 = vrcp.f32 %v3132_v36  ;;  %v4193_v57 = vmul.f32 %v5869_v62, %v4192_v40 }
 0x5bb   :  { %v4024_v3 = vsel %vm10041_vm15, %v3970_v4, 0.0  ;;  %5874 = vrcp.f32 %v3135_v50 }
 0x5bc   :  { %v4194_v58 = vmul.f32 0.5, %v4193_v57  ;;  %v4011_v55 = vpop.xlane.xlu0 %4010  ;;  %4025 = vadd.xlane.f32.xlu0 %v4024_v3  ;;  %v3837_v13 = vpop.xlane.xlu2 %3836  ;;  %5876 = vrcp.f32 %v3137_v23  ;;  %v5977_v23 = vld [vmem:[#allocation2 + $0xa8] sm:$0xff] }
 0x5bd   :  { %v3907_v22 = vmul.f32 %v3837_v13, %v10013_v18 }
 0x5be   :  { %v4195_v29 = vsub.f32 1.5, %v4194_v58 }
 0x5bf   :  { %v5871_v0 = vpop.eup %5870  ;;  %v8845_v21 = vsub.f32 %v8669_v60, %v3907_v22 }
 0x5c0   :  { %v4202_v25 = vmul.f32 %v5871_v0, %v4124_v54  ;;  %v5873_v42 = vpop.eup %5872  ;;  %v4196_v1 = vmul.f32 %v5869_v62, %v4195_v29  ;;  %vm4208_vm12 = vweird.f32 %v5871_v0  ;;  %v4093_v54 = vmul.f32 %v4011_v55, %v10013_v18 }
 0x5c1   :  { %v3971_v51 = vmul.f32 %v8845_v21, %v8845_v21  ;;  %v3752_v31 = vmul.f32 %v5873_v42, %v3497_v12  ;;  %vm4209_vm2 = vmor %vm4207_vm1, %vm4208_vm12  ;;  %v3559_v12 = vpop.f32.mrf.mxu3 }
 0x5c2   :  { %v4203_v30 = vmul.f32 %v5871_v0, %v4202_v25  ;;  %v4200_v61 = vsel %vm4199_vm9, %v5869_v62, %v4196_v1  ;;  %v5875_v62 = vpop.eup %5874  ;;  %v3140_v25 = vpop.f32.mrf.mxu0  ;;  %v4125_v42 = vadd.f32 1e-05, %v4093_v54  ;;  %v5976_v1 = vld [vmem:[#allocation2 + $0xa0] sm:$0xff]  ;;  %vm10055_vm1 = vmmov %vm10039_vm0 }
 0x5c3   :  { %v4027_v8 = vsel %vm10042_vm7, %v3971_v51, 0.0  ;;  %v4475_v36 = vmul.f32 %v4200_v61, %v8648_v2  ;;  %v8855_v14 = vadd.f32 %v5975_v20, %v3752_v31  ;;  %v3753_v2 = vmul.f32 %v5875_v62, %v3557_v7  ;;  %v5877_v51 = vpop.eup %5876 }
 0x5c4   :  { %v4204_v53 = vmul.f32 0.5, %v4203_v30  ;;  %v3840_v49 = vpop.xlane.xlu0 %3839  ;;  %4028 = vadd.xlane.f32.xlu0 %v4027_v8  ;;  %5878 = vrcp.f32 %v3140_v25  ;;  %vm4217_vm6 = vweird.f32 %v4125_v42 }
 0x5c5   :  { %v3908_v56 = vmul.f32 %v3840_v49, %v10013_v18  ;;  %v4510_v50 = vmul.f32 %v8779_v41, %v4475_v36  ;;  %v3856_v58 = vsel %vm10044_vm5, %v8855_v14, 0.0  ;;  %v8872_v30 = vadd.f32 %v5976_v1, %v3753_v2 }
 0x5c6   :  { %v4205_v24 = vsub.f32 1.5, %v4204_v53  ;;  %5880 = vrsqrt.f32 %v4125_v42  ;;  %v3754_v49 = vmul.f32 %v5877_v51, %v3559_v12  ;;  %v5628_v51 = vld [vmem:[%s9506_s8 + $0x70] sm:$0xff] }
 0x5c7   :  { %v8853_v9 = vsub.f32 %v8676_v37, %v3908_v56  ;;  %v4545_v29 = vadd.f32 %v8794_v63, %v4510_v50  ;;  %10045 = vst [vmem:[#allocation70_spill] sm:$0xff] %v8872_v30  ;;  %v3859_v31 = vsel %vm10049_vm13, %v8872_v30, 0.0 }
 0x5c8   :  { %v4206_v26 = vmul.f32 %v5871_v0, %v4205_v24  ;;  %v8881_v24 = vadd.f32 %v5977_v23, %v3754_v49 }
 0x5c9   :  { %v3972_v4 = vmul.f32 %v8853_v9, %v8853_v9  ;;  %v3562_v36 = vpop.f32.mrf.mxu3 }
 0x5ca   :  { %v4210_v40 = vsel %vm4209_vm2, %v5871_v0, %v4206_v26  ;;  %10050 = vst [vmem:[#allocation32_spill] sm:$0xff] %v8881_v24  ;;  %v5879_v56 = vpop.eup %5878  ;;  %v3862_v20 = vsel %vm10039_vm0, %v8881_v24, 0.0  ;;  %v3142_v49 = vpop.f32.mrf.mxu0 }
 0x5cb   :  { %v4476_v57 = vmul.f32 %v4210_v40, %v8656_v19  ;;  %v4030_v3 = vsel %vm10043_vm10, %v3972_v4, 0.0  ;;  %v3755_v26 = vmul.f32 %v5879_v56, %v3562_v36  ;;  %v8885_v40 = vpop.f32.mrf.mxu1  ;;  %v5978_v4 = vld [vmem:[#allocation2 + $0xb0] sm:$0xff]  ;;  %v5627_v36 = vld [vmem:[%s9506_s8 + $0x68] sm:$0xff] }
 0x5cc   :  { %4031 = vadd.xlane.f32.xlu1 %v4030_v3  ;;  %v3843_v13 = vpop.xlane.xlu0 %3842  ;;  %3857 = vadd.xlane.f32.xlu0 %v3856_v58  ;;  %v5881_v7 = vpop.eup %5880 }
 0x5cd   :  { %v4511_v22 = vmul.f32 %v8779_v41, %v4476_v57  ;;  %v3909_v0 = vmul.f32 %v3843_v13, %v10013_v18  ;;  %v4212_v62 = vmul.f32 %v5881_v7, %v4125_v42  ;;  %v8887_v57 = vadd.f32 %v5978_v4, %v3755_v26  ;;  %v5620_v26 = vld [vmem:[%s9506_s8 + $0x30] sm:$0xff] }
 0x5ce   :  { %vm4218_vm15 = vweird.f32 %v5881_v7 }
 0x5cf   :  { %v4546_v19 = vadd.f32 %v8794_v63, %v4511_v22  ;;  %v8870_v55 = vsub.f32 %v8680_v28, %v3909_v0  ;;  %10051 = vst [vmem:[#allocation31_spill] sm:$0xff] %v8887_v57  ;;  %v4213_v50 = vmul.f32 %v5881_v7, %v4212_v62  ;;  %v3865_v58 = vsel %vm10052_vm14, %v8887_v57, 0.0  ;;  %v5629_v0 = vld [vmem:[%s9506_s8 + $0x78] sm:$0xff]  ;;  %vm8909_vm8 = vmor %vm4217_vm6, %vm4218_vm15 }
 0x5d0   :  { %5186 = vmatpush.bf16.msra.mxu0 %v5629_v0  ;;  %vm10062_vm15 = vmmov %vm10055_vm1 }
 0x5d1   :  { %v4575_v61 = vpack.c.bf16 %v4546_v19, %v4545_v29  ;;  %v3973_v53 = vmul.f32 %v8870_v55, %v8870_v55  ;;  %v4214_v13 = vmul.f32 0.5, %v4213_v50  ;;  %v5621_v29 = vld [vmem:[%s9506_s8 + $0x38] sm:$0xff]  ;;  %vm10063_vm6 = vmmov %vm10055_vm1 }
 0x5d2   :  { %5097 = vmatpush.bf16.msrb.mxu2 %v5621_v29 }
 0x5d3   :  { %5504 = vmatmul.msk.bf16.gmra.mxu3 %vm10046_vm3, %v4575_v61  ;;  %5520 = vmatmul.msk.bf16.gmra.mxu1 %vm10047_vm4, %v4575_v61  ;;  %v4033_v8 = vsel %vm10048_vm11, %v3973_v53, 0.0  ;;  %v8892_v22 = vpop.f32.mrf.mxu1  ;;  %v4215_v19 = vsub.f32 1.5, %v4214_v13  ;;  %vm10058_vm3 = vmmov %vm10039_vm0 }
 0x5d4   :  { %4034 = vadd.xlane.f32.xlu1 %v4033_v8  ;;  %3860 = vadd.xlane.f32.xlu0 %v3859_v31  ;;  %vm10059_vm4 = vmmov %vm10039_vm0 }
 0x5d5   :  { %v4216_v53 = vmul.f32 %v5881_v7, %v4215_v19  ;;  %5187 = vmatpush.bf16.msra.mxu0 %v5628_v51  ;;  %vm10060_vm11 = vmmov %vm10039_vm0 }
 0x5d6   :  { %5098 = vmatpush.bf16.msrb.mxu2 %v5620_v26 }
 0x5d9   :  { %5188 = vmatpush.bf16.msra.mxu0 %v5627_v36 }
 0x5db   :  { %v8907_v23 = vpop.f32.mrf.mxu1 }
 0x5dc   :  { %3863 = vadd.xlane.f32.xlu1 %v3862_v20  ;;  %v4220_v20 = vsel %vm8909_vm8, %v5881_v7, %v4216_v53  ;;  %v5618_v53 = vld [vmem:[%s9506_s8 + $0x20] sm:$0xff]  ;;  %vm10065_vm8 = vmmov %vm10055_vm1 }
 0x5dd   :  { %v4477_v0 = vmul.f32 %v4220_v20, %v8667_v6  ;;  %v5625_v6 = vld [vmem:[%s9506_s8 + $0x58] sm:$0xff] }
 0x5df   :  { %v4512_v36 = vmul.f32 %v8779_v41, %v4477_v0 }
 0x5e4   :  { %3866 = vadd.xlane.f32.xlu1 %v3865_v58  ;;  %v5619_v58 = vld [vmem:[%s9506_s8 + $0x28] sm:$0xff] }
 0x5e5   :  { %5099 = vmatpush.bf16.msrb.mxu2 %v5619_v58 }
 0x5e6   :  { %v4014_v2 = vpop.xlane.xlu1 %4013 }
 0x5e7   :  { %v4094_v54 = vmul.f32 %v4014_v2, %v10013_v18 }
 0x5e9   :  { %v4126_v3 = vadd.f32 1e-05, %v4094_v54  ;;  %v5626_v54 = vld [vmem:[%s9506_s8 + $0x60] sm:$0xff]  ;;  %5100 = vmatpush.bf16.msrb.mxu2 %v5618_v53 }
 0x5ea   :  { %5189 = vmatpush.bf16.msra.mxu0 %v5626_v54 }
 0x5eb   :  { %5882 = vrsqrt.f32 %v4126_v3  ;;  %vm4227_vm7 = vweird.f32 %v4126_v3 }
 0x5ee   :  { %v4017_v25 = vpop.xlane.xlu1 %4016  ;;  %5190 = vmatpush.bf16.msra.mxu0 %v5625_v6 }
 0x5ef   :  { %v4095_v1 = vmul.f32 %v4017_v25, %v10013_v18 }
 0x5f1   :  { %v5883_v12 = vpop.eup %5882  ;;  %v8904_v61 = vadd.f32 1e-05, %v4095_v1 }
 0x5f2   :  { %v4222_v8 = vmul.f32 %v5883_v12, %v4126_v3  ;;  %vm4228_vm9 = vweird.f32 %v5883_v12 }
 0x5f3   :  { %5884 = vrsqrt.f32 %v8904_v61  ;;  %vm4229_vm12 = vmor %vm4227_vm7, %vm4228_vm9  ;;  %vm4237_vm10 = vweird.f32 %v8904_v61 }
 0x5f4   :  { %v4223_v31 = vmul.f32 %v5883_v12, %v4222_v8  ;;  %vm10066_vm9 = vmmov %vm10055_vm1 }
 0x5f5   :  { %vm10067_vm7 = vmmov %vm10055_vm1 }
 0x5f6   :  { %v4224_v42 = vmul.f32 0.5, %v4223_v31  ;;  %v3846_v62 = vpop.xlane.xlu1 %3845  ;;  %v4020_v4 = vpop.xlane.xlu2 %4019 }
 0x5f7   :  { %v3910_v50 = vmul.f32 %v3846_v62, %v10013_v18  ;;  %v4096_v2 = vmul.f32 %v4020_v4, %v10013_v18  ;;  %v3145_v62 = vpop.f32.mrf.mxu0  ;;  %v8954_v4 = vpop.f32.mrf.mxu1 }
 0x5f8   :  { %v4225_v13 = vsub.f32 1.5, %v4224_v42 }
 0x5f9   :  { %v8929_v7 = vpop.eup %5884  ;;  %v8933_v29 = vsub.f32 %v8785_v47, %v3910_v50  ;;  %v8935_v19 = vadd.f32 1e-05, %v4096_v2 }
 0x5fa   :  { %v4226_v25 = vmul.f32 %v5883_v12, %v4225_v13  ;;  %v4232_v1 = vmul.f32 %v8929_v7, %v8904_v61  ;;  %v4547_v13 = vadd.f32 %v8794_v63, %v4512_v36  ;;  %vm4238_vm2 = vweird.f32 %v8929_v7 }
 0x5fb   :  { %5886 = vrsqrt.f32 %v8935_v19  ;;  %v3974_v51 = vmul.f32 %v8933_v29, %v8933_v29  ;;  %vm8981_vm5 = vmor %vm4237_vm10, %vm4238_vm2  ;;  %vm4247_vm0 = vweird.f32 %v8935_v19 }
 0x5fc   :  { %5888 = vrcp.f32 %v3142_v49  ;;  %v4230_v3 = vsel %vm4229_vm12, %v5883_v12, %v4226_v25  ;;  %v4233_v8 = vmul.f32 %v8929_v7, %v4232_v1  ;;  %v5617_v49 = vld [vmem:[%s9506_s8 + $0x18] sm:$0xff]  ;;  %vm10068_vm12 = vmmov %vm10055_vm1 }
 0x5fd   :  { %v4478_v31 = vmul.f32 %v4230_v3, %v8707_v59  ;;  %v4036_v56 = vsel %vm10055_vm1, %v3974_v51, 0.0  ;;  %v5624_v59 = vld [vmem:[%s9506_s8 + $0x50] sm:$0xff]  ;;  %5890 = vrcp.f32 %v3145_v62  ;;  %5101 = vmatpush.bf16.msrb.mxu2 %v5617_v49  ;;  %v5623_v3 = vld [vmem:[%s9506_s8 + $0x48] sm:$0xff]  ;;  %vm10069_vm2 = vmmov %vm10055_vm1 }
 0x5fe   :  { %v4234_v26 = vmul.f32 0.5, %v4233_v8  ;;  %v3849_v20 = vpop.xlane.xlu1 %3848  ;;  %4037 = vadd.xlane.f32.xlu2 %v4036_v56  ;;  %v8952_v42 = vpop.xlane.xlu2 %4022  ;;  %5191 = vmatpush.bf16.msra.mxu0 %v5624_v59  ;;  %v5616_v8 = vld [vmem:[%s9506_s8 + $0x10] sm:$0xff]  ;;  %v4597_v59 = vld [vmem:[%s9505_s7] sm:$0x3] }
 0x5ff   :  { %v3911_v50 = vmul.f32 %v3849_v20, %v10013_v18  ;;  %v4513_v12 = vmul.f32 %v8779_v41, %v4478_v31  ;;  %v3564_v31 = vpop.f32.mrf.mxu3 }
 0x600   :  { %v4235_v2 = vsub.f32 1.5, %v4234_v26 }
 0x601   :  { %v5887_v54 = vpop.eup %5886  ;;  %v8965_v58 = vsub.f32 %v8808_v44, %v3911_v50  ;;  %v4548_v0 = vadd.f32 %v8794_v63, %v4513_v12  ;;  %v4789_v49 = vpop.f32.mrf.mxu1  ;;  %5102 = vmatpush.bf16.msrb.mxu2 %v5616_v8  ;;  %v9008_v8 = vperm.slane %v4597_v59, 1 }
 0x602   :  { %v5889_v25 = vpop.eup %5888  ;;  %v4236_v1 = vmul.f32 %v8929_v7, %v4235_v2  ;;  %v4242_v51 = vmul.f32 %v5887_v54, %v8935_v19  ;;  %5192 = vmatpush.bf16.msra.mxu0 %v5623_v3  ;;  %v5622_v2 = vld [vmem:[%s9506_s8 + $0x40] sm:$0xff]  ;;  %vm4248_vm13 = vweird.f32 %v5887_v54 }
 0x603   :  { %v4576_v6 = vpack.c.bf16 %v4548_v0, %v4547_v13  ;;  %v3975_v53 = vmul.f32 %v8965_v58, %v8965_v58  ;;  %v3756_v20 = vmul.f32 %v5889_v25, %v3564_v31  ;;  %v5891_v0 = vpop.eup %5890  ;;  %v3147_v25 = vpop.f32.mrf.mxu0  ;;  %vm4249_vm14 = vmor %vm4247_vm0, %vm4248_vm13 }
 0x604   :  { %v4243_v56 = vmul.f32 %v5887_v54, %v4242_v51  ;;  %v4240_v62 = vsel %vm8981_vm5, %v8929_v7, %v4236_v1  ;;  %v5615_v7 = vld [vmem:[%s9506_s8 + $0x8] sm:$0xff]  ;;  %5892 = vrcp.f32 %v3147_v25  ;;  %v5980_v25 = vld [vmem:[#allocation2 + $0xc0] sm:$0xff]  ;;  %vm10070_vm0 = vmmov %vm10055_vm1 }
 0x605   :  { %5505 = vmatmul.msk.bf16.gmra.mxu3 %vm10058_vm3, %v4576_v6  ;;  %5521 = vmatmul.msk.bf16.gmra.mxu1 %vm10059_vm4, %v4576_v6  ;;  %v4039_v26 = vsel %vm10060_vm11, %v3975_v53, 0.0  ;;  %v4479_v1 = vmul.f32 %v4240_v62, %v8745_v16  ;;  %v5979_v6 = vld [vmem:[#allocation2 + $0xb8] sm:$0xff]  ;;  %v5614_v16 = vld [vmem:[%s9506_s8] sm:$0xff] }
 0x606   :  { %v4244_v50 = vmul.f32 0.5, %v4243_v56  ;;  %4040 = vadd.xlane.f32.xlu2 %v4039_v26  ;;  %v3852_v12 = vpop.xlane.xlu2 %3851  ;;  %v9005_v53 = vadd.f32 %v5979_v6, %v3756_v20  ;;  %5193 = vmatpush.bf16.msra.mxu0 %v5622_v2  ;;  %v3757_v56 = vmul.f32 %v5891_v0, %v8885_v40 }
 0x607   :  { %v3912_v61 = vmul.f32 %v3852_v12, %v10013_v18  ;;  %5103 = vmatpush.bf16.msrb.mxu2 %v5615_v7  ;;  %v4700_v20 = vpop.f32.mrf.mxu3  ;;  %v4790_v12 = vadd.f32 %v4789_v49, %v9008_v8 }
 0x608   :  { %v4245_v13 = vsub.f32 1.5, %v4244_v50  ;;  %10061 = vst [vmem:[#allocation36_spill] sm:$0xff] %v9005_v53  ;;  %v3868_v19 = vsel %vm10062_vm15, %v9005_v53, 0.0  ;;  %v4514_v50 = vmul.f32 %v8779_v41, %v4479_v1  ;;  %v9032_v1 = vadd.f32 %v5980_v25, %v3757_v56 }
 0x609   :  { %v9003_v51 = vsub.f32 %v8819_v39, %v3912_v61  ;;  %v4791_v40 = vpop.f32.mrf.mxu1 }
 0x60a   :  { %v4246_v3 = vmul.f32 %v5887_v54, %v4245_v13  ;;  %v4792_v7 = vadd.f32 %v4791_v40, %v9008_v8  ;;  %v4549_v0 = vadd.f32 %v8794_v63, %v4514_v50  ;;  %10064 = vst [vmem:[#allocation33_spill] sm:$0xff] %v9032_v1  ;;  %v5893_v6 = vpop.eup %5892  ;;  %v3871_v56 = vsel %vm10067_vm7, %v9032_v1, 0.0  ;;  %vm10075_vm7 = vmmov %vm10070_vm0 }
 0x60b   :  { %v3976_v31 = vmul.f32 %v9003_v51, %v9003_v51  ;;  %5104 = vmatpush.bf16.msrb.mxu2 %v5614_v16 }
 0x60c   :  { %v4250_v36 = vsel %vm4249_vm14, %v5887_v54, %v4246_v3  ;;  %v3150_v3 = vpop.f32.mrf.mxu0 }
 0x60d   :  { %v4480_v26 = vmul.f32 %v4250_v36, %v8783_v38  ;;  %v4042_v62 = vsel %vm10063_vm6, %v3976_v31, 0.0  ;;  %v9024_v38 = vperm.slane %v4597_v59, 0  ;;  %v4870_v31 = vmax.f32 %v4790_v12, 0.0 }
 0x60e   :  { %3869 = vadd.xlane.f32.xlu2 %v3868_v19  ;;  %4043 = vadd.xlane.f32.xlu0 %v4042_v62  ;;  %v3855_v61 = vpop.xlane.xlu2 %3854  ;;  %v4872_v36 = vmax.f32 %v4792_v7, 0.0  ;;  %5894 = vrcp.f32 %v3150_v3  ;;  %v5981_v7 = vld [vmem:[#allocation2 + $0xc8] sm:$0xff] }
 0x60f   :  { %v3913_v2 = vmul.f32 %v3855_v61, %v10013_v18  ;;  %v4515_v54 = vmul.f32 %v8779_v41, %v4480_v26  ;;  %v4701_v16 = vadd.f32 %v4700_v20, %v9024_v38  ;;  %v4702_v62 = vpop.f32.mrf.mxu3  ;;  %v3758_v61 = vmul.f32 %v5893_v6, %v8892_v22 }
 0x610   :  { %v4934_v19 = vpack.c.bf16 %v4872_v36, %v4870_v31  ;;  %v4703_v12 = vadd.f32 %v4702_v62, %v9024_v38  ;;  %v4097_v6 = vmul.f32 %v8952_v42, %v10013_v18 }
 0x611   :  { %v9028_v13 = vsub.f32 %v8828_v34, %v3913_v2  ;;  %v4550_v49 = vadd.f32 %v8794_v63, %v4515_v54  ;;  %v4869_v2 = vmax.f32 %v4701_v16, 0.0 }
 0x612   :  { %5194 = vmatmul.bf16.vlgmr.msra.gmra.mxu0 %v4934_v19  ;;  %v4871_v40 = vmax.f32 %v4703_v12, 0.0 }
 0x613   :  { %v4577_v26 = vpack.c.bf16 %v4550_v49, %v4549_v0  ;;  %v3977_v59 = vmul.f32 %v9028_v13, %v9028_v13  ;;  %v9044_v0 = vadd.f32 %v5981_v7, %v3758_v61 }
 0x614   :  { %v4794_v20 = vpop.f32.mrf.mxu1  ;;  %v4933_v54 = vpack.c.bf16 %v4871_v40, %v4869_v2  ;;  %v5895_v49 = vpop.eup %5894 }
 0x615   :  { %5506 = vmatmul.msk.bf16.gmra.mxu3 %vm10065_vm8, %v4577_v26  ;;  %5522 = vmatmul.msk.bf16.gmra.mxu1 %vm10066_vm9, %v4577_v26  ;;  %v4045_v50 = vsel %vm10068_vm12, %v3977_v59, 0.0  ;;  %v3759_v3 = vmul.f32 %v5895_v49, %v8907_v23  ;;  %v4795_v31 = vadd.f32 %v4794_v20, %v9008_v8  ;;  %v3874_v36 = vsel %vm10055_vm1, %v9044_v0, 0.0  ;;  %v5982_v59 = vld [vmem:[#allocation2 + $0xd0] sm:$0xff]  ;;  %vm10073_vm8 = vmmov %vm10070_vm0 }
 0x616   :  { %3872 = vadd.xlane.f32.xlu2 %v3871_v56  ;;  %4046 = vadd.xlane.f32.xlu0 %v4045_v50  ;;  %v4129_v56 = vadd.f32 1e-05, %v4097_v6  ;;  %vm10074_vm9 = vmmov %vm10070_vm0 }
 0x617   :  { %5105 = vmatmul.bf16.vlgmr.msrb.gmra.mxu2 %v4933_v54  ;;  %v9053_v16 = vadd.f32 %v5982_v59, %v3759_v3  ;;  %v4874_v19 = vmax.f32 %v4795_v31, 0.0 }
 0x618   :  { %5896 = vrsqrt.f32 %v4129_v56  ;;  %vm4257_vm5 = vweird.f32 %v4129_v56 }
 0x619   :  { %v3877_v20 = vsel %vm10069_vm2, %v9053_v16, 0.0 }
 0x61a   :  { %v4705_v25 = vpop.f32.mrf.mxu3 }
 0x61b   :  { %v4706_v23 = vadd.f32 %v4705_v25, %v9024_v38 }
 0x61c   :  { %v4796_v22 = vpop.f32.mrf.mxu1 }
 0x61d   :  { %v4797_v26 = vadd.f32 %v4796_v22, %v9008_v8  ;;  %v4873_v42 = vmax.f32 %v4706_v23, 0.0 }
 0x61e   :  { %3875 = vadd.xlane.f32.xlu0 %v3874_v36  ;;  %v5897_v54 = vpop.eup %5896 }
 0x61f   :  { %v4876_v62 = vmax.f32 %v4797_v26, 0.0  ;;  %v4252_v7 = vmul.f32 %v5897_v54, %v4129_v56  ;;  %vm4258_vm10 = vweird.f32 %v5897_v54 }
 0x620   :  { %vm4259_vm3 = vmor %vm4257_vm5, %vm4258_vm10 }
 0x621   :  { %v4936_v50 = vpack.c.bf16 %v4876_v62, %v4874_v19  ;;  %v4253_v49 = vmul.f32 %v5897_v54, %v4252_v7  ;;  %vm10076_vm10 = vmmov %vm10070_vm0 }
 0x622   :  { %v4707_v12 = vpop.f32.mrf.mxu3  ;;  %vm10077_vm5 = vmmov %vm10070_vm0 }
 0x623   :  { %v4708_v61 = vadd.f32 %v4707_v12, %v9024_v38  ;;  %5199 = vmatmul.bf16.gmra.mxu0 %v4936_v50  ;;  %v4254_v36 = vmul.f32 0.5, %v4253_v49 }
 0x625   :  { %v4875_v2 = vmax.f32 %v4708_v61, 0.0  ;;  %v4255_v22 = vsub.f32 1.5, %v4254_v36 }
 0x626   :  { %3878 = vadd.xlane.f32.xlu0 %v3877_v20 }
 0x627   :  { %v4935_v40 = vpack.c.bf16 %v4875_v2, %v4873_v42  ;;  %v4256_v62 = vmul.f32 %v5897_v54, %v4255_v22  ;;  %v3152_v2 = vpop.f32.mrf.mxu0 }
 0x629   :  { %5110 = vmatmul.bf16.gmra.mxu2 %v4935_v40  ;;  %v4260_v12 = vsel %vm4259_vm3, %v5897_v54, %v4256_v62  ;;  %vm10078_vm3 = vmmov %vm10070_vm0 }
 0x62f   :  { %v4026_v3 = vpop.xlane.xlu0 %4025 }
 0x630   :  { %v4098_v25 = vmul.f32 %v4026_v3, %v10013_v18 }
 0x632   :  { %v4130_v31 = vadd.f32 1e-05, %v4098_v25  ;;  %v4481_v25 = vmul.f32 %v4260_v12, %v8806_v11 }
 0x634   :  { %5898 = vrsqrt.f32 %v4130_v31  ;;  %vm4267_vm11 = vweird.f32 %v4130_v31  ;;  %v4516_v11 = vmul.f32 %v8779_v41, %v4481_v25 }
 0x637   :  { %v4029_v6 = vpop.xlane.xlu0 %4028 }
 0x638   :  { %v4099_v26 = vmul.f32 %v4029_v6, %v10013_v18 }
 0x63a   :  { %v5899_v59 = vpop.eup %5898  ;;  %v4131_v19 = vadd.f32 1e-05, %v4099_v26 }
 0x63b   :  { %v4262_v23 = vmul.f32 %v5899_v59, %v4130_v31  ;;  %vm4268_vm4 = vweird.f32 %v5899_v59  ;;  %v3155_v31 = vpop.f32.mrf.mxu0 }
 0x63c   :  { %5900 = vrsqrt.f32 %v4131_v19  ;;  %vm4269_vm13 = vmor %vm4267_vm11, %vm4268_vm4  ;;  %vm4277_vm15 = vweird.f32 %v4131_v19 }
 0x63d   :  { %v4263_v50 = vmul.f32 %v5899_v59, %v4262_v23  ;;  %vm10079_vm4 = vmmov %vm10070_vm0 }
 0x63e   :  { %vm10080_vm11 = vmmov %vm10070_vm0 }
 0x63f   :  { %v4264_v61 = vmul.f32 0.5, %v4263_v50  ;;  %v4032_v20 = vpop.xlane.xlu1 %4031  ;;  %v3858_v42 = vpop.xlane.xlu0 %3857 }
 0x640   :  { %v4100_v40 = vmul.f32 %v4032_v20, %v10013_v18  ;;  %v3914_v7 = vmul.f32 %v3858_v42, %v10013_v18 }
 0x641   :  { %v4265_v49 = vsub.f32 1.5, %v4264_v61 }
 0x642   :  { %v5901_v3 = vpop.eup %5900  ;;  %v4132_v36 = vadd.f32 1e-05, %v4100_v40  ;;  %v9065_v22 = vsub.f32 %v8855_v14, %v3914_v7 }
 0x643   :  { %v4266_v56 = vmul.f32 %v5899_v59, %v4265_v49  ;;  %v4272_v54 = vmul.f32 %v5901_v3, %v4131_v19  ;;  %vm4278_vm14 = vweird.f32 %v5901_v3 }
 0x644   :  { %5902 = vrsqrt.f32 %v4132_v36  ;;  %v3978_v6 = vmul.f32 %v9065_v22, %v9065_v22  ;;  %vm9082_vm6 = vmor %vm4277_vm15, %vm4278_vm14  ;;  %vm4287_vm1 = vweird.f32 %v4132_v36 }
 0x645   :  { %5904 = vrcp.f32 %v3152_v2  ;;  %v4270_v26 = vsel %vm4269_vm13, %v5899_v59, %v4266_v56  ;;  %v4273_v62 = vmul.f32 %v5901_v3, %v4272_v54  ;;  %vm10081_vm13 = vmmov %vm10070_vm0 }
 0x646   :  { %v4482_v23 = vmul.f32 %v4270_v26, %v8838_v33  ;;  %v4048_v50 = vsel %vm10070_vm0, %v3978_v6, 0.0  ;;  %v4551_v33 = vadd.f32 %v8794_v63, %v4516_v11  ;;  %5906 = vrcp.f32 %v3155_v31  ;;  %v3691_v31 = vpop.f32.mrf.mxu2  ;;  %vm10082_vm14 = vmmov %vm10070_vm0 }
 0x647   :  { %v4274_v12 = vmul.f32 0.5, %v4273_v62  ;;  %v4035_v61 = vpop.xlane.xlu1 %4034  ;;  %4049 = vadd.xlane.f32.xlu1 %v4048_v50  ;;  %v3861_v20 = vpop.xlane.xlu0 %3860 }
 0x648   :  { %v3915_v42 = vmul.f32 %v3861_v20, %v10013_v18  ;;  %v4517_v40 = vmul.f32 %v8779_v41, %v4482_v23 }
 0x649   :  { %v4275_v7 = vsub.f32 1.5, %v4274_v12 }
 0x64a   :  { %v5903_v49 = vpop.eup %5902  ;;  %v9075_v59 = vsub.f32 %v8872_v30, %v3915_v42  ;;  %v4552_v2 = vadd.f32 %v8794_v63, %v4517_v40 }
 0x64b   :  { %v5905_v56 = vpop.eup %5904  ;;  %v4276_v25 = vmul.f32 %v5901_v3, %v4275_v7  ;;  %v4282_v54 = vmul.f32 %v5903_v49, %v4132_v36  ;;  %vm4288_vm12 = vweird.f32 %v5903_v49  ;;  %v5983_v7 = vld [vmem:[#allocation2 + $0xd8] sm:$0xff] }
 0x64c   :  { %v4578_v6 = vpack.c.bf16 %v4552_v2, %v4551_v33  ;;  %v3979_v26 = vmul.f32 %v9075_v59, %v9075_v59  ;;  %v3760_v23 = vmul.f32 %v5905_v56, %v8954_v4  ;;  %v3157_v2 = vpop.f32.mrf.mxu0  ;;  %vm4289_vm2 = vmor %vm4287_vm1, %vm4288_vm12 }
 0x64d   :  { %v4283_v62 = vmul.f32 %v5903_v49, %v4282_v54  ;;  %v4280_v12 = vsel %vm9082_vm6, %v5901_v3, %v4276_v25  ;;  %v5907_v3 = vpop.eup %5906  ;;  %5908 = vrcp.f32 %v3157_v2  ;;  %vm10083_vm1 = vmmov %vm10070_vm0 }
 0x64e   :  { %5507 = vmatmul.msk.bf16.gmra.mxu3 %vm10073_vm8, %v4578_v6  ;;  %5523 = vmatmul.msk.bf16.gmra.mxu1 %vm10074_vm9, %v4578_v6  ;;  %v4051_v11 = vsel %vm10075_vm7, %v3979_v26, 0.0  ;;  %v9092_v33 = vadd.f32 %v5983_v7, %v3760_v23  ;;  %v4483_v56 = vmul.f32 %v4280_v12, %v8845_v21 }
 0x64f   :  { %v4284_v20 = vmul.f32 0.5, %v4283_v62  ;;  %v3864_v42 = vpop.xlane.xlu1 %3863  ;;  %4052 = vadd.xlane.f32.xlu1 %v4051_v11  ;;  %v4101_v62 = vmul.f32 %v4035_v61, %v10013_v18 }
 0x650   :  { %v4799_v19 = vpop.f32.mrf.mxu1  ;;  %v3916_v4 = vmul.f32 %v3864_v42, %v10013_v18  ;;  %v3880_v12 = vsel %vm10077_vm5, %v9092_v33, 0.0  ;;  %v4518_v36 = vmul.f32 %v8779_v41, %v4483_v56 }
 0x651   :  { %v4285_v40 = vsub.f32 1.5, %v4284_v20  ;;  %v4800_v23 = vadd.f32 %v4799_v19, %v9008_v8  ;;  %v3761_v20 = vmul.f32 %v5907_v3, %v3691_v31 }
 0x652   :  { %v9096_v54 = vsub.f32 %v8881_v24, %v3916_v4  ;;  %v4553_v56 = vadd.f32 %v8794_v63, %v4518_v36 }
 0x653   :  { %v4286_v6 = vmul.f32 %v5903_v49, %v4285_v40  ;;  %v4133_v40 = vadd.f32 1e-05, %v4101_v62  ;;  %v5909_v3 = vpop.eup %5908 }
 0x654   :  { %v3980_v25 = vmul.f32 %v9096_v54, %v9096_v54  ;;  %v3160_v7 = vpop.f32.mrf.mxu0 }
 0x655   :  { %v4290_v26 = vsel %vm4289_vm2, %v5903_v49, %v4286_v6  ;;  %5910 = vrcp.f32 %v3160_v7  ;;  %vm4297_vm6 = vweird.f32 %v4133_v40 }
 0x656   :  { %v4710_v50 = vpop.f32.mrf.mxu3  ;;  %v4484_v11 = vmul.f32 %v4290_v26, %v8853_v9  ;;  %v4054_v21 = vsel %vm10076_vm10, %v3980_v25, 0.0  ;;  %v4878_v9 = vmax.f32 %v4800_v23, 0.0  ;;  %v5984_v25 = vld [vmem:[#allocation2 + $0xe0] sm:$0xff]  ;;  %5912 = vrsqrt.f32 %v4133_v40 }
 0x657   :  { %4055 = vadd.xlane.f32.xlu2 %v4054_v21  ;;  %v3867_v42 = vpop.xlane.xlu1 %3866  ;;  %3881 = vadd.xlane.f32.xlu1 %v3880_v12  ;;  %v9115_v26 = vadd.f32 %v5984_v25, %v3761_v20  ;;  %v3693_v21 = vpop.f32.mrf.mxu2  ;;  %v4711_v12 = vadd.f32 %v4710_v50, %v9024_v38  ;;  %v5986_v25 = vld [vmem:[#allocation2 + $0xf0] sm:$0xff] }
 0x658   :  { %v4801_v4 = vpop.f32.mrf.mxu1  ;;  %v3917_v49 = vmul.f32 %v3867_v42, %v10013_v18  ;;  %v4519_v19 = vmul.f32 %v8779_v41, %v4484_v11  ;;  %v3762_v11 = vmul.f32 %v5909_v3, %v3693_v21 }
 0x659   :  { %v4802_v61 = vadd.f32 %v4801_v4, %v9008_v8  ;;  %v3883_v50 = vsel %vm10081_vm13, %v9115_v26, 0.0  ;;  %v4877_v20 = vmax.f32 %v4711_v12, 0.0 }
 0x65a   :  { %v9111_v2 = vsub.f32 %v8887_v57, %v3917_v49  ;;  %v4554_v31 = vadd.f32 %v8794_v63, %v4519_v19  ;;  %v5985_v49 = vld [vmem:[#allocation2 + $0xe8] sm:$0xff] }
 0x65b   :  { %v4880_v6 = vmax.f32 %v4802_v61, 0.0  ;;  %v9126_v61 = vadd.f32 %v5985_v49, %v3762_v11 }
 0x65c   :  { %v4579_v42 = vpack.c.bf16 %v4554_v31, %v4553_v56  ;;  %v3981_v41 = vmul.f32 %v9111_v2, %v9111_v2 }
 0x65d   :  { %v4938_v62 = vpack.c.bf16 %v4880_v6, %v4878_v9  ;;  %v5911_v9 = vpop.eup %5910  ;;  %v3886_v31 = vsel %vm10070_vm0, %v9126_v61, 0.0 }
 0x65e   :  { %v4712_v23 = vpop.f32.mrf.mxu3  ;;  %5508 = vmatmul.msk.bf16.gmra.mxu3 %vm10078_vm3, %v4579_v42  ;;  %5524 = vmatmul.msk.bf16.gmra.mxu1 %vm10079_vm4, %v4579_v42  ;;  %v4057_v63 = vsel %vm10080_vm11, %v3981_v41, 0.0  ;;  %v5913_v6 = vpop.eup %5912  ;;  %vm10086_vm3 = vmmov %vm10070_vm0 }
 0x65f   :  { %v4713_v36 = vadd.f32 %v4712_v23, %v9024_v38  ;;  %4058 = vadd.xlane.f32.xlu2 %v4057_v63  ;;  %5204 = vmatmul.bf16.gmra.mxu0 %v4938_v62  ;;  %v3696_v7 = vpop.f32.mrf.mxu2  ;;  %v4292_v3 = vmul.f32 %v5913_v6, %v4133_v40  ;;  %vm4298_vm15 = vweird.f32 %v5913_v6  ;;  %vm10087_vm4 = vmmov %vm10070_vm0 }
 0x660   :  { %3884 = vadd.xlane.f32.xlu1 %v3883_v50  ;;  %v3763_v56 = vmul.f32 %v5911_v9, %v3696_v7  ;;  %vm4299_vm8 = vmor %vm4297_vm6, %vm4298_vm15 }
 0x661   :  { %v4879_v4 = vmax.f32 %v4713_v36, 0.0  ;;  %v4293_v12 = vmul.f32 %v5913_v6, %v4292_v3  ;;  %vm10088_vm11 = vmmov %vm10070_vm0 }
 0x662   :  { %v9130_v21 = vadd.f32 %v5986_v25, %v3763_v56  ;;  %vm10089_vm15 = vmmov %vm10083_vm1 }
 0x663   :  { %v4937_v19 = vpack.c.bf16 %v4879_v4, %v4877_v20  ;;  %v4294_v11 = vmul.f32 0.5, %v4293_v12  ;;  %vm10090_vm6 = vmmov %vm10083_vm1 }
 0x664   :  { %v3889_v23 = vsel %vm10082_vm14, %v9130_v21, 0.0 }
 0x665   :  { %5115 = vmatmul.bf16.gmra.mxu2 %v4937_v19  ;;  %v4295_v36 = vsub.f32 1.5, %v4294_v11  ;;  %v3162_v11 = vpop.f32.mrf.mxu0 }
 0x667   :  { %3887 = vadd.xlane.f32.xlu2 %v3886_v31  ;;  %v4296_v49 = vmul.f32 %v5913_v6, %v4295_v36 }
 0x669   :  { %v4300_v7 = vsel %vm4299_vm8, %v5913_v6, %v4296_v49  ;;  %vm10091_vm8 = vmmov %vm10083_vm1 }
 0x66a   :  { %v4485_v36 = vmul.f32 %v4300_v7, %v8870_v55 }
 0x66f   :  { %3890 = vadd.xlane.f32.xlu2 %v3889_v23 }
 0x671   :  { %v4038_v42 = vpop.xlane.xlu2 %4037 }
 0x672   :  { %v4102_v41 = vmul.f32 %v4038_v42, %v10013_v18 }
 0x674   :  { %v4134_v62 = vadd.f32 1e-05, %v4102_v41 }
 0x676   :  { %5914 = vrsqrt.f32 %v4134_v62  ;;  %vm4307_vm7 = vweird.f32 %v4134_v62 }
 0x679   :  { %v4041_v63 = vpop.xlane.xlu2 %4040 }
 0x67a   :  { %v4103_v50 = vmul.f32 %v4041_v63, %v10013_v18 }
 0x67c   :  { %v5915_v20 = vpop.eup %5914  ;;  %v9136_v4 = vadd.f32 1e-05, %v4103_v50 }
 0x67d   :  { %v4302_v19 = vmul.f32 %v5915_v20, %v4134_v62  ;;  %vm4308_vm9 = vweird.f32 %v5915_v20  ;;  %v9160_v62 = vld [vmem:[%s9502_s4] ss:$0 sm:$0xff] }
 0x67e   :  { %5916 = vrsqrt.f32 %v9136_v4  ;;  %vm4309_vm12 = vmor %vm4307_vm7, %vm4308_vm9  ;;  %vm4317_vm10 = vweird.f32 %v9136_v4 }
 0x67f   :  { %v4303_v9 = vmul.f32 %v5915_v20, %v4302_v19  ;;  %vm10092_vm9 = vmmov %vm10083_vm1 }
 0x680   :  { %vm10093_vm7 = vmmov %vm10083_vm1 }
 0x681   :  { %v4304_v56 = vmul.f32 0.5, %v4303_v9  ;;  %v4044_v31 = vpop.xlane.xlu0 %4043  ;;  %v3870_v3 = vpop.xlane.xlu2 %3869 }
 0x682   :  { %v4104_v25 = vmul.f32 %v4044_v31, %v10013_v18  ;;  %v3918_v12 = vmul.f32 %v3870_v3, %v10013_v18  ;;  %v4804_v42 = vpop.f32.mrf.mxu1  ;;  %v4520_v31 = vmul.f32 %v9160_v62, %v4485_v36 }
 0x683   :  { %v4305_v41 = vsub.f32 1.5, %v4304_v56 }
 0x684   :  { %v9141_v23 = vpop.eup %5916  ;;  %v9144_v63 = vadd.f32 1e-05, %v4104_v25  ;;  %v9147_v40 = vsub.f32 %v9005_v53, %v3918_v12  ;;  %v4805_v25 = vadd.f32 %v4804_v42, %v9008_v8  ;;  %v9175_v42 = vld [vmem:[%s9503_s5] ss:$0 sm:$0xff] }
 0x685   :  { %v4306_v6 = vmul.f32 %v5915_v20, %v4305_v41  ;;  %v4312_v50 = vmul.f32 %v9141_v23, %v9136_v4  ;;  %v4555_v36 = vadd.f32 %v9175_v42, %v4520_v31  ;;  %vm4318_vm2 = vweird.f32 %v9141_v23 }
 0x686   :  { %5918 = vrsqrt.f32 %v9144_v63  ;;  %v3982_v49 = vmul.f32 %v9147_v40, %v9147_v40  ;;  %vm9186_vm5 = vmor %vm4317_vm10, %vm4318_vm2  ;;  %vm4327_vm0 = vweird.f32 %v9144_v63 }
 0x687   :  { %5920 = vrcp.f32 %v3162_v11  ;;  %v4310_v19 = vsel %vm4309_vm12, %v5915_v20, %v4306_v6  ;;  %v4313_v55 = vmul.f32 %v9141_v23, %v4312_v50  ;;  %vm10094_vm12 = vmmov %vm10083_vm1 }
 0x688   :  { %v4486_v9 = vmul.f32 %v4310_v19, %v8933_v29  ;;  %v4715_v7 = vpop.f32.mrf.mxu3  ;;  %v4060_v56 = vsel %vm10083_vm1, %v3982_v49, 0.0  ;;  %vm10095_vm2 = vmmov %vm10083_vm1 }
 0x689   :  { %v4314_v3 = vmul.f32 0.5, %v4313_v55  ;;  %4061 = vadd.xlane.f32.xlu0 %v4060_v56  ;;  %v3873_v12 = vpop.xlane.xlu2 %3872  ;;  %v9164_v20 = vpop.xlane.xlu0 %4046  ;;  %vm10096_vm10 = vmmov %vm10083_vm1 }
 0x68a   :  { %v3919_v41 = vmul.f32 %v3873_v12, %v10013_v18  ;;  %v4806_v29 = vpop.f32.mrf.mxu1  ;;  %v4521_v11 = vmul.f32 %v9160_v62, %v4486_v9  ;;  %v3698_v12 = vpop.f32.mrf.mxu2 }
 0x68b   :  { %v4315_v6 = vsub.f32 1.5, %v4314_v3  ;;  %v4807_v50 = vadd.f32 %v4806_v29, %v9008_v8  ;;  %v4882_v29 = vmax.f32 %v4805_v25, 0.0 }
 0x68c   :  { %v5919_v49 = vpop.eup %5918  ;;  %v9170_v19 = vsub.f32 %v9032_v1, %v3919_v41  ;;  %v4556_v55 = vadd.f32 %v9175_v42, %v4521_v11  ;;  %v4716_v41 = vadd.f32 %v4715_v7, %v9024_v38 }
 0x68d   :  { %v5921_v56 = vpop.eup %5920  ;;  %v4316_v9 = vmul.f32 %v9141_v23, %v4315_v6  ;;  %v4322_v3 = vmul.f32 %v5919_v49, %v9144_v63  ;;  %v4884_v1 = vmax.f32 %v4807_v50, 0.0  ;;  %vm4328_vm13 = vweird.f32 %v5919_v49 }
 0x68e   :  { %v4580_v53 = vpack.c.bf16 %v4556_v55, %v4555_v36  ;;  %v3983_v57 = vmul.f32 %v9170_v19, %v9170_v19  ;;  %v3764_v11 = vmul.f32 %v5921_v56, %v3698_v12  ;;  %v4881_v55 = vmax.f32 %v4716_v41, 0.0  ;;  %vm4329_vm14 = vmor %vm4327_vm0, %vm4328_vm13 }
 0x68f   :  { %v4323_v31 = vmul.f32 %v5919_v49, %v4322_v3  ;;  %v4940_v25 = vpack.c.bf16 %v4884_v1, %v4882_v29  ;;  %v4320_v50 = vsel %vm9186_vm5, %v9141_v23, %v4316_v9  ;;  %v5989_v1 = vld [vmem:[#allocation2 + $0xf8] sm:$0xff] }
 0x690   :  { %v4717_v6 = vpop.f32.mrf.mxu3  ;;  %5509 = vmatmul.msk.bf16.gmra.mxu3 %vm10086_vm3, %v4580_v53  ;;  %5525 = vmatmul.msk.bf16.gmra.mxu1 %vm10087_vm4, %v4580_v53  ;;  %v4063_v7 = vsel %vm10088_vm11, %v3983_v57, 0.0  ;;  %v9198_v29 = vadd.f32 %v5989_v1, %v3764_v11  ;;  %v4487_v57 = vmul.f32 %v4320_v50, %v8965_v58 }
 0x691   :  { %v4324_v36 = vmul.f32 0.5, %v4323_v31  ;;  %v4718_v4 = vadd.f32 %v4717_v6, %v9024_v38  ;;  %4064 = vadd.xlane.f32.xlu0 %v4063_v7  ;;  %5209 = vmatmul.bf16.gmra.mxu0 %v4940_v25  ;;  %v3876_v56 = vpop.xlane.xlu0 %3875 }
 0x692   :  { %v4809_v12 = vpop.f32.mrf.mxu1  ;;  %v3920_v53 = vmul.f32 %v3876_v56, %v10013_v18  ;;  %v3892_v11 = vsel %vm10089_vm15, %v9198_v29, 0.0  ;;  %v4522_v58 = vmul.f32 %v9160_v62, %v4487_v57 }
 0x693   :  { %v4325_v3 = vsub.f32 1.5, %v4324_v36  ;;  %v4883_v30 = vmax.f32 %v4718_v4, 0.0  ;;  %v4810_v63 = vadd.f32 %v4809_v12, %v9008_v8  ;;  %v5195_v36 = vpop.f32.mrf.mxu0 }
 0x694   :  { %v9203_v23 = vsub.f32 %v9044_v0, %v3920_v53  ;;  %v4557_v56 = vadd.f32 %v9175_v42, %v4522_v58 }
 0x695   :  { %v4326_v24 = vmul.f32 %v5919_v49, %v4325_v3  ;;  %v4939_v9 = vpack.c.bf16 %v4883_v30, %v4881_v55  ;;  %v9219_v55 = vld [vmem:[%s9507_s9] ss:$0 sm:$0xff]  ;;  %v4886_v3 = vmax.f32 %v4810_v63, 0.0 }
 0x696   :  { %v3984_v31 = vmul.f32 %v9203_v23, %v9203_v23 }
 0x697   :  { %v4330_v41 = vsel %vm4329_vm14, %v5919_v49, %v4326_v24  ;;  %5120 = vmatmul.bf16.gmra.mxu2 %v4939_v9  ;;  %vm10097_vm14 = vmmov %vm10083_vm1 }
 0x698   :  { %v4488_v6 = vmul.f32 %v4330_v41, %v9003_v51  ;;  %v4720_v25 = vpop.f32.mrf.mxu3  ;;  %v4066_v7 = vsel %vm10090_vm6, %v3984_v31, 0.0 }
 0x699   :  { %3893 = vadd.xlane.f32.xlu0 %v3892_v11  ;;  %4067 = vadd.xlane.f32.xlu1 %v4066_v7  ;;  %v3879_v30 = vpop.xlane.xlu0 %3878  ;;  %v4721_v24 = vadd.f32 %v4720_v25, %v9024_v38 }
 0x69a   :  { %v4811_v49 = vpop.f32.mrf.mxu1  ;;  %v4523_v50 = vmul.f32 %v9160_v62, %v4488_v6  ;;  %v3921_v4 = vmul.f32 %v3879_v30, %v10013_v18  ;;  %v5106_v41 = vpop.f32.mrf.mxu2 }
 0x69b   :  { %v4812_v51 = vadd.f32 %v4811_v49, %v9008_v8  ;;  %v5107_v6 = vadd.f32 %v9219_v55, %v5106_v41  ;;  %v4885_v25 = vmax.f32 %v4721_v24, 0.0 }
 0x69c   :  { %v4558_v12 = vadd.f32 %v9175_v42, %v4523_v50  ;;  %v9224_v53 = vsub.f32 %v9053_v16, %v3921_v4  ;;  %v5197_v50 = vpop.f32.mrf.mxu0 }
 0x69d   :  { %v4888_v1 = vmax.f32 %v4812_v51, 0.0  ;;  %v5196_v7 = vadd.f32 %v5195_v36, %v5107_v6 }
 0x69e   :  { %v4581_v57 = vpack.c.bf16 %v4558_v12, %v4557_v56  ;;  %v3985_v31 = vmul.f32 %v9224_v53, %v9224_v53 }
 0x69f   :  { %v4942_v9 = vpack.c.bf16 %v4888_v1, %v4886_v3  ;;  %v5275_v49 = vadd.f32 %v5196_v7, %v8537_v27  ;;  %v4105_v3 = vmul.f32 %v9164_v20, %v10013_v18 }
 0x6a0   :  { %v4722_v11 = vpop.f32.mrf.mxu3  ;;  %5510 = vmatmul.msk.bf16.gmra.mxu3 %vm10091_vm8, %v4581_v57  ;;  %5526 = vmatmul.msk.bf16.gmra.mxu1 %vm10092_vm9, %v4581_v57  ;;  %v4069_v63 = vsel %vm10093_vm7, %v3985_v31, 0.0  ;;  %vm10100_vm9 = vmmov %vm10083_vm1 }
 0x6a1   :  { %v4723_v58 = vadd.f32 %v4722_v11, %v9024_v38  ;;  %5214 = vmatmul.bf16.gmra.mxu0 %v4942_v9  ;;  %4070 = vadd.xlane.f32.xlu1 %v4069_v63  ;;  %5307 = vst.msk [vmem:[#allocation5] sm:$0xff] %vm10094_vm12, %v5275_v49  ;;  %v4137_v1 = vadd.f32 1e-05, %v4105_v3  ;;  %vm10101_vm7 = vmmov %vm10083_vm1 }
 0x6a2   :  { %v5108_v51 = vpop.f32.mrf.mxu2  ;;  %vm10102_vm12 = vmmov %vm10083_vm1 }
 0x6a3   :  { %v4887_v30 = vmax.f32 %v4723_v58, 0.0  ;;  %v5109_v56 = vadd.f32 %v9219_v55, %v5108_v51  ;;  %5922 = vrsqrt.f32 %v4137_v1  ;;  %vm4337_vm3 = vweird.f32 %v4137_v1 }
 0x6a4   :  { %v5200_v57 = vpop.f32.mrf.mxu0 }
 0x6a5   :  { %v4941_v4 = vpack.c.bf16 %v4887_v30, %v4885_v25  ;;  %v5198_v12 = vadd.f32 %v5197_v50, %v5109_v56 }
 0x6a7   :  { %5125 = vmatmul.bf16.gmra.mxu2 %v4941_v4  ;;  %v5276_v36 = vadd.f32 %v5198_v12, %v8546_v45 }
 0x6a9   :  { %5308 = vst.msk [vmem:[#allocation5 + $0x8] sm:$0xff] %vm10083_vm1, %v5276_v36  ;;  %v5923_v11 = vpop.eup %5922 }
 0x6aa   :  { %v4332_v45 = vmul.f32 %v5923_v11, %v4137_v1  ;;  %vm4338_vm5 = vweird.f32 %v5923_v11 }
 0x6ab   :  { %vm4339_vm4 = vmor %vm4337_vm3, %vm4338_vm5 }
 0x6ac   :  { %v5111_v24 = vpop.f32.mrf.mxu2  ;;  %v5202_v20 = vpop.f32.mrf.mxu0  ;;  %v4333_v7 = vmul.f32 %v5923_v11, %v4332_v45  ;;  %vm10103_vm5 = vmmov %vm10101_vm7 }
 0x6ad   :  { %v5112_v27 = vadd.f32 %v9219_v55, %v5111_v24  ;;  %vm10104_vm3 = vmmov %vm10103_vm5 }
 0x6ae   :  { %v4334_v50 = vmul.f32 0.5, %v4333_v7 }
 0x6af   :  { %v5201_v9 = vadd.f32 %v5200_v57, %v5112_v27 }
 0x6b1   :  { %v5277_v41 = vadd.f32 %v5201_v9, %v8555_v46  ;;  %v4335_v46 = vsub.f32 1.5, %v4334_v50 }
 0x6b3   :  { %5309 = vst.msk [vmem:[#allocation5 + $0x10] sm:$0xff] %vm10095_vm2, %v5277_v41  ;;  %v4336_v3 = vmul.f32 %v5923_v11, %v4335_v46 }
 0x6b4   :  { %v5113_v31 = vpop.f32.mrf.mxu2 }
 0x6b5   :  { %v5114_v6 = vadd.f32 %v9219_v55, %v5113_v31  ;;  %v4340_v57 = vsel %vm4339_vm4, %v5923_v11, %v4336_v3  ;;  %vm10105_vm4 = vmmov %vm10104_vm3 }
 0x6b6   :  { %v4489_v45 = vmul.f32 %v4340_v57, %v9028_v13 }
 0x6b7   :  { %v5203_v58 = vadd.f32 %v5202_v20, %v5114_v6 }
 0x6b8   :  { %v4524_v13 = vmul.f32 %v9160_v62, %v4489_v45 }
 0x6b9   :  { %v5278_v63 = vadd.f32 %v5203_v58, %v8561_v15 }
 0x6ba   :  { %v4050_v25 = vpop.xlane.xlu1 %4049 }
 0x6bb   :  { %5310 = vst.msk [vmem:[#allocation5 + $0x18] sm:$0xff] %vm10096_vm10, %v5278_v63  ;;  %v4106_v30 = vmul.f32 %v4050_v25, %v10013_v18 }
 0x6bd   :  { %v4138_v49 = vadd.f32 1e-05, %v4106_v30 }
 0x6bf   :  { %5924 = vrsqrt.f32 %v4138_v49  ;;  %vm4347_vm13 = vweird.f32 %v4138_v49 }
 0x6c2   :  { %v4053_v4 = vpop.xlane.xlu1 %4052 }
 0x6c3   :  { %v4107_v51 = vmul.f32 %v4053_v4, %v10013_v18 }
 0x6c5   :  { %v5925_v56 = vpop.eup %5924  ;;  %v4139_v12 = vadd.f32 1e-05, %v4107_v51 }
 0x6c6   :  { %v4342_v36 = vmul.f32 %v5925_v56, %v4138_v49  ;;  %vm4348_vm11 = vweird.f32 %v5925_v56 }
 0x6c7   :  { %5926 = vrsqrt.f32 %v4139_v12  ;;  %vm4349_vm0 = vmor %vm4347_vm13, %vm4348_vm11  ;;  %vm4357_vm6 = vweird.f32 %v4139_v12 }
 0x6c8   :  { %v4343_v15 = vmul.f32 %v5925_v56, %v4342_v36  ;;  %vm10106_vm11 = vmmov %vm10104_vm3 }
 0x6c9   :  { %vm10107_vm13 = vmmov %vm10104_vm3 }
 0x6ca   :  { %v4344_v24 = vmul.f32 0.5, %v4343_v15  ;;  %v3882_v27 = vpop.xlane.xlu1 %3881  ;;  %v4056_v9 = vpop.xlane.xlu2 %4055 }
 0x6cb   :  { %v3922_v41 = vmul.f32 %v3882_v27, %v10013_v18  ;;  %v4108_v31 = vmul.f32 %v4056_v9, %v10013_v18  ;;  %v4814_v6 = vpop.f32.mrf.mxu1 }
 0x6cc   :  { %v4345_v20 = vsub.f32 1.5, %v4344_v24  ;;  %v4815_v49 = vadd.f32 %v4814_v6, %v9008_v8 }
 0x6cd   :  { %v5927_v58 = vpop.eup %5926  ;;  %v9253_v63 = vsub.f32 %v9092_v33, %v3922_v41  ;;  %v4140_v1 = vadd.f32 1e-05, %v4108_v31  ;;  %v4559_v41 = vadd.f32 %v9175_v42, %v4524_v13 }
 0x6ce   :  { %v4346_v7 = vmul.f32 %v5925_v56, %v4345_v20  ;;  %v4352_v11 = vmul.f32 %v5927_v58, %v4139_v12  ;;  %vm4358_vm15 = vweird.f32 %v5927_v58  ;;  %v4890_v6 = vmax.f32 %v4815_v49, 0.0 }
 0x6cf   :  { %5928 = vrsqrt.f32 %v4140_v1  ;;  %v3986_v25 = vmul.f32 %v9253_v63, %v9253_v63  ;;  %vm9272_vm8 = vmor %vm4357_vm6, %vm4358_vm15  ;;  %vm4367_vm2 = vweird.f32 %v4140_v1 }
 0x6d0   :  { %v4350_v30 = vsel %vm4349_vm0, %v5925_v56, %v4346_v7  ;;  %v4353_v50 = vmul.f32 %v5927_v58, %v4352_v11  ;;  %vm10108_vm0 = vmmov %vm10104_vm3 }
 0x6d1   :  { %v4490_v46 = vmul.f32 %v4350_v30, %v9065_v22  ;;  %v4725_v4 = vpop.f32.mrf.mxu3  ;;  %v4072_v51 = vsel %vm10097_vm14, %v3986_v25, 0.0 }
 0x6d2   :  { %v4354_v3 = vmul.f32 0.5, %v4353_v50  ;;  %4073 = vadd.xlane.f32.xlu2 %v4072_v51  ;;  %v4059_v36 = vpop.xlane.xlu2 %4058  ;;  %v4726_v50 = vadd.f32 %v4725_v4, %v9024_v38 }
 0x6d3   :  { %v3885_v15 = vpop.xlane.xlu1 %3884  ;;  %v4816_v57 = vpop.f32.mrf.mxu1  ;;  %v4525_v24 = vmul.f32 %v9160_v62, %v4490_v46 }
 0x6d4   :  { %v4355_v27 = vsub.f32 1.5, %v4354_v3  ;;  %v3923_v56 = vmul.f32 %v3885_v15, %v10013_v18  ;;  %v4817_v9 = vadd.f32 %v4816_v57, %v9008_v8 }
 0x6d5   :  { %v5929_v22 = vpop.eup %5928  ;;  %v4560_v31 = vadd.f32 %v9175_v42, %v4525_v24 }
 0x6d6   :  { %v4356_v20 = vmul.f32 %v5927_v58, %v4355_v27  ;;  %v4362_v45 = vmul.f32 %v5929_v22, %v4140_v1  ;;  %v9267_v7 = vsub.f32 %v9115_v26, %v3923_v56  ;;  %v4892_v11 = vmax.f32 %v4817_v9, 0.0 }
 0x6d7   :  { %v4582_v25 = vpack.c.bf16 %v4560_v31, %v4559_v41  ;;  %vm4368_vm1 = vweird.f32 %v5929_v22  ;;  %v4889_v9 = vmax.f32 %v4726_v50, 0.0 }
 0x6d8   :  { %v4363_v30 = vmul.f32 %v5929_v22, %v4362_v45  ;;  %v3987_v46 = vmul.f32 %v9267_v7, %v9267_v7  ;;  %v4944_v13 = vpack.c.bf16 %v4892_v11, %v4890_v6  ;;  %v4360_v49 = vsel %vm9272_vm8, %v5927_v58, %v4356_v20  ;;  %vm4369_vm10 = vmor %vm4367_vm2, %vm4368_vm1 }
 0x6d9   :  { %v4727_v3 = vpop.f32.mrf.mxu3  ;;  %5511 = vmatmul.msk.bf16.gmra.mxu3 %vm10100_vm9, %v4582_v25  ;;  %5527 = vmatmul.msk.bf16.gmra.mxu1 %vm10101_vm7, %v4582_v25  ;;  %v4491_v31 = vmul.f32 %v4360_v49, %v9075_v59 }
 0x6da   :  { %v4364_v12 = vmul.f32 0.5, %v4363_v30  ;;  %v4728_v15 = vadd.f32 %v4727_v3, %v9024_v38  ;;  %v4075_v4 = vsel %vm10102_vm12, %v3987_v46, 0.0  ;;  %v3888_v57 = vpop.xlane.xlu2 %3887  ;;  %5219 = vmatmul.bf16.gmra.mxu0 %v4944_v13  ;;  %v4109_v30 = vmul.f32 %v4059_v36, %v10013_v18  ;;  %vm10109_vm12 = vmmov %vm10108_vm0 }
 0x6db   :  { %4076 = vadd.xlane.f32.xlu0 %v4075_v4  ;;  %v3924_v24 = vmul.f32 %v3888_v57, %v10013_v18  ;;  %v4819_v27 = vpop.f32.mrf.mxu1  ;;  %v4526_v59 = vmul.f32 %v9160_v62, %v4491_v31 }
 0x6dc   :  { %v4365_v56 = vsub.f32 1.5, %v4364_v12  ;;  %v4891_v41 = vmax.f32 %v4728_v15, 0.0  ;;  %v4820_v51 = vadd.f32 %v4819_v27, %v9008_v8  ;;  %v4141_v12 = vadd.f32 1e-05, %v4109_v30 }
 0x6dd   :  { %v9285_v45 = vsub.f32 %v9126_v61, %v3924_v24  ;;  %v4561_v36 = vadd.f32 %v9175_v42, %v4526_v59  ;;  %v5205_v24 = vpop.f32.mrf.mxu0 }
 0x6de   :  { %v4366_v58 = vmul.f32 %v5929_v22, %v4365_v56  ;;  %v4943_v20 = vpack.c.bf16 %v4891_v41, %v4889_v9  ;;  %v4894_v4 = vmax.f32 %v4820_v51, 0.0  ;;  %5930 = vrsqrt.f32 %v4141_v12 }
 0x6df   :  { %v3988_v6 = vmul.f32 %v9285_v45, %v9285_v45  ;;  %vm4377_vm15 = vweird.f32 %v4141_v12 }
 0x6e0   :  { %v4370_v11 = vsel %vm4369_vm10, %v5929_v22, %v4366_v58  ;;  %5130 = vmatmul.bf16.gmra.mxu2 %v4943_v20  ;;  %vm10110_vm10 = vmmov %vm10108_vm0 }
 0x6e1   :  { %v4492_v25 = vmul.f32 %v4370_v11, %v9096_v54  ;;  %v4730_v50 = vpop.f32.mrf.mxu3  ;;  %v4078_v46 = vsel %vm10103_vm5, %v3988_v6, 0.0  ;;  %vm10111_vm5 = vmmov %vm10108_vm0 }
 0x6e2   :  { %4079 = vadd.xlane.f32.xlu1 %v4078_v46  ;;  %v3891_v1 = vpop.xlane.xlu2 %3890  ;;  %v4731_v41 = vadd.f32 %v4730_v50, %v9024_v38 }
 0x6e3   :  { %v3925_v13 = vmul.f32 %v3891_v1, %v10013_v18  ;;  %v4821_v3 = vpop.f32.mrf.mxu1  ;;  %v4527_v49 = vmul.f32 %v9160_v62, %v4492_v25 }
 0x6e4   :  { %v4822_v22 = vadd.f32 %v4821_v3, %v9008_v8  ;;  %v4893_v30 = vmax.f32 %v4731_v41, 0.0  ;;  %v5931_v51 = vpop.eup %5930 }
 0x6e5   :  { %v9298_v54 = vsub.f32 %v9130_v21, %v3925_v13  ;;  %v4562_v15 = vadd.f32 %v9175_v42, %v4527_v49  ;;  %v5207_v3 = vpop.f32.mrf.mxu0  ;;  %v4372_v49 = vmul.f32 %v5931_v51, %v4141_v12  ;;  %vm4378_vm14 = vweird.f32 %v5931_v51 }
 0x6e6   :  { %v4896_v57 = vmax.f32 %v4822_v22, 0.0  ;;  %vm4379_vm6 = vmor %vm4377_vm15, %vm4378_vm14 }
 0x6e7   :  { %v4583_v56 = vpack.c.bf16 %v4562_v15, %v4561_v36  ;;  %v3989_v9 = vmul.f32 %v9298_v54, %v9298_v54  ;;  %v4373_v15 = vmul.f32 %v5931_v51, %v4372_v49  ;;  %vm10113_vm14 = vmmov %vm10111_vm5 }
 0x6e8   :  { %v5116_v27 = vpop.f32.mrf.mxu2  ;;  %v4946_v31 = vpack.c.bf16 %v4896_v57, %v4894_v4  ;;  %vm10114_vm15 = vmmov %vm10111_vm5 }
 0x6e9   :  { %v5117_v58 = vadd.f32 %v9219_v55, %v5116_v27  ;;  %v4732_v20 = vpop.f32.mrf.mxu3  ;;  %5512 = vmatmul.msk.bf16.gmra.mxu3 %vm10104_vm3, %v4583_v56  ;;  %5528 = vmatmul.msk.bf16.gmra.mxu1 %vm10105_vm4, %v4583_v56  ;;  %v4081_v6 = vsel %vm10106_vm11, %v3989_v9, 0.0 }
 0x6ea   :  { %v4733_v25 = vadd.f32 %v4732_v20, %v9024_v38  ;;  %4082 = vadd.xlane.f32.xlu2 %v4081_v6  ;;  %5224 = vmatmul.bf16.gmra.mxu0 %v4946_v31 }
 0x6eb   :  { %v5206_v11 = vadd.f32 %v5205_v24, %v5117_v58  ;;  %v4374_v24 = vmul.f32 0.5, %v4373_v15 }
 0x6ec   :  { %v4895_v50 = vmax.f32 %v4733_v25, 0.0 }
 0x6ed   :  { %v5279_v46 = vadd.f32 %v5206_v11, %v8581_v35  ;;  %v4375_v27 = vsub.f32 1.5, %v4374_v24 }
 0x6ee   :  { %v4945_v59 = vpack.c.bf16 %v4895_v50, %v4893_v30 }
 0x6ef   :  { %5311 = vst.msk [vmem:[#allocation5 + $0x20] sm:$0xff] %vm10107_vm13, %v5279_v46  ;;  %v4376_v58 = vmul.f32 %v5931_v51, %v4375_v27  ;;  %vm10112_vm13 = vmmov %vm10108_vm0 }
 0x6f0   :  { %v5118_v1 = vpop.f32.mrf.mxu2  ;;  %5135 = vmatmul.bf16.gmra.mxu2 %v4945_v59 }
 0x6f1   :  { %v5119_v13 = vadd.f32 %v9219_v55, %v5118_v1  ;;  %v4380_v6 = vsel %vm4379_vm6, %v5931_v51, %v4376_v58  ;;  %vm10115_vm6 = vmmov %vm10111_vm5 }
 0x6f3   :  { %v5208_v22 = vadd.f32 %v5207_v3, %v5119_v13  ;;  %v4493_v3 = vmul.f32 %v4380_v6, %v9111_v2 }
 0x6f5   :  { %v5280_v36 = vadd.f32 %v5208_v22, %v8585_v10  ;;  %v4528_v2 = vmul.f32 %v9160_v62, %v4493_v3 }
 0x6f7   :  { %5312 = vst.msk [vmem:[#allocation5 + $0x28] sm:$0xff] %vm10108_vm0, %v5280_v36  ;;  %v4563_v6 = vadd.f32 %v9175_v42, %v4528_v2 }
 0x6fc   :  { %v4062_v4 = vpop.xlane.xlu0 %4061 }
 0x6fd   :  { %v4110_v35 = vmul.f32 %v4062_v4, %v10013_v18 }
 0x6ff   :  { %v4142_v57 = vadd.f32 1e-05, %v4110_v35 }
 0x701   :  { %5932 = vrsqrt.f32 %v4142_v57  ;;  %vm4387_vm9 = vweird.f32 %v4142_v57 }
 0x704   :  { %v4065_v56 = vpop.xlane.xlu0 %4064 }
 0x705   :  { %v4111_v9 = vmul.f32 %v4065_v56, %v10013_v18 }
 0x707   :  { %v5933_v41 = vpop.eup %5932  ;;  %v4143_v31 = vadd.f32 1e-05, %v4111_v9 }
 0x708   :  { %v4382_v20 = vmul.f32 %v5933_v41, %v4142_v57  ;;  %vm4388_vm8 = vweird.f32 %v5933_v41 }
 0x709   :  { %5934 = vrsqrt.f32 %v4143_v31  ;;  %vm4389_vm7 = vmor %vm4387_vm9, %vm4388_vm8  ;;  %vm4397_vm2 = vweird.f32 %v4143_v31 }
 0x70a   :  { %v4383_v10 = vmul.f32 %v5933_v41, %v4382_v20  ;;  %vm10116_vm8 = vmmov %vm10111_vm5 }
 0x70b   :  { %vm10117_vm9 = vmmov %vm10111_vm5 }
 0x70c   :  { %v4384_v11 = vmul.f32 0.5, %v4383_v10  ;;  %v3894_v25 = vpop.xlane.xlu0 %3893  ;;  %v4068_v30 = vpop.xlane.xlu1 %4067 }
 0x70d   :  { %v3926_v46 = vmul.f32 %v3894_v25, %v10013_v18  ;;  %v4824_v50 = vpop.f32.mrf.mxu1  ;;  %v4112_v1 = vmul.f32 %v4068_v30, %v10013_v18 }
 0x70e   :  { %v4385_v59 = vsub.f32 1.5, %v4384_v11  ;;  %v4825_v9 = vadd.f32 %v4824_v50, %v9008_v8  ;;  %v5210_v10 = vpop.f32.mrf.mxu0 }
 0x70f   :  { %v5935_v13 = vpop.eup %5934  ;;  %v9321_v49 = vsub.f32 %v9198_v29, %v3926_v46  ;;  %v4144_v51 = vadd.f32 1e-05, %v4112_v1 }
 0x710   :  { %v4386_v12 = vmul.f32 %v5933_v41, %v4385_v59  ;;  %v4392_v22 = vmul.f32 %v5935_v13, %v4143_v31  ;;  %v4898_v25 = vmax.f32 %v4825_v9, 0.0  ;;  %vm4398_vm1 = vweird.f32 %v5935_v13 }
 0x711   :  { %v3990_v36 = vmul.f32 %v9321_v49, %v9321_v49  ;;  %5936 = vrsqrt.f32 %v4144_v51  ;;  %vm4399_vm3 = vmor %vm4397_vm2, %vm4398_vm1  ;;  %vm4407_vm11 = vweird.f32 %v4144_v51 }
 0x712   :  { %v4390_v15 = vsel %vm4389_vm7, %v5933_v41, %v4386_v12  ;;  %v4393_v4 = vmul.f32 %v5935_v13, %v4392_v22 }
 0x713   :  { %v4494_v35 = vmul.f32 %v4390_v15, %v9147_v40  ;;  %v4735_v24 = vpop.f32.mrf.mxu3  ;;  %v4084_v27 = vsel %vm10109_vm12, %v3990_v36, 0.0 }
 0x714   :  { %v4394_v56 = vmul.f32 0.5, %v4393_v4  ;;  %4085 = vadd.xlane.f32.xlu0 %v4084_v27  ;;  %v4736_v50 = vadd.f32 %v4735_v24, %v9024_v38 }
 0x715   :  { %v4826_v57 = vpop.f32.mrf.mxu1  ;;  %v4529_v58 = vmul.f32 %v9160_v62, %v4494_v35 }
 0x716   :  { %v4395_v20 = vsub.f32 1.5, %v4394_v56  ;;  %v4827_v41 = vadd.f32 %v4826_v57, %v9008_v8  ;;  %v4897_v24 = vmax.f32 %v4736_v50, 0.0 }
 0x717   :  { %v4564_v40 = vadd.f32 %v9175_v42, %v4529_v58  ;;  %v5937_v11 = vpop.eup %5936 }
 0x718   :  { %v4900_v30 = vmax.f32 %v4827_v41, 0.0  ;;  %v4396_v46 = vmul.f32 %v5935_v13, %v4395_v20  ;;  %v4402_v59 = vmul.f32 %v5937_v11, %v4144_v51  ;;  %vm4408_vm4 = vweird.f32 %v5937_v11  ;;  %v5212_v20 = vpop.f32.mrf.mxu0 }
 0x719   :  { %v4584_v1 = vpack.c.bf16 %v4564_v40, %v4563_v6  ;;  %vm4409_vm0 = vmor %vm4407_vm11, %vm4408_vm4 }
 0x71a   :  { %v4948_v3 = vpack.c.bf16 %v4900_v30, %v4898_v25  ;;  %v5121_v12 = vpop.f32.mrf.mxu2  ;;  %v4403_v22 = vmul.f32 %v5937_v11, %v4402_v59  ;;  %v4400_v35 = vsel %vm4399_vm3, %v5935_v13, %v4396_v46 }
 0x71b   :  { %v5122_v36 = vadd.f32 %v9219_v55, %v5121_v12  ;;  %v4737_v15 = vpop.f32.mrf.mxu3  ;;  %5513 = vmatmul.msk.bf16.gmra.mxu3 %vm10110_vm10, %v4584_v1  ;;  %5529 = vmatmul.msk.bf16.gmra.mxu1 %vm10111_vm5, %v4584_v1  ;;  %v4495_v58 = vmul.f32 %v4400_v35, %v9170_v19 }
 0x71c   :  { %v4738_v4 = vadd.f32 %v4737_v15, %v9024_v38  ;;  %5229 = vmatmul.bf16.gmra.mxu0 %v4948_v3  ;;  %v4404_v27 = vmul.f32 0.5, %v4403_v22 }
 0x71d   :  { %v5211_v2 = vadd.f32 %v5210_v10, %v5122_v36  ;;  %v4829_v56 = vpop.f32.mrf.mxu1 }
 0x71e   :  { %v4899_v9 = vmax.f32 %v4738_v4, 0.0  ;;  %v4405_v57 = vsub.f32 1.5, %v4404_v27  ;;  %v4830_v46 = vadd.f32 %v4829_v56, %v9008_v8 }
 0x71f   :  { %v5281_v31 = vadd.f32 %v5211_v2, %v8593_v43  ;;  %v4530_v43 = vmul.f32 %v9160_v62, %v4495_v58 }
 0x720   :  { %v4947_v41 = vpack.c.bf16 %v4899_v9, %v4897_v24  ;;  %v4406_v6 = vmul.f32 %v5937_v11, %v4405_v57  ;;  %v4902_v3 = vmax.f32 %v4830_v46, 0.0 }
 0x721   :  { %5313 = vst.msk [vmem:[#allocation5 + $0x30] sm:$0xff] %vm10112_vm13, %v5281_v31  ;;  %vm10118_vm13 = vmmov %vm10115_vm6 }
 0x722   :  { %v5123_v40 = vpop.f32.mrf.mxu2  ;;  %5140 = vmatmul.bf16.gmra.mxu2 %v4947_v41  ;;  %v4410_v13 = vsel %vm4409_vm0, %v5937_v11, %v4406_v6  ;;  %v4565_v11 = vadd.f32 %v9175_v42, %v4530_v43  ;;  %vm10119_vm0 = vmmov %vm10115_vm6 }
 0x723   :  { %v5124_v10 = vadd.f32 %v9219_v55, %v5123_v40  ;;  %v4740_v25 = vpop.f32.mrf.mxu3  ;;  %v4496_v30 = vmul.f32 %v4410_v13, %v9203_v23  ;;  %v5215_v23 = vpop.f32.mrf.mxu0 }
 0x724   :  { %v4741_v36 = vadd.f32 %v4740_v25, %v9024_v38 }
 0x725   :  { %v5213_v19 = vadd.f32 %v5212_v20, %v5124_v10  ;;  %v4831_v59 = vpop.f32.mrf.mxu1  ;;  %v4531_v51 = vmul.f32 %v9160_v62, %v4496_v30  ;;  %v4071_v20 = vpop.xlane.xlu1 %4070 }
 0x726   :  { %v4832_v1 = vadd.f32 %v4831_v59, %v9008_v8  ;;  %v4901_v24 = vmax.f32 %v4741_v36, 0.0  ;;  %v4113_v13 = vmul.f32 %v4071_v20, %v10013_v18 }
 0x727   :  { %v5282_v50 = vadd.f32 %v5213_v19, %v8607_v48  ;;  %v4566_v22 = vadd.f32 %v9175_v42, %v4531_v51 }
 0x728   :  { %v4904_v12 = vmax.f32 %v4832_v1, 0.0  ;;  %v4145_v25 = vadd.f32 1e-05, %v4113_v13 }
 0x729   :  { %5314 = vst.msk [vmem:[#allocation5 + $0x38] sm:$0xff] %vm10113_vm14, %v5282_v50  ;;  %v4585_v35 = vpack.c.bf16 %v4566_v22, %v4565_v11 }
 0x72a   :  { %v4950_v15 = vpack.c.bf16 %v4904_v12, %v4902_v3  ;;  %v5126_v4 = vpop.f32.mrf.mxu2  ;;  %5938 = vrsqrt.f32 %v4145_v25  ;;  %vm4417_vm12 = vweird.f32 %v4145_v25 }
 0x72b   :  { %v5127_v27 = vadd.f32 %v9219_v55, %v5126_v4  ;;  %v4742_v2 = vpop.f32.mrf.mxu3  ;;  %5514 = vmatmul.msk.bf16.gmra.mxu3 %vm10114_vm15, %v4585_v35  ;;  %5530 = vmatmul.msk.bf16.gmra.mxu1 %vm10115_vm6, %v4585_v35  ;;  %v5217_v6 = vpop.f32.mrf.mxu0 }
 0x72c   :  { %v4743_v56 = vadd.f32 %v4742_v2, %v9024_v38  ;;  %5234 = vmatmul.bf16.gmra.mxu0 %v4950_v15 }
 0x72d   :  { %v5216_v48 = vadd.f32 %v5215_v23, %v5127_v27 }
 0x72e   :  { %v4903_v9 = vmax.f32 %v4743_v56, 0.0 }
 0x72f   :  { %v5283_v57 = vadd.f32 %v5216_v48, %v8621_v52 }
 0x730   :  { %v4949_v31 = vpack.c.bf16 %v4903_v9, %v4901_v24  ;;  %v5939_v30 = vpop.eup %5938 }
 0x731   :  { %5315 = vst.msk [vmem:[#allocation5 + $0x40] sm:$0xff] %vm10116_vm8, %v5283_v57  ;;  %v4412_v52 = vmul.f32 %v5939_v30, %v4145_v25  ;;  %vm4418_vm7 = vweird.f32 %v5939_v30  ;;  %vm10120_vm8 = vmmov %vm10119_vm0 }
 0x732   :  { %v5128_v58 = vpop.f32.mrf.mxu2  ;;  %5145 = vmatmul.bf16.gmra.mxu2 %v4949_v31  ;;  %vm4419_vm1 = vmor %vm4417_vm12, %vm4418_vm7 }
 0x733   :  { %v5129_v41 = vadd.f32 %v9219_v55, %v5128_v58  ;;  %v4413_v46 = vmul.f32 %v5939_v30, %v4412_v52  ;;  %vm10122_vm7 = vmmov %vm10119_vm0 }
 0x734   :  { %vm10123_vm12 = vmmov %vm10119_vm0 }
 0x735   :  { %v5218_v40 = vadd.f32 %v5217_v6, %v5129_v41  ;;  %v4414_v1 = vmul.f32 0.5, %v4413_v46 }
 0x737   :  { %v5284_v10 = vadd.f32 %v5218_v40, %v8632_v17  ;;  %v4415_v51 = vsub.f32 1.5, %v4414_v1 }
 0x739   :  { %5316 = vst.msk [vmem:[#allocation5 + $0x48] sm:$0xff] %vm10117_vm9, %v5284_v10  ;;  %v4416_v11 = vmul.f32 %v5939_v30, %v4415_v51  ;;  %vm10121_vm9 = vmmov %vm10119_vm0 }
 0x73b   :  { %v4420_v36 = vsel %vm4419_vm1, %v5939_v30, %v4416_v11  ;;  %vm10124_vm1 = vmmov %vm10119_vm0 }
 0x73c   :  { %v4497_v56 = vmul.f32 %v4420_v36, %v9224_v53 }
 0x73e   :  { %v4532_v6 = vmul.f32 %v9160_v62, %v4497_v56 }
 0x745   :  { %v4074_v43 = vpop.xlane.xlu2 %4073 }
 0x746   :  { %v4114_v19 = vmul.f32 %v4074_v43, %v10013_v18  ;;  %v4567_v43 = vadd.f32 %v9175_v42, %v4532_v6 }
 0x748   :  { %v4146_v59 = vadd.f32 1e-05, %v4114_v19 }
 0x74a   :  { %5940 = vrsqrt.f32 %v4146_v59  ;;  %vm4427_vm10 = vweird.f32 %v4146_v59 }
 0x74e   :  { %v4077_v50 = vpop.xlane.xlu0 %4076 }
 0x74f   :  { %v4115_v3 = vmul.f32 %v4077_v50, %v10013_v18 }
 0x750   :  { %v5941_v12 = vpop.eup %5940 }
 0x751   :  { %v4422_v17 = vmul.f32 %v5941_v12, %v4146_v59  ;;  %v4147_v22 = vadd.f32 1e-05, %v4115_v3  ;;  %vm4428_vm2 = vweird.f32 %v5941_v12 }
 0x752   :  { %vm4429_vm5 = vmor %vm4427_vm10, %vm4428_vm2 }
 0x753   :  { %v4423_v23 = vmul.f32 %v5941_v12, %v4422_v17  ;;  %5942 = vrsqrt.f32 %v4147_v22  ;;  %vm4437_vm4 = vweird.f32 %v4147_v22  ;;  %vm10125_vm2 = vmmov %vm10119_vm0 }
 0x755   :  { %v4424_v15 = vmul.f32 0.5, %v4423_v23  ;;  %v4080_v4 = vpop.xlane.xlu1 %4079 }
 0x756   :  { %v4116_v35 = vmul.f32 %v4080_v4, %v10013_v18  ;;  %v4834_v27 = vpop.f32.mrf.mxu1 }
 0x757   :  { %v4425_v2 = vsub.f32 1.5, %v4424_v15  ;;  %v4835_v40 = vadd.f32 %v4834_v27, %v9008_v8  ;;  %v5220_v25 = vpop.f32.mrf.mxu0 }
 0x758   :  { %v4148_v48 = vadd.f32 1e-05, %v4116_v35 }
 0x759   :  { %v5943_v24 = vpop.eup %5942  ;;  %v4426_v9 = vmul.f32 %v5941_v12, %v4425_v2  ;;  %v4906_v59 = vmax.f32 %v4835_v40, 0.0 }
 0x75a   :  { %v4432_v57 = vmul.f32 %v5943_v24, %v4147_v22  ;;  %5944 = vrsqrt.f32 %v4148_v48  ;;  %vm4438_vm3 = vweird.f32 %v5943_v24  ;;  %vm4447_vm15 = vweird.f32 %v4148_v48 }
 0x75b   :  { %v4430_v31 = vsel %vm4429_vm5, %v5941_v12, %v4426_v9  ;;  %vm4439_vm11 = vmor %vm4437_vm4, %vm4438_vm3 }
 0x75c   :  { %v4498_v58 = vmul.f32 %v4430_v31, %v9253_v63  ;;  %v4433_v20 = vmul.f32 %v5943_v24, %v4432_v57  ;;  %v4745_v41 = vpop.f32.mrf.mxu3 }
 0x75d   :  { %v4746_v12 = vadd.f32 %v4745_v41, %v9024_v38 }
 0x75e   :  { %v4434_v13 = vmul.f32 0.5, %v4433_v20  ;;  %v4836_v10 = vpop.f32.mrf.mxu1  ;;  %v4533_v53 = vmul.f32 %v9160_v62, %v4498_v58  ;;  %v4083_v20 = vpop.xlane.xlu2 %4082 }
 0x75f   :  { %v4837_v30 = vadd.f32 %v4836_v10, %v9008_v8  ;;  %v4905_v56 = vmax.f32 %v4746_v12, 0.0  ;;  %v5222_v41 = vpop.f32.mrf.mxu0  ;;  %v4117_v10 = vmul.f32 %v4083_v20, %v10013_v18 }
 0x760   :  { %v5945_v52 = vpop.eup %5944  ;;  %v4435_v46 = vsub.f32 1.5, %v4434_v13  ;;  %v4568_v19 = vadd.f32 %v9175_v42, %v4533_v53 }
 0x761   :  { %v4442_v63 = vmul.f32 %v5945_v52, %v4148_v48  ;;  %v4908_v1 = vmax.f32 %v4837_v30, 0.0  ;;  %vm4448_vm14 = vweird.f32 %v5945_v52 }
 0x762   :  { %v4436_v51 = vmul.f32 %v5943_v24, %v4435_v46  ;;  %v4586_v50 = vpack.c.bf16 %v4568_v19, %v4567_v43  ;;  %vm4449_vm6 = vmor %vm4447_vm15, %vm4448_vm14 }
 0x763   :  { %v4443_v3 = vmul.f32 %v5945_v52, %v4442_v63  ;;  %v4952_v11 = vpack.c.bf16 %v4908_v1, %v4906_v59  ;;  %v5131_v17 = vpop.f32.mrf.mxu2  ;;  %vm10126_vm14 = vmmov %vm10119_vm0 }
 0x764   :  { %v5132_v23 = vadd.f32 %v9219_v55, %v5131_v17  ;;  %v4747_v36 = vpop.f32.mrf.mxu3  ;;  %5515 = vmatmul.msk.bf16.gmra.mxu3 %vm10118_vm13, %v4586_v50  ;;  %5531 = vmatmul.msk.bf16.gmra.mxu1 %vm10119_vm0, %v4586_v50  ;;  %v4440_v15 = vsel %vm4439_vm11, %v5943_v24, %v4436_v51  ;;  %vm10127_vm15 = vmmov %vm10119_vm0 }
 0x765   :  { %v4444_v4 = vmul.f32 0.5, %v4443_v3  ;;  %v4748_v35 = vadd.f32 %v4747_v36, %v9024_v38  ;;  %5239 = vmatmul.bf16.gmra.mxu0 %v4952_v11  ;;  %v4499_v57 = vmul.f32 %v4440_v15, %v9267_v7 }
 0x766   :  { %v5221_v27 = vadd.f32 %v5220_v25, %v5132_v23  ;;  %v4839_v22 = vpop.f32.mrf.mxu1 }
 0x767   :  { %v4445_v2 = vsub.f32 1.5, %v4444_v4  ;;  %v4907_v9 = vmax.f32 %v4748_v35, 0.0  ;;  %v4840_v48 = vadd.f32 %v4839_v22, %v9008_v8  ;;  %v5225_v50 = vpop.f32.mrf.mxu0 }
 0x768   :  { %v5285_v31 = vadd.f32 %v5221_v27, %v8640_v5  ;;  %v4534_v5 = vmul.f32 %v9160_v62, %v4499_v57 }
 0x769   :  { %v4446_v58 = vmul.f32 %v5945_v52, %v4445_v2  ;;  %v4951_v6 = vpack.c.bf16 %v4907_v9, %v4905_v56  ;;  %v4910_v59 = vmax.f32 %v4840_v48, 0.0 }
 0x76a   :  { %5317 = vst.msk [vmem:[#allocation5 + $0x50] sm:$0xff] %vm10120_vm8, %v5285_v31  ;;  %vm10129_vm8 = vmmov %vm10119_vm0 }
 0x76b   :  { %v4450_v24 = vsel %vm4449_vm6, %v5945_v52, %v4446_v58  ;;  %v5133_v40 = vpop.f32.mrf.mxu2  ;;  %5150 = vmatmul.bf16.gmra.mxu2 %v4951_v6  ;;  %v4149_v52 = vadd.f32 1e-05, %v4117_v10  ;;  %vm10128_vm6 = vmmov %vm10119_vm0 }
 0x76c   :  { %v4500_v13 = vmul.f32 %v4450_v24, %v9285_v45  ;;  %v5134_v53 = vadd.f32 %v9219_v55, %v5133_v40  ;;  %v4750_v7 = vpop.f32.mrf.mxu3  ;;  %v4569_v45 = vadd.f32 %v9175_v42, %v4534_v5 }
 0x76d   :  { %v4751_v3 = vadd.f32 %v4750_v7, %v9024_v38  ;;  %5946 = vrsqrt.f32 %v4149_v52  ;;  %vm4457_vm5 = vweird.f32 %v4149_v52 }
 0x76e   :  { %v5223_v25 = vadd.f32 %v5222_v41, %v5134_v53  ;;  %v4841_v30 = vpop.f32.mrf.mxu1  ;;  %v4535_v46 = vmul.f32 %v9160_v62, %v4500_v13 }
 0x76f   :  { %v4842_v43 = vadd.f32 %v4841_v30, %v9008_v8  ;;  %v4909_v23 = vmax.f32 %v4751_v3, 0.0  ;;  %v5227_v56 = vpop.f32.mrf.mxu0 }
 0x770   :  { %v5286_v19 = vadd.f32 %v5223_v25, %v8658_v32  ;;  %v4570_v63 = vadd.f32 %v9175_v42, %v4535_v46 }
 0x771   :  { %v4912_v1 = vmax.f32 %v4842_v43, 0.0  ;;  %v5990_v43 = vld [vmem:[%s9502_s4] ss:$0 sm:$0xff] }
 0x772   :  { %5318 = vst.msk [vmem:[#allocation5 + $0x58] sm:$0xff] %vm10121_vm9, %v5286_v19  ;;  %v4587_v51 = vpack.c.bf16 %v4570_v63, %v4569_v45  ;;  %vm10130_vm9 = vmmov %vm10119_vm0 }
 0x773   :  { %v4954_v12 = vpack.c.bf16 %v4912_v1, %v4910_v59  ;;  %v5136_v11 = vpop.f32.mrf.mxu2  ;;  %v5947_v35 = vpop.eup %5946 }
 0x774   :  { %v5137_v62 = vadd.f32 %v9219_v55, %v5136_v11  ;;  %v4752_v17 = vpop.f32.mrf.mxu3  ;;  %5516 = vmatmul.msk.bf16.gmra.mxu3 %vm10122_vm7, %v4587_v51  ;;  %5532 = vmatmul.msk.bf16.gmra.mxu1 %vm10123_vm12, %v4587_v51  ;;  %v4452_v2 = vmul.f32 %v5947_v35, %v4149_v52  ;;  %vm4458_vm10 = vweird.f32 %v5947_v35  ;;  %vm10131_vm7 = vmmov %vm10119_vm0 }
 0x775   :  { %v4753_v32 = vadd.f32 %v4752_v17, %v9024_v38  ;;  %5244 = vmatmul.bf16.gmra.mxu0 %v4954_v12  ;;  %vm4459_vm3 = vmor %vm4457_vm5, %vm4458_vm10 }
 0x776   :  { %v5226_v42 = vadd.f32 %v5225_v50, %v5137_v62  ;;  %v4453_v31 = vmul.f32 %v5947_v35, %v4452_v2  ;;  %vm10132_vm12 = vmmov %vm10119_vm0 }
 0x777   :  { %v4911_v36 = vmax.f32 %v4753_v32, 0.0  ;;  %vm10138_vm10 = vmmov %vm10119_vm0 }
 0x778   :  { %v5287_v15 = vadd.f32 %v5226_v42, %v8669_v60  ;;  %v4454_v41 = vmul.f32 0.5, %v4453_v31  ;;  %vm10140_vm5 = vmmov %vm10119_vm0 }
 0x779   :  { %v4953_v4 = vpack.c.bf16 %v4911_v36, %v4909_v23 }
 0x77a   :  { %5319 = vst.msk [vmem:[#allocation5 + $0x60] sm:$0xff] %vm10124_vm1, %v5287_v15  ;;  %v4455_v6 = vsub.f32 1.5, %v4454_v41  ;;  %vm10134_vm1 = vmmov %vm10119_vm0 }
 0x77b   :  { %v5138_v27 = vpop.f32.mrf.mxu2  ;;  %5155 = vmatmul.bf16.gmra.mxu2 %v4953_v4 }
 0x77c   :  { %v5139_v22 = vadd.f32 %v9219_v55, %v5138_v27  ;;  %v4456_v40 = vmul.f32 %v5947_v35, %v4455_v6 }
 0x77e   :  { %v5228_v9 = vadd.f32 %v5227_v56, %v5139_v22  ;;  %v4460_v53 = vsel %vm4459_vm3, %v5947_v35, %v4456_v40  ;;  %vm10142_vm3 = vmmov %vm10119_vm0 }
 0x77f   :  { %v4501_v48 = vmul.f32 %v4460_v53, %v9298_v54  ;;  %v5991_v54 = vld [vmem:[%s9503_s5] ss:$0 sm:$0xff] }
 0x780   :  { %v5288_v57 = vadd.f32 %v5228_v9, %v8676_v37 }
 0x781   :  { %v4536_v52 = vmul.f32 %v5990_v43, %v4501_v48 }
 0x782   :  { %5320 = vst.msk [vmem:[#allocation5 + $0x68] sm:$0xff] %vm10125_vm2, %v5288_v57  ;;  %vm10136_vm2 = vmmov %vm10119_vm0 }
 0x783   :  { %v4571_v51 = vadd.f32 %v5991_v54, %v4536_v52 }
 0x787   :  { %v4086_v58 = vpop.xlane.xlu0 %4085 }
 0x788   :  { %v4118_v20 = vmul.f32 %v4086_v58, %v10013_v18 }
 0x78a   :  { %v4150_v60 = vadd.f32 1e-05, %v4118_v20 }
 0x78c   :  { %5948 = vrsqrt.f32 %v4150_v60  ;;  %vm4467_vm11 = vweird.f32 %v4150_v60 }
 0x792   :  { %v5949_v24 = vpop.eup %5948 }
 0x793   :  { %v4462_v13 = vmul.f32 %v5949_v24, %v4150_v60  ;;  %vm4468_vm4 = vweird.f32 %v5949_v24 }
 0x794   :  { %vm4469_vm13 = vmor %vm4467_vm11, %vm4468_vm4 }
 0x795   :  { %v4463_v10 = vmul.f32 %v5949_v24, %v4462_v13  ;;  %vm10143_vm4 = vmmov %vm10119_vm0 }
 0x796   :  { %vm10144_vm11 = vmmov %vm10119_vm0 }
 0x797   :  { %v4464_v7 = vmul.f32 0.5, %v4463_v10 }
 0x798   :  { %v4844_v37 = vpop.f32.mrf.mxu1 }
 0x799   :  { %v4465_v5 = vsub.f32 1.5, %v4464_v7  ;;  %v4845_v19 = vadd.f32 %v4844_v37, %v9008_v8  ;;  %v5230_v59 = vpop.f32.mrf.mxu0 }
 0x79b   :  { %v4466_v25 = vmul.f32 %v5949_v24, %v4465_v5 }
 0x79d   :  { %v4470_v18 = vsel %vm4469_vm13, %v5949_v24, %v4466_v25  ;;  %vm10145_vm13 = vmmov %vm10119_vm0 }
 0x79e   :  { %v4502_v30 = vmul.f32 %v4470_v18, %v9321_v49  ;;  %v4755_v46 = vpop.f32.mrf.mxu3  ;;  %v4914_v49 = vmax.f32 %v4845_v19, 0.0 }
 0x79f   :  { %v4756_v11 = vadd.f32 %v4755_v46, %v9024_v38 }
 0x7a0   :  { %v4846_v45 = vpop.f32.mrf.mxu1  ;;  %v4537_v63 = vmul.f32 %v5990_v43, %v4502_v30 }
 0x7a1   :  { %v4847_v1 = vadd.f32 %v4846_v45, %v9008_v8  ;;  %v4913_v15 = vmax.f32 %v4756_v11, 0.0  ;;  %v5232_v22 = vpop.f32.mrf.mxu0 }
 0x7a2   :  { %v4572_v50 = vadd.f32 %v5991_v54, %v4537_v63 }
 0x7a3   :  { %v4916_v3 = vmax.f32 %v4847_v1, 0.0 }
 0x7a4   :  { %v4588_v12 = vpack.c.bf16 %v4572_v50, %v4571_v51 }
 0x7a5   :  { %v4956_v62 = vpack.c.bf16 %v4916_v3, %v4914_v49  ;;  %v5141_v17 = vpop.f32.mrf.mxu2 }
 0x7a6   :  { %v5142_v32 = vadd.f32 %v9219_v55, %v5141_v17  ;;  %v4757_v42 = vpop.f32.mrf.mxu3  ;;  %5517 = vmatmul.msk.bf16.gmra.mxu3 %vm10119_vm0, %v4588_v12  ;;  %5533 = vmatmul.msk.bf16.gmra.mxu1 %vm10126_vm14, %v4588_v12  ;;  %v9423_v55 = vld [vmem:[%s9507_s9] ss:$0 sm:$0xff]  ;;  %vm10146_vm14 = vmmov %vm10119_vm0  ;;  %s6053_s9 = smov [#allocation5]  }
 0x7a7   :  { %v4758_v23 = vadd.f32 %v4757_v42, %v9024_v38  ;;  %5249 = vmatmul.bf16.gmra.mxu0 %v4956_v62  ;;  %s5343_s6 = sshll.u32 %s6053_s9, 4  ;;  %s5344_s6 = int_to_ptr.vmem [resolvable:$true] %s5343_s6 }
 0x7a8   :  { %v5231_v36 = vadd.f32 %v5230_v59, %v5142_v32  ;;  %v4849_v35 = vpop.f32.mrf.mxu1 }
 0x7a9   :  { %v4915_v4 = vmax.f32 %v4758_v23, 0.0  ;;  %v4850_v31 = vadd.f32 %v4849_v35, %v9008_v8  ;;  %v5235_v24 = vpop.f32.mrf.mxu0 }
 0x7aa   :  { %v5289_v27 = vadd.f32 %v5231_v36, %v8680_v28 }
 0x7ab   :  { %v4955_v2 = vpack.c.bf16 %v4915_v4, %v4913_v15  ;;  %v4918_v41 = vmax.f32 %v4850_v31, 0.0 }
 0x7ac   :  { %5321 = vst.msk [vmem:[#allocation5 + $0x70] sm:$0xff] %vm10127_vm15, %v5289_v27  ;;  %vm10147_vm15 = vmmov %vm10119_vm0 }
 0x7ad   :  { %v5143_v56 = vpop.f32.mrf.mxu2  ;;  %5160 = vmatmul.bf16.gmra.mxu2 %v4955_v2 }
 0x7ae   :  { %v5144_v9 = vadd.f32 %v9423_v55, %v5143_v56  ;;  %v4760_v57 = vpop.f32.mrf.mxu3 }
 0x7af   :  { %v4761_v13 = vadd.f32 %v4760_v57, %v9024_v38 }
 0x7b0   :  { %v5233_v58 = vadd.f32 %v5232_v22, %v5144_v9  ;;  %v4851_v20 = vpop.f32.mrf.mxu1 }
 0x7b1   :  { %v4852_v60 = vadd.f32 %v4851_v20, %v9008_v8  ;;  %v4917_v48 = vmax.f32 %v4761_v13, 0.0  ;;  %v5237_v43 = vpop.f32.mrf.mxu0 }
 0x7b2   :  { %v5290_v28 = vadd.f32 %v5233_v58, %v8785_v47 }
 0x7b3   :  { %v4920_v6 = vmax.f32 %v4852_v60, 0.0 }
 0x7b4   :  { %5322 = vst.msk [vmem:[#allocation5 + $0x78] sm:$0xff] %vm10128_vm6, %v5290_v28  ;;  %vm10148_vm6 = vmmov %vm10119_vm0 }
 0x7b5   :  { %v5146_v40 = vpop.f32.mrf.mxu2  ;;  %v4958_v10 = vpack.c.bf16 %v4920_v6, %v4918_v41 }
 0x7b6   :  { %v5147_v53 = vadd.f32 %v9423_v55, %v5146_v40  ;;  %v4762_v7 = vpop.f32.mrf.mxu3 }
 0x7b7   :  { %v4763_v5 = vadd.f32 %v4762_v7, %v9024_v38  ;;  %5254 = vmatmul.bf16.gmra.mxu0 %v4958_v10  ;;  %v10133_v7 = vld [vmem:[#allocation70_spill] sm:$0xff] }
 0x7b8   :  { %v5236_v37 = vadd.f32 %v5235_v24, %v5147_v53 }
 0x7b9   :  { %v4919_v25 = vmax.f32 %v4763_v5, 0.0 }
 0x7ba   :  { %v5291_v47 = vadd.f32 %v5236_v37, %v8808_v44 }
 0x7bb   :  { %v4957_v18 = vpack.c.bf16 %v4919_v25, %v4917_v48 }
 0x7bc   :  { %5323 = vst.msk [vmem:[#allocation5 + $0x80] sm:$0xff] %vm10129_vm8, %v5291_v47 }
 0x7bd   :  { %v5148_v30 = vpop.f32.mrf.mxu2  ;;  %5165 = vmatmul.bf16.gmra.mxu2 %v4957_v18  ;;  %v10135_v18 = vld [vmem:[#allocation32_spill] sm:$0xff] }
 0x7be   :  { %v5149_v46 = vadd.f32 %v9423_v55, %v5148_v30 }
 0x7c0   :  { %v5238_v52 = vadd.f32 %v5237_v43, %v5149_v46 }
 0x7c2   :  { %v5292_v19 = vadd.f32 %v5238_v52, %v8819_v39 }
 0x7c4   :  { %5324 = vst.msk [vmem:[#allocation5 + $0x88] sm:$0xff] %vm10130_vm9, %v5292_v19 }
 0x7e1   :  { %v4854_v45 = vpop.f32.mrf.mxu1 }
 0x7e2   :  { %v4855_v59 = vadd.f32 %v4854_v45, %v9008_v8  ;;  %v5240_v44 = vpop.f32.mrf.mxu0 }
 0x7e4   :  { %v4922_v51 = vmax.f32 %v4855_v59, 0.0 }
 0x7e7   :  { %v4765_v63 = vpop.f32.mrf.mxu3 }
 0x7e8   :  { %v4766_v49 = vadd.f32 %v4765_v63, %v9024_v38 }
 0x7e9   :  { %v4856_v1 = vpop.f32.mrf.mxu1 }
 0x7ea   :  { %v4857_v54 = vadd.f32 %v4856_v1, %v9008_v8  ;;  %v4921_v42 = vmax.f32 %v4766_v49, 0.0  ;;  %v5242_v15 = vpop.f32.mrf.mxu0 }
 0x7ec   :  { %v4924_v50 = vmax.f32 %v4857_v54, 0.0 }
 0x7ee   :  { %v4960_v3 = vpack.c.bf16 %v4924_v50, %v4922_v51  ;;  %v5151_v12 = vpop.f32.mrf.mxu2 }
 0x7ef   :  { %v5152_v11 = vadd.f32 %v9423_v55, %v5151_v12  ;;  %v4767_v62 = vpop.f32.mrf.mxu3 }
 0x7f0   :  { %v4768_v39 = vadd.f32 %v4767_v62, %v9024_v38  ;;  %5259 = vmatmul.bf16.gmra.mxu0 %v4960_v3 }
 0x7f1   :  { %v5241_v17 = vadd.f32 %v5240_v44, %v5152_v11  ;;  %v4859_v32 = vpop.f32.mrf.mxu1 }
 0x7f2   :  { %v4923_v23 = vmax.f32 %v4768_v39, 0.0  ;;  %v4860_v2 = vadd.f32 %v4859_v32, %v9008_v8  ;;  %v10137_v39 = vld [vmem:[#allocation31_spill] sm:$0xff] }
 0x7f3   :  { %v5293_v36 = vadd.f32 %v5241_v17, %v8828_v34  ;;  %v5245_v34 = vpop.f32.mrf.mxu0 }
 0x7f4   :  { %v4959_v4 = vpack.c.bf16 %v4923_v23, %v4921_v42  ;;  %v4926_v58 = vmax.f32 %v4860_v2, 0.0  ;;  %v10141_v2 = vld [vmem:[#allocation33_spill] sm:$0xff] }
 0x7f5   :  { %5325 = vst.msk [vmem:[#allocation5 + $0x90] sm:$0xff] %vm10131_vm7, %v5293_v36 }
 0x7f6   :  { %v5153_v35 = vpop.f32.mrf.mxu2  ;;  %5170 = vmatmul.bf16.gmra.mxu2 %v4959_v4 }
 0x7f7   :  { %v5154_v27 = vadd.f32 %v9423_v55, %v5153_v35  ;;  %v4770_v22 = vpop.f32.mrf.mxu3 }
 0x7f8   :  { %v4771_v28 = vadd.f32 %v4770_v22, %v9024_v38 }
 0x7f9   :  { %v5243_v56 = vadd.f32 %v5242_v15, %v5154_v27  ;;  %v4861_v9 = vpop.f32.mrf.mxu1  ;;  %v10139_v15 = vld [vmem:[#allocation36_spill] sm:$0xff] }
 0x7fa   :  { %v4862_v57 = vadd.f32 %v4861_v9, %v9008_v8  ;;  %v4925_v10 = vmax.f32 %v4771_v28, 0.0 }
 0x7fb   :  { %v5294_v31 = vadd.f32 %v5243_v56, %v8855_v14  ;;  %v5247_v47 = vpop.f32.mrf.mxu0 }
 0x7fc   :  { %v4928_v20 = vmax.f32 %v4862_v57, 0.0 }
 0x7fd   :  { %5326 = vst.msk [vmem:[#allocation5 + $0x98] sm:$0xff] %vm10132_vm12, %v5294_v31 }
 0x7fe   :  { %v4962_v60 = vpack.c.bf16 %v4928_v20, %v4926_v58  ;;  %v5156_v41 = vpop.f32.mrf.mxu2 }
 0x7ff   :  { %v5157_v6 = vadd.f32 %v9423_v55, %v5156_v41  ;;  %v4772_v24 = vpop.f32.mrf.mxu3 }
 0x800   :  { %v4773_v40 = vadd.f32 %v4772_v24, %v9024_v38  ;;  %5264 = vmatmul.bf16.gmra.mxu0 %v4962_v60 }
 0x801   :  { %v5246_v13 = vadd.f32 %v5245_v34, %v5157_v6 }
 0x802   :  { %v4927_v53 = vmax.f32 %v4773_v40, 0.0 }
 0x803   :  { %v5295_v14 = vadd.f32 %v5246_v13, %v10133_v7 }
 0x804   :  { %v4961_v37 = vpack.c.bf16 %v4927_v53, %v4925_v10 }
 0x805   :  { %5327 = vst.msk [vmem:[#allocation5 + $0xa0] sm:$0xff] %vm10134_vm1, %v5295_v14 }
 0x806   :  { %v5158_v5 = vpop.f32.mrf.mxu2  ;;  %5175 = vmatmul.bf16.gmra.mxu2 %v4961_v37 }
 0x807   :  { %v5159_v48 = vadd.f32 %v9423_v55, %v5158_v5 }
 0x809   :  { %v5248_v25 = vadd.f32 %v5247_v47, %v5159_v48 }
 0x80b   :  { %v5296_v30 = vadd.f32 %v5248_v25, %v10135_v18 }
 0x80d   :  { %5328 = vst.msk [vmem:[#allocation5 + $0xa8] sm:$0xff] %vm10136_vm2, %v5296_v30 }
 0x823   :  { %v4864_v46 = vpop.f32.mrf.mxu1 }
 0x824   :  { %v4865_v52 = vadd.f32 %v4864_v46, %v9008_v8  ;;  %v5250_v63 = vpop.f32.mrf.mxu0 }
 0x826   :  { %v4930_v59 = vmax.f32 %v4865_v52, 0.0 }
 0x829   :  { %v4775_v43 = vpop.f32.mrf.mxu3 }
 0x82a   :  { %v4776_v44 = vadd.f32 %v4775_v43, %v9024_v38 }
 0x82b   :  { %v4866_v19 = vpop.f32.mrf.mxu1 }
 0x82c   :  { %v4867_v45 = vadd.f32 %v4866_v19, %v9008_v8  ;;  %v4929_v11 = vmax.f32 %v4776_v44, 0.0  ;;  %v5252_v8 = vpop.f32.mrf.mxu0 }
 0x82e   :  { %v4932_v1 = vmax.f32 %v4867_v45, 0.0 }
 0x830   :  { %v4964_v54 = vpack.c.bf16 %v4932_v1, %v4930_v59  ;;  %v5161_v51 = vpop.f32.mrf.mxu2 }
 0x831   :  { %v5162_v50 = vadd.f32 %v9423_v55, %v5161_v51  ;;  %v4777_v49 = vpop.f32.mrf.mxu3 }
 0x832   :  { %v4778_v3 = vadd.f32 %v4777_v49, %v9024_v38  ;;  %5269 = vmatmul.bf16.gmra.mxu0 %v4964_v54 }
 0x833   :  { %v5251_v12 = vadd.f32 %v5250_v63, %v5162_v50 }
 0x834   :  { %v4931_v62 = vmax.f32 %v4778_v3, 0.0  ;;  %v5255_v38 = vpop.f32.mrf.mxu0 }
 0x835   :  { %v5297_v17 = vadd.f32 %v5251_v12, %v10137_v39 }
 0x836   :  { %v4963_v32 = vpack.c.bf16 %v4931_v62, %v4929_v11 }
 0x837   :  { %5329 = vst.msk [vmem:[#allocation5 + $0xb0] sm:$0xff] %vm10138_vm10, %v5297_v17 }
 0x838   :  { %v5163_v42 = vpop.f32.mrf.mxu2  ;;  %5180 = vmatmul.bf16.gmra.mxu2 %v4963_v32 }
 0x839   :  { %v5164_v23 = vadd.f32 %v9423_v55, %v5163_v42 }
 0x83b   :  { %v5253_v36 = vadd.f32 %v5252_v8, %v5164_v23 }
 0x83c   :  { %v5257_v31 = vpop.f32.mrf.mxu0 }
 0x83d   :  { %v5298_v4 = vadd.f32 %v5253_v36, %v10139_v15 }
 0x83f   :  { %5330 = vst.msk [vmem:[#allocation5 + $0xb8] sm:$0xff] %vm10140_vm5, %v5298_v4 }
 0x840   :  { %v5166_v35 = vpop.f32.mrf.mxu2 }
 0x841   :  { %v5167_v27 = vadd.f32 %v9423_v55, %v5166_v35 }
 0x843   :  { %v5256_v22 = vadd.f32 %v5255_v38, %v5167_v27 }
 0x845   :  { %v5299_v56 = vadd.f32 %v5256_v22, %v10141_v2 }
 0x847   :  { %5331 = vst.msk [vmem:[#allocation5 + $0xc0] sm:$0xff] %vm10142_vm3, %v5299_v56 }
 0x848   :  { %v5168_v9 = vpop.f32.mrf.mxu2 }
 0x849   :  { %v5169_v57 = vadd.f32 %v9423_v55, %v5168_v9 }
 0x84b   :  { %v5258_v58 = vadd.f32 %v5257_v31, %v5169_v57 }
 0x84d   :  { %v5300_v20 = vadd.f32 %v5258_v58, %v9044_v0 }
 0x84f   :  { %5332 = vst.msk [vmem:[#allocation5 + $0xc8] sm:$0xff] %vm10143_vm4, %v5300_v20 }
 0x86d   :  { %v5260_v34 = vpop.f32.mrf.mxu0 }
 0x875   :  { %v5262_v24 = vpop.f32.mrf.mxu0 }
 0x879   :  { %v5171_v28 = vpop.f32.mrf.mxu2 }
 0x87a   :  { %v5172_v60 = vadd.f32 %v9423_v55, %v5171_v28 }
 0x87c   :  { %v5261_v41 = vadd.f32 %v5260_v34, %v5172_v60 }
 0x87d   :  { %v5265_v0 = vpop.f32.mrf.mxu0 }
 0x87e   :  { %v5301_v6 = vadd.f32 %v5261_v41, %v9053_v16 }
 0x880   :  { %5333 = vst.msk [vmem:[#allocation5 + $0xd0] sm:$0xff] %vm10144_vm11, %v5301_v6 }
 0x881   :  { %v5173_v40 = vpop.f32.mrf.mxu2 }
 0x882   :  { %v5174_v13 = vadd.f32 %v9423_v55, %v5173_v40 }
 0x884   :  { %v5263_v10 = vadd.f32 %v5262_v24, %v5174_v13 }
 0x885   :  { %v5267_v47 = vpop.f32.mrf.mxu0 }
 0x886   :  { %v5302_v53 = vadd.f32 %v5263_v10, %v9092_v33 }
 0x888   :  { %5334 = vst.msk [vmem:[#allocation5 + $0xd8] sm:$0xff] %vm10145_vm13, %v5302_v53 }
 0x889   :  { %v5176_v7 = vpop.f32.mrf.mxu2 }
 0x88a   :  { %v5177_v14 = vadd.f32 %v9423_v55, %v5176_v7 }
 0x88c   :  { %v5266_v37 = vadd.f32 %v5265_v0, %v5177_v14 }
 0x88e   :  { %v5303_v5 = vadd.f32 %v5266_v37, %v9115_v26 }
 0x890   :  { %5335 = vst.msk [vmem:[#allocation5 + $0xe0] sm:$0xff] %vm10119_vm0, %v5303_v5 }
 0x891   :  { %v5178_v16 = vpop.f32.mrf.mxu2 }
 0x892   :  { %v5179_v48 = vadd.f32 %v9423_v55, %v5178_v16 }
 0x894   :  { %v5268_v25 = vadd.f32 %v5267_v47, %v5179_v48 }
 0x896   :  { %v5304_v18 = vadd.f32 %v5268_v25, %v9126_v61 }
 0x898   :  { %5336 = vst.msk [vmem:[#allocation5 + $0xe8] sm:$0xff] %vm10146_vm14, %v5304_v18 }
 0x8af   :  { %v5270_v33 = vpop.f32.mrf.mxu0 }
 0x8b7   :  { %v5272_v45 = vpop.f32.mrf.mxu0 }
 0x8bb   :  { %v5181_v30 = vpop.f32.mrf.mxu2 }
 0x8bc   :  { %v5182_v46 = vadd.f32 %v9423_v55, %v5181_v30 }
 0x8be   :  { %v5271_v43 = vadd.f32 %v5270_v33, %v5182_v46 }
 0x8c0   :  { %v5305_v52 = vadd.f32 %v5271_v43, %v9130_v21 }
 0x8c2   :  { %5337 = vst.msk [vmem:[#allocation5 + $0xf0] sm:$0xff] %vm10147_vm15, %v5305_v52 }
 0x8c3   :  { %v5183_v26 = vpop.f32.mrf.mxu2 }
 0x8c4   :  { %v5184_v19 = vadd.f32 %v9423_v55, %v5183_v26 }
 0x8c6   :  { %v5273_v61 = vadd.f32 %v5272_v45, %v5184_v19 }
 0x8c8   :  { %v5306_v63 = vadd.f32 %v5273_v61, %v9198_v29 }
 0x8ca   :  { %5338 = vst.msk [vmem:[#allocation5 + $0xf8] sm:$0xff] %vm10148_vm6, %v5306_v63 }
 0x8cb   :  { %5351 = dma.vmem_to_hbm [thread:$0]  %s5344_s6, 4096, %s5346_s15, [#allocation4], %s6046_s18, %s6046_s18, %s6047_s19  }
 0x8cc   :  { %6043 = dma.done.wait [#allocation4], 4096  }
 0x8cd   :  { %6044 = vsyncadd [#allocation4], 4294963200 }
 0x8ce   :  { %5356 = vsyncpa [#allocation3], 1 }
 0x8cf   :  { %5357 = vsyncpa [#allocation4], 1 }

</bundles_post_ra>
